<compile_context>
chip_gen: v6e
topology: v6e:2x2x1
jax: 0.10.0
libtpu: 0.0.40
codegen_flags: <defaults>
</compile_context>

<pallas_src>
import functools

import jax
import jax.numpy as jnp
from jax import lax
from jax.experimental import pallas as pl
from jax.experimental.pallas import tpu as pltpu

KSIZE = 7
PAD = (KSIZE - 1) // 2
TAPS = KSIZE * KSIZE


def _sigmoid(z):
    # sigmoid(z) = 0.5*(1 + tanh(z/2)): one EUP transcendental, numerically
    # stable for all z (no exp overflow), accurate to f32 rounding.
    return 0.5 * (jnp.tanh(0.5 * z) + 1.0)


def _pad_map(p, d0, d1):
    """Zero-pad a (bt, d0, d1) f32 map to (bt, d0+2P, d1+2P) in registers."""
    bt = p.shape[0]
    zc = jnp.zeros((bt, d0, PAD), jnp.float32)
    p = jnp.concatenate([zc, p, zc], axis=2)
    zr = jnp.zeros((bt, PAD, d1 + 2 * PAD), jnp.float32)
    return jnp.concatenate([zr, p, zr], axis=1)


def _conv7x7(pmax, pmean, w_ref, w_off, d0, d1, swap_w):
    """7x7 'same' conv of the 2-channel pooled map (max, mean) -> (bt, d0, d1).

    swap_w=True evaluates the conv on a transposed map with transposed kernel
    indexing, so the W-branch needs no data transpose.
    """
    bt = pmax.shape[0]
    px = _pad_map(pmax, d0, d1)
    pm = _pad_map(pmean, d0, d1)
    # 4 independent accumulators (dh parity x {max, mean} channel) break the
    # previous ~196-op serial VALU dependence chain into 4 short chains.
    acc = [jnp.zeros((bt, d0, d1), jnp.float32) for _ in range(4)]
    for dh in range(KSIZE):
        bx = px[:, dh:dh + d0, :]          # value slices of vreg-resident data
        bm = pm[:, dh:dh + d0, :]
        k = dh & 1
        for dw in range(KSIZE):
            wi = (dw * KSIZE + dh) if swap_w else (dh * KSIZE + dw)
            acc[k] = acc[k] + w_ref[w_off + wi] * bx[:, :, dw:dw + d1]
            acc[2 + k] = acc[2 + k] + w_ref[w_off + TAPS + wi] * bm[:, :, dw:dw + d1]
    return (acc[0] + acc[1]) + (acc[2] + acc[3])


def _triplet_kernel(x_ref, w_ref, bn_ref, o_ref, *, C, H, W):
    x = x_ref[...]                          # (bt, C, H*W) native dtype, folded
    inv_h, inv_w, inv_c = 1.0 / H, 1.0 / W, 1.0 / C

    # --- ChannelPool of all three branches in ONE slab traversal -----------
    b1x = None                              # branch 1: max/sum over H
    b1s = None
    rows2x, rows2s = [], []                 # branch 2: per-h reduce over W
    rows3x, rows3s = [], []                 # branch 3: per-h reduce over C
    for h in range(H):
        ch = x[:, :, h * W:(h + 1) * W].astype(jnp.float32)   # (bt, C, W)
        b1x = ch if b1x is None else jnp.maximum(b1x, ch)
        b1s = ch if b1s is None else b1s + ch
        rows2x.append(jnp.max(ch, axis=2))                    # (bt, C)
        rows2s.append(jnp.sum(ch, axis=2))
        rows3x.append(jnp.max(ch, axis=1))                    # (bt, W)
        rows3s.append(jnp.sum(ch, axis=1))
    p1x, p1m = b1x, b1s * inv_h                               # (bt, C, W)
    p2x = jnp.stack(rows2x, axis=2)                           # (bt, C, H)
    p2m = jnp.stack(rows2s, axis=2) * inv_w
    p3x = jnp.stack(rows3x, axis=1)                           # (bt, H, W)
    p3m = jnp.stack(rows3s, axis=1) * inv_c

    # --- 7x7 same-conv per branch (weights flattened: [max(49), mean(49)]) --
    a1 = _conv7x7(p1x, p1m, w_ref, 0 * 2 * TAPS, C, W, swap_w=False)
    a2 = _conv7x7(p2x, p2m, w_ref, 1 * 2 * TAPS, C, H, swap_w=True)
    a3 = _conv7x7(p3x, p3m, w_ref, 2 * 2 * TAPS, H, W, swap_w=False)

    # Folded eval-mode BatchNorm, then sigmoid.
    g1 = _sigmoid(a1 * bn_ref[0] + bn_ref[1])   # (bt, C, W)  gate(c, w)
    g2 = _sigmoid(a2 * bn_ref[2] + bn_ref[3])   # (bt, C, H)  gate(c, h)
    g3 = _sigmoid(a3 * bn_ref[4] + bn_ref[5])   # (bt, H, W)  gate(h, w)

    # --- Build the summed gate directly in the folded (bt, C, H*W) layout ---
    rows = []
    for h in range(H):
        rows.append((g1 + g2[:, :, h:h + 1] + g3[:, h:h + 1, :]) * (1.0 / 3.0))
    gate = jnp.concatenate(rows, axis=2)        # (bt, C, H*W) f32

    # Single lane-dense slab multiply (f32) + unmasked store in output dtype.
    o_ref[...] = (x.astype(jnp.float32) * gate).astype(o_ref.dtype)


def triplet_attention(x, wh, bnh, ww, bnw, ws, bns, *, bt=None):
    """Fused TripletAttention forward (no_spatial=False). x: (B, C, H, W)."""
    B, C, H, W = x.shape
    HW = H * W
    x_f = x.reshape(B, C, HW)               # free view: HBM is contiguous

    # Flatten conv weights / folded BN params into 1-D SMEM arrays.
    w_all = jnp.concatenate(
        [wh.reshape(-1), ww.reshape(-1), ws.reshape(-1)]).astype(jnp.float32)
    bn_all = jnp.concatenate([bnh, bnw, bns]).astype(jnp.float32)

    # Generation-aware VMEM capacity (128 MiB on v5e/v6e, 64 MiB/TC on v7x).
    try:
        vmem_cap = int(pltpu.get_tpu_info().vmem_capacity_bytes)
    except Exception:
        vmem_cap = 64 * 2 ** 20              # conservative (v7x per-core)

    itemsize = x.dtype.itemsize

    def footprint(bt_):
        blk = bt_ * C * HW * itemsize                 # one (bt, C, HW) block
        f32_tmp = 2 * bt_ * C * HW * 4                # folded f32 gate + temps
        return 4 * blk + f32_tmp + (1 << 20)          # 2x dbl-buffered blocks

    budget = vmem_cap // 3                            # leave compiler headroom
    if bt is None:
        # >=4 grid steps when possible so each v7x core gets >=2 (pipelining);
        # otherwise just keep >=2 steps; largest bt that fits the VMEM budget.
        min_steps = 4 if B >= 4 else (2 if B >= 2 else 1)
        bt = 1
        for cand in range(1, B + 1):
            if B % cand == 0 and B // cand >= min_steps and footprint(cand) <= budget:
                bt = cand
    assert B % bt == 0, "batch tile must divide B"

    vmem_limit = int(min(max(footprint(bt), 16 * 2 ** 20), vmem_cap // 2))

    kernel = functools.partial(_triplet_kernel, C=C, H=H, W=W)

    out = pl.pallas_call(
        kernel,
        out_shape=jax.ShapeDtypeStruct((B, C, HW), x.dtype),
        grid_spec=pltpu.PrefetchScalarGridSpec(
            num_scalar_prefetch=0,
            grid=(B // bt,),
            in_specs=[
                pl.BlockSpec((bt, C, HW), lambda b: (b, 0, 0)),
                pl.BlockSpec(memory_space=pltpu.MemorySpace.SMEM),
                pl.BlockSpec(memory_space=pltpu.MemorySpace.SMEM),
            ],
            out_specs=pl.BlockSpec((bt, C, HW), lambda b: (b, 0, 0)),
        ),
        compiler_params=pltpu.CompilerParams(
            dimension_semantics=("parallel",),
            vmem_limit_bytes=vmem_limit),
    )(x_f, w_all, bn_all)
    return out.reshape(B, C, H, W)


# ---------------- pure-JAX reference (for correctness check) ----------------
def _spatial_gate_ref(x, w, bn):
    pooled = jnp.stack([jnp.max(x, axis=1), jnp.mean(x, axis=1)], axis=1)
    conv = lax.conv_general_dilated(
        pooled, w[None].astype(jnp.float32),
        window_strides=(1, 1), padding=((PAD, PAD), (PAD, PAD)),
        dimension_numbers=("NCHW", "OIHW", "NCHW"))
    gate = jax.nn.sigmoid(conv * bn[0] + bn[1])
    return x * gate


def _triplet_ref(x, wh, bnh, ww, bnw, ws, bns):
    xp1 = jnp.transpose(x, (0, 2, 1, 3))
    o1 = jnp.transpose(_spatial_gate_ref(xp1, wh, bnh), (0, 2, 1, 3))
    xp2 = jnp.transpose(x, (0, 3, 2, 1))
    o2 = jnp.transpose(_spatial_gate_ref(xp2, ww, bnw), (0, 3, 2, 1))
    o3 = _spatial_gate_ref(x, ws, bns)
    return (1.0 / 3.0) * (o3 + o1 + o2)


# ---------------------------------------------------------------------------
if __name__ == "__main__":
    key = jax.random.PRNGKey(0)
    kx, k1, k2, k3 = jax.random.split(key, 4)

    B, C, H, W = 2, 4, 16, 16
    x = jax.random.normal(kx, (B, C, H, W), dtype=jnp.float32)

    def make_gate_params(k):
        # Conv2d(2, 1, 7, bias=False) weight, stored as (2, 7, 7) f32.
        w = (jax.random.normal(k, (2, KSIZE, KSIZE), dtype=jnp.float32)
             * (1.0 / jnp.sqrt(2.0 * KSIZE * KSIZE)))
        # BatchNorm2d(1) eval: gamma=1, beta=0, running_mean=0, running_var=1.
        gamma, beta, rmean, rvar, eps = 1.0, 0.0, 0.0, 1.0, 1e-5
        scale = gamma / jnp.sqrt(rvar + eps)
        shift = beta - rmean * scale
        bn = jnp.array([scale, shift], dtype=jnp.float32)
        return w, bn

    wh, bnh = make_gate_params(k1)   # ChannelGateH
    ww, bnw = make_gate_params(k2)   # ChannelGateW
    ws, bns = make_gate_params(k3)   # SpatialGate

    out = triplet_attention(x, wh, bnh, ww, bnw, ws, bns)
    out = jax.block_until_ready(out)

    ref = _triplet_ref(x, wh, bnh, ww, bnw, ws, bns)
    assert out.shape == (B, C, H, W)
    assert jnp.allclose(out, ref, rtol=1e-4, atol=1e-4), "mismatch vs reference"

    print("KERNEL_OK")
</pallas_src>

<mosaic_0001>
module attributes {stable_mosaic.version = 11 : i64} {
  func.func @_triplet_kernel(%arg0: i32, %arg1: memref<1x4x256xf32, #tpu.memory_space<vmem>>, %arg2: memref<294xf32, #tpu.memory_space<smem>>, %arg3: memref<6xf32, #tpu.memory_space<smem>>, %arg4: memref<1x4x256xf32, #tpu.memory_space<vmem>>) attributes {dimension_semantics = [#tpu.dimension_semantics<parallel>], iteration_bounds = array<i64: 2>, scalar_prefetch = 0 : i64, scratch_operands = 0 : i64, tpu.core_type = #tpu.core_type<tc>, window_params = [{transform_indices = @transform_0, window_bounds = array<i64: 1, 4, 256>}, {transform_indices = @transform_1, window_bounds = array<i64: 294>}, {transform_indices = @transform_2, window_bounds = array<i64: 6>}, {transform_indices = @transform_3, window_bounds = array<i64: 1, 4, 256>}]} {
    %c0 = arith.constant 0 : index
    %c0_0 = arith.constant 0 : index
    %c0_1 = arith.constant 0 : index
    %0 = vector.load %arg1[%c0, %c0_0, %c0_1] : memref<1x4x256xf32, #tpu.memory_space<vmem>>, vector<1x4x256xf32>
    %1 = vector.extract_strided_slice %0 {offsets = [0, 0, 0], sizes = [1, 4, 16], strides = [1, 1, 1]} : vector<1x4x256xf32> to vector<1x4x16xf32>
    %cst = arith.constant dense<0xFF800000> : vector<1x4xf32>
    %2 = vector.multi_reduction <maximumf>, %1, %cst [2] : vector<1x4x16xf32> to vector<1x4xf32>
    %cst_2 = arith.constant dense<0.000000e+00> : vector<1x4xf32>
    %3 = vector.multi_reduction <add>, %1, %cst_2 [2] : vector<1x4x16xf32> to vector<1x4xf32>
    %cst_3 = arith.constant dense<0xFF800000> : vector<1x16xf32>
    %4 = vector.multi_reduction <maximumf>, %1, %cst_3 [1] : vector<1x4x16xf32> to vector<1x16xf32>
    %cst_4 = arith.constant dense<0.000000e+00> : vector<1x16xf32>
    %5 = vector.multi_reduction <add>, %1, %cst_4 [1] : vector<1x4x16xf32> to vector<1x16xf32>
    %6 = vector.extract_strided_slice %0 {offsets = [0, 0, 16], sizes = [1, 4, 16], strides = [1, 1, 1]} : vector<1x4x256xf32> to vector<1x4x16xf32>
    %7 = arith.maximumf %1, %6 : vector<1x4x16xf32>
    %8 = arith.addf %1, %6 : vector<1x4x16xf32>
    %cst_5 = arith.constant dense<0xFF800000> : vector<1x4xf32>
    %9 = vector.multi_reduction <maximumf>, %6, %cst_5 [2] : vector<1x4x16xf32> to vector<1x4xf32>
    %cst_6 = arith.constant dense<0.000000e+00> : vector<1x4xf32>
    %10 = vector.multi_reduction <add>, %6, %cst_6 [2] : vector<1x4x16xf32> to vector<1x4xf32>
    %cst_7 = arith.constant dense<0xFF800000> : vector<1x16xf32>
    %11 = vector.multi_reduction <maximumf>, %6, %cst_7 [1] : vector<1x4x16xf32> to vector<1x16xf32>
    %cst_8 = arith.constant dense<0.000000e+00> : vector<1x16xf32>
    %12 = vector.multi_reduction <add>, %6, %cst_8 [1] : vector<1x4x16xf32> to vector<1x16xf32>
    %13 = vector.extract_strided_slice %0 {offsets = [0, 0, 32], sizes = [1, 4, 16], strides = [1, 1, 1]} : vector<1x4x256xf32> to vector<1x4x16xf32>
    %14 = arith.maximumf %7, %13 : vector<1x4x16xf32>
    %15 = arith.addf %8, %13 : vector<1x4x16xf32>
    %cst_9 = arith.constant dense<0xFF800000> : vector<1x4xf32>
    %16 = vector.multi_reduction <maximumf>, %13, %cst_9 [2] : vector<1x4x16xf32> to vector<1x4xf32>
    %cst_10 = arith.constant dense<0.000000e+00> : vector<1x4xf32>
    %17 = vector.multi_reduction <add>, %13, %cst_10 [2] : vector<1x4x16xf32> to vector<1x4xf32>
    %cst_11 = arith.constant dense<0xFF800000> : vector<1x16xf32>
    %18 = vector.multi_reduction <maximumf>, %13, %cst_11 [1] : vector<1x4x16xf32> to vector<1x16xf32>
    %cst_12 = arith.constant dense<0.000000e+00> : vector<1x16xf32>
    %19 = vector.multi_reduction <add>, %13, %cst_12 [1] : vector<1x4x16xf32> to vector<1x16xf32>
    %20 = vector.extract_strided_slice %0 {offsets = [0, 0, 48], sizes = [1, 4, 16], strides = [1, 1, 1]} : vector<1x4x256xf32> to vector<1x4x16xf32>
    %21 = arith.maximumf %14, %20 : vector<1x4x16xf32>
    %22 = arith.addf %15, %20 : vector<1x4x16xf32>
    %cst_13 = arith.constant dense<0xFF800000> : vector<1x4xf32>
    %23 = vector.multi_reduction <maximumf>, %20, %cst_13 [2] : vector<1x4x16xf32> to vector<1x4xf32>
    %cst_14 = arith.constant dense<0.000000e+00> : vector<1x4xf32>
    %24 = vector.multi_reduction <add>, %20, %cst_14 [2] : vector<1x4x16xf32> to vector<1x4xf32>
    %cst_15 = arith.constant dense<0xFF800000> : vector<1x16xf32>
    %25 = vector.multi_reduction <maximumf>, %20, %cst_15 [1] : vector<1x4x16xf32> to vector<1x16xf32>
    %cst_16 = arith.constant dense<0.000000e+00> : vector<1x16xf32>
    %26 = vector.multi_reduction <add>, %20, %cst_16 [1] : vector<1x4x16xf32> to vector<1x16xf32>
    %27 = vector.extract_strided_slice %0 {offsets = [0, 0, 64], sizes = [1, 4, 16], strides = [1, 1, 1]} : vector<1x4x256xf32> to vector<1x4x16xf32>
    %28 = arith.maximumf %21, %27 : vector<1x4x16xf32>
    %29 = arith.addf %22, %27 : vector<1x4x16xf32>
    %cst_17 = arith.constant dense<0xFF800000> : vector<1x4xf32>
    %30 = vector.multi_reduction <maximumf>, %27, %cst_17 [2] : vector<1x4x16xf32> to vector<1x4xf32>
    %cst_18 = arith.constant dense<0.000000e+00> : vector<1x4xf32>
    %31 = vector.multi_reduction <add>, %27, %cst_18 [2] : vector<1x4x16xf32> to vector<1x4xf32>
    %cst_19 = arith.constant dense<0xFF800000> : vector<1x16xf32>
    %32 = vector.multi_reduction <maximumf>, %27, %cst_19 [1] : vector<1x4x16xf32> to vector<1x16xf32>
    %cst_20 = arith.constant dense<0.000000e+00> : vector<1x16xf32>
    %33 = vector.multi_reduction <add>, %27, %cst_20 [1] : vector<1x4x16xf32> to vector<1x16xf32>
    %34 = vector.extract_strided_slice %0 {offsets = [0, 0, 80], sizes = [1, 4, 16], strides = [1, 1, 1]} : vector<1x4x256xf32> to vector<1x4x16xf32>
    %35 = arith.maximumf %28, %34 : vector<1x4x16xf32>
    %36 = arith.addf %29, %34 : vector<1x4x16xf32>
    %cst_21 = arith.constant dense<0xFF800000> : vector<1x4xf32>
    %37 = vector.multi_reduction <maximumf>, %34, %cst_21 [2] : vector<1x4x16xf32> to vector<1x4xf32>
    %cst_22 = arith.constant dense<0.000000e+00> : vector<1x4xf32>
    %38 = vector.multi_reduction <add>, %34, %cst_22 [2] : vector<1x4x16xf32> to vector<1x4xf32>
    %cst_23 = arith.constant dense<0xFF800000> : vector<1x16xf32>
    %39 = vector.multi_reduction <maximumf>, %34, %cst_23 [1] : vector<1x4x16xf32> to vector<1x16xf32>
    %cst_24 = arith.constant dense<0.000000e+00> : vector<1x16xf32>
    %40 = vector.multi_reduction <add>, %34, %cst_24 [1] : vector<1x4x16xf32> to vector<1x16xf32>
    %41 = vector.extract_strided_slice %0 {offsets = [0, 0, 96], sizes = [1, 4, 16], strides = [1, 1, 1]} : vector<1x4x256xf32> to vector<1x4x16xf32>
    %42 = arith.maximumf %35, %41 : vector<1x4x16xf32>
    %43 = arith.addf %36, %41 : vector<1x4x16xf32>
    %cst_25 = arith.constant dense<0xFF800000> : vector<1x4xf32>
    %44 = vector.multi_reduction <maximumf>, %41, %cst_25 [2] : vector<1x4x16xf32> to vector<1x4xf32>
    %cst_26 = arith.constant dense<0.000000e+00> : vector<1x4xf32>
    %45 = vector.multi_reduction <add>, %41, %cst_26 [2] : vector<1x4x16xf32> to vector<1x4xf32>
    %cst_27 = arith.constant dense<0xFF800000> : vector<1x16xf32>
    %46 = vector.multi_reduction <maximumf>, %41, %cst_27 [1] : vector<1x4x16xf32> to vector<1x16xf32>
    %cst_28 = arith.constant dense<0.000000e+00> : vector<1x16xf32>
    %47 = vector.multi_reduction <add>, %41, %cst_28 [1] : vector<1x4x16xf32> to vector<1x16xf32>
    %48 = vector.extract_strided_slice %0 {offsets = [0, 0, 112], sizes = [1, 4, 16], strides = [1, 1, 1]} : vector<1x4x256xf32> to vector<1x4x16xf32>
    %49 = arith.maximumf %42, %48 : vector<1x4x16xf32>
    %50 = arith.addf %43, %48 : vector<1x4x16xf32>
    %cst_29 = arith.constant dense<0xFF800000> : vector<1x4xf32>
    %51 = vector.multi_reduction <maximumf>, %48, %cst_29 [2] : vector<1x4x16xf32> to vector<1x4xf32>
    %cst_30 = arith.constant dense<0.000000e+00> : vector<1x4xf32>
    %52 = vector.multi_reduction <add>, %48, %cst_30 [2] : vector<1x4x16xf32> to vector<1x4xf32>
    %cst_31 = arith.constant dense<0xFF800000> : vector<1x16xf32>
    %53 = vector.multi_reduction <maximumf>, %48, %cst_31 [1] : vector<1x4x16xf32> to vector<1x16xf32>
    %cst_32 = arith.constant dense<0.000000e+00> : vector<1x16xf32>
    %54 = vector.multi_reduction <add>, %48, %cst_32 [1] : vector<1x4x16xf32> to vector<1x16xf32>
    %55 = vector.extract_strided_slice %0 {offsets = [0, 0, 128], sizes = [1, 4, 16], strides = [1, 1, 1]} : vector<1x4x256xf32> to vector<1x4x16xf32>
    %56 = arith.maximumf %49, %55 : vector<1x4x16xf32>
    %57 = arith.addf %50, %55 : vector<1x4x16xf32>
    %cst_33 = arith.constant dense<0xFF800000> : vector<1x4xf32>
    %58 = vector.multi_reduction <maximumf>, %55, %cst_33 [2] : vector<1x4x16xf32> to vector<1x4xf32>
    %cst_34 = arith.constant dense<0.000000e+00> : vector<1x4xf32>
    %59 = vector.multi_reduction <add>, %55, %cst_34 [2] : vector<1x4x16xf32> to vector<1x4xf32>
    %cst_35 = arith.constant dense<0xFF800000> : vector<1x16xf32>
    %60 = vector.multi_reduction <maximumf>, %55, %cst_35 [1] : vector<1x4x16xf32> to vector<1x16xf32>
    %cst_36 = arith.constant dense<0.000000e+00> : vector<1x16xf32>
    %61 = vector.multi_reduction <add>, %55, %cst_36 [1] : vector<1x4x16xf32> to vector<1x16xf32>
    %62 = vector.extract_strided_slice %0 {offsets = [0, 0, 144], sizes = [1, 4, 16], strides = [1, 1, 1]} : vector<1x4x256xf32> to vector<1x4x16xf32>
    %63 = arith.maximumf %56, %62 : vector<1x4x16xf32>
    %64 = arith.addf %57, %62 : vector<1x4x16xf32>
    %cst_37 = arith.constant dense<0xFF800000> : vector<1x4xf32>
    %65 = vector.multi_reduction <maximumf>, %62, %cst_37 [2] : vector<1x4x16xf32> to vector<1x4xf32>
    %cst_38 = arith.constant dense<0.000000e+00> : vector<1x4xf32>
    %66 = vector.multi_reduction <add>, %62, %cst_38 [2] : vector<1x4x16xf32> to vector<1x4xf32>
    %cst_39 = arith.constant dense<0xFF800000> : vector<1x16xf32>
    %67 = vector.multi_reduction <maximumf>, %62, %cst_39 [1] : vector<1x4x16xf32> to vector<1x16xf32>
    %cst_40 = arith.constant dense<0.000000e+00> : vector<1x16xf32>
    %68 = vector.multi_reduction <add>, %62, %cst_40 [1] : vector<1x4x16xf32> to vector<1x16xf32>
    %69 = vector.extract_strided_slice %0 {offsets = [0, 0, 160], sizes = [1, 4, 16], strides = [1, 1, 1]} : vector<1x4x256xf32> to vector<1x4x16xf32>
    %70 = arith.maximumf %63, %69 : vector<1x4x16xf32>
    %71 = arith.addf %64, %69 : vector<1x4x16xf32>
    %cst_41 = arith.constant dense<0xFF800000> : vector<1x4xf32>
    %72 = vector.multi_reduction <maximumf>, %69, %cst_41 [2] : vector<1x4x16xf32> to vector<1x4xf32>
    %cst_42 = arith.constant dense<0.000000e+00> : vector<1x4xf32>
    %73 = vector.multi_reduction <add>, %69, %cst_42 [2] : vector<1x4x16xf32> to vector<1x4xf32>
    %cst_43 = arith.constant dense<0xFF800000> : vector<1x16xf32>
    %74 = vector.multi_reduction <maximumf>, %69, %cst_43 [1] : vector<1x4x16xf32> to vector<1x16xf32>
    %cst_44 = arith.constant dense<0.000000e+00> : vector<1x16xf32>
    %75 = vector.multi_reduction <add>, %69, %cst_44 [1] : vector<1x4x16xf32> to vector<1x16xf32>
    %76 = vector.extract_strided_slice %0 {offsets = [0, 0, 176], sizes = [1, 4, 16], strides = [1, 1, 1]} : vector<1x4x256xf32> to vector<1x4x16xf32>
    %77 = arith.maximumf %70, %76 : vector<1x4x16xf32>
    %78 = arith.addf %71, %76 : vector<1x4x16xf32>
    %cst_45 = arith.constant dense<0xFF800000> : vector<1x4xf32>
    %79 = vector.multi_reduction <maximumf>, %76, %cst_45 [2] : vector<1x4x16xf32> to vector<1x4xf32>
    %cst_46 = arith.constant dense<0.000000e+00> : vector<1x4xf32>
    %80 = vector.multi_reduction <add>, %76, %cst_46 [2] : vector<1x4x16xf32> to vector<1x4xf32>
    %cst_47 = arith.constant dense<0xFF800000> : vector<1x16xf32>
    %81 = vector.multi_reduction <maximumf>, %76, %cst_47 [1] : vector<1x4x16xf32> to vector<1x16xf32>
    %cst_48 = arith.constant dense<0.000000e+00> : vector<1x16xf32>
    %82 = vector.multi_reduction <add>, %76, %cst_48 [1] : vector<1x4x16xf32> to vector<1x16xf32>
    %83 = vector.extract_strided_slice %0 {offsets = [0, 0, 192], sizes = [1, 4, 16], strides = [1, 1, 1]} : vector<1x4x256xf32> to vector<1x4x16xf32>
    %84 = arith.maximumf %77, %83 : vector<1x4x16xf32>
    %85 = arith.addf %78, %83 : vector<1x4x16xf32>
    %cst_49 = arith.constant dense<0xFF800000> : vector<1x4xf32>
    %86 = vector.multi_reduction <maximumf>, %83, %cst_49 [2] : vector<1x4x16xf32> to vector<1x4xf32>
    %cst_50 = arith.constant dense<0.000000e+00> : vector<1x4xf32>
    %87 = vector.multi_reduction <add>, %83, %cst_50 [2] : vector<1x4x16xf32> to vector<1x4xf32>
    %cst_51 = arith.constant dense<0xFF800000> : vector<1x16xf32>
    %88 = vector.multi_reduction <maximumf>, %83, %cst_51 [1] : vector<1x4x16xf32> to vector<1x16xf32>
    %cst_52 = arith.constant dense<0.000000e+00> : vector<1x16xf32>
    %89 = vector.multi_reduction <add>, %83, %cst_52 [1] : vector<1x4x16xf32> to vector<1x16xf32>
    %90 = vector.extract_strided_slice %0 {offsets = [0, 0, 208], sizes = [1, 4, 16], strides = [1, 1, 1]} : vector<1x4x256xf32> to vector<1x4x16xf32>
    %91 = arith.maximumf %84, %90 : vector<1x4x16xf32>
    %92 = arith.addf %85, %90 : vector<1x4x16xf32>
    %cst_53 = arith.constant dense<0xFF800000> : vector<1x4xf32>
    %93 = vector.multi_reduction <maximumf>, %90, %cst_53 [2] : vector<1x4x16xf32> to vector<1x4xf32>
    %cst_54 = arith.constant dense<0.000000e+00> : vector<1x4xf32>
    %94 = vector.multi_reduction <add>, %90, %cst_54 [2] : vector<1x4x16xf32> to vector<1x4xf32>
    %cst_55 = arith.constant dense<0xFF800000> : vector<1x16xf32>
    %95 = vector.multi_reduction <maximumf>, %90, %cst_55 [1] : vector<1x4x16xf32> to vector<1x16xf32>
    %cst_56 = arith.constant dense<0.000000e+00> : vector<1x16xf32>
    %96 = vector.multi_reduction <add>, %90, %cst_56 [1] : vector<1x4x16xf32> to vector<1x16xf32>
    %97 = vector.extract_strided_slice %0 {offsets = [0, 0, 224], sizes = [1, 4, 16], strides = [1, 1, 1]} : vector<1x4x256xf32> to vector<1x4x16xf32>
    %98 = arith.maximumf %91, %97 : vector<1x4x16xf32>
    %99 = arith.addf %92, %97 : vector<1x4x16xf32>
    %cst_57 = arith.constant dense<0xFF800000> : vector<1x4xf32>
    %100 = vector.multi_reduction <maximumf>, %97, %cst_57 [2] : vector<1x4x16xf32> to vector<1x4xf32>
    %cst_58 = arith.constant dense<0.000000e+00> : vector<1x4xf32>
    %101 = vector.multi_reduction <add>, %97, %cst_58 [2] : vector<1x4x16xf32> to vector<1x4xf32>
    %cst_59 = arith.constant dense<0xFF800000> : vector<1x16xf32>
    %102 = vector.multi_reduction <maximumf>, %97, %cst_59 [1] : vector<1x4x16xf32> to vector<1x16xf32>
    %cst_60 = arith.constant dense<0.000000e+00> : vector<1x16xf32>
    %103 = vector.multi_reduction <add>, %97, %cst_60 [1] : vector<1x4x16xf32> to vector<1x16xf32>
    %104 = vector.extract_strided_slice %0 {offsets = [0, 0, 240], sizes = [1, 4, 16], strides = [1, 1, 1]} : vector<1x4x256xf32> to vector<1x4x16xf32>
    %105 = arith.maximumf %98, %104 : vector<1x4x16xf32>
    %106 = arith.addf %99, %104 : vector<1x4x16xf32>
    %cst_61 = arith.constant dense<0xFF800000> : vector<1x4xf32>
    %107 = vector.multi_reduction <maximumf>, %104, %cst_61 [2] : vector<1x4x16xf32> to vector<1x4xf32>
    %cst_62 = arith.constant dense<0.000000e+00> : vector<1x4xf32>
    %108 = vector.multi_reduction <add>, %104, %cst_62 [2] : vector<1x4x16xf32> to vector<1x4xf32>
    %cst_63 = arith.constant dense<0xFF800000> : vector<1x16xf32>
    %109 = vector.multi_reduction <maximumf>, %104, %cst_63 [1] : vector<1x4x16xf32> to vector<1x16xf32>
    %cst_64 = arith.constant dense<0.000000e+00> : vector<1x16xf32>
    %110 = vector.multi_reduction <add>, %104, %cst_64 [1] : vector<1x4x16xf32> to vector<1x16xf32>
    %cst_65 = arith.constant 6.250000e-02 : f32
    %111 = vector.broadcast %cst_65 : f32 to vector<1x4x16xf32>
    %112 = arith.mulf %106, %111 : vector<1x4x16xf32>
    %113 = vector.shape_cast %2 : vector<1x4xf32> to vector<1x4x1xf32>
    %114 = vector.shape_cast %9 : vector<1x4xf32> to vector<1x4x1xf32>
    %115 = vector.shape_cast %16 : vector<1x4xf32> to vector<1x4x1xf32>
    %116 = vector.shape_cast %23 : vector<1x4xf32> to vector<1x4x1xf32>
    %117 = vector.shape_cast %30 : vector<1x4xf32> to vector<1x4x1xf32>
    %118 = vector.shape_cast %37 : vector<1x4xf32> to vector<1x4x1xf32>
    %119 = vector.shape_cast %44 : vector<1x4xf32> to vector<1x4x1xf32>
    %120 = vector.shape_cast %51 : vector<1x4xf32> to vector<1x4x1xf32>
    %121 = vector.shape_cast %58 : vector<1x4xf32> to vector<1x4x1xf32>
    %122 = vector.shape_cast %65 : vector<1x4xf32> to vector<1x4x1xf32>
    %123 = vector.shape_cast %72 : vector<1x4xf32> to vector<1x4x1xf32>
    %124 = vector.shape_cast %79 : vector<1x4xf32> to vector<1x4x1xf32>
    %125 = vector.shape_cast %86 : vector<1x4xf32> to vector<1x4x1xf32>
    %126 = vector.shape_cast %93 : vector<1x4xf32> to vector<1x4x1xf32>
    %127 = vector.shape_cast %100 : vector<1x4xf32> to vector<1x4x1xf32>
    %128 = vector.shape_cast %107 : vector<1x4xf32> to vector<1x4x1xf32>
    %129 = tpu.concatenate %113, %114, %115, %116, %117, %118, %119, %120, %121, %122, %123, %124, %125, %126, %127, %128 in 2 : vector<1x4x1xf32>, vector<1x4x1xf32>, vector<1x4x1xf32>, vector<1x4x1xf32>, vector<1x4x1xf32>, vector<1x4x1xf32>, vector<1x4x1xf32>, vector<1x4x1xf32>, vector<1x4x1xf32>, vector<1x4x1xf32>, vector<1x4x1xf32>, vector<1x4x1xf32>, vector<1x4x1xf32>, vector<1x4x1xf32>, vector<1x4x1xf32>, vector<1x4x1xf32> -> vector<1x4x16xf32>
    %130 = vector.shape_cast %3 : vector<1x4xf32> to vector<1x4x1xf32>
    %131 = vector.shape_cast %10 : vector<1x4xf32> to vector<1x4x1xf32>
    %132 = vector.shape_cast %17 : vector<1x4xf32> to vector<1x4x1xf32>
    %133 = vector.shape_cast %24 : vector<1x4xf32> to vector<1x4x1xf32>
    %134 = vector.shape_cast %31 : vector<1x4xf32> to vector<1x4x1xf32>
    %135 = vector.shape_cast %38 : vector<1x4xf32> to vector<1x4x1xf32>
    %136 = vector.shape_cast %45 : vector<1x4xf32> to vector<1x4x1xf32>
    %137 = vector.shape_cast %52 : vector<1x4xf32> to vector<1x4x1xf32>
    %138 = vector.shape_cast %59 : vector<1x4xf32> to vector<1x4x1xf32>
    %139 = vector.shape_cast %66 : vector<1x4xf32> to vector<1x4x1xf32>
    %140 = vector.shape_cast %73 : vector<1x4xf32> to vector<1x4x1xf32>
    %141 = vector.shape_cast %80 : vector<1x4xf32> to vector<1x4x1xf32>
    %142 = vector.shape_cast %87 : vector<1x4xf32> to vector<1x4x1xf32>
    %143 = vector.shape_cast %94 : vector<1x4xf32> to vector<1x4x1xf32>
    %144 = vector.shape_cast %101 : vector<1x4xf32> to vector<1x4x1xf32>
    %145 = vector.shape_cast %108 : vector<1x4xf32> to vector<1x4x1xf32>
    %146 = tpu.concatenate %130, %131, %132, %133, %134, %135, %136, %137, %138, %139, %140, %141, %142, %143, %144, %145 in 2 : vector<1x4x1xf32>, vector<1x4x1xf32>, vector<1x4x1xf32>, vector<1x4x1xf32>, vector<1x4x1xf32>, vector<1x4x1xf32>, vector<1x4x1xf32>, vector<1x4x1xf32>, vector<1x4x1xf32>, vector<1x4x1xf32>, vector<1x4x1xf32>, vector<1x4x1xf32>, vector<1x4x1xf32>, vector<1x4x1xf32>, vector<1x4x1xf32>, vector<1x4x1xf32> -> vector<1x4x16xf32>
    %cst_66 = arith.constant 6.250000e-02 : f32
    %147 = vector.broadcast %cst_66 : f32 to vector<1x4x16xf32>
    %148 = arith.mulf %146, %147 : vector<1x4x16xf32>
    %149 = vector.shape_cast %4 : vector<1x16xf32> to vector<1x1x16xf32>
    %150 = vector.shape_cast %11 : vector<1x16xf32> to vector<1x1x16xf32>
    %151 = vector.shape_cast %18 : vector<1x16xf32> to vector<1x1x16xf32>
    %152 = vector.shape_cast %25 : vector<1x16xf32> to vector<1x1x16xf32>
    %153 = vector.shape_cast %32 : vector<1x16xf32> to vector<1x1x16xf32>
    %154 = vector.shape_cast %39 : vector<1x16xf32> to vector<1x1x16xf32>
    %155 = vector.shape_cast %46 : vector<1x16xf32> to vector<1x1x16xf32>
    %156 = vector.shape_cast %53 : vector<1x16xf32> to vector<1x1x16xf32>
    %157 = vector.shape_cast %60 : vector<1x16xf32> to vector<1x1x16xf32>
    %158 = vector.shape_cast %67 : vector<1x16xf32> to vector<1x1x16xf32>
    %159 = vector.shape_cast %74 : vector<1x16xf32> to vector<1x1x16xf32>
    %160 = vector.shape_cast %81 : vector<1x16xf32> to vector<1x1x16xf32>
    %161 = vector.shape_cast %88 : vector<1x16xf32> to vector<1x1x16xf32>
    %162 = vector.shape_cast %95 : vector<1x16xf32> to vector<1x1x16xf32>
    %163 = vector.shape_cast %102 : vector<1x16xf32> to vector<1x1x16xf32>
    %164 = vector.shape_cast %109 : vector<1x16xf32> to vector<1x1x16xf32>
    %165 = tpu.concatenate %149, %150, %151, %152, %153, %154, %155, %156, %157, %158, %159, %160, %161, %162, %163, %164 in 1 : vector<1x1x16xf32>, vector<1x1x16xf32>, vector<1x1x16xf32>, vector<1x1x16xf32>, vector<1x1x16xf32>, vector<1x1x16xf32>, vector<1x1x16xf32>, vector<1x1x16xf32>, vector<1x1x16xf32>, vector<1x1x16xf32>, vector<1x1x16xf32>, vector<1x1x16xf32>, vector<1x1x16xf32>, vector<1x1x16xf32>, vector<1x1x16xf32>, vector<1x1x16xf32> -> vector<1x16x16xf32>
    %166 = vector.shape_cast %5 : vector<1x16xf32> to vector<1x1x16xf32>
    %167 = vector.shape_cast %12 : vector<1x16xf32> to vector<1x1x16xf32>
    %168 = vector.shape_cast %19 : vector<1x16xf32> to vector<1x1x16xf32>
    %169 = vector.shape_cast %26 : vector<1x16xf32> to vector<1x1x16xf32>
    %170 = vector.shape_cast %33 : vector<1x16xf32> to vector<1x1x16xf32>
    %171 = vector.shape_cast %40 : vector<1x16xf32> to vector<1x1x16xf32>
    %172 = vector.shape_cast %47 : vector<1x16xf32> to vector<1x1x16xf32>
    %173 = vector.shape_cast %54 : vector<1x16xf32> to vector<1x1x16xf32>
    %174 = vector.shape_cast %61 : vector<1x16xf32> to vector<1x1x16xf32>
    %175 = vector.shape_cast %68 : vector<1x16xf32> to vector<1x1x16xf32>
    %176 = vector.shape_cast %75 : vector<1x16xf32> to vector<1x1x16xf32>
    %177 = vector.shape_cast %82 : vector<1x16xf32> to vector<1x1x16xf32>
    %178 = vector.shape_cast %89 : vector<1x16xf32> to vector<1x1x16xf32>
    %179 = vector.shape_cast %96 : vector<1x16xf32> to vector<1x1x16xf32>
    %180 = vector.shape_cast %103 : vector<1x16xf32> to vector<1x1x16xf32>
    %181 = vector.shape_cast %110 : vector<1x16xf32> to vector<1x1x16xf32>
    %182 = tpu.concatenate %166, %167, %168, %169, %170, %171, %172, %173, %174, %175, %176, %177, %178, %179, %180, %181 in 1 : vector<1x1x16xf32>, vector<1x1x16xf32>, vector<1x1x16xf32>, vector<1x1x16xf32>, vector<1x1x16xf32>, vector<1x1x16xf32>, vector<1x1x16xf32>, vector<1x1x16xf32>, vector<1x1x16xf32>, vector<1x1x16xf32>, vector<1x1x16xf32>, vector<1x1x16xf32>, vector<1x1x16xf32>, vector<1x1x16xf32>, vector<1x1x16xf32>, vector<1x1x16xf32> -> vector<1x16x16xf32>
    %cst_67 = arith.constant 2.500000e-01 : f32
    %183 = vector.broadcast %cst_67 : f32 to vector<1x16x16xf32>
    %184 = arith.mulf %182, %183 : vector<1x16x16xf32>
    %cst_68 = arith.constant 0.000000e+00 : f32
    %185 = vector.broadcast %cst_68 : f32 to vector<1x4x3xf32>
    %186 = tpu.concatenate %185, %105, %185 in 2 : vector<1x4x3xf32>, vector<1x4x16xf32>, vector<1x4x3xf32> -> vector<1x4x22xf32>
    %cst_69 = arith.constant 0.000000e+00 : f32
    %187 = vector.broadcast %cst_69 : f32 to vector<1x3x22xf32>
    %188 = tpu.concatenate %187, %186, %187 in 1 : vector<1x3x22xf32>, vector<1x4x22xf32>, vector<1x3x22xf32> -> vector<1x10x22xf32>
    %cst_70 = arith.constant 0.000000e+00 : f32
    %189 = vector.broadcast %cst_70 : f32 to vector<1x4x3xf32>
    %190 = tpu.concatenate %189, %112, %189 in 2 : vector<1x4x3xf32>, vector<1x4x16xf32>, vector<1x4x3xf32> -> vector<1x4x22xf32>
    %cst_71 = arith.constant 0.000000e+00 : f32
    %191 = vector.broadcast %cst_71 : f32 to vector<1x3x22xf32>
    %192 = tpu.concatenate %191, %190, %191 in 1 : vector<1x3x22xf32>, vector<1x4x22xf32>, vector<1x3x22xf32> -> vector<1x10x22xf32>
    %cst_72 = arith.constant 0.000000e+00 : f32
    %193 = vector.broadcast %cst_72 : f32 to vector<1x4x16xf32>
    %cst_73 = arith.constant 0.000000e+00 : f32
    %194 = vector.broadcast %cst_73 : f32 to vector<1x4x16xf32>
    %cst_74 = arith.constant 0.000000e+00 : f32
    %195 = vector.broadcast %cst_74 : f32 to vector<1x4x16xf32>
    %cst_75 = arith.constant 0.000000e+00 : f32
    %196 = vector.broadcast %cst_75 : f32 to vector<1x4x16xf32>
    %197 = vector.extract_strided_slice %188 {offsets = [0, 0, 0], sizes = [1, 4, 22], strides = [1, 1, 1]} : vector<1x10x22xf32> to vector<1x4x22xf32>
    %198 = vector.extract_strided_slice %192 {offsets = [0, 0, 0], sizes = [1, 4, 22], strides = [1, 1, 1]} : vector<1x10x22xf32> to vector<1x4x22xf32>
    %c0_76 = arith.constant 0 : index
    %199 = memref.load %arg2[%c0_76] : memref<294xf32, #tpu.memory_space<smem>>
    %200 = vector.extract_strided_slice %197 {offsets = [0, 0, 0], sizes = [1, 4, 16], strides = [1, 1, 1]} : vector<1x4x22xf32> to vector<1x4x16xf32>
    %201 = vector.broadcast %199 : f32 to vector<1x4x16xf32>
    %202 = arith.mulf %201, %200 : vector<1x4x16xf32>
    %203 = arith.addf %193, %202 : vector<1x4x16xf32>
    %c49 = arith.constant 49 : index
    %204 = memref.load %arg2[%c49] : memref<294xf32, #tpu.memory_space<smem>>
    %205 = vector.extract_strided_slice %198 {offsets = [0, 0, 0], sizes = [1, 4, 16], strides = [1, 1, 1]} : vector<1x4x22xf32> to vector<1x4x16xf32>
    %206 = vector.broadcast %204 : f32 to vector<1x4x16xf32>
    %207 = arith.mulf %206, %205 : vector<1x4x16xf32>
    %208 = arith.addf %195, %207 : vector<1x4x16xf32>
    %c1 = arith.constant 1 : index
    %209 = memref.load %arg2[%c1] : memref<294xf32, #tpu.memory_space<smem>>
    %210 = vector.extract_strided_slice %197 {offsets = [0, 0, 1], sizes = [1, 4, 16], strides = [1, 1, 1]} : vector<1x4x22xf32> to vector<1x4x16xf32>
    %211 = vector.broadcast %209 : f32 to vector<1x4x16xf32>
    %212 = arith.mulf %211, %210 : vector<1x4x16xf32>
    %213 = arith.addf %203, %212 : vector<1x4x16xf32>
    %c50 = arith.constant 50 : index
    %214 = memref.load %arg2[%c50] : memref<294xf32, #tpu.memory_space<smem>>
    %215 = vector.extract_strided_slice %198 {offsets = [0, 0, 1], sizes = [1, 4, 16], strides = [1, 1, 1]} : vector<1x4x22xf32> to vector<1x4x16xf32>
    %216 = vector.broadcast %214 : f32 to vector<1x4x16xf32>
    %217 = arith.mulf %216, %215 : vector<1x4x16xf32>
    %218 = arith.addf %208, %217 : vector<1x4x16xf32>
    %c2 = arith.constant 2 : index
    %219 = memref.load %arg2[%c2] : memref<294xf32, #tpu.memory_space<smem>>
    %220 = vector.extract_strided_slice %197 {offsets = [0, 0, 2], sizes = [1, 4, 16], strides = [1, 1, 1]} : vector<1x4x22xf32> to vector<1x4x16xf32>
    %221 = vector.broadcast %219 : f32 to vector<1x4x16xf32>
    %222 = arith.mulf %221, %220 : vector<1x4x16xf32>
    %223 = arith.addf %213, %222 : vector<1x4x16xf32>
    %c51 = arith.constant 51 : index
    %224 = memref.load %arg2[%c51] : memref<294xf32, #tpu.memory_space<smem>>
    %225 = vector.extract_strided_slice %198 {offsets = [0, 0, 2], sizes = [1, 4, 16], strides = [1, 1, 1]} : vector<1x4x22xf32> to vector<1x4x16xf32>
    %226 = vector.broadcast %224 : f32 to vector<1x4x16xf32>
    %227 = arith.mulf %226, %225 : vector<1x4x16xf32>
    %228 = arith.addf %218, %227 : vector<1x4x16xf32>
    %c3 = arith.constant 3 : index
    %229 = memref.load %arg2[%c3] : memref<294xf32, #tpu.memory_space<smem>>
    %230 = vector.extract_strided_slice %197 {offsets = [0, 0, 3], sizes = [1, 4, 16], strides = [1, 1, 1]} : vector<1x4x22xf32> to vector<1x4x16xf32>
    %231 = vector.broadcast %229 : f32 to vector<1x4x16xf32>
    %232 = arith.mulf %231, %230 : vector<1x4x16xf32>
    %233 = arith.addf %223, %232 : vector<1x4x16xf32>
    %c52 = arith.constant 52 : index
    %234 = memref.load %arg2[%c52] : memref<294xf32, #tpu.memory_space<smem>>
    %235 = vector.extract_strided_slice %198 {offsets = [0, 0, 3], sizes = [1, 4, 16], strides = [1, 1, 1]} : vector<1x4x22xf32> to vector<1x4x16xf32>
    %236 = vector.broadcast %234 : f32 to vector<1x4x16xf32>
    %237 = arith.mulf %236, %235 : vector<1x4x16xf32>
    %238 = arith.addf %228, %237 : vector<1x4x16xf32>
    %c4 = arith.constant 4 : index
    %239 = memref.load %arg2[%c4] : memref<294xf32, #tpu.memory_space<smem>>
    %240 = vector.extract_strided_slice %197 {offsets = [0, 0, 4], sizes = [1, 4, 16], strides = [1, 1, 1]} : vector<1x4x22xf32> to vector<1x4x16xf32>
    %241 = vector.broadcast %239 : f32 to vector<1x4x16xf32>
    %242 = arith.mulf %241, %240 : vector<1x4x16xf32>
    %243 = arith.addf %233, %242 : vector<1x4x16xf32>
    %c53 = arith.constant 53 : index
    %244 = memref.load %arg2[%c53] : memref<294xf32, #tpu.memory_space<smem>>
    %245 = vector.extract_strided_slice %198 {offsets = [0, 0, 4], sizes = [1, 4, 16], strides = [1, 1, 1]} : vector<1x4x22xf32> to vector<1x4x16xf32>
    %246 = vector.broadcast %244 : f32 to vector<1x4x16xf32>
    %247 = arith.mulf %246, %245 : vector<1x4x16xf32>
    %248 = arith.addf %238, %247 : vector<1x4x16xf32>
    %c5 = arith.constant 5 : index
    %249 = memref.load %arg2[%c5] : memref<294xf32, #tpu.memory_space<smem>>
    %250 = vector.extract_strided_slice %197 {offsets = [0, 0, 5], sizes = [1, 4, 16], strides = [1, 1, 1]} : vector<1x4x22xf32> to vector<1x4x16xf32>
    %251 = vector.broadcast %249 : f32 to vector<1x4x16xf32>
    %252 = arith.mulf %251, %250 : vector<1x4x16xf32>
    %253 = arith.addf %243, %252 : vector<1x4x16xf32>
    %c54 = arith.constant 54 : index
    %254 = memref.load %arg2[%c54] : memref<294xf32, #tpu.memory_space<smem>>
    %255 = vector.extract_strided_slice %198 {offsets = [0, 0, 5], sizes = [1, 4, 16], strides = [1, 1, 1]} : vector<1x4x22xf32> to vector<1x4x16xf32>
    %256 = vector.broadcast %254 : f32 to vector<1x4x16xf32>
    %257 = arith.mulf %256, %255 : vector<1x4x16xf32>
    %258 = arith.addf %248, %257 : vector<1x4x16xf32>
    %c6 = arith.constant 6 : index
    %259 = memref.load %arg2[%c6] : memref<294xf32, #tpu.memory_space<smem>>
    %260 = vector.extract_strided_slice %197 {offsets = [0, 0, 6], sizes = [1, 4, 16], strides = [1, 1, 1]} : vector<1x4x22xf32> to vector<1x4x16xf32>
    %261 = vector.broadcast %259 : f32 to vector<1x4x16xf32>
    %262 = arith.mulf %261, %260 : vector<1x4x16xf32>
    %263 = arith.addf %253, %262 : vector<1x4x16xf32>
    %c55 = arith.constant 55 : index
    %264 = memref.load %arg2[%c55] : memref<294xf32, #tpu.memory_space<smem>>
    %265 = vector.extract_strided_slice %198 {offsets = [0, 0, 6], sizes = [1, 4, 16], strides = [1, 1, 1]} : vector<1x4x22xf32> to vector<1x4x16xf32>
    %266 = vector.broadcast %264 : f32 to vector<1x4x16xf32>
    %267 = arith.mulf %266, %265 : vector<1x4x16xf32>
    %268 = arith.addf %258, %267 : vector<1x4x16xf32>
    %269 = vector.extract_strided_slice %188 {offsets = [0, 1, 0], sizes = [1, 4, 22], strides = [1, 1, 1]} : vector<1x10x22xf32> to vector<1x4x22xf32>
    %270 = vector.extract_strided_slice %192 {offsets = [0, 1, 0], sizes = [1, 4, 22], strides = [1, 1, 1]} : vector<1x10x22xf32> to vector<1x4x22xf32>
    %c7 = arith.constant 7 : index
    %271 = memref.load %arg2[%c7] : memref<294xf32, #tpu.memory_space<smem>>
    %272 = vector.extract_strided_slice %269 {offsets = [0, 0, 0], sizes = [1, 4, 16], strides = [1, 1, 1]} : vector<1x4x22xf32> to vector<1x4x16xf32>
    %273 = vector.broadcast %271 : f32 to vector<1x4x16xf32>
    %274 = arith.mulf %273, %272 : vector<1x4x16xf32>
    %275 = arith.addf %194, %274 : vector<1x4x16xf32>
    %c56 = arith.constant 56 : index
    %276 = memref.load %arg2[%c56] : memref<294xf32, #tpu.memory_space<smem>>
    %277 = vector.extract_strided_slice %270 {offsets = [0, 0, 0], sizes = [1, 4, 16], strides = [1, 1, 1]} : vector<1x4x22xf32> to vector<1x4x16xf32>
    %278 = vector.broadcast %276 : f32 to vector<1x4x16xf32>
    %279 = arith.mulf %278, %277 : vector<1x4x16xf32>
    %280 = arith.addf %196, %279 : vector<1x4x16xf32>
    %c8 = arith.constant 8 : index
    %281 = memref.load %arg2[%c8] : memref<294xf32, #tpu.memory_space<smem>>
    %282 = vector.extract_strided_slice %269 {offsets = [0, 0, 1], sizes = [1, 4, 16], strides = [1, 1, 1]} : vector<1x4x22xf32> to vector<1x4x16xf32>
    %283 = vector.broadcast %281 : f32 to vector<1x4x16xf32>
    %284 = arith.mulf %283, %282 : vector<1x4x16xf32>
    %285 = arith.addf %275, %284 : vector<1x4x16xf32>
    %c57 = arith.constant 57 : index
    %286 = memref.load %arg2[%c57] : memref<294xf32, #tpu.memory_space<smem>>
    %287 = vector.extract_strided_slice %270 {offsets = [0, 0, 1], sizes = [1, 4, 16], strides = [1, 1, 1]} : vector<1x4x22xf32> to vector<1x4x16xf32>
    %288 = vector.broadcast %286 : f32 to vector<1x4x16xf32>
    %289 = arith.mulf %288, %287 : vector<1x4x16xf32>
    %290 = arith.addf %280, %289 : vector<1x4x16xf32>
    %c9 = arith.constant 9 : index
    %291 = memref.load %arg2[%c9] : memref<294xf32, #tpu.memory_space<smem>>
    %292 = vector.extract_strided_slice %269 {offsets = [0, 0, 2], sizes = [1, 4, 16], strides = [1, 1, 1]} : vector<1x4x22xf32> to vector<1x4x16xf32>
    %293 = vector.broadcast %291 : f32 to vector<1x4x16xf32>
    %294 = arith.mulf %293, %292 : vector<1x4x16xf32>
    %295 = arith.addf %285, %294 : vector<1x4x16xf32>
    %c58 = arith.constant 58 : index
    %296 = memref.load %arg2[%c58] : memref<294xf32, #tpu.memory_space<smem>>
    %297 = vector.extract_strided_slice %270 {offsets = [0, 0, 2], sizes = [1, 4, 16], strides = [1, 1, 1]} : vector<1x4x22xf32> to vector<1x4x16xf32>
    %298 = vector.broadcast %296 : f32 to vector<1x4x16xf32>
    %299 = arith.mulf %298, %297 : vector<1x4x16xf32>
    %300 = arith.addf %290, %299 : vector<1x4x16xf32>
    %c10 = arith.constant 10 : index
    %301 = memref.load %arg2[%c10] : memref<294xf32, #tpu.memory_space<smem>>
    %302 = vector.extract_strided_slice %269 {offsets = [0, 0, 3], sizes = [1, 4, 16], strides = [1, 1, 1]} : vector<1x4x22xf32> to vector<1x4x16xf32>
    %303 = vector.broadcast %301 : f32 to vector<1x4x16xf32>
    %304 = arith.mulf %303, %302 : vector<1x4x16xf32>
    %305 = arith.addf %295, %304 : vector<1x4x16xf32>
    %c59 = arith.constant 59 : index
    %306 = memref.load %arg2[%c59] : memref<294xf32, #tpu.memory_space<smem>>
    %307 = vector.extract_strided_slice %270 {offsets = [0, 0, 3], sizes = [1, 4, 16], strides = [1, 1, 1]} : vector<1x4x22xf32> to vector<1x4x16xf32>
    %308 = vector.broadcast %306 : f32 to vector<1x4x16xf32>
    %309 = arith.mulf %308, %307 : vector<1x4x16xf32>
    %310 = arith.addf %300, %309 : vector<1x4x16xf32>
    %c11 = arith.constant 11 : index
    %311 = memref.load %arg2[%c11] : memref<294xf32, #tpu.memory_space<smem>>
    %312 = vector.extract_strided_slice %269 {offsets = [0, 0, 4], sizes = [1, 4, 16], strides = [1, 1, 1]} : vector<1x4x22xf32> to vector<1x4x16xf32>
    %313 = vector.broadcast %311 : f32 to vector<1x4x16xf32>
    %314 = arith.mulf %313, %312 : vector<1x4x16xf32>
    %315 = arith.addf %305, %314 : vector<1x4x16xf32>
    %c60 = arith.constant 60 : index
    %316 = memref.load %arg2[%c60] : memref<294xf32, #tpu.memory_space<smem>>
    %317 = vector.extract_strided_slice %270 {offsets = [0, 0, 4], sizes = [1, 4, 16], strides = [1, 1, 1]} : vector<1x4x22xf32> to vector<1x4x16xf32>
    %318 = vector.broadcast %316 : f32 to vector<1x4x16xf32>
    %319 = arith.mulf %318, %317 : vector<1x4x16xf32>
    %320 = arith.addf %310, %319 : vector<1x4x16xf32>
    %c12 = arith.constant 12 : index
    %321 = memref.load %arg2[%c12] : memref<294xf32, #tpu.memory_space<smem>>
    %322 = vector.extract_strided_slice %269 {offsets = [0, 0, 5], sizes = [1, 4, 16], strides = [1, 1, 1]} : vector<1x4x22xf32> to vector<1x4x16xf32>
    %323 = vector.broadcast %321 : f32 to vector<1x4x16xf32>
    %324 = arith.mulf %323, %322 : vector<1x4x16xf32>
    %325 = arith.addf %315, %324 : vector<1x4x16xf32>
    %c61 = arith.constant 61 : index
    %326 = memref.load %arg2[%c61] : memref<294xf32, #tpu.memory_space<smem>>
    %327 = vector.extract_strided_slice %270 {offsets = [0, 0, 5], sizes = [1, 4, 16], strides = [1, 1, 1]} : vector<1x4x22xf32> to vector<1x4x16xf32>
    %328 = vector.broadcast %326 : f32 to vector<1x4x16xf32>
    %329 = arith.mulf %328, %327 : vector<1x4x16xf32>
    %330 = arith.addf %320, %329 : vector<1x4x16xf32>
    %c13 = arith.constant 13 : index
    %331 = memref.load %arg2[%c13] : memref<294xf32, #tpu.memory_space<smem>>
    %332 = vector.extract_strided_slice %269 {offsets = [0, 0, 6], sizes = [1, 4, 16], strides = [1, 1, 1]} : vector<1x4x22xf32> to vector<1x4x16xf32>
    %333 = vector.broadcast %331 : f32 to vector<1x4x16xf32>
    %334 = arith.mulf %333, %332 : vector<1x4x16xf32>
    %335 = arith.addf %325, %334 : vector<1x4x16xf32>
    %c62 = arith.constant 62 : index
    %336 = memref.load %arg2[%c62] : memref<294xf32, #tpu.memory_space<smem>>
    %337 = vector.extract_strided_slice %270 {offsets = [0, 0, 6], sizes = [1, 4, 16], strides = [1, 1, 1]} : vector<1x4x22xf32> to vector<1x4x16xf32>
    %338 = vector.broadcast %336 : f32 to vector<1x4x16xf32>
    %339 = arith.mulf %338, %337 : vector<1x4x16xf32>
    %340 = arith.addf %330, %339 : vector<1x4x16xf32>
    %341 = vector.extract_strided_slice %188 {offsets = [0, 2, 0], sizes = [1, 4, 22], strides = [1, 1, 1]} : vector<1x10x22xf32> to vector<1x4x22xf32>
    %342 = vector.extract_strided_slice %192 {offsets = [0, 2, 0], sizes = [1, 4, 22], strides = [1, 1, 1]} : vector<1x10x22xf32> to vector<1x4x22xf32>
    %c14 = arith.constant 14 : index
    %343 = memref.load %arg2[%c14] : memref<294xf32, #tpu.memory_space<smem>>
    %344 = vector.extract_strided_slice %341 {offsets = [0, 0, 0], sizes = [1, 4, 16], strides = [1, 1, 1]} : vector<1x4x22xf32> to vector<1x4x16xf32>
    %345 = vector.broadcast %343 : f32 to vector<1x4x16xf32>
    %346 = arith.mulf %345, %344 : vector<1x4x16xf32>
    %347 = arith.addf %263, %346 : vector<1x4x16xf32>
    %c63 = arith.constant 63 : index
    %348 = memref.load %arg2[%c63] : memref<294xf32, #tpu.memory_space<smem>>
    %349 = vector.extract_strided_slice %342 {offsets = [0, 0, 0], sizes = [1, 4, 16], strides = [1, 1, 1]} : vector<1x4x22xf32> to vector<1x4x16xf32>
    %350 = vector.broadcast %348 : f32 to vector<1x4x16xf32>
    %351 = arith.mulf %350, %349 : vector<1x4x16xf32>
    %352 = arith.addf %268, %351 : vector<1x4x16xf32>
    %c15 = arith.constant 15 : index
    %353 = memref.load %arg2[%c15] : memref<294xf32, #tpu.memory_space<smem>>
    %354 = vector.extract_strided_slice %341 {offsets = [0, 0, 1], sizes = [1, 4, 16], strides = [1, 1, 1]} : vector<1x4x22xf32> to vector<1x4x16xf32>
    %355 = vector.broadcast %353 : f32 to vector<1x4x16xf32>
    %356 = arith.mulf %355, %354 : vector<1x4x16xf32>
    %357 = arith.addf %347, %356 : vector<1x4x16xf32>
    %c64 = arith.constant 64 : index
    %358 = memref.load %arg2[%c64] : memref<294xf32, #tpu.memory_space<smem>>
    %359 = vector.extract_strided_slice %342 {offsets = [0, 0, 1], sizes = [1, 4, 16], strides = [1, 1, 1]} : vector<1x4x22xf32> to vector<1x4x16xf32>
    %360 = vector.broadcast %358 : f32 to vector<1x4x16xf32>
    %361 = arith.mulf %360, %359 : vector<1x4x16xf32>
    %362 = arith.addf %352, %361 : vector<1x4x16xf32>
    %c16 = arith.constant 16 : index
    %363 = memref.load %arg2[%c16] : memref<294xf32, #tpu.memory_space<smem>>
    %364 = vector.extract_strided_slice %341 {offsets = [0, 0, 2], sizes = [1, 4, 16], strides = [1, 1, 1]} : vector<1x4x22xf32> to vector<1x4x16xf32>
    %365 = vector.broadcast %363 : f32 to vector<1x4x16xf32>
    %366 = arith.mulf %365, %364 : vector<1x4x16xf32>
    %367 = arith.addf %357, %366 : vector<1x4x16xf32>
    %c65 = arith.constant 65 : index
    %368 = memref.load %arg2[%c65] : memref<294xf32, #tpu.memory_space<smem>>
    %369 = vector.extract_strided_slice %342 {offsets = [0, 0, 2], sizes = [1, 4, 16], strides = [1, 1, 1]} : vector<1x4x22xf32> to vector<1x4x16xf32>
    %370 = vector.broadcast %368 : f32 to vector<1x4x16xf32>
    %371 = arith.mulf %370, %369 : vector<1x4x16xf32>
    %372 = arith.addf %362, %371 : vector<1x4x16xf32>
    %c17 = arith.constant 17 : index
    %373 = memref.load %arg2[%c17] : memref<294xf32, #tpu.memory_space<smem>>
    %374 = vector.extract_strided_slice %341 {offsets = [0, 0, 3], sizes = [1, 4, 16], strides = [1, 1, 1]} : vector<1x4x22xf32> to vector<1x4x16xf32>
    %375 = vector.broadcast %373 : f32 to vector<1x4x16xf32>
    %376 = arith.mulf %375, %374 : vector<1x4x16xf32>
    %377 = arith.addf %367, %376 : vector<1x4x16xf32>
    %c66 = arith.constant 66 : index
    %378 = memref.load %arg2[%c66] : memref<294xf32, #tpu.memory_space<smem>>
    %379 = vector.extract_strided_slice %342 {offsets = [0, 0, 3], sizes = [1, 4, 16], strides = [1, 1, 1]} : vector<1x4x22xf32> to vector<1x4x16xf32>
    %380 = vector.broadcast %378 : f32 to vector<1x4x16xf32>
    %381 = arith.mulf %380, %379 : vector<1x4x16xf32>
    %382 = arith.addf %372, %381 : vector<1x4x16xf32>
    %c18 = arith.constant 18 : index
    %383 = memref.load %arg2[%c18] : memref<294xf32, #tpu.memory_space<smem>>
    %384 = vector.extract_strided_slice %341 {offsets = [0, 0, 4], sizes = [1, 4, 16], strides = [1, 1, 1]} : vector<1x4x22xf32> to vector<1x4x16xf32>
    %385 = vector.broadcast %383 : f32 to vector<1x4x16xf32>
    %386 = arith.mulf %385, %384 : vector<1x4x16xf32>
    %387 = arith.addf %377, %386 : vector<1x4x16xf32>
    %c67 = arith.constant 67 : index
    %388 = memref.load %arg2[%c67] : memref<294xf32, #tpu.memory_space<smem>>
    %389 = vector.extract_strided_slice %342 {offsets = [0, 0, 4], sizes = [1, 4, 16], strides = [1, 1, 1]} : vector<1x4x22xf32> to vector<1x4x16xf32>
    %390 = vector.broadcast %388 : f32 to vector<1x4x16xf32>
    %391 = arith.mulf %390, %389 : vector<1x4x16xf32>
    %392 = arith.addf %382, %391 : vector<1x4x16xf32>
    %c19 = arith.constant 19 : index
    %393 = memref.load %arg2[%c19] : memref<294xf32, #tpu.memory_space<smem>>
    %394 = vector.extract_strided_slice %341 {offsets = [0, 0, 5], sizes = [1, 4, 16], strides = [1, 1, 1]} : vector<1x4x22xf32> to vector<1x4x16xf32>
    %395 = vector.broadcast %393 : f32 to vector<1x4x16xf32>
    %396 = arith.mulf %395, %394 : vector<1x4x16xf32>
    %397 = arith.addf %387, %396 : vector<1x4x16xf32>
    %c68 = arith.constant 68 : index
    %398 = memref.load %arg2[%c68] : memref<294xf32, #tpu.memory_space<smem>>
    %399 = vector.extract_strided_slice %342 {offsets = [0, 0, 5], sizes = [1, 4, 16], strides = [1, 1, 1]} : vector<1x4x22xf32> to vector<1x4x16xf32>
    %400 = vector.broadcast %398 : f32 to vector<1x4x16xf32>
    %401 = arith.mulf %400, %399 : vector<1x4x16xf32>
    %402 = arith.addf %392, %401 : vector<1x4x16xf32>
    %c20 = arith.constant 20 : index
    %403 = memref.load %arg2[%c20] : memref<294xf32, #tpu.memory_space<smem>>
    %404 = vector.extract_strided_slice %341 {offsets = [0, 0, 6], sizes = [1, 4, 16], strides = [1, 1, 1]} : vector<1x4x22xf32> to vector<1x4x16xf32>
    %405 = vector.broadcast %403 : f32 to vector<1x4x16xf32>
    %406 = arith.mulf %405, %404 : vector<1x4x16xf32>
    %407 = arith.addf %397, %406 : vector<1x4x16xf32>
    %c69 = arith.constant 69 : index
    %408 = memref.load %arg2[%c69] : memref<294xf32, #tpu.memory_space<smem>>
    %409 = vector.extract_strided_slice %342 {offsets = [0, 0, 6], sizes = [1, 4, 16], strides = [1, 1, 1]} : vector<1x4x22xf32> to vector<1x4x16xf32>
    %410 = vector.broadcast %408 : f32 to vector<1x4x16xf32>
    %411 = arith.mulf %410, %409 : vector<1x4x16xf32>
    %412 = arith.addf %402, %411 : vector<1x4x16xf32>
    %413 = vector.extract_strided_slice %188 {offsets = [0, 3, 0], sizes = [1, 4, 22], strides = [1, 1, 1]} : vector<1x10x22xf32> to vector<1x4x22xf32>
    %414 = vector.extract_strided_slice %192 {offsets = [0, 3, 0], sizes = [1, 4, 22], strides = [1, 1, 1]} : vector<1x10x22xf32> to vector<1x4x22xf32>
    %c21 = arith.constant 21 : index
    %415 = memref.load %arg2[%c21] : memref<294xf32, #tpu.memory_space<smem>>
    %416 = vector.extract_strided_slice %413 {offsets = [0, 0, 0], sizes = [1, 4, 16], strides = [1, 1, 1]} : vector<1x4x22xf32> to vector<1x4x16xf32>
    %417 = vector.broadcast %415 : f32 to vector<1x4x16xf32>
    %418 = arith.mulf %417, %416 : vector<1x4x16xf32>
    %419 = arith.addf %335, %418 : vector<1x4x16xf32>
    %c70 = arith.constant 70 : index
    %420 = memref.load %arg2[%c70] : memref<294xf32, #tpu.memory_space<smem>>
    %421 = vector.extract_strided_slice %414 {offsets = [0, 0, 0], sizes = [1, 4, 16], strides = [1, 1, 1]} : vector<1x4x22xf32> to vector<1x4x16xf32>
    %422 = vector.broadcast %420 : f32 to vector<1x4x16xf32>
    %423 = arith.mulf %422, %421 : vector<1x4x16xf32>
    %424 = arith.addf %340, %423 : vector<1x4x16xf32>
    %c22 = arith.constant 22 : index
    %425 = memref.load %arg2[%c22] : memref<294xf32, #tpu.memory_space<smem>>
    %426 = vector.extract_strided_slice %413 {offsets = [0, 0, 1], sizes = [1, 4, 16], strides = [1, 1, 1]} : vector<1x4x22xf32> to vector<1x4x16xf32>
    %427 = vector.broadcast %425 : f32 to vector<1x4x16xf32>
    %428 = arith.mulf %427, %426 : vector<1x4x16xf32>
    %429 = arith.addf %419, %428 : vector<1x4x16xf32>
    %c71 = arith.constant 71 : index
    %430 = memref.load %arg2[%c71] : memref<294xf32, #tpu.memory_space<smem>>
    %431 = vector.extract_strided_slice %414 {offsets = [0, 0, 1], sizes = [1, 4, 16], strides = [1, 1, 1]} : vector<1x4x22xf32> to vector<1x4x16xf32>
    %432 = vector.broadcast %430 : f32 to vector<1x4x16xf32>
    %433 = arith.mulf %432, %431 : vector<1x4x16xf32>
    %434 = arith.addf %424, %433 : vector<1x4x16xf32>
    %c23 = arith.constant 23 : index
    %435 = memref.load %arg2[%c23] : memref<294xf32, #tpu.memory_space<smem>>
    %436 = vector.extract_strided_slice %413 {offsets = [0, 0, 2], sizes = [1, 4, 16], strides = [1, 1, 1]} : vector<1x4x22xf32> to vector<1x4x16xf32>
    %437 = vector.broadcast %435 : f32 to vector<1x4x16xf32>
    %438 = arith.mulf %437, %436 : vector<1x4x16xf32>
    %439 = arith.addf %429, %438 : vector<1x4x16xf32>
    %c72 = arith.constant 72 : index
    %440 = memref.load %arg2[%c72] : memref<294xf32, #tpu.memory_space<smem>>
    %441 = vector.extract_strided_slice %414 {offsets = [0, 0, 2], sizes = [1, 4, 16], strides = [1, 1, 1]} : vector<1x4x22xf32> to vector<1x4x16xf32>
    %442 = vector.broadcast %440 : f32 to vector<1x4x16xf32>
    %443 = arith.mulf %442, %441 : vector<1x4x16xf32>
    %444 = arith.addf %434, %443 : vector<1x4x16xf32>
    %c24 = arith.constant 24 : index
    %445 = memref.load %arg2[%c24] : memref<294xf32, #tpu.memory_space<smem>>
    %446 = vector.extract_strided_slice %413 {offsets = [0, 0, 3], sizes = [1, 4, 16], strides = [1, 1, 1]} : vector<1x4x22xf32> to vector<1x4x16xf32>
    %447 = vector.broadcast %445 : f32 to vector<1x4x16xf32>
    %448 = arith.mulf %447, %446 : vector<1x4x16xf32>
    %449 = arith.addf %439, %448 : vector<1x4x16xf32>
    %c73 = arith.constant 73 : index
    %450 = memref.load %arg2[%c73] : memref<294xf32, #tpu.memory_space<smem>>
    %451 = vector.extract_strided_slice %414 {offsets = [0, 0, 3], sizes = [1, 4, 16], strides = [1, 1, 1]} : vector<1x4x22xf32> to vector<1x4x16xf32>
    %452 = vector.broadcast %450 : f32 to vector<1x4x16xf32>
    %453 = arith.mulf %452, %451 : vector<1x4x16xf32>
    %454 = arith.addf %444, %453 : vector<1x4x16xf32>
    %c25 = arith.constant 25 : index
    %455 = memref.load %arg2[%c25] : memref<294xf32, #tpu.memory_space<smem>>
    %456 = vector.extract_strided_slice %413 {offsets = [0, 0, 4], sizes = [1, 4, 16], strides = [1, 1, 1]} : vector<1x4x22xf32> to vector<1x4x16xf32>
    %457 = vector.broadcast %455 : f32 to vector<1x4x16xf32>
    %458 = arith.mulf %457, %456 : vector<1x4x16xf32>
    %459 = arith.addf %449, %458 : vector<1x4x16xf32>
    %c74 = arith.constant 74 : index
    %460 = memref.load %arg2[%c74] : memref<294xf32, #tpu.memory_space<smem>>
    %461 = vector.extract_strided_slice %414 {offsets = [0, 0, 4], sizes = [1, 4, 16], strides = [1, 1, 1]} : vector<1x4x22xf32> to vector<1x4x16xf32>
    %462 = vector.broadcast %460 : f32 to vector<1x4x16xf32>
    %463 = arith.mulf %462, %461 : vector<1x4x16xf32>
    %464 = arith.addf %454, %463 : vector<1x4x16xf32>
    %c26 = arith.constant 26 : index
    %465 = memref.load %arg2[%c26] : memref<294xf32, #tpu.memory_space<smem>>
    %466 = vector.extract_strided_slice %413 {offsets = [0, 0, 5], sizes = [1, 4, 16], strides = [1, 1, 1]} : vector<1x4x22xf32> to vector<1x4x16xf32>
    %467 = vector.broadcast %465 : f32 to vector<1x4x16xf32>
    %468 = arith.mulf %467, %466 : vector<1x4x16xf32>
    %469 = arith.addf %459, %468 : vector<1x4x16xf32>
    %c75 = arith.constant 75 : index
    %470 = memref.load %arg2[%c75] : memref<294xf32, #tpu.memory_space<smem>>
    %471 = vector.extract_strided_slice %414 {offsets = [0, 0, 5], sizes = [1, 4, 16], strides = [1, 1, 1]} : vector<1x4x22xf32> to vector<1x4x16xf32>
    %472 = vector.broadcast %470 : f32 to vector<1x4x16xf32>
    %473 = arith.mulf %472, %471 : vector<1x4x16xf32>
    %474 = arith.addf %464, %473 : vector<1x4x16xf32>
    %c27 = arith.constant 27 : index
    %475 = memref.load %arg2[%c27] : memref<294xf32, #tpu.memory_space<smem>>
    %476 = vector.extract_strided_slice %413 {offsets = [0, 0, 6], sizes = [1, 4, 16], strides = [1, 1, 1]} : vector<1x4x22xf32> to vector<1x4x16xf32>
    %477 = vector.broadcast %475 : f32 to vector<1x4x16xf32>
    %478 = arith.mulf %477, %476 : vector<1x4x16xf32>
    %479 = arith.addf %469, %478 : vector<1x4x16xf32>
    %c76 = arith.constant 76 : index
    %480 = memref.load %arg2[%c76] : memref<294xf32, #tpu.memory_space<smem>>
    %481 = vector.extract_strided_slice %414 {offsets = [0, 0, 6], sizes = [1, 4, 16], strides = [1, 1, 1]} : vector<1x4x22xf32> to vector<1x4x16xf32>
    %482 = vector.broadcast %480 : f32 to vector<1x4x16xf32>
    %483 = arith.mulf %482, %481 : vector<1x4x16xf32>
    %484 = arith.addf %474, %483 : vector<1x4x16xf32>
    %485 = vector.extract_strided_slice %188 {offsets = [0, 4, 0], sizes = [1, 4, 22], strides = [1, 1, 1]} : vector<1x10x22xf32> to vector<1x4x22xf32>
    %486 = vector.extract_strided_slice %192 {offsets = [0, 4, 0], sizes = [1, 4, 22], strides = [1, 1, 1]} : vector<1x10x22xf32> to vector<1x4x22xf32>
    %c28 = arith.constant 28 : index
    %487 = memref.load %arg2[%c28] : memref<294xf32, #tpu.memory_space<smem>>
    %488 = vector.extract_strided_slice %485 {offsets = [0, 0, 0], sizes = [1, 4, 16], strides = [1, 1, 1]} : vector<1x4x22xf32> to vector<1x4x16xf32>
    %489 = vector.broadcast %487 : f32 to vector<1x4x16xf32>
    %490 = arith.mulf %489, %488 : vector<1x4x16xf32>
    %491 = arith.addf %407, %490 : vector<1x4x16xf32>
    %c77 = arith.constant 77 : index
    %492 = memref.load %arg2[%c77] : memref<294xf32, #tpu.memory_space<smem>>
    %493 = vector.extract_strided_slice %486 {offsets = [0, 0, 0], sizes = [1, 4, 16], strides = [1, 1, 1]} : vector<1x4x22xf32> to vector<1x4x16xf32>
    %494 = vector.broadcast %492 : f32 to vector<1x4x16xf32>
    %495 = arith.mulf %494, %493 : vector<1x4x16xf32>
    %496 = arith.addf %412, %495 : vector<1x4x16xf32>
    %c29 = arith.constant 29 : index
    %497 = memref.load %arg2[%c29] : memref<294xf32, #tpu.memory_space<smem>>
    %498 = vector.extract_strided_slice %485 {offsets = [0, 0, 1], sizes = [1, 4, 16], strides = [1, 1, 1]} : vector<1x4x22xf32> to vector<1x4x16xf32>
    %499 = vector.broadcast %497 : f32 to vector<1x4x16xf32>
    %500 = arith.mulf %499, %498 : vector<1x4x16xf32>
    %501 = arith.addf %491, %500 : vector<1x4x16xf32>
    %c78 = arith.constant 78 : index
    %502 = memref.load %arg2[%c78] : memref<294xf32, #tpu.memory_space<smem>>
    %503 = vector.extract_strided_slice %486 {offsets = [0, 0, 1], sizes = [1, 4, 16], strides = [1, 1, 1]} : vector<1x4x22xf32> to vector<1x4x16xf32>
    %504 = vector.broadcast %502 : f32 to vector<1x4x16xf32>
    %505 = arith.mulf %504, %503 : vector<1x4x16xf32>
    %506 = arith.addf %496, %505 : vector<1x4x16xf32>
    %c30 = arith.constant 30 : index
    %507 = memref.load %arg2[%c30] : memref<294xf32, #tpu.memory_space<smem>>
    %508 = vector.extract_strided_slice %485 {offsets = [0, 0, 2], sizes = [1, 4, 16], strides = [1, 1, 1]} : vector<1x4x22xf32> to vector<1x4x16xf32>
    %509 = vector.broadcast %507 : f32 to vector<1x4x16xf32>
    %510 = arith.mulf %509, %508 : vector<1x4x16xf32>
    %511 = arith.addf %501, %510 : vector<1x4x16xf32>
    %c79 = arith.constant 79 : index
    %512 = memref.load %arg2[%c79] : memref<294xf32, #tpu.memory_space<smem>>
    %513 = vector.extract_strided_slice %486 {offsets = [0, 0, 2], sizes = [1, 4, 16], strides = [1, 1, 1]} : vector<1x4x22xf32> to vector<1x4x16xf32>
    %514 = vector.broadcast %512 : f32 to vector<1x4x16xf32>
    %515 = arith.mulf %514, %513 : vector<1x4x16xf32>
    %516 = arith.addf %506, %515 : vector<1x4x16xf32>
    %c31 = arith.constant 31 : index
    %517 = memref.load %arg2[%c31] : memref<294xf32, #tpu.memory_space<smem>>
    %518 = vector.extract_strided_slice %485 {offsets = [0, 0, 3], sizes = [1, 4, 16], strides = [1, 1, 1]} : vector<1x4x22xf32> to vector<1x4x16xf32>
    %519 = vector.broadcast %517 : f32 to vector<1x4x16xf32>
    %520 = arith.mulf %519, %518 : vector<1x4x16xf32>
    %521 = arith.addf %511, %520 : vector<1x4x16xf32>
    %c80 = arith.constant 80 : index
    %522 = memref.load %arg2[%c80] : memref<294xf32, #tpu.memory_space<smem>>
    %523 = vector.extract_strided_slice %486 {offsets = [0, 0, 3], sizes = [1, 4, 16], strides = [1, 1, 1]} : vector<1x4x22xf32> to vector<1x4x16xf32>
    %524 = vector.broadcast %522 : f32 to vector<1x4x16xf32>
    %525 = arith.mulf %524, %523 : vector<1x4x16xf32>
    %526 = arith.addf %516, %525 : vector<1x4x16xf32>
    %c32 = arith.constant 32 : index
    %527 = memref.load %arg2[%c32] : memref<294xf32, #tpu.memory_space<smem>>
    %528 = vector.extract_strided_slice %485 {offsets = [0, 0, 4], sizes = [1, 4, 16], strides = [1, 1, 1]} : vector<1x4x22xf32> to vector<1x4x16xf32>
    %529 = vector.broadcast %527 : f32 to vector<1x4x16xf32>
    %530 = arith.mulf %529, %528 : vector<1x4x16xf32>
    %531 = arith.addf %521, %530 : vector<1x4x16xf32>
    %c81 = arith.constant 81 : index
    %532 = memref.load %arg2[%c81] : memref<294xf32, #tpu.memory_space<smem>>
    %533 = vector.extract_strided_slice %486 {offsets = [0, 0, 4], sizes = [1, 4, 16], strides = [1, 1, 1]} : vector<1x4x22xf32> to vector<1x4x16xf32>
    %534 = vector.broadcast %532 : f32 to vector<1x4x16xf32>
    %535 = arith.mulf %534, %533 : vector<1x4x16xf32>
    %536 = arith.addf %526, %535 : vector<1x4x16xf32>
    %c33 = arith.constant 33 : index
    %537 = memref.load %arg2[%c33] : memref<294xf32, #tpu.memory_space<smem>>
    %538 = vector.extract_strided_slice %485 {offsets = [0, 0, 5], sizes = [1, 4, 16], strides = [1, 1, 1]} : vector<1x4x22xf32> to vector<1x4x16xf32>
    %539 = vector.broadcast %537 : f32 to vector<1x4x16xf32>
    %540 = arith.mulf %539, %538 : vector<1x4x16xf32>
    %541 = arith.addf %531, %540 : vector<1x4x16xf32>
    %c82 = arith.constant 82 : index
    %542 = memref.load %arg2[%c82] : memref<294xf32, #tpu.memory_space<smem>>
    %543 = vector.extract_strided_slice %486 {offsets = [0, 0, 5], sizes = [1, 4, 16], strides = [1, 1, 1]} : vector<1x4x22xf32> to vector<1x4x16xf32>
    %544 = vector.broadcast %542 : f32 to vector<1x4x16xf32>
    %545 = arith.mulf %544, %543 : vector<1x4x16xf32>
    %546 = arith.addf %536, %545 : vector<1x4x16xf32>
    %c34 = arith.constant 34 : index
    %547 = memref.load %arg2[%c34] : memref<294xf32, #tpu.memory_space<smem>>
    %548 = vector.extract_strided_slice %485 {offsets = [0, 0, 6], sizes = [1, 4, 16], strides = [1, 1, 1]} : vector<1x4x22xf32> to vector<1x4x16xf32>
    %549 = vector.broadcast %547 : f32 to vector<1x4x16xf32>
    %550 = arith.mulf %549, %548 : vector<1x4x16xf32>
    %551 = arith.addf %541, %550 : vector<1x4x16xf32>
    %c83 = arith.constant 83 : index
    %552 = memref.load %arg2[%c83] : memref<294xf32, #tpu.memory_space<smem>>
    %553 = vector.extract_strided_slice %486 {offsets = [0, 0, 6], sizes = [1, 4, 16], strides = [1, 1, 1]} : vector<1x4x22xf32> to vector<1x4x16xf32>
    %554 = vector.broadcast %552 : f32 to vector<1x4x16xf32>
    %555 = arith.mulf %554, %553 : vector<1x4x16xf32>
    %556 = arith.addf %546, %555 : vector<1x4x16xf32>
    %557 = vector.extract_strided_slice %188 {offsets = [0, 5, 0], sizes = [1, 4, 22], strides = [1, 1, 1]} : vector<1x10x22xf32> to vector<1x4x22xf32>
    %558 = vector.extract_strided_slice %192 {offsets = [0, 5, 0], sizes = [1, 4, 22], strides = [1, 1, 1]} : vector<1x10x22xf32> to vector<1x4x22xf32>
    %c35 = arith.constant 35 : index
    %559 = memref.load %arg2[%c35] : memref<294xf32, #tpu.memory_space<smem>>
    %560 = vector.extract_strided_slice %557 {offsets = [0, 0, 0], sizes = [1, 4, 16], strides = [1, 1, 1]} : vector<1x4x22xf32> to vector<1x4x16xf32>
    %561 = vector.broadcast %559 : f32 to vector<1x4x16xf32>
    %562 = arith.mulf %561, %560 : vector<1x4x16xf32>
    %563 = arith.addf %479, %562 : vector<1x4x16xf32>
    %c84 = arith.constant 84 : index
    %564 = memref.load %arg2[%c84] : memref<294xf32, #tpu.memory_space<smem>>
    %565 = vector.extract_strided_slice %558 {offsets = [0, 0, 0], sizes = [1, 4, 16], strides = [1, 1, 1]} : vector<1x4x22xf32> to vector<1x4x16xf32>
    %566 = vector.broadcast %564 : f32 to vector<1x4x16xf32>
    %567 = arith.mulf %566, %565 : vector<1x4x16xf32>
    %568 = arith.addf %484, %567 : vector<1x4x16xf32>
    %c36 = arith.constant 36 : index
    %569 = memref.load %arg2[%c36] : memref<294xf32, #tpu.memory_space<smem>>
    %570 = vector.extract_strided_slice %557 {offsets = [0, 0, 1], sizes = [1, 4, 16], strides = [1, 1, 1]} : vector<1x4x22xf32> to vector<1x4x16xf32>
    %571 = vector.broadcast %569 : f32 to vector<1x4x16xf32>
    %572 = arith.mulf %571, %570 : vector<1x4x16xf32>
    %573 = arith.addf %563, %572 : vector<1x4x16xf32>
    %c85 = arith.constant 85 : index
    %574 = memref.load %arg2[%c85] : memref<294xf32, #tpu.memory_space<smem>>
    %575 = vector.extract_strided_slice %558 {offsets = [0, 0, 1], sizes = [1, 4, 16], strides = [1, 1, 1]} : vector<1x4x22xf32> to vector<1x4x16xf32>
    %576 = vector.broadcast %574 : f32 to vector<1x4x16xf32>
    %577 = arith.mulf %576, %575 : vector<1x4x16xf32>
    %578 = arith.addf %568, %577 : vector<1x4x16xf32>
    %c37 = arith.constant 37 : index
    %579 = memref.load %arg2[%c37] : memref<294xf32, #tpu.memory_space<smem>>
    %580 = vector.extract_strided_slice %557 {offsets = [0, 0, 2], sizes = [1, 4, 16], strides = [1, 1, 1]} : vector<1x4x22xf32> to vector<1x4x16xf32>
    %581 = vector.broadcast %579 : f32 to vector<1x4x16xf32>
    %582 = arith.mulf %581, %580 : vector<1x4x16xf32>
    %583 = arith.addf %573, %582 : vector<1x4x16xf32>
    %c86 = arith.constant 86 : index
    %584 = memref.load %arg2[%c86] : memref<294xf32, #tpu.memory_space<smem>>
    %585 = vector.extract_strided_slice %558 {offsets = [0, 0, 2], sizes = [1, 4, 16], strides = [1, 1, 1]} : vector<1x4x22xf32> to vector<1x4x16xf32>
    %586 = vector.broadcast %584 : f32 to vector<1x4x16xf32>
    %587 = arith.mulf %586, %585 : vector<1x4x16xf32>
    %588 = arith.addf %578, %587 : vector<1x4x16xf32>
    %c38 = arith.constant 38 : index
    %589 = memref.load %arg2[%c38] : memref<294xf32, #tpu.memory_space<smem>>
    %590 = vector.extract_strided_slice %557 {offsets = [0, 0, 3], sizes = [1, 4, 16], strides = [1, 1, 1]} : vector<1x4x22xf32> to vector<1x4x16xf32>
    %591 = vector.broadcast %589 : f32 to vector<1x4x16xf32>
    %592 = arith.mulf %591, %590 : vector<1x4x16xf32>
    %593 = arith.addf %583, %592 : vector<1x4x16xf32>
    %c87 = arith.constant 87 : index
    %594 = memref.load %arg2[%c87] : memref<294xf32, #tpu.memory_space<smem>>
    %595 = vector.extract_strided_slice %558 {offsets = [0, 0, 3], sizes = [1, 4, 16], strides = [1, 1, 1]} : vector<1x4x22xf32> to vector<1x4x16xf32>
    %596 = vector.broadcast %594 : f32 to vector<1x4x16xf32>
    %597 = arith.mulf %596, %595 : vector<1x4x16xf32>
    %598 = arith.addf %588, %597 : vector<1x4x16xf32>
    %c39 = arith.constant 39 : index
    %599 = memref.load %arg2[%c39] : memref<294xf32, #tpu.memory_space<smem>>
    %600 = vector.extract_strided_slice %557 {offsets = [0, 0, 4], sizes = [1, 4, 16], strides = [1, 1, 1]} : vector<1x4x22xf32> to vector<1x4x16xf32>
    %601 = vector.broadcast %599 : f32 to vector<1x4x16xf32>
    %602 = arith.mulf %601, %600 : vector<1x4x16xf32>
    %603 = arith.addf %593, %602 : vector<1x4x16xf32>
    %c88 = arith.constant 88 : index
    %604 = memref.load %arg2[%c88] : memref<294xf32, #tpu.memory_space<smem>>
    %605 = vector.extract_strided_slice %558 {offsets = [0, 0, 4], sizes = [1, 4, 16], strides = [1, 1, 1]} : vector<1x4x22xf32> to vector<1x4x16xf32>
    %606 = vector.broadcast %604 : f32 to vector<1x4x16xf32>
    %607 = arith.mulf %606, %605 : vector<1x4x16xf32>
    %608 = arith.addf %598, %607 : vector<1x4x16xf32>
    %c40 = arith.constant 40 : index
    %609 = memref.load %arg2[%c40] : memref<294xf32, #tpu.memory_space<smem>>
    %610 = vector.extract_strided_slice %557 {offsets = [0, 0, 5], sizes = [1, 4, 16], strides = [1, 1, 1]} : vector<1x4x22xf32> to vector<1x4x16xf32>
    %611 = vector.broadcast %609 : f32 to vector<1x4x16xf32>
    %612 = arith.mulf %611, %610 : vector<1x4x16xf32>
    %613 = arith.addf %603, %612 : vector<1x4x16xf32>
    %c89 = arith.constant 89 : index
    %614 = memref.load %arg2[%c89] : memref<294xf32, #tpu.memory_space<smem>>
    %615 = vector.extract_strided_slice %558 {offsets = [0, 0, 5], sizes = [1, 4, 16], strides = [1, 1, 1]} : vector<1x4x22xf32> to vector<1x4x16xf32>
    %616 = vector.broadcast %614 : f32 to vector<1x4x16xf32>
    %617 = arith.mulf %616, %615 : vector<1x4x16xf32>
    %618 = arith.addf %608, %617 : vector<1x4x16xf32>
    %c41 = arith.constant 41 : index
    %619 = memref.load %arg2[%c41] : memref<294xf32, #tpu.memory_space<smem>>
    %620 = vector.extract_strided_slice %557 {offsets = [0, 0, 6], sizes = [1, 4, 16], strides = [1, 1, 1]} : vector<1x4x22xf32> to vector<1x4x16xf32>
    %621 = vector.broadcast %619 : f32 to vector<1x4x16xf32>
    %622 = arith.mulf %621, %620 : vector<1x4x16xf32>
    %623 = arith.addf %613, %622 : vector<1x4x16xf32>
    %c90 = arith.constant 90 : index
    %624 = memref.load %arg2[%c90] : memref<294xf32, #tpu.memory_space<smem>>
    %625 = vector.extract_strided_slice %558 {offsets = [0, 0, 6], sizes = [1, 4, 16], strides = [1, 1, 1]} : vector<1x4x22xf32> to vector<1x4x16xf32>
    %626 = vector.broadcast %624 : f32 to vector<1x4x16xf32>
    %627 = arith.mulf %626, %625 : vector<1x4x16xf32>
    %628 = arith.addf %618, %627 : vector<1x4x16xf32>
    %629 = vector.extract_strided_slice %188 {offsets = [0, 6, 0], sizes = [1, 4, 22], strides = [1, 1, 1]} : vector<1x10x22xf32> to vector<1x4x22xf32>
    %630 = vector.extract_strided_slice %192 {offsets = [0, 6, 0], sizes = [1, 4, 22], strides = [1, 1, 1]} : vector<1x10x22xf32> to vector<1x4x22xf32>
    %c42 = arith.constant 42 : index
    %631 = memref.load %arg2[%c42] : memref<294xf32, #tpu.memory_space<smem>>
    %632 = vector.extract_strided_slice %629 {offsets = [0, 0, 0], sizes = [1, 4, 16], strides = [1, 1, 1]} : vector<1x4x22xf32> to vector<1x4x16xf32>
    %633 = vector.broadcast %631 : f32 to vector<1x4x16xf32>
    %634 = arith.mulf %633, %632 : vector<1x4x16xf32>
    %635 = arith.addf %551, %634 : vector<1x4x16xf32>
    %c91 = arith.constant 91 : index
    %636 = memref.load %arg2[%c91] : memref<294xf32, #tpu.memory_space<smem>>
    %637 = vector.extract_strided_slice %630 {offsets = [0, 0, 0], sizes = [1, 4, 16], strides = [1, 1, 1]} : vector<1x4x22xf32> to vector<1x4x16xf32>
    %638 = vector.broadcast %636 : f32 to vector<1x4x16xf32>
    %639 = arith.mulf %638, %637 : vector<1x4x16xf32>
    %640 = arith.addf %556, %639 : vector<1x4x16xf32>
    %c43 = arith.constant 43 : index
    %641 = memref.load %arg2[%c43] : memref<294xf32, #tpu.memory_space<smem>>
    %642 = vector.extract_strided_slice %629 {offsets = [0, 0, 1], sizes = [1, 4, 16], strides = [1, 1, 1]} : vector<1x4x22xf32> to vector<1x4x16xf32>
    %643 = vector.broadcast %641 : f32 to vector<1x4x16xf32>
    %644 = arith.mulf %643, %642 : vector<1x4x16xf32>
    %645 = arith.addf %635, %644 : vector<1x4x16xf32>
    %c92 = arith.constant 92 : index
    %646 = memref.load %arg2[%c92] : memref<294xf32, #tpu.memory_space<smem>>
    %647 = vector.extract_strided_slice %630 {offsets = [0, 0, 1], sizes = [1, 4, 16], strides = [1, 1, 1]} : vector<1x4x22xf32> to vector<1x4x16xf32>
    %648 = vector.broadcast %646 : f32 to vector<1x4x16xf32>
    %649 = arith.mulf %648, %647 : vector<1x4x16xf32>
    %650 = arith.addf %640, %649 : vector<1x4x16xf32>
    %c44 = arith.constant 44 : index
    %651 = memref.load %arg2[%c44] : memref<294xf32, #tpu.memory_space<smem>>
    %652 = vector.extract_strided_slice %629 {offsets = [0, 0, 2], sizes = [1, 4, 16], strides = [1, 1, 1]} : vector<1x4x22xf32> to vector<1x4x16xf32>
    %653 = vector.broadcast %651 : f32 to vector<1x4x16xf32>
    %654 = arith.mulf %653, %652 : vector<1x4x16xf32>
    %655 = arith.addf %645, %654 : vector<1x4x16xf32>
    %c93 = arith.constant 93 : index
    %656 = memref.load %arg2[%c93] : memref<294xf32, #tpu.memory_space<smem>>
    %657 = vector.extract_strided_slice %630 {offsets = [0, 0, 2], sizes = [1, 4, 16], strides = [1, 1, 1]} : vector<1x4x22xf32> to vector<1x4x16xf32>
    %658 = vector.broadcast %656 : f32 to vector<1x4x16xf32>
    %659 = arith.mulf %658, %657 : vector<1x4x16xf32>
    %660 = arith.addf %650, %659 : vector<1x4x16xf32>
    %c45 = arith.constant 45 : index
    %661 = memref.load %arg2[%c45] : memref<294xf32, #tpu.memory_space<smem>>
    %662 = vector.extract_strided_slice %629 {offsets = [0, 0, 3], sizes = [1, 4, 16], strides = [1, 1, 1]} : vector<1x4x22xf32> to vector<1x4x16xf32>
    %663 = vector.broadcast %661 : f32 to vector<1x4x16xf32>
    %664 = arith.mulf %663, %662 : vector<1x4x16xf32>
    %665 = arith.addf %655, %664 : vector<1x4x16xf32>
    %c94 = arith.constant 94 : index
    %666 = memref.load %arg2[%c94] : memref<294xf32, #tpu.memory_space<smem>>
    %667 = vector.extract_strided_slice %630 {offsets = [0, 0, 3], sizes = [1, 4, 16], strides = [1, 1, 1]} : vector<1x4x22xf32> to vector<1x4x16xf32>
    %668 = vector.broadcast %666 : f32 to vector<1x4x16xf32>
    %669 = arith.mulf %668, %667 : vector<1x4x16xf32>
    %670 = arith.addf %660, %669 : vector<1x4x16xf32>
    %c46 = arith.constant 46 : index
    %671 = memref.load %arg2[%c46] : memref<294xf32, #tpu.memory_space<smem>>
    %672 = vector.extract_strided_slice %629 {offsets = [0, 0, 4], sizes = [1, 4, 16], strides = [1, 1, 1]} : vector<1x4x22xf32> to vector<1x4x16xf32>
    %673 = vector.broadcast %671 : f32 to vector<1x4x16xf32>
    %674 = arith.mulf %673, %672 : vector<1x4x16xf32>
    %675 = arith.addf %665, %674 : vector<1x4x16xf32>
    %c95 = arith.constant 95 : index
    %676 = memref.load %arg2[%c95] : memref<294xf32, #tpu.memory_space<smem>>
    %677 = vector.extract_strided_slice %630 {offsets = [0, 0, 4], sizes = [1, 4, 16], strides = [1, 1, 1]} : vector<1x4x22xf32> to vector<1x4x16xf32>
    %678 = vector.broadcast %676 : f32 to vector<1x4x16xf32>
    %679 = arith.mulf %678, %677 : vector<1x4x16xf32>
    %680 = arith.addf %670, %679 : vector<1x4x16xf32>
    %c47 = arith.constant 47 : index
    %681 = memref.load %arg2[%c47] : memref<294xf32, #tpu.memory_space<smem>>
    %682 = vector.extract_strided_slice %629 {offsets = [0, 0, 5], sizes = [1, 4, 16], strides = [1, 1, 1]} : vector<1x4x22xf32> to vector<1x4x16xf32>
    %683 = vector.broadcast %681 : f32 to vector<1x4x16xf32>
    %684 = arith.mulf %683, %682 : vector<1x4x16xf32>
    %685 = arith.addf %675, %684 : vector<1x4x16xf32>
    %c96 = arith.constant 96 : index
    %686 = memref.load %arg2[%c96] : memref<294xf32, #tpu.memory_space<smem>>
    %687 = vector.extract_strided_slice %630 {offsets = [0, 0, 5], sizes = [1, 4, 16], strides = [1, 1, 1]} : vector<1x4x22xf32> to vector<1x4x16xf32>
    %688 = vector.broadcast %686 : f32 to vector<1x4x16xf32>
    %689 = arith.mulf %688, %687 : vector<1x4x16xf32>
    %690 = arith.addf %680, %689 : vector<1x4x16xf32>
    %c48 = arith.constant 48 : index
    %691 = memref.load %arg2[%c48] : memref<294xf32, #tpu.memory_space<smem>>
    %692 = vector.extract_strided_slice %629 {offsets = [0, 0, 6], sizes = [1, 4, 16], strides = [1, 1, 1]} : vector<1x4x22xf32> to vector<1x4x16xf32>
    %693 = vector.broadcast %691 : f32 to vector<1x4x16xf32>
    %694 = arith.mulf %693, %692 : vector<1x4x16xf32>
    %695 = arith.addf %685, %694 : vector<1x4x16xf32>
    %c97 = arith.constant 97 : index
    %696 = memref.load %arg2[%c97] : memref<294xf32, #tpu.memory_space<smem>>
    %697 = vector.extract_strided_slice %630 {offsets = [0, 0, 6], sizes = [1, 4, 16], strides = [1, 1, 1]} : vector<1x4x22xf32> to vector<1x4x16xf32>
    %698 = vector.broadcast %696 : f32 to vector<1x4x16xf32>
    %699 = arith.mulf %698, %697 : vector<1x4x16xf32>
    %700 = arith.addf %690, %699 : vector<1x4x16xf32>
    %701 = arith.addf %695, %623 : vector<1x4x16xf32>
    %702 = arith.addf %700, %628 : vector<1x4x16xf32>
    %703 = arith.addf %701, %702 : vector<1x4x16xf32>
    %cst_77 = arith.constant 0.000000e+00 : f32
    %704 = vector.broadcast %cst_77 : f32 to vector<1x4x3xf32>
    %705 = tpu.concatenate %704, %129, %704 in 2 : vector<1x4x3xf32>, vector<1x4x16xf32>, vector<1x4x3xf32> -> vector<1x4x22xf32>
    %cst_78 = arith.constant 0.000000e+00 : f32
    %706 = vector.broadcast %cst_78 : f32 to vector<1x3x22xf32>
    %707 = tpu.concatenate %706, %705, %706 in 1 : vector<1x3x22xf32>, vector<1x4x22xf32>, vector<1x3x22xf32> -> vector<1x10x22xf32>
    %cst_79 = arith.constant 0.000000e+00 : f32
    %708 = vector.broadcast %cst_79 : f32 to vector<1x4x3xf32>
    %709 = tpu.concatenate %708, %148, %708 in 2 : vector<1x4x3xf32>, vector<1x4x16xf32>, vector<1x4x3xf32> -> vector<1x4x22xf32>
    %cst_80 = arith.constant 0.000000e+00 : f32
    %710 = vector.broadcast %cst_80 : f32 to vector<1x3x22xf32>
    %711 = tpu.concatenate %710, %709, %710 in 1 : vector<1x3x22xf32>, vector<1x4x22xf32>, vector<1x3x22xf32> -> vector<1x10x22xf32>
    %cst_81 = arith.constant 0.000000e+00 : f32
    %712 = vector.broadcast %cst_81 : f32 to vector<1x4x16xf32>
    %cst_82 = arith.constant 0.000000e+00 : f32
    %713 = vector.broadcast %cst_82 : f32 to vector<1x4x16xf32>
    %cst_83 = arith.constant 0.000000e+00 : f32
    %714 = vector.broadcast %cst_83 : f32 to vector<1x4x16xf32>
    %cst_84 = arith.constant 0.000000e+00 : f32
    %715 = vector.broadcast %cst_84 : f32 to vector<1x4x16xf32>
    %716 = vector.extract_strided_slice %707 {offsets = [0, 0, 0], sizes = [1, 4, 22], strides = [1, 1, 1]} : vector<1x10x22xf32> to vector<1x4x22xf32>
    %717 = vector.extract_strided_slice %711 {offsets = [0, 0, 0], sizes = [1, 4, 22], strides = [1, 1, 1]} : vector<1x10x22xf32> to vector<1x4x22xf32>
    %c98 = arith.constant 98 : index
    %718 = memref.load %arg2[%c98] : memref<294xf32, #tpu.memory_space<smem>>
    %719 = vector.extract_strided_slice %716 {offsets = [0, 0, 0], sizes = [1, 4, 16], strides = [1, 1, 1]} : vector<1x4x22xf32> to vector<1x4x16xf32>
    %720 = vector.broadcast %718 : f32 to vector<1x4x16xf32>
    %721 = arith.mulf %720, %719 : vector<1x4x16xf32>
    %722 = arith.addf %712, %721 : vector<1x4x16xf32>
    %c147 = arith.constant 147 : index
    %723 = memref.load %arg2[%c147] : memref<294xf32, #tpu.memory_space<smem>>
    %724 = vector.extract_strided_slice %717 {offsets = [0, 0, 0], sizes = [1, 4, 16], strides = [1, 1, 1]} : vector<1x4x22xf32> to vector<1x4x16xf32>
    %725 = vector.broadcast %723 : f32 to vector<1x4x16xf32>
    %726 = arith.mulf %725, %724 : vector<1x4x16xf32>
    %727 = arith.addf %714, %726 : vector<1x4x16xf32>
    %c105 = arith.constant 105 : index
    %728 = memref.load %arg2[%c105] : memref<294xf32, #tpu.memory_space<smem>>
    %729 = vector.extract_strided_slice %716 {offsets = [0, 0, 1], sizes = [1, 4, 16], strides = [1, 1, 1]} : vector<1x4x22xf32> to vector<1x4x16xf32>
    %730 = vector.broadcast %728 : f32 to vector<1x4x16xf32>
    %731 = arith.mulf %730, %729 : vector<1x4x16xf32>
    %732 = arith.addf %722, %731 : vector<1x4x16xf32>
    %c154 = arith.constant 154 : index
    %733 = memref.load %arg2[%c154] : memref<294xf32, #tpu.memory_space<smem>>
    %734 = vector.extract_strided_slice %717 {offsets = [0, 0, 1], sizes = [1, 4, 16], strides = [1, 1, 1]} : vector<1x4x22xf32> to vector<1x4x16xf32>
    %735 = vector.broadcast %733 : f32 to vector<1x4x16xf32>
    %736 = arith.mulf %735, %734 : vector<1x4x16xf32>
    %737 = arith.addf %727, %736 : vector<1x4x16xf32>
    %c112 = arith.constant 112 : index
    %738 = memref.load %arg2[%c112] : memref<294xf32, #tpu.memory_space<smem>>
    %739 = vector.extract_strided_slice %716 {offsets = [0, 0, 2], sizes = [1, 4, 16], strides = [1, 1, 1]} : vector<1x4x22xf32> to vector<1x4x16xf32>
    %740 = vector.broadcast %738 : f32 to vector<1x4x16xf32>
    %741 = arith.mulf %740, %739 : vector<1x4x16xf32>
    %742 = arith.addf %732, %741 : vector<1x4x16xf32>
    %c161 = arith.constant 161 : index
    %743 = memref.load %arg2[%c161] : memref<294xf32, #tpu.memory_space<smem>>
    %744 = vector.extract_strided_slice %717 {offsets = [0, 0, 2], sizes = [1, 4, 16], strides = [1, 1, 1]} : vector<1x4x22xf32> to vector<1x4x16xf32>
    %745 = vector.broadcast %743 : f32 to vector<1x4x16xf32>
    %746 = arith.mulf %745, %744 : vector<1x4x16xf32>
    %747 = arith.addf %737, %746 : vector<1x4x16xf32>
    %c119 = arith.constant 119 : index
    %748 = memref.load %arg2[%c119] : memref<294xf32, #tpu.memory_space<smem>>
    %749 = vector.extract_strided_slice %716 {offsets = [0, 0, 3], sizes = [1, 4, 16], strides = [1, 1, 1]} : vector<1x4x22xf32> to vector<1x4x16xf32>
    %750 = vector.broadcast %748 : f32 to vector<1x4x16xf32>
    %751 = arith.mulf %750, %749 : vector<1x4x16xf32>
    %752 = arith.addf %742, %751 : vector<1x4x16xf32>
    %c168 = arith.constant 168 : index
    %753 = memref.load %arg2[%c168] : memref<294xf32, #tpu.memory_space<smem>>
    %754 = vector.extract_strided_slice %717 {offsets = [0, 0, 3], sizes = [1, 4, 16], strides = [1, 1, 1]} : vector<1x4x22xf32> to vector<1x4x16xf32>
    %755 = vector.broadcast %753 : f32 to vector<1x4x16xf32>
    %756 = arith.mulf %755, %754 : vector<1x4x16xf32>
    %757 = arith.addf %747, %756 : vector<1x4x16xf32>
    %c126 = arith.constant 126 : index
    %758 = memref.load %arg2[%c126] : memref<294xf32, #tpu.memory_space<smem>>
    %759 = vector.extract_strided_slice %716 {offsets = [0, 0, 4], sizes = [1, 4, 16], strides = [1, 1, 1]} : vector<1x4x22xf32> to vector<1x4x16xf32>
    %760 = vector.broadcast %758 : f32 to vector<1x4x16xf32>
    %761 = arith.mulf %760, %759 : vector<1x4x16xf32>
    %762 = arith.addf %752, %761 : vector<1x4x16xf32>
    %c175 = arith.constant 175 : index
    %763 = memref.load %arg2[%c175] : memref<294xf32, #tpu.memory_space<smem>>
    %764 = vector.extract_strided_slice %717 {offsets = [0, 0, 4], sizes = [1, 4, 16], strides = [1, 1, 1]} : vector<1x4x22xf32> to vector<1x4x16xf32>
    %765 = vector.broadcast %763 : f32 to vector<1x4x16xf32>
    %766 = arith.mulf %765, %764 : vector<1x4x16xf32>
    %767 = arith.addf %757, %766 : vector<1x4x16xf32>
    %c133 = arith.constant 133 : index
    %768 = memref.load %arg2[%c133] : memref<294xf32, #tpu.memory_space<smem>>
    %769 = vector.extract_strided_slice %716 {offsets = [0, 0, 5], sizes = [1, 4, 16], strides = [1, 1, 1]} : vector<1x4x22xf32> to vector<1x4x16xf32>
    %770 = vector.broadcast %768 : f32 to vector<1x4x16xf32>
    %771 = arith.mulf %770, %769 : vector<1x4x16xf32>
    %772 = arith.addf %762, %771 : vector<1x4x16xf32>
    %c182 = arith.constant 182 : index
    %773 = memref.load %arg2[%c182] : memref<294xf32, #tpu.memory_space<smem>>
    %774 = vector.extract_strided_slice %717 {offsets = [0, 0, 5], sizes = [1, 4, 16], strides = [1, 1, 1]} : vector<1x4x22xf32> to vector<1x4x16xf32>
    %775 = vector.broadcast %773 : f32 to vector<1x4x16xf32>
    %776 = arith.mulf %775, %774 : vector<1x4x16xf32>
    %777 = arith.addf %767, %776 : vector<1x4x16xf32>
    %c140 = arith.constant 140 : index
    %778 = memref.load %arg2[%c140] : memref<294xf32, #tpu.memory_space<smem>>
    %779 = vector.extract_strided_slice %716 {offsets = [0, 0, 6], sizes = [1, 4, 16], strides = [1, 1, 1]} : vector<1x4x22xf32> to vector<1x4x16xf32>
    %780 = vector.broadcast %778 : f32 to vector<1x4x16xf32>
    %781 = arith.mulf %780, %779 : vector<1x4x16xf32>
    %782 = arith.addf %772, %781 : vector<1x4x16xf32>
    %c189 = arith.constant 189 : index
    %783 = memref.load %arg2[%c189] : memref<294xf32, #tpu.memory_space<smem>>
    %784 = vector.extract_strided_slice %717 {offsets = [0, 0, 6], sizes = [1, 4, 16], strides = [1, 1, 1]} : vector<1x4x22xf32> to vector<1x4x16xf32>
    %785 = vector.broadcast %783 : f32 to vector<1x4x16xf32>
    %786 = arith.mulf %785, %784 : vector<1x4x16xf32>
    %787 = arith.addf %777, %786 : vector<1x4x16xf32>
    %788 = vector.extract_strided_slice %707 {offsets = [0, 1, 0], sizes = [1, 4, 22], strides = [1, 1, 1]} : vector<1x10x22xf32> to vector<1x4x22xf32>
    %789 = vector.extract_strided_slice %711 {offsets = [0, 1, 0], sizes = [1, 4, 22], strides = [1, 1, 1]} : vector<1x10x22xf32> to vector<1x4x22xf32>
    %c99 = arith.constant 99 : index
    %790 = memref.load %arg2[%c99] : memref<294xf32, #tpu.memory_space<smem>>
    %791 = vector.extract_strided_slice %788 {offsets = [0, 0, 0], sizes = [1, 4, 16], strides = [1, 1, 1]} : vector<1x4x22xf32> to vector<1x4x16xf32>
    %792 = vector.broadcast %790 : f32 to vector<1x4x16xf32>
    %793 = arith.mulf %792, %791 : vector<1x4x16xf32>
    %794 = arith.addf %713, %793 : vector<1x4x16xf32>
    %c148 = arith.constant 148 : index
    %795 = memref.load %arg2[%c148] : memref<294xf32, #tpu.memory_space<smem>>
    %796 = vector.extract_strided_slice %789 {offsets = [0, 0, 0], sizes = [1, 4, 16], strides = [1, 1, 1]} : vector<1x4x22xf32> to vector<1x4x16xf32>
    %797 = vector.broadcast %795 : f32 to vector<1x4x16xf32>
    %798 = arith.mulf %797, %796 : vector<1x4x16xf32>
    %799 = arith.addf %715, %798 : vector<1x4x16xf32>
    %c106 = arith.constant 106 : index
    %800 = memref.load %arg2[%c106] : memref<294xf32, #tpu.memory_space<smem>>
    %801 = vector.extract_strided_slice %788 {offsets = [0, 0, 1], sizes = [1, 4, 16], strides = [1, 1, 1]} : vector<1x4x22xf32> to vector<1x4x16xf32>
    %802 = vector.broadcast %800 : f32 to vector<1x4x16xf32>
    %803 = arith.mulf %802, %801 : vector<1x4x16xf32>
    %804 = arith.addf %794, %803 : vector<1x4x16xf32>
    %c155 = arith.constant 155 : index
    %805 = memref.load %arg2[%c155] : memref<294xf32, #tpu.memory_space<smem>>
    %806 = vector.extract_strided_slice %789 {offsets = [0, 0, 1], sizes = [1, 4, 16], strides = [1, 1, 1]} : vector<1x4x22xf32> to vector<1x4x16xf32>
    %807 = vector.broadcast %805 : f32 to vector<1x4x16xf32>
    %808 = arith.mulf %807, %806 : vector<1x4x16xf32>
    %809 = arith.addf %799, %808 : vector<1x4x16xf32>
    %c113 = arith.constant 113 : index
    %810 = memref.load %arg2[%c113] : memref<294xf32, #tpu.memory_space<smem>>
    %811 = vector.extract_strided_slice %788 {offsets = [0, 0, 2], sizes = [1, 4, 16], strides = [1, 1, 1]} : vector<1x4x22xf32> to vector<1x4x16xf32>
    %812 = vector.broadcast %810 : f32 to vector<1x4x16xf32>
    %813 = arith.mulf %812, %811 : vector<1x4x16xf32>
    %814 = arith.addf %804, %813 : vector<1x4x16xf32>
    %c162 = arith.constant 162 : index
    %815 = memref.load %arg2[%c162] : memref<294xf32, #tpu.memory_space<smem>>
    %816 = vector.extract_strided_slice %789 {offsets = [0, 0, 2], sizes = [1, 4, 16], strides = [1, 1, 1]} : vector<1x4x22xf32> to vector<1x4x16xf32>
    %817 = vector.broadcast %815 : f32 to vector<1x4x16xf32>
    %818 = arith.mulf %817, %816 : vector<1x4x16xf32>
    %819 = arith.addf %809, %818 : vector<1x4x16xf32>
    %c120 = arith.constant 120 : index
    %820 = memref.load %arg2[%c120] : memref<294xf32, #tpu.memory_space<smem>>
    %821 = vector.extract_strided_slice %788 {offsets = [0, 0, 3], sizes = [1, 4, 16], strides = [1, 1, 1]} : vector<1x4x22xf32> to vector<1x4x16xf32>
    %822 = vector.broadcast %820 : f32 to vector<1x4x16xf32>
    %823 = arith.mulf %822, %821 : vector<1x4x16xf32>
    %824 = arith.addf %814, %823 : vector<1x4x16xf32>
    %c169 = arith.constant 169 : index
    %825 = memref.load %arg2[%c169] : memref<294xf32, #tpu.memory_space<smem>>
    %826 = vector.extract_strided_slice %789 {offsets = [0, 0, 3], sizes = [1, 4, 16], strides = [1, 1, 1]} : vector<1x4x22xf32> to vector<1x4x16xf32>
    %827 = vector.broadcast %825 : f32 to vector<1x4x16xf32>
    %828 = arith.mulf %827, %826 : vector<1x4x16xf32>
    %829 = arith.addf %819, %828 : vector<1x4x16xf32>
    %c127 = arith.constant 127 : index
    %830 = memref.load %arg2[%c127] : memref<294xf32, #tpu.memory_space<smem>>
    %831 = vector.extract_strided_slice %788 {offsets = [0, 0, 4], sizes = [1, 4, 16], strides = [1, 1, 1]} : vector<1x4x22xf32> to vector<1x4x16xf32>
    %832 = vector.broadcast %830 : f32 to vector<1x4x16xf32>
    %833 = arith.mulf %832, %831 : vector<1x4x16xf32>
    %834 = arith.addf %824, %833 : vector<1x4x16xf32>
    %c176 = arith.constant 176 : index
    %835 = memref.load %arg2[%c176] : memref<294xf32, #tpu.memory_space<smem>>
    %836 = vector.extract_strided_slice %789 {offsets = [0, 0, 4], sizes = [1, 4, 16], strides = [1, 1, 1]} : vector<1x4x22xf32> to vector<1x4x16xf32>
    %837 = vector.broadcast %835 : f32 to vector<1x4x16xf32>
    %838 = arith.mulf %837, %836 : vector<1x4x16xf32>
    %839 = arith.addf %829, %838 : vector<1x4x16xf32>
    %c134 = arith.constant 134 : index
    %840 = memref.load %arg2[%c134] : memref<294xf32, #tpu.memory_space<smem>>
    %841 = vector.extract_strided_slice %788 {offsets = [0, 0, 5], sizes = [1, 4, 16], strides = [1, 1, 1]} : vector<1x4x22xf32> to vector<1x4x16xf32>
    %842 = vector.broadcast %840 : f32 to vector<1x4x16xf32>
    %843 = arith.mulf %842, %841 : vector<1x4x16xf32>
    %844 = arith.addf %834, %843 : vector<1x4x16xf32>
    %c183 = arith.constant 183 : index
    %845 = memref.load %arg2[%c183] : memref<294xf32, #tpu.memory_space<smem>>
    %846 = vector.extract_strided_slice %789 {offsets = [0, 0, 5], sizes = [1, 4, 16], strides = [1, 1, 1]} : vector<1x4x22xf32> to vector<1x4x16xf32>
    %847 = vector.broadcast %845 : f32 to vector<1x4x16xf32>
    %848 = arith.mulf %847, %846 : vector<1x4x16xf32>
    %849 = arith.addf %839, %848 : vector<1x4x16xf32>
    %c141 = arith.constant 141 : index
    %850 = memref.load %arg2[%c141] : memref<294xf32, #tpu.memory_space<smem>>
    %851 = vector.extract_strided_slice %788 {offsets = [0, 0, 6], sizes = [1, 4, 16], strides = [1, 1, 1]} : vector<1x4x22xf32> to vector<1x4x16xf32>
    %852 = vector.broadcast %850 : f32 to vector<1x4x16xf32>
    %853 = arith.mulf %852, %851 : vector<1x4x16xf32>
    %854 = arith.addf %844, %853 : vector<1x4x16xf32>
    %c190 = arith.constant 190 : index
    %855 = memref.load %arg2[%c190] : memref<294xf32, #tpu.memory_space<smem>>
    %856 = vector.extract_strided_slice %789 {offsets = [0, 0, 6], sizes = [1, 4, 16], strides = [1, 1, 1]} : vector<1x4x22xf32> to vector<1x4x16xf32>
    %857 = vector.broadcast %855 : f32 to vector<1x4x16xf32>
    %858 = arith.mulf %857, %856 : vector<1x4x16xf32>
    %859 = arith.addf %849, %858 : vector<1x4x16xf32>
    %860 = vector.extract_strided_slice %707 {offsets = [0, 2, 0], sizes = [1, 4, 22], strides = [1, 1, 1]} : vector<1x10x22xf32> to vector<1x4x22xf32>
    %861 = vector.extract_strided_slice %711 {offsets = [0, 2, 0], sizes = [1, 4, 22], strides = [1, 1, 1]} : vector<1x10x22xf32> to vector<1x4x22xf32>
    %c100 = arith.constant 100 : index
    %862 = memref.load %arg2[%c100] : memref<294xf32, #tpu.memory_space<smem>>
    %863 = vector.extract_strided_slice %860 {offsets = [0, 0, 0], sizes = [1, 4, 16], strides = [1, 1, 1]} : vector<1x4x22xf32> to vector<1x4x16xf32>
    %864 = vector.broadcast %862 : f32 to vector<1x4x16xf32>
    %865 = arith.mulf %864, %863 : vector<1x4x16xf32>
    %866 = arith.addf %782, %865 : vector<1x4x16xf32>
    %c149 = arith.constant 149 : index
    %867 = memref.load %arg2[%c149] : memref<294xf32, #tpu.memory_space<smem>>
    %868 = vector.extract_strided_slice %861 {offsets = [0, 0, 0], sizes = [1, 4, 16], strides = [1, 1, 1]} : vector<1x4x22xf32> to vector<1x4x16xf32>
    %869 = vector.broadcast %867 : f32 to vector<1x4x16xf32>
    %870 = arith.mulf %869, %868 : vector<1x4x16xf32>
    %871 = arith.addf %787, %870 : vector<1x4x16xf32>
    %c107 = arith.constant 107 : index
    %872 = memref.load %arg2[%c107] : memref<294xf32, #tpu.memory_space<smem>>
    %873 = vector.extract_strided_slice %860 {offsets = [0, 0, 1], sizes = [1, 4, 16], strides = [1, 1, 1]} : vector<1x4x22xf32> to vector<1x4x16xf32>
    %874 = vector.broadcast %872 : f32 to vector<1x4x16xf32>
    %875 = arith.mulf %874, %873 : vector<1x4x16xf32>
    %876 = arith.addf %866, %875 : vector<1x4x16xf32>
    %c156 = arith.constant 156 : index
    %877 = memref.load %arg2[%c156] : memref<294xf32, #tpu.memory_space<smem>>
    %878 = vector.extract_strided_slice %861 {offsets = [0, 0, 1], sizes = [1, 4, 16], strides = [1, 1, 1]} : vector<1x4x22xf32> to vector<1x4x16xf32>
    %879 = vector.broadcast %877 : f32 to vector<1x4x16xf32>
    %880 = arith.mulf %879, %878 : vector<1x4x16xf32>
    %881 = arith.addf %871, %880 : vector<1x4x16xf32>
    %c114 = arith.constant 114 : index
    %882 = memref.load %arg2[%c114] : memref<294xf32, #tpu.memory_space<smem>>
    %883 = vector.extract_strided_slice %860 {offsets = [0, 0, 2], sizes = [1, 4, 16], strides = [1, 1, 1]} : vector<1x4x22xf32> to vector<1x4x16xf32>
    %884 = vector.broadcast %882 : f32 to vector<1x4x16xf32>
    %885 = arith.mulf %884, %883 : vector<1x4x16xf32>
    %886 = arith.addf %876, %885 : vector<1x4x16xf32>
    %c163 = arith.constant 163 : index
    %887 = memref.load %arg2[%c163] : memref<294xf32, #tpu.memory_space<smem>>
    %888 = vector.extract_strided_slice %861 {offsets = [0, 0, 2], sizes = [1, 4, 16], strides = [1, 1, 1]} : vector<1x4x22xf32> to vector<1x4x16xf32>
    %889 = vector.broadcast %887 : f32 to vector<1x4x16xf32>
    %890 = arith.mulf %889, %888 : vector<1x4x16xf32>
    %891 = arith.addf %881, %890 : vector<1x4x16xf32>
    %c121 = arith.constant 121 : index
    %892 = memref.load %arg2[%c121] : memref<294xf32, #tpu.memory_space<smem>>
    %893 = vector.extract_strided_slice %860 {offsets = [0, 0, 3], sizes = [1, 4, 16], strides = [1, 1, 1]} : vector<1x4x22xf32> to vector<1x4x16xf32>
    %894 = vector.broadcast %892 : f32 to vector<1x4x16xf32>
    %895 = arith.mulf %894, %893 : vector<1x4x16xf32>
    %896 = arith.addf %886, %895 : vector<1x4x16xf32>
    %c170 = arith.constant 170 : index
    %897 = memref.load %arg2[%c170] : memref<294xf32, #tpu.memory_space<smem>>
    %898 = vector.extract_strided_slice %861 {offsets = [0, 0, 3], sizes = [1, 4, 16], strides = [1, 1, 1]} : vector<1x4x22xf32> to vector<1x4x16xf32>
    %899 = vector.broadcast %897 : f32 to vector<1x4x16xf32>
    %900 = arith.mulf %899, %898 : vector<1x4x16xf32>
    %901 = arith.addf %891, %900 : vector<1x4x16xf32>
    %c128 = arith.constant 128 : index
    %902 = memref.load %arg2[%c128] : memref<294xf32, #tpu.memory_space<smem>>
    %903 = vector.extract_strided_slice %860 {offsets = [0, 0, 4], sizes = [1, 4, 16], strides = [1, 1, 1]} : vector<1x4x22xf32> to vector<1x4x16xf32>
    %904 = vector.broadcast %902 : f32 to vector<1x4x16xf32>
    %905 = arith.mulf %904, %903 : vector<1x4x16xf32>
    %906 = arith.addf %896, %905 : vector<1x4x16xf32>
    %c177 = arith.constant 177 : index
    %907 = memref.load %arg2[%c177] : memref<294xf32, #tpu.memory_space<smem>>
    %908 = vector.extract_strided_slice %861 {offsets = [0, 0, 4], sizes = [1, 4, 16], strides = [1, 1, 1]} : vector<1x4x22xf32> to vector<1x4x16xf32>
    %909 = vector.broadcast %907 : f32 to vector<1x4x16xf32>
    %910 = arith.mulf %909, %908 : vector<1x4x16xf32>
    %911 = arith.addf %901, %910 : vector<1x4x16xf32>
    %c135 = arith.constant 135 : index
    %912 = memref.load %arg2[%c135] : memref<294xf32, #tpu.memory_space<smem>>
    %913 = vector.extract_strided_slice %860 {offsets = [0, 0, 5], sizes = [1, 4, 16], strides = [1, 1, 1]} : vector<1x4x22xf32> to vector<1x4x16xf32>
    %914 = vector.broadcast %912 : f32 to vector<1x4x16xf32>
    %915 = arith.mulf %914, %913 : vector<1x4x16xf32>
    %916 = arith.addf %906, %915 : vector<1x4x16xf32>
    %c184 = arith.constant 184 : index
    %917 = memref.load %arg2[%c184] : memref<294xf32, #tpu.memory_space<smem>>
    %918 = vector.extract_strided_slice %861 {offsets = [0, 0, 5], sizes = [1, 4, 16], strides = [1, 1, 1]} : vector<1x4x22xf32> to vector<1x4x16xf32>
    %919 = vector.broadcast %917 : f32 to vector<1x4x16xf32>
    %920 = arith.mulf %919, %918 : vector<1x4x16xf32>
    %921 = arith.addf %911, %920 : vector<1x4x16xf32>
    %c142 = arith.constant 142 : index
    %922 = memref.load %arg2[%c142] : memref<294xf32, #tpu.memory_space<smem>>
    %923 = vector.extract_strided_slice %860 {offsets = [0, 0, 6], sizes = [1, 4, 16], strides = [1, 1, 1]} : vector<1x4x22xf32> to vector<1x4x16xf32>
    %924 = vector.broadcast %922 : f32 to vector<1x4x16xf32>
    %925 = arith.mulf %924, %923 : vector<1x4x16xf32>
    %926 = arith.addf %916, %925 : vector<1x4x16xf32>
    %c191 = arith.constant 191 : index
    %927 = memref.load %arg2[%c191] : memref<294xf32, #tpu.memory_space<smem>>
    %928 = vector.extract_strided_slice %861 {offsets = [0, 0, 6], sizes = [1, 4, 16], strides = [1, 1, 1]} : vector<1x4x22xf32> to vector<1x4x16xf32>
    %929 = vector.broadcast %927 : f32 to vector<1x4x16xf32>
    %930 = arith.mulf %929, %928 : vector<1x4x16xf32>
    %931 = arith.addf %921, %930 : vector<1x4x16xf32>
    %932 = vector.extract_strided_slice %707 {offsets = [0, 3, 0], sizes = [1, 4, 22], strides = [1, 1, 1]} : vector<1x10x22xf32> to vector<1x4x22xf32>
    %933 = vector.extract_strided_slice %711 {offsets = [0, 3, 0], sizes = [1, 4, 22], strides = [1, 1, 1]} : vector<1x10x22xf32> to vector<1x4x22xf32>
    %c101 = arith.constant 101 : index
    %934 = memref.load %arg2[%c101] : memref<294xf32, #tpu.memory_space<smem>>
    %935 = vector.extract_strided_slice %932 {offsets = [0, 0, 0], sizes = [1, 4, 16], strides = [1, 1, 1]} : vector<1x4x22xf32> to vector<1x4x16xf32>
    %936 = vector.broadcast %934 : f32 to vector<1x4x16xf32>
    %937 = arith.mulf %936, %935 : vector<1x4x16xf32>
    %938 = arith.addf %854, %937 : vector<1x4x16xf32>
    %c150 = arith.constant 150 : index
    %939 = memref.load %arg2[%c150] : memref<294xf32, #tpu.memory_space<smem>>
    %940 = vector.extract_strided_slice %933 {offsets = [0, 0, 0], sizes = [1, 4, 16], strides = [1, 1, 1]} : vector<1x4x22xf32> to vector<1x4x16xf32>
    %941 = vector.broadcast %939 : f32 to vector<1x4x16xf32>
    %942 = arith.mulf %941, %940 : vector<1x4x16xf32>
    %943 = arith.addf %859, %942 : vector<1x4x16xf32>
    %c108 = arith.constant 108 : index
    %944 = memref.load %arg2[%c108] : memref<294xf32, #tpu.memory_space<smem>>
    %945 = vector.extract_strided_slice %932 {offsets = [0, 0, 1], sizes = [1, 4, 16], strides = [1, 1, 1]} : vector<1x4x22xf32> to vector<1x4x16xf32>
    %946 = vector.broadcast %944 : f32 to vector<1x4x16xf32>
    %947 = arith.mulf %946, %945 : vector<1x4x16xf32>
    %948 = arith.addf %938, %947 : vector<1x4x16xf32>
    %c157 = arith.constant 157 : index
    %949 = memref.load %arg2[%c157] : memref<294xf32, #tpu.memory_space<smem>>
    %950 = vector.extract_strided_slice %933 {offsets = [0, 0, 1], sizes = [1, 4, 16], strides = [1, 1, 1]} : vector<1x4x22xf32> to vector<1x4x16xf32>
    %951 = vector.broadcast %949 : f32 to vector<1x4x16xf32>
    %952 = arith.mulf %951, %950 : vector<1x4x16xf32>
    %953 = arith.addf %943, %952 : vector<1x4x16xf32>
    %c115 = arith.constant 115 : index
    %954 = memref.load %arg2[%c115] : memref<294xf32, #tpu.memory_space<smem>>
    %955 = vector.extract_strided_slice %932 {offsets = [0, 0, 2], sizes = [1, 4, 16], strides = [1, 1, 1]} : vector<1x4x22xf32> to vector<1x4x16xf32>
    %956 = vector.broadcast %954 : f32 to vector<1x4x16xf32>
    %957 = arith.mulf %956, %955 : vector<1x4x16xf32>
    %958 = arith.addf %948, %957 : vector<1x4x16xf32>
    %c164 = arith.constant 164 : index
    %959 = memref.load %arg2[%c164] : memref<294xf32, #tpu.memory_space<smem>>
    %960 = vector.extract_strided_slice %933 {offsets = [0, 0, 2], sizes = [1, 4, 16], strides = [1, 1, 1]} : vector<1x4x22xf32> to vector<1x4x16xf32>
    %961 = vector.broadcast %959 : f32 to vector<1x4x16xf32>
    %962 = arith.mulf %961, %960 : vector<1x4x16xf32>
    %963 = arith.addf %953, %962 : vector<1x4x16xf32>
    %c122 = arith.constant 122 : index
    %964 = memref.load %arg2[%c122] : memref<294xf32, #tpu.memory_space<smem>>
    %965 = vector.extract_strided_slice %932 {offsets = [0, 0, 3], sizes = [1, 4, 16], strides = [1, 1, 1]} : vector<1x4x22xf32> to vector<1x4x16xf32>
    %966 = vector.broadcast %964 : f32 to vector<1x4x16xf32>
    %967 = arith.mulf %966, %965 : vector<1x4x16xf32>
    %968 = arith.addf %958, %967 : vector<1x4x16xf32>
    %c171 = arith.constant 171 : index
    %969 = memref.load %arg2[%c171] : memref<294xf32, #tpu.memory_space<smem>>
    %970 = vector.extract_strided_slice %933 {offsets = [0, 0, 3], sizes = [1, 4, 16], strides = [1, 1, 1]} : vector<1x4x22xf32> to vector<1x4x16xf32>
    %971 = vector.broadcast %969 : f32 to vector<1x4x16xf32>
    %972 = arith.mulf %971, %970 : vector<1x4x16xf32>
    %973 = arith.addf %963, %972 : vector<1x4x16xf32>
    %c129 = arith.constant 129 : index
    %974 = memref.load %arg2[%c129] : memref<294xf32, #tpu.memory_space<smem>>
    %975 = vector.extract_strided_slice %932 {offsets = [0, 0, 4], sizes = [1, 4, 16], strides = [1, 1, 1]} : vector<1x4x22xf32> to vector<1x4x16xf32>
    %976 = vector.broadcast %974 : f32 to vector<1x4x16xf32>
    %977 = arith.mulf %976, %975 : vector<1x4x16xf32>
    %978 = arith.addf %968, %977 : vector<1x4x16xf32>
    %c178 = arith.constant 178 : index
    %979 = memref.load %arg2[%c178] : memref<294xf32, #tpu.memory_space<smem>>
    %980 = vector.extract_strided_slice %933 {offsets = [0, 0, 4], sizes = [1, 4, 16], strides = [1, 1, 1]} : vector<1x4x22xf32> to vector<1x4x16xf32>
    %981 = vector.broadcast %979 : f32 to vector<1x4x16xf32>
    %982 = arith.mulf %981, %980 : vector<1x4x16xf32>
    %983 = arith.addf %973, %982 : vector<1x4x16xf32>
    %c136 = arith.constant 136 : index
    %984 = memref.load %arg2[%c136] : memref<294xf32, #tpu.memory_space<smem>>
    %985 = vector.extract_strided_slice %932 {offsets = [0, 0, 5], sizes = [1, 4, 16], strides = [1, 1, 1]} : vector<1x4x22xf32> to vector<1x4x16xf32>
    %986 = vector.broadcast %984 : f32 to vector<1x4x16xf32>
    %987 = arith.mulf %986, %985 : vector<1x4x16xf32>
    %988 = arith.addf %978, %987 : vector<1x4x16xf32>
    %c185 = arith.constant 185 : index
    %989 = memref.load %arg2[%c185] : memref<294xf32, #tpu.memory_space<smem>>
    %990 = vector.extract_strided_slice %933 {offsets = [0, 0, 5], sizes = [1, 4, 16], strides = [1, 1, 1]} : vector<1x4x22xf32> to vector<1x4x16xf32>
    %991 = vector.broadcast %989 : f32 to vector<1x4x16xf32>
    %992 = arith.mulf %991, %990 : vector<1x4x16xf32>
    %993 = arith.addf %983, %992 : vector<1x4x16xf32>
    %c143 = arith.constant 143 : index
    %994 = memref.load %arg2[%c143] : memref<294xf32, #tpu.memory_space<smem>>
    %995 = vector.extract_strided_slice %932 {offsets = [0, 0, 6], sizes = [1, 4, 16], strides = [1, 1, 1]} : vector<1x4x22xf32> to vector<1x4x16xf32>
    %996 = vector.broadcast %994 : f32 to vector<1x4x16xf32>
    %997 = arith.mulf %996, %995 : vector<1x4x16xf32>
    %998 = arith.addf %988, %997 : vector<1x4x16xf32>
    %c192 = arith.constant 192 : index
    %999 = memref.load %arg2[%c192] : memref<294xf32, #tpu.memory_space<smem>>
    %1000 = vector.extract_strided_slice %933 {offsets = [0, 0, 6], sizes = [1, 4, 16], strides = [1, 1, 1]} : vector<1x4x22xf32> to vector<1x4x16xf32>
    %1001 = vector.broadcast %999 : f32 to vector<1x4x16xf32>
    %1002 = arith.mulf %1001, %1000 : vector<1x4x16xf32>
    %1003 = arith.addf %993, %1002 : vector<1x4x16xf32>
    %1004 = vector.extract_strided_slice %707 {offsets = [0, 4, 0], sizes = [1, 4, 22], strides = [1, 1, 1]} : vector<1x10x22xf32> to vector<1x4x22xf32>
    %1005 = vector.extract_strided_slice %711 {offsets = [0, 4, 0], sizes = [1, 4, 22], strides = [1, 1, 1]} : vector<1x10x22xf32> to vector<1x4x22xf32>
    %c102 = arith.constant 102 : index
    %1006 = memref.load %arg2[%c102] : memref<294xf32, #tpu.memory_space<smem>>
    %1007 = vector.extract_strided_slice %1004 {offsets = [0, 0, 0], sizes = [1, 4, 16], strides = [1, 1, 1]} : vector<1x4x22xf32> to vector<1x4x16xf32>
    %1008 = vector.broadcast %1006 : f32 to vector<1x4x16xf32>
    %1009 = arith.mulf %1008, %1007 : vector<1x4x16xf32>
    %1010 = arith.addf %926, %1009 : vector<1x4x16xf32>
    %c151 = arith.constant 151 : index
    %1011 = memref.load %arg2[%c151] : memref<294xf32, #tpu.memory_space<smem>>
    %1012 = vector.extract_strided_slice %1005 {offsets = [0, 0, 0], sizes = [1, 4, 16], strides = [1, 1, 1]} : vector<1x4x22xf32> to vector<1x4x16xf32>
    %1013 = vector.broadcast %1011 : f32 to vector<1x4x16xf32>
    %1014 = arith.mulf %1013, %1012 : vector<1x4x16xf32>
    %1015 = arith.addf %931, %1014 : vector<1x4x16xf32>
    %c109 = arith.constant 109 : index
    %1016 = memref.load %arg2[%c109] : memref<294xf32, #tpu.memory_space<smem>>
    %1017 = vector.extract_strided_slice %1004 {offsets = [0, 0, 1], sizes = [1, 4, 16], strides = [1, 1, 1]} : vector<1x4x22xf32> to vector<1x4x16xf32>
    %1018 = vector.broadcast %1016 : f32 to vector<1x4x16xf32>
    %1019 = arith.mulf %1018, %1017 : vector<1x4x16xf32>
    %1020 = arith.addf %1010, %1019 : vector<1x4x16xf32>
    %c158 = arith.constant 158 : index
    %1021 = memref.load %arg2[%c158] : memref<294xf32, #tpu.memory_space<smem>>
    %1022 = vector.extract_strided_slice %1005 {offsets = [0, 0, 1], sizes = [1, 4, 16], strides = [1, 1, 1]} : vector<1x4x22xf32> to vector<1x4x16xf32>
    %1023 = vector.broadcast %1021 : f32 to vector<1x4x16xf32>
    %1024 = arith.mulf %1023, %1022 : vector<1x4x16xf32>
    %1025 = arith.addf %1015, %1024 : vector<1x4x16xf32>
    %c116 = arith.constant 116 : index
    %1026 = memref.load %arg2[%c116] : memref<294xf32, #tpu.memory_space<smem>>
    %1027 = vector.extract_strided_slice %1004 {offsets = [0, 0, 2], sizes = [1, 4, 16], strides = [1, 1, 1]} : vector<1x4x22xf32> to vector<1x4x16xf32>
    %1028 = vector.broadcast %1026 : f32 to vector<1x4x16xf32>
    %1029 = arith.mulf %1028, %1027 : vector<1x4x16xf32>
    %1030 = arith.addf %1020, %1029 : vector<1x4x16xf32>
    %c165 = arith.constant 165 : index
    %1031 = memref.load %arg2[%c165] : memref<294xf32, #tpu.memory_space<smem>>
    %1032 = vector.extract_strided_slice %1005 {offsets = [0, 0, 2], sizes = [1, 4, 16], strides = [1, 1, 1]} : vector<1x4x22xf32> to vector<1x4x16xf32>
    %1033 = vector.broadcast %1031 : f32 to vector<1x4x16xf32>
    %1034 = arith.mulf %1033, %1032 : vector<1x4x16xf32>
    %1035 = arith.addf %1025, %1034 : vector<1x4x16xf32>
    %c123 = arith.constant 123 : index
    %1036 = memref.load %arg2[%c123] : memref<294xf32, #tpu.memory_space<smem>>
    %1037 = vector.extract_strided_slice %1004 {offsets = [0, 0, 3], sizes = [1, 4, 16], strides = [1, 1, 1]} : vector<1x4x22xf32> to vector<1x4x16xf32>
    %1038 = vector.broadcast %1036 : f32 to vector<1x4x16xf32>
    %1039 = arith.mulf %1038, %1037 : vector<1x4x16xf32>
    %1040 = arith.addf %1030, %1039 : vector<1x4x16xf32>
    %c172 = arith.constant 172 : index
    %1041 = memref.load %arg2[%c172] : memref<294xf32, #tpu.memory_space<smem>>
    %1042 = vector.extract_strided_slice %1005 {offsets = [0, 0, 3], sizes = [1, 4, 16], strides = [1, 1, 1]} : vector<1x4x22xf32> to vector<1x4x16xf32>
    %1043 = vector.broadcast %1041 : f32 to vector<1x4x16xf32>
    %1044 = arith.mulf %1043, %1042 : vector<1x4x16xf32>
    %1045 = arith.addf %1035, %1044 : vector<1x4x16xf32>
    %c130 = arith.constant 130 : index
    %1046 = memref.load %arg2[%c130] : memref<294xf32, #tpu.memory_space<smem>>
    %1047 = vector.extract_strided_slice %1004 {offsets = [0, 0, 4], sizes = [1, 4, 16], strides = [1, 1, 1]} : vector<1x4x22xf32> to vector<1x4x16xf32>
    %1048 = vector.broadcast %1046 : f32 to vector<1x4x16xf32>
    %1049 = arith.mulf %1048, %1047 : vector<1x4x16xf32>
    %1050 = arith.addf %1040, %1049 : vector<1x4x16xf32>
    %c179 = arith.constant 179 : index
    %1051 = memref.load %arg2[%c179] : memref<294xf32, #tpu.memory_space<smem>>
    %1052 = vector.extract_strided_slice %1005 {offsets = [0, 0, 4], sizes = [1, 4, 16], strides = [1, 1, 1]} : vector<1x4x22xf32> to vector<1x4x16xf32>
    %1053 = vector.broadcast %1051 : f32 to vector<1x4x16xf32>
    %1054 = arith.mulf %1053, %1052 : vector<1x4x16xf32>
    %1055 = arith.addf %1045, %1054 : vector<1x4x16xf32>
    %c137 = arith.constant 137 : index
    %1056 = memref.load %arg2[%c137] : memref<294xf32, #tpu.memory_space<smem>>
    %1057 = vector.extract_strided_slice %1004 {offsets = [0, 0, 5], sizes = [1, 4, 16], strides = [1, 1, 1]} : vector<1x4x22xf32> to vector<1x4x16xf32>
    %1058 = vector.broadcast %1056 : f32 to vector<1x4x16xf32>
    %1059 = arith.mulf %1058, %1057 : vector<1x4x16xf32>
    %1060 = arith.addf %1050, %1059 : vector<1x4x16xf32>
    %c186 = arith.constant 186 : index
    %1061 = memref.load %arg2[%c186] : memref<294xf32, #tpu.memory_space<smem>>
    %1062 = vector.extract_strided_slice %1005 {offsets = [0, 0, 5], sizes = [1, 4, 16], strides = [1, 1, 1]} : vector<1x4x22xf32> to vector<1x4x16xf32>
    %1063 = vector.broadcast %1061 : f32 to vector<1x4x16xf32>
    %1064 = arith.mulf %1063, %1062 : vector<1x4x16xf32>
    %1065 = arith.addf %1055, %1064 : vector<1x4x16xf32>
    %c144 = arith.constant 144 : index
    %1066 = memref.load %arg2[%c144] : memref<294xf32, #tpu.memory_space<smem>>
    %1067 = vector.extract_strided_slice %1004 {offsets = [0, 0, 6], sizes = [1, 4, 16], strides = [1, 1, 1]} : vector<1x4x22xf32> to vector<1x4x16xf32>
    %1068 = vector.broadcast %1066 : f32 to vector<1x4x16xf32>
    %1069 = arith.mulf %1068, %1067 : vector<1x4x16xf32>
    %1070 = arith.addf %1060, %1069 : vector<1x4x16xf32>
    %c193 = arith.constant 193 : index
    %1071 = memref.load %arg2[%c193] : memref<294xf32, #tpu.memory_space<smem>>
    %1072 = vector.extract_strided_slice %1005 {offsets = [0, 0, 6], sizes = [1, 4, 16], strides = [1, 1, 1]} : vector<1x4x22xf32> to vector<1x4x16xf32>
    %1073 = vector.broadcast %1071 : f32 to vector<1x4x16xf32>
    %1074 = arith.mulf %1073, %1072 : vector<1x4x16xf32>
    %1075 = arith.addf %1065, %1074 : vector<1x4x16xf32>
    %1076 = vector.extract_strided_slice %707 {offsets = [0, 5, 0], sizes = [1, 4, 22], strides = [1, 1, 1]} : vector<1x10x22xf32> to vector<1x4x22xf32>
    %1077 = vector.extract_strided_slice %711 {offsets = [0, 5, 0], sizes = [1, 4, 22], strides = [1, 1, 1]} : vector<1x10x22xf32> to vector<1x4x22xf32>
    %c103 = arith.constant 103 : index
    %1078 = memref.load %arg2[%c103] : memref<294xf32, #tpu.memory_space<smem>>
    %1079 = vector.extract_strided_slice %1076 {offsets = [0, 0, 0], sizes = [1, 4, 16], strides = [1, 1, 1]} : vector<1x4x22xf32> to vector<1x4x16xf32>
    %1080 = vector.broadcast %1078 : f32 to vector<1x4x16xf32>
    %1081 = arith.mulf %1080, %1079 : vector<1x4x16xf32>
    %1082 = arith.addf %998, %1081 : vector<1x4x16xf32>
    %c152 = arith.constant 152 : index
    %1083 = memref.load %arg2[%c152] : memref<294xf32, #tpu.memory_space<smem>>
    %1084 = vector.extract_strided_slice %1077 {offsets = [0, 0, 0], sizes = [1, 4, 16], strides = [1, 1, 1]} : vector<1x4x22xf32> to vector<1x4x16xf32>
    %1085 = vector.broadcast %1083 : f32 to vector<1x4x16xf32>
    %1086 = arith.mulf %1085, %1084 : vector<1x4x16xf32>
    %1087 = arith.addf %1003, %1086 : vector<1x4x16xf32>
    %c110 = arith.constant 110 : index
    %1088 = memref.load %arg2[%c110] : memref<294xf32, #tpu.memory_space<smem>>
    %1089 = vector.extract_strided_slice %1076 {offsets = [0, 0, 1], sizes = [1, 4, 16], strides = [1, 1, 1]} : vector<1x4x22xf32> to vector<1x4x16xf32>
    %1090 = vector.broadcast %1088 : f32 to vector<1x4x16xf32>
    %1091 = arith.mulf %1090, %1089 : vector<1x4x16xf32>
    %1092 = arith.addf %1082, %1091 : vector<1x4x16xf32>
    %c159 = arith.constant 159 : index
    %1093 = memref.load %arg2[%c159] : memref<294xf32, #tpu.memory_space<smem>>
    %1094 = vector.extract_strided_slice %1077 {offsets = [0, 0, 1], sizes = [1, 4, 16], strides = [1, 1, 1]} : vector<1x4x22xf32> to vector<1x4x16xf32>
    %1095 = vector.broadcast %1093 : f32 to vector<1x4x16xf32>
    %1096 = arith.mulf %1095, %1094 : vector<1x4x16xf32>
    %1097 = arith.addf %1087, %1096 : vector<1x4x16xf32>
    %c117 = arith.constant 117 : index
    %1098 = memref.load %arg2[%c117] : memref<294xf32, #tpu.memory_space<smem>>
    %1099 = vector.extract_strided_slice %1076 {offsets = [0, 0, 2], sizes = [1, 4, 16], strides = [1, 1, 1]} : vector<1x4x22xf32> to vector<1x4x16xf32>
    %1100 = vector.broadcast %1098 : f32 to vector<1x4x16xf32>
    %1101 = arith.mulf %1100, %1099 : vector<1x4x16xf32>
    %1102 = arith.addf %1092, %1101 : vector<1x4x16xf32>
    %c166 = arith.constant 166 : index
    %1103 = memref.load %arg2[%c166] : memref<294xf32, #tpu.memory_space<smem>>
    %1104 = vector.extract_strided_slice %1077 {offsets = [0, 0, 2], sizes = [1, 4, 16], strides = [1, 1, 1]} : vector<1x4x22xf32> to vector<1x4x16xf32>
    %1105 = vector.broadcast %1103 : f32 to vector<1x4x16xf32>
    %1106 = arith.mulf %1105, %1104 : vector<1x4x16xf32>
    %1107 = arith.addf %1097, %1106 : vector<1x4x16xf32>
    %c124 = arith.constant 124 : index
    %1108 = memref.load %arg2[%c124] : memref<294xf32, #tpu.memory_space<smem>>
    %1109 = vector.extract_strided_slice %1076 {offsets = [0, 0, 3], sizes = [1, 4, 16], strides = [1, 1, 1]} : vector<1x4x22xf32> to vector<1x4x16xf32>
    %1110 = vector.broadcast %1108 : f32 to vector<1x4x16xf32>
    %1111 = arith.mulf %1110, %1109 : vector<1x4x16xf32>
    %1112 = arith.addf %1102, %1111 : vector<1x4x16xf32>
    %c173 = arith.constant 173 : index
    %1113 = memref.load %arg2[%c173] : memref<294xf32, #tpu.memory_space<smem>>
    %1114 = vector.extract_strided_slice %1077 {offsets = [0, 0, 3], sizes = [1, 4, 16], strides = [1, 1, 1]} : vector<1x4x22xf32> to vector<1x4x16xf32>
    %1115 = vector.broadcast %1113 : f32 to vector<1x4x16xf32>
    %1116 = arith.mulf %1115, %1114 : vector<1x4x16xf32>
    %1117 = arith.addf %1107, %1116 : vector<1x4x16xf32>
    %c131 = arith.constant 131 : index
    %1118 = memref.load %arg2[%c131] : memref<294xf32, #tpu.memory_space<smem>>
    %1119 = vector.extract_strided_slice %1076 {offsets = [0, 0, 4], sizes = [1, 4, 16], strides = [1, 1, 1]} : vector<1x4x22xf32> to vector<1x4x16xf32>
    %1120 = vector.broadcast %1118 : f32 to vector<1x4x16xf32>
    %1121 = arith.mulf %1120, %1119 : vector<1x4x16xf32>
    %1122 = arith.addf %1112, %1121 : vector<1x4x16xf32>
    %c180 = arith.constant 180 : index
    %1123 = memref.load %arg2[%c180] : memref<294xf32, #tpu.memory_space<smem>>
    %1124 = vector.extract_strided_slice %1077 {offsets = [0, 0, 4], sizes = [1, 4, 16], strides = [1, 1, 1]} : vector<1x4x22xf32> to vector<1x4x16xf32>
    %1125 = vector.broadcast %1123 : f32 to vector<1x4x16xf32>
    %1126 = arith.mulf %1125, %1124 : vector<1x4x16xf32>
    %1127 = arith.addf %1117, %1126 : vector<1x4x16xf32>
    %c138 = arith.constant 138 : index
    %1128 = memref.load %arg2[%c138] : memref<294xf32, #tpu.memory_space<smem>>
    %1129 = vector.extract_strided_slice %1076 {offsets = [0, 0, 5], sizes = [1, 4, 16], strides = [1, 1, 1]} : vector<1x4x22xf32> to vector<1x4x16xf32>
    %1130 = vector.broadcast %1128 : f32 to vector<1x4x16xf32>
    %1131 = arith.mulf %1130, %1129 : vector<1x4x16xf32>
    %1132 = arith.addf %1122, %1131 : vector<1x4x16xf32>
    %c187 = arith.constant 187 : index
    %1133 = memref.load %arg2[%c187] : memref<294xf32, #tpu.memory_space<smem>>
    %1134 = vector.extract_strided_slice %1077 {offsets = [0, 0, 5], sizes = [1, 4, 16], strides = [1, 1, 1]} : vector<1x4x22xf32> to vector<1x4x16xf32>
    %1135 = vector.broadcast %1133 : f32 to vector<1x4x16xf32>
    %1136 = arith.mulf %1135, %1134 : vector<1x4x16xf32>
    %1137 = arith.addf %1127, %1136 : vector<1x4x16xf32>
    %c145 = arith.constant 145 : index
    %1138 = memref.load %arg2[%c145] : memref<294xf32, #tpu.memory_space<smem>>
    %1139 = vector.extract_strided_slice %1076 {offsets = [0, 0, 6], sizes = [1, 4, 16], strides = [1, 1, 1]} : vector<1x4x22xf32> to vector<1x4x16xf32>
    %1140 = vector.broadcast %1138 : f32 to vector<1x4x16xf32>
    %1141 = arith.mulf %1140, %1139 : vector<1x4x16xf32>
    %1142 = arith.addf %1132, %1141 : vector<1x4x16xf32>
    %c194 = arith.constant 194 : index
    %1143 = memref.load %arg2[%c194] : memref<294xf32, #tpu.memory_space<smem>>
    %1144 = vector.extract_strided_slice %1077 {offsets = [0, 0, 6], sizes = [1, 4, 16], strides = [1, 1, 1]} : vector<1x4x22xf32> to vector<1x4x16xf32>
    %1145 = vector.broadcast %1143 : f32 to vector<1x4x16xf32>
    %1146 = arith.mulf %1145, %1144 : vector<1x4x16xf32>
    %1147 = arith.addf %1137, %1146 : vector<1x4x16xf32>
    %1148 = vector.extract_strided_slice %707 {offsets = [0, 6, 0], sizes = [1, 4, 22], strides = [1, 1, 1]} : vector<1x10x22xf32> to vector<1x4x22xf32>
    %1149 = vector.extract_strided_slice %711 {offsets = [0, 6, 0], sizes = [1, 4, 22], strides = [1, 1, 1]} : vector<1x10x22xf32> to vector<1x4x22xf32>
    %c104 = arith.constant 104 : index
    %1150 = memref.load %arg2[%c104] : memref<294xf32, #tpu.memory_space<smem>>
    %1151 = vector.extract_strided_slice %1148 {offsets = [0, 0, 0], sizes = [1, 4, 16], strides = [1, 1, 1]} : vector<1x4x22xf32> to vector<1x4x16xf32>
    %1152 = vector.broadcast %1150 : f32 to vector<1x4x16xf32>
    %1153 = arith.mulf %1152, %1151 : vector<1x4x16xf32>
    %1154 = arith.addf %1070, %1153 : vector<1x4x16xf32>
    %c153 = arith.constant 153 : index
    %1155 = memref.load %arg2[%c153] : memref<294xf32, #tpu.memory_space<smem>>
    %1156 = vector.extract_strided_slice %1149 {offsets = [0, 0, 0], sizes = [1, 4, 16], strides = [1, 1, 1]} : vector<1x4x22xf32> to vector<1x4x16xf32>
    %1157 = vector.broadcast %1155 : f32 to vector<1x4x16xf32>
    %1158 = arith.mulf %1157, %1156 : vector<1x4x16xf32>
    %1159 = arith.addf %1075, %1158 : vector<1x4x16xf32>
    %c111 = arith.constant 111 : index
    %1160 = memref.load %arg2[%c111] : memref<294xf32, #tpu.memory_space<smem>>
    %1161 = vector.extract_strided_slice %1148 {offsets = [0, 0, 1], sizes = [1, 4, 16], strides = [1, 1, 1]} : vector<1x4x22xf32> to vector<1x4x16xf32>
    %1162 = vector.broadcast %1160 : f32 to vector<1x4x16xf32>
    %1163 = arith.mulf %1162, %1161 : vector<1x4x16xf32>
    %1164 = arith.addf %1154, %1163 : vector<1x4x16xf32>
    %c160 = arith.constant 160 : index
    %1165 = memref.load %arg2[%c160] : memref<294xf32, #tpu.memory_space<smem>>
    %1166 = vector.extract_strided_slice %1149 {offsets = [0, 0, 1], sizes = [1, 4, 16], strides = [1, 1, 1]} : vector<1x4x22xf32> to vector<1x4x16xf32>
    %1167 = vector.broadcast %1165 : f32 to vector<1x4x16xf32>
    %1168 = arith.mulf %1167, %1166 : vector<1x4x16xf32>
    %1169 = arith.addf %1159, %1168 : vector<1x4x16xf32>
    %c118 = arith.constant 118 : index
    %1170 = memref.load %arg2[%c118] : memref<294xf32, #tpu.memory_space<smem>>
    %1171 = vector.extract_strided_slice %1148 {offsets = [0, 0, 2], sizes = [1, 4, 16], strides = [1, 1, 1]} : vector<1x4x22xf32> to vector<1x4x16xf32>
    %1172 = vector.broadcast %1170 : f32 to vector<1x4x16xf32>
    %1173 = arith.mulf %1172, %1171 : vector<1x4x16xf32>
    %1174 = arith.addf %1164, %1173 : vector<1x4x16xf32>
    %c167 = arith.constant 167 : index
    %1175 = memref.load %arg2[%c167] : memref<294xf32, #tpu.memory_space<smem>>
    %1176 = vector.extract_strided_slice %1149 {offsets = [0, 0, 2], sizes = [1, 4, 16], strides = [1, 1, 1]} : vector<1x4x22xf32> to vector<1x4x16xf32>
    %1177 = vector.broadcast %1175 : f32 to vector<1x4x16xf32>
    %1178 = arith.mulf %1177, %1176 : vector<1x4x16xf32>
    %1179 = arith.addf %1169, %1178 : vector<1x4x16xf32>
    %c125 = arith.constant 125 : index
    %1180 = memref.load %arg2[%c125] : memref<294xf32, #tpu.memory_space<smem>>
    %1181 = vector.extract_strided_slice %1148 {offsets = [0, 0, 3], sizes = [1, 4, 16], strides = [1, 1, 1]} : vector<1x4x22xf32> to vector<1x4x16xf32>
    %1182 = vector.broadcast %1180 : f32 to vector<1x4x16xf32>
    %1183 = arith.mulf %1182, %1181 : vector<1x4x16xf32>
    %1184 = arith.addf %1174, %1183 : vector<1x4x16xf32>
    %c174 = arith.constant 174 : index
    %1185 = memref.load %arg2[%c174] : memref<294xf32, #tpu.memory_space<smem>>
    %1186 = vector.extract_strided_slice %1149 {offsets = [0, 0, 3], sizes = [1, 4, 16], strides = [1, 1, 1]} : vector<1x4x22xf32> to vector<1x4x16xf32>
    %1187 = vector.broadcast %1185 : f32 to vector<1x4x16xf32>
    %1188 = arith.mulf %1187, %1186 : vector<1x4x16xf32>
    %1189 = arith.addf %1179, %1188 : vector<1x4x16xf32>
    %c132 = arith.constant 132 : index
    %1190 = memref.load %arg2[%c132] : memref<294xf32, #tpu.memory_space<smem>>
    %1191 = vector.extract_strided_slice %1148 {offsets = [0, 0, 4], sizes = [1, 4, 16], strides = [1, 1, 1]} : vector<1x4x22xf32> to vector<1x4x16xf32>
    %1192 = vector.broadcast %1190 : f32 to vector<1x4x16xf32>
    %1193 = arith.mulf %1192, %1191 : vector<1x4x16xf32>
    %1194 = arith.addf %1184, %1193 : vector<1x4x16xf32>
    %c181 = arith.constant 181 : index
    %1195 = memref.load %arg2[%c181] : memref<294xf32, #tpu.memory_space<smem>>
    %1196 = vector.extract_strided_slice %1149 {offsets = [0, 0, 4], sizes = [1, 4, 16], strides = [1, 1, 1]} : vector<1x4x22xf32> to vector<1x4x16xf32>
    %1197 = vector.broadcast %1195 : f32 to vector<1x4x16xf32>
    %1198 = arith.mulf %1197, %1196 : vector<1x4x16xf32>
    %1199 = arith.addf %1189, %1198 : vector<1x4x16xf32>
    %c139 = arith.constant 139 : index
    %1200 = memref.load %arg2[%c139] : memref<294xf32, #tpu.memory_space<smem>>
    %1201 = vector.extract_strided_slice %1148 {offsets = [0, 0, 5], sizes = [1, 4, 16], strides = [1, 1, 1]} : vector<1x4x22xf32> to vector<1x4x16xf32>
    %1202 = vector.broadcast %1200 : f32 to vector<1x4x16xf32>
    %1203 = arith.mulf %1202, %1201 : vector<1x4x16xf32>
    %1204 = arith.addf %1194, %1203 : vector<1x4x16xf32>
    %c188 = arith.constant 188 : index
    %1205 = memref.load %arg2[%c188] : memref<294xf32, #tpu.memory_space<smem>>
    %1206 = vector.extract_strided_slice %1149 {offsets = [0, 0, 5], sizes = [1, 4, 16], strides = [1, 1, 1]} : vector<1x4x22xf32> to vector<1x4x16xf32>
    %1207 = vector.broadcast %1205 : f32 to vector<1x4x16xf32>
    %1208 = arith.mulf %1207, %1206 : vector<1x4x16xf32>
    %1209 = arith.addf %1199, %1208 : vector<1x4x16xf32>
    %c146 = arith.constant 146 : index
    %1210 = memref.load %arg2[%c146] : memref<294xf32, #tpu.memory_space<smem>>
    %1211 = vector.extract_strided_slice %1148 {offsets = [0, 0, 6], sizes = [1, 4, 16], strides = [1, 1, 1]} : vector<1x4x22xf32> to vector<1x4x16xf32>
    %1212 = vector.broadcast %1210 : f32 to vector<1x4x16xf32>
    %1213 = arith.mulf %1212, %1211 : vector<1x4x16xf32>
    %1214 = arith.addf %1204, %1213 : vector<1x4x16xf32>
    %c195 = arith.constant 195 : index
    %1215 = memref.load %arg2[%c195] : memref<294xf32, #tpu.memory_space<smem>>
    %1216 = vector.extract_strided_slice %1149 {offsets = [0, 0, 6], sizes = [1, 4, 16], strides = [1, 1, 1]} : vector<1x4x22xf32> to vector<1x4x16xf32>
    %1217 = vector.broadcast %1215 : f32 to vector<1x4x16xf32>
    %1218 = arith.mulf %1217, %1216 : vector<1x4x16xf32>
    %1219 = arith.addf %1209, %1218 : vector<1x4x16xf32>
    %1220 = arith.addf %1214, %1142 : vector<1x4x16xf32>
    %1221 = arith.addf %1219, %1147 : vector<1x4x16xf32>
    %1222 = arith.addf %1220, %1221 : vector<1x4x16xf32>
    %cst_85 = arith.constant 0.000000e+00 : f32
    %1223 = vector.broadcast %cst_85 : f32 to vector<1x16x3xf32>
    %1224 = tpu.concatenate %1223, %165, %1223 in 2 : vector<1x16x3xf32>, vector<1x16x16xf32>, vector<1x16x3xf32> -> vector<1x16x22xf32>
    %cst_86 = arith.constant 0.000000e+00 : f32
    %1225 = vector.broadcast %cst_86 : f32 to vector<1x3x22xf32>
    %1226 = tpu.concatenate %1225, %1224, %1225 in 1 : vector<1x3x22xf32>, vector<1x16x22xf32>, vector<1x3x22xf32> -> vector<1x22x22xf32>
    %cst_87 = arith.constant 0.000000e+00 : f32
    %1227 = vector.broadcast %cst_87 : f32 to vector<1x16x3xf32>
    %1228 = tpu.concatenate %1227, %184, %1227 in 2 : vector<1x16x3xf32>, vector<1x16x16xf32>, vector<1x16x3xf32> -> vector<1x16x22xf32>
    %cst_88 = arith.constant 0.000000e+00 : f32
    %1229 = vector.broadcast %cst_88 : f32 to vector<1x3x22xf32>
    %1230 = tpu.concatenate %1229, %1228, %1229 in 1 : vector<1x3x22xf32>, vector<1x16x22xf32>, vector<1x3x22xf32> -> vector<1x22x22xf32>
    %cst_89 = arith.constant 0.000000e+00 : f32
    %1231 = vector.broadcast %cst_89 : f32 to vector<1x16x16xf32>
    %cst_90 = arith.constant 0.000000e+00 : f32
    %1232 = vector.broadcast %cst_90 : f32 to vector<1x16x16xf32>
    %cst_91 = arith.constant 0.000000e+00 : f32
    %1233 = vector.broadcast %cst_91 : f32 to vector<1x16x16xf32>
    %cst_92 = arith.constant 0.000000e+00 : f32
    %1234 = vector.broadcast %cst_92 : f32 to vector<1x16x16xf32>
    %1235 = vector.extract_strided_slice %1226 {offsets = [0, 0, 0], sizes = [1, 16, 22], strides = [1, 1, 1]} : vector<1x22x22xf32> to vector<1x16x22xf32>
    %1236 = vector.extract_strided_slice %1230 {offsets = [0, 0, 0], sizes = [1, 16, 22], strides = [1, 1, 1]} : vector<1x22x22xf32> to vector<1x16x22xf32>
    %c196 = arith.constant 196 : index
    %1237 = memref.load %arg2[%c196] : memref<294xf32, #tpu.memory_space<smem>>
    %1238 = vector.extract_strided_slice %1235 {offsets = [0, 0, 0], sizes = [1, 16, 16], strides = [1, 1, 1]} : vector<1x16x22xf32> to vector<1x16x16xf32>
    %1239 = vector.broadcast %1237 : f32 to vector<1x16x16xf32>
    %1240 = arith.mulf %1239, %1238 : vector<1x16x16xf32>
    %1241 = arith.addf %1231, %1240 : vector<1x16x16xf32>
    %c245 = arith.constant 245 : index
    %1242 = memref.load %arg2[%c245] : memref<294xf32, #tpu.memory_space<smem>>
    %1243 = vector.extract_strided_slice %1236 {offsets = [0, 0, 0], sizes = [1, 16, 16], strides = [1, 1, 1]} : vector<1x16x22xf32> to vector<1x16x16xf32>
    %1244 = vector.broadcast %1242 : f32 to vector<1x16x16xf32>
    %1245 = arith.mulf %1244, %1243 : vector<1x16x16xf32>
    %1246 = arith.addf %1233, %1245 : vector<1x16x16xf32>
    %c197 = arith.constant 197 : index
    %1247 = memref.load %arg2[%c197] : memref<294xf32, #tpu.memory_space<smem>>
    %1248 = vector.extract_strided_slice %1235 {offsets = [0, 0, 1], sizes = [1, 16, 16], strides = [1, 1, 1]} : vector<1x16x22xf32> to vector<1x16x16xf32>
    %1249 = vector.broadcast %1247 : f32 to vector<1x16x16xf32>
    %1250 = arith.mulf %1249, %1248 : vector<1x16x16xf32>
    %1251 = arith.addf %1241, %1250 : vector<1x16x16xf32>
    %c246 = arith.constant 246 : index
    %1252 = memref.load %arg2[%c246] : memref<294xf32, #tpu.memory_space<smem>>
    %1253 = vector.extract_strided_slice %1236 {offsets = [0, 0, 1], sizes = [1, 16, 16], strides = [1, 1, 1]} : vector<1x16x22xf32> to vector<1x16x16xf32>
    %1254 = vector.broadcast %1252 : f32 to vector<1x16x16xf32>
    %1255 = arith.mulf %1254, %1253 : vector<1x16x16xf32>
    %1256 = arith.addf %1246, %1255 : vector<1x16x16xf32>
    %c198 = arith.constant 198 : index
    %1257 = memref.load %arg2[%c198] : memref<294xf32, #tpu.memory_space<smem>>
    %1258 = vector.extract_strided_slice %1235 {offsets = [0, 0, 2], sizes = [1, 16, 16], strides = [1, 1, 1]} : vector<1x16x22xf32> to vector<1x16x16xf32>
    %1259 = vector.broadcast %1257 : f32 to vector<1x16x16xf32>
    %1260 = arith.mulf %1259, %1258 : vector<1x16x16xf32>
    %1261 = arith.addf %1251, %1260 : vector<1x16x16xf32>
    %c247 = arith.constant 247 : index
    %1262 = memref.load %arg2[%c247] : memref<294xf32, #tpu.memory_space<smem>>
    %1263 = vector.extract_strided_slice %1236 {offsets = [0, 0, 2], sizes = [1, 16, 16], strides = [1, 1, 1]} : vector<1x16x22xf32> to vector<1x16x16xf32>
    %1264 = vector.broadcast %1262 : f32 to vector<1x16x16xf32>
    %1265 = arith.mulf %1264, %1263 : vector<1x16x16xf32>
    %1266 = arith.addf %1256, %1265 : vector<1x16x16xf32>
    %c199 = arith.constant 199 : index
    %1267 = memref.load %arg2[%c199] : memref<294xf32, #tpu.memory_space<smem>>
    %1268 = vector.extract_strided_slice %1235 {offsets = [0, 0, 3], sizes = [1, 16, 16], strides = [1, 1, 1]} : vector<1x16x22xf32> to vector<1x16x16xf32>
    %1269 = vector.broadcast %1267 : f32 to vector<1x16x16xf32>
    %1270 = arith.mulf %1269, %1268 : vector<1x16x16xf32>
    %1271 = arith.addf %1261, %1270 : vector<1x16x16xf32>
    %c248 = arith.constant 248 : index
    %1272 = memref.load %arg2[%c248] : memref<294xf32, #tpu.memory_space<smem>>
    %1273 = vector.extract_strided_slice %1236 {offsets = [0, 0, 3], sizes = [1, 16, 16], strides = [1, 1, 1]} : vector<1x16x22xf32> to vector<1x16x16xf32>
    %1274 = vector.broadcast %1272 : f32 to vector<1x16x16xf32>
    %1275 = arith.mulf %1274, %1273 : vector<1x16x16xf32>
    %1276 = arith.addf %1266, %1275 : vector<1x16x16xf32>
    %c200 = arith.constant 200 : index
    %1277 = memref.load %arg2[%c200] : memref<294xf32, #tpu.memory_space<smem>>
    %1278 = vector.extract_strided_slice %1235 {offsets = [0, 0, 4], sizes = [1, 16, 16], strides = [1, 1, 1]} : vector<1x16x22xf32> to vector<1x16x16xf32>
    %1279 = vector.broadcast %1277 : f32 to vector<1x16x16xf32>
    %1280 = arith.mulf %1279, %1278 : vector<1x16x16xf32>
    %1281 = arith.addf %1271, %1280 : vector<1x16x16xf32>
    %c249 = arith.constant 249 : index
    %1282 = memref.load %arg2[%c249] : memref<294xf32, #tpu.memory_space<smem>>
    %1283 = vector.extract_strided_slice %1236 {offsets = [0, 0, 4], sizes = [1, 16, 16], strides = [1, 1, 1]} : vector<1x16x22xf32> to vector<1x16x16xf32>
    %1284 = vector.broadcast %1282 : f32 to vector<1x16x16xf32>
    %1285 = arith.mulf %1284, %1283 : vector<1x16x16xf32>
    %1286 = arith.addf %1276, %1285 : vector<1x16x16xf32>
    %c201 = arith.constant 201 : index
    %1287 = memref.load %arg2[%c201] : memref<294xf32, #tpu.memory_space<smem>>
    %1288 = vector.extract_strided_slice %1235 {offsets = [0, 0, 5], sizes = [1, 16, 16], strides = [1, 1, 1]} : vector<1x16x22xf32> to vector<1x16x16xf32>
    %1289 = vector.broadcast %1287 : f32 to vector<1x16x16xf32>
    %1290 = arith.mulf %1289, %1288 : vector<1x16x16xf32>
    %1291 = arith.addf %1281, %1290 : vector<1x16x16xf32>
    %c250 = arith.constant 250 : index
    %1292 = memref.load %arg2[%c250] : memref<294xf32, #tpu.memory_space<smem>>
    %1293 = vector.extract_strided_slice %1236 {offsets = [0, 0, 5], sizes = [1, 16, 16], strides = [1, 1, 1]} : vector<1x16x22xf32> to vector<1x16x16xf32>
    %1294 = vector.broadcast %1292 : f32 to vector<1x16x16xf32>
    %1295 = arith.mulf %1294, %1293 : vector<1x16x16xf32>
    %1296 = arith.addf %1286, %1295 : vector<1x16x16xf32>
    %c202 = arith.constant 202 : index
    %1297 = memref.load %arg2[%c202] : memref<294xf32, #tpu.memory_space<smem>>
    %1298 = vector.extract_strided_slice %1235 {offsets = [0, 0, 6], sizes = [1, 16, 16], strides = [1, 1, 1]} : vector<1x16x22xf32> to vector<1x16x16xf32>
    %1299 = vector.broadcast %1297 : f32 to vector<1x16x16xf32>
    %1300 = arith.mulf %1299, %1298 : vector<1x16x16xf32>
    %1301 = arith.addf %1291, %1300 : vector<1x16x16xf32>
    %c251 = arith.constant 251 : index
    %1302 = memref.load %arg2[%c251] : memref<294xf32, #tpu.memory_space<smem>>
    %1303 = vector.extract_strided_slice %1236 {offsets = [0, 0, 6], sizes = [1, 16, 16], strides = [1, 1, 1]} : vector<1x16x22xf32> to vector<1x16x16xf32>
    %1304 = vector.broadcast %1302 : f32 to vector<1x16x16xf32>
    %1305 = arith.mulf %1304, %1303 : vector<1x16x16xf32>
    %1306 = arith.addf %1296, %1305 : vector<1x16x16xf32>
    %1307 = vector.extract_strided_slice %1226 {offsets = [0, 1, 0], sizes = [1, 16, 22], strides = [1, 1, 1]} : vector<1x22x22xf32> to vector<1x16x22xf32>
    %1308 = vector.extract_strided_slice %1230 {offsets = [0, 1, 0], sizes = [1, 16, 22], strides = [1, 1, 1]} : vector<1x22x22xf32> to vector<1x16x22xf32>
    %c203 = arith.constant 203 : index
    %1309 = memref.load %arg2[%c203] : memref<294xf32, #tpu.memory_space<smem>>
    %1310 = vector.extract_strided_slice %1307 {offsets = [0, 0, 0], sizes = [1, 16, 16], strides = [1, 1, 1]} : vector<1x16x22xf32> to vector<1x16x16xf32>
    %1311 = vector.broadcast %1309 : f32 to vector<1x16x16xf32>
    %1312 = arith.mulf %1311, %1310 : vector<1x16x16xf32>
    %1313 = arith.addf %1232, %1312 : vector<1x16x16xf32>
    %c252 = arith.constant 252 : index
    %1314 = memref.load %arg2[%c252] : memref<294xf32, #tpu.memory_space<smem>>
    %1315 = vector.extract_strided_slice %1308 {offsets = [0, 0, 0], sizes = [1, 16, 16], strides = [1, 1, 1]} : vector<1x16x22xf32> to vector<1x16x16xf32>
    %1316 = vector.broadcast %1314 : f32 to vector<1x16x16xf32>
    %1317 = arith.mulf %1316, %1315 : vector<1x16x16xf32>
    %1318 = arith.addf %1234, %1317 : vector<1x16x16xf32>
    %c204 = arith.constant 204 : index
    %1319 = memref.load %arg2[%c204] : memref<294xf32, #tpu.memory_space<smem>>
    %1320 = vector.extract_strided_slice %1307 {offsets = [0, 0, 1], sizes = [1, 16, 16], strides = [1, 1, 1]} : vector<1x16x22xf32> to vector<1x16x16xf32>
    %1321 = vector.broadcast %1319 : f32 to vector<1x16x16xf32>
    %1322 = arith.mulf %1321, %1320 : vector<1x16x16xf32>
    %1323 = arith.addf %1313, %1322 : vector<1x16x16xf32>
    %c253 = arith.constant 253 : index
    %1324 = memref.load %arg2[%c253] : memref<294xf32, #tpu.memory_space<smem>>
    %1325 = vector.extract_strided_slice %1308 {offsets = [0, 0, 1], sizes = [1, 16, 16], strides = [1, 1, 1]} : vector<1x16x22xf32> to vector<1x16x16xf32>
    %1326 = vector.broadcast %1324 : f32 to vector<1x16x16xf32>
    %1327 = arith.mulf %1326, %1325 : vector<1x16x16xf32>
    %1328 = arith.addf %1318, %1327 : vector<1x16x16xf32>
    %c205 = arith.constant 205 : index
    %1329 = memref.load %arg2[%c205] : memref<294xf32, #tpu.memory_space<smem>>
    %1330 = vector.extract_strided_slice %1307 {offsets = [0, 0, 2], sizes = [1, 16, 16], strides = [1, 1, 1]} : vector<1x16x22xf32> to vector<1x16x16xf32>
    %1331 = vector.broadcast %1329 : f32 to vector<1x16x16xf32>
    %1332 = arith.mulf %1331, %1330 : vector<1x16x16xf32>
    %1333 = arith.addf %1323, %1332 : vector<1x16x16xf32>
    %c254 = arith.constant 254 : index
    %1334 = memref.load %arg2[%c254] : memref<294xf32, #tpu.memory_space<smem>>
    %1335 = vector.extract_strided_slice %1308 {offsets = [0, 0, 2], sizes = [1, 16, 16], strides = [1, 1, 1]} : vector<1x16x22xf32> to vector<1x16x16xf32>
    %1336 = vector.broadcast %1334 : f32 to vector<1x16x16xf32>
    %1337 = arith.mulf %1336, %1335 : vector<1x16x16xf32>
    %1338 = arith.addf %1328, %1337 : vector<1x16x16xf32>
    %c206 = arith.constant 206 : index
    %1339 = memref.load %arg2[%c206] : memref<294xf32, #tpu.memory_space<smem>>
    %1340 = vector.extract_strided_slice %1307 {offsets = [0, 0, 3], sizes = [1, 16, 16], strides = [1, 1, 1]} : vector<1x16x22xf32> to vector<1x16x16xf32>
    %1341 = vector.broadcast %1339 : f32 to vector<1x16x16xf32>
    %1342 = arith.mulf %1341, %1340 : vector<1x16x16xf32>
    %1343 = arith.addf %1333, %1342 : vector<1x16x16xf32>
    %c255 = arith.constant 255 : index
    %1344 = memref.load %arg2[%c255] : memref<294xf32, #tpu.memory_space<smem>>
    %1345 = vector.extract_strided_slice %1308 {offsets = [0, 0, 3], sizes = [1, 16, 16], strides = [1, 1, 1]} : vector<1x16x22xf32> to vector<1x16x16xf32>
    %1346 = vector.broadcast %1344 : f32 to vector<1x16x16xf32>
    %1347 = arith.mulf %1346, %1345 : vector<1x16x16xf32>
    %1348 = arith.addf %1338, %1347 : vector<1x16x16xf32>
    %c207 = arith.constant 207 : index
    %1349 = memref.load %arg2[%c207] : memref<294xf32, #tpu.memory_space<smem>>
    %1350 = vector.extract_strided_slice %1307 {offsets = [0, 0, 4], sizes = [1, 16, 16], strides = [1, 1, 1]} : vector<1x16x22xf32> to vector<1x16x16xf32>
    %1351 = vector.broadcast %1349 : f32 to vector<1x16x16xf32>
    %1352 = arith.mulf %1351, %1350 : vector<1x16x16xf32>
    %1353 = arith.addf %1343, %1352 : vector<1x16x16xf32>
    %c256 = arith.constant 256 : index
    %1354 = memref.load %arg2[%c256] : memref<294xf32, #tpu.memory_space<smem>>
    %1355 = vector.extract_strided_slice %1308 {offsets = [0, 0, 4], sizes = [1, 16, 16], strides = [1, 1, 1]} : vector<1x16x22xf32> to vector<1x16x16xf32>
    %1356 = vector.broadcast %1354 : f32 to vector<1x16x16xf32>
    %1357 = arith.mulf %1356, %1355 : vector<1x16x16xf32>
    %1358 = arith.addf %1348, %1357 : vector<1x16x16xf32>
    %c208 = arith.constant 208 : index
    %1359 = memref.load %arg2[%c208] : memref<294xf32, #tpu.memory_space<smem>>
    %1360 = vector.extract_strided_slice %1307 {offsets = [0, 0, 5], sizes = [1, 16, 16], strides = [1, 1, 1]} : vector<1x16x22xf32> to vector<1x16x16xf32>
    %1361 = vector.broadcast %1359 : f32 to vector<1x16x16xf32>
    %1362 = arith.mulf %1361, %1360 : vector<1x16x16xf32>
    %1363 = arith.addf %1353, %1362 : vector<1x16x16xf32>
    %c257 = arith.constant 257 : index
    %1364 = memref.load %arg2[%c257] : memref<294xf32, #tpu.memory_space<smem>>
    %1365 = vector.extract_strided_slice %1308 {offsets = [0, 0, 5], sizes = [1, 16, 16], strides = [1, 1, 1]} : vector<1x16x22xf32> to vector<1x16x16xf32>
    %1366 = vector.broadcast %1364 : f32 to vector<1x16x16xf32>
    %1367 = arith.mulf %1366, %1365 : vector<1x16x16xf32>
    %1368 = arith.addf %1358, %1367 : vector<1x16x16xf32>
    %c209 = arith.constant 209 : index
    %1369 = memref.load %arg2[%c209] : memref<294xf32, #tpu.memory_space<smem>>
    %1370 = vector.extract_strided_slice %1307 {offsets = [0, 0, 6], sizes = [1, 16, 16], strides = [1, 1, 1]} : vector<1x16x22xf32> to vector<1x16x16xf32>
    %1371 = vector.broadcast %1369 : f32 to vector<1x16x16xf32>
    %1372 = arith.mulf %1371, %1370 : vector<1x16x16xf32>
    %1373 = arith.addf %1363, %1372 : vector<1x16x16xf32>
    %c258 = arith.constant 258 : index
    %1374 = memref.load %arg2[%c258] : memref<294xf32, #tpu.memory_space<smem>>
    %1375 = vector.extract_strided_slice %1308 {offsets = [0, 0, 6], sizes = [1, 16, 16], strides = [1, 1, 1]} : vector<1x16x22xf32> to vector<1x16x16xf32>
    %1376 = vector.broadcast %1374 : f32 to vector<1x16x16xf32>
    %1377 = arith.mulf %1376, %1375 : vector<1x16x16xf32>
    %1378 = arith.addf %1368, %1377 : vector<1x16x16xf32>
    %1379 = vector.extract_strided_slice %1226 {offsets = [0, 2, 0], sizes = [1, 16, 22], strides = [1, 1, 1]} : vector<1x22x22xf32> to vector<1x16x22xf32>
    %1380 = vector.extract_strided_slice %1230 {offsets = [0, 2, 0], sizes = [1, 16, 22], strides = [1, 1, 1]} : vector<1x22x22xf32> to vector<1x16x22xf32>
    %c210 = arith.constant 210 : index
    %1381 = memref.load %arg2[%c210] : memref<294xf32, #tpu.memory_space<smem>>
    %1382 = vector.extract_strided_slice %1379 {offsets = [0, 0, 0], sizes = [1, 16, 16], strides = [1, 1, 1]} : vector<1x16x22xf32> to vector<1x16x16xf32>
    %1383 = vector.broadcast %1381 : f32 to vector<1x16x16xf32>
    %1384 = arith.mulf %1383, %1382 : vector<1x16x16xf32>
    %1385 = arith.addf %1301, %1384 : vector<1x16x16xf32>
    %c259 = arith.constant 259 : index
    %1386 = memref.load %arg2[%c259] : memref<294xf32, #tpu.memory_space<smem>>
    %1387 = vector.extract_strided_slice %1380 {offsets = [0, 0, 0], sizes = [1, 16, 16], strides = [1, 1, 1]} : vector<1x16x22xf32> to vector<1x16x16xf32>
    %1388 = vector.broadcast %1386 : f32 to vector<1x16x16xf32>
    %1389 = arith.mulf %1388, %1387 : vector<1x16x16xf32>
    %1390 = arith.addf %1306, %1389 : vector<1x16x16xf32>
    %c211 = arith.constant 211 : index
    %1391 = memref.load %arg2[%c211] : memref<294xf32, #tpu.memory_space<smem>>
    %1392 = vector.extract_strided_slice %1379 {offsets = [0, 0, 1], sizes = [1, 16, 16], strides = [1, 1, 1]} : vector<1x16x22xf32> to vector<1x16x16xf32>
    %1393 = vector.broadcast %1391 : f32 to vector<1x16x16xf32>
    %1394 = arith.mulf %1393, %1392 : vector<1x16x16xf32>
    %1395 = arith.addf %1385, %1394 : vector<1x16x16xf32>
    %c260 = arith.constant 260 : index
    %1396 = memref.load %arg2[%c260] : memref<294xf32, #tpu.memory_space<smem>>
    %1397 = vector.extract_strided_slice %1380 {offsets = [0, 0, 1], sizes = [1, 16, 16], strides = [1, 1, 1]} : vector<1x16x22xf32> to vector<1x16x16xf32>
    %1398 = vector.broadcast %1396 : f32 to vector<1x16x16xf32>
    %1399 = arith.mulf %1398, %1397 : vector<1x16x16xf32>
    %1400 = arith.addf %1390, %1399 : vector<1x16x16xf32>
    %c212 = arith.constant 212 : index
    %1401 = memref.load %arg2[%c212] : memref<294xf32, #tpu.memory_space<smem>>
    %1402 = vector.extract_strided_slice %1379 {offsets = [0, 0, 2], sizes = [1, 16, 16], strides = [1, 1, 1]} : vector<1x16x22xf32> to vector<1x16x16xf32>
    %1403 = vector.broadcast %1401 : f32 to vector<1x16x16xf32>
    %1404 = arith.mulf %1403, %1402 : vector<1x16x16xf32>
    %1405 = arith.addf %1395, %1404 : vector<1x16x16xf32>
    %c261 = arith.constant 261 : index
    %1406 = memref.load %arg2[%c261] : memref<294xf32, #tpu.memory_space<smem>>
    %1407 = vector.extract_strided_slice %1380 {offsets = [0, 0, 2], sizes = [1, 16, 16], strides = [1, 1, 1]} : vector<1x16x22xf32> to vector<1x16x16xf32>
    %1408 = vector.broadcast %1406 : f32 to vector<1x16x16xf32>
    %1409 = arith.mulf %1408, %1407 : vector<1x16x16xf32>
    %1410 = arith.addf %1400, %1409 : vector<1x16x16xf32>
    %c213 = arith.constant 213 : index
    %1411 = memref.load %arg2[%c213] : memref<294xf32, #tpu.memory_space<smem>>
    %1412 = vector.extract_strided_slice %1379 {offsets = [0, 0, 3], sizes = [1, 16, 16], strides = [1, 1, 1]} : vector<1x16x22xf32> to vector<1x16x16xf32>
    %1413 = vector.broadcast %1411 : f32 to vector<1x16x16xf32>
    %1414 = arith.mulf %1413, %1412 : vector<1x16x16xf32>
    %1415 = arith.addf %1405, %1414 : vector<1x16x16xf32>
    %c262 = arith.constant 262 : index
    %1416 = memref.load %arg2[%c262] : memref<294xf32, #tpu.memory_space<smem>>
    %1417 = vector.extract_strided_slice %1380 {offsets = [0, 0, 3], sizes = [1, 16, 16], strides = [1, 1, 1]} : vector<1x16x22xf32> to vector<1x16x16xf32>
    %1418 = vector.broadcast %1416 : f32 to vector<1x16x16xf32>
    %1419 = arith.mulf %1418, %1417 : vector<1x16x16xf32>
    %1420 = arith.addf %1410, %1419 : vector<1x16x16xf32>
    %c214 = arith.constant 214 : index
    %1421 = memref.load %arg2[%c214] : memref<294xf32, #tpu.memory_space<smem>>
    %1422 = vector.extract_strided_slice %1379 {offsets = [0, 0, 4], sizes = [1, 16, 16], strides = [1, 1, 1]} : vector<1x16x22xf32> to vector<1x16x16xf32>
    %1423 = vector.broadcast %1421 : f32 to vector<1x16x16xf32>
    %1424 = arith.mulf %1423, %1422 : vector<1x16x16xf32>
    %1425 = arith.addf %1415, %1424 : vector<1x16x16xf32>
    %c263 = arith.constant 263 : index
    %1426 = memref.load %arg2[%c263] : memref<294xf32, #tpu.memory_space<smem>>
    %1427 = vector.extract_strided_slice %1380 {offsets = [0, 0, 4], sizes = [1, 16, 16], strides = [1, 1, 1]} : vector<1x16x22xf32> to vector<1x16x16xf32>
    %1428 = vector.broadcast %1426 : f32 to vector<1x16x16xf32>
    %1429 = arith.mulf %1428, %1427 : vector<1x16x16xf32>
    %1430 = arith.addf %1420, %1429 : vector<1x16x16xf32>
    %c215 = arith.constant 215 : index
    %1431 = memref.load %arg2[%c215] : memref<294xf32, #tpu.memory_space<smem>>
    %1432 = vector.extract_strided_slice %1379 {offsets = [0, 0, 5], sizes = [1, 16, 16], strides = [1, 1, 1]} : vector<1x16x22xf32> to vector<1x16x16xf32>
    %1433 = vector.broadcast %1431 : f32 to vector<1x16x16xf32>
    %1434 = arith.mulf %1433, %1432 : vector<1x16x16xf32>
    %1435 = arith.addf %1425, %1434 : vector<1x16x16xf32>
    %c264 = arith.constant 264 : index
    %1436 = memref.load %arg2[%c264] : memref<294xf32, #tpu.memory_space<smem>>
    %1437 = vector.extract_strided_slice %1380 {offsets = [0, 0, 5], sizes = [1, 16, 16], strides = [1, 1, 1]} : vector<1x16x22xf32> to vector<1x16x16xf32>
    %1438 = vector.broadcast %1436 : f32 to vector<1x16x16xf32>
    %1439 = arith.mulf %1438, %1437 : vector<1x16x16xf32>
    %1440 = arith.addf %1430, %1439 : vector<1x16x16xf32>
    %c216 = arith.constant 216 : index
    %1441 = memref.load %arg2[%c216] : memref<294xf32, #tpu.memory_space<smem>>
    %1442 = vector.extract_strided_slice %1379 {offsets = [0, 0, 6], sizes = [1, 16, 16], strides = [1, 1, 1]} : vector<1x16x22xf32> to vector<1x16x16xf32>
    %1443 = vector.broadcast %1441 : f32 to vector<1x16x16xf32>
    %1444 = arith.mulf %1443, %1442 : vector<1x16x16xf32>
    %1445 = arith.addf %1435, %1444 : vector<1x16x16xf32>
    %c265 = arith.constant 265 : index
    %1446 = memref.load %arg2[%c265] : memref<294xf32, #tpu.memory_space<smem>>
    %1447 = vector.extract_strided_slice %1380 {offsets = [0, 0, 6], sizes = [1, 16, 16], strides = [1, 1, 1]} : vector<1x16x22xf32> to vector<1x16x16xf32>
    %1448 = vector.broadcast %1446 : f32 to vector<1x16x16xf32>
    %1449 = arith.mulf %1448, %1447 : vector<1x16x16xf32>
    %1450 = arith.addf %1440, %1449 : vector<1x16x16xf32>
    %1451 = vector.extract_strided_slice %1226 {offsets = [0, 3, 0], sizes = [1, 16, 22], strides = [1, 1, 1]} : vector<1x22x22xf32> to vector<1x16x22xf32>
    %1452 = vector.extract_strided_slice %1230 {offsets = [0, 3, 0], sizes = [1, 16, 22], strides = [1, 1, 1]} : vector<1x22x22xf32> to vector<1x16x22xf32>
    %c217 = arith.constant 217 : index
    %1453 = memref.load %arg2[%c217] : memref<294xf32, #tpu.memory_space<smem>>
    %1454 = vector.extract_strided_slice %1451 {offsets = [0, 0, 0], sizes = [1, 16, 16], strides = [1, 1, 1]} : vector<1x16x22xf32> to vector<1x16x16xf32>
    %1455 = vector.broadcast %1453 : f32 to vector<1x16x16xf32>
    %1456 = arith.mulf %1455, %1454 : vector<1x16x16xf32>
    %1457 = arith.addf %1373, %1456 : vector<1x16x16xf32>
    %c266 = arith.constant 266 : index
    %1458 = memref.load %arg2[%c266] : memref<294xf32, #tpu.memory_space<smem>>
    %1459 = vector.extract_strided_slice %1452 {offsets = [0, 0, 0], sizes = [1, 16, 16], strides = [1, 1, 1]} : vector<1x16x22xf32> to vector<1x16x16xf32>
    %1460 = vector.broadcast %1458 : f32 to vector<1x16x16xf32>
    %1461 = arith.mulf %1460, %1459 : vector<1x16x16xf32>
    %1462 = arith.addf %1378, %1461 : vector<1x16x16xf32>
    %c218 = arith.constant 218 : index
    %1463 = memref.load %arg2[%c218] : memref<294xf32, #tpu.memory_space<smem>>
    %1464 = vector.extract_strided_slice %1451 {offsets = [0, 0, 1], sizes = [1, 16, 16], strides = [1, 1, 1]} : vector<1x16x22xf32> to vector<1x16x16xf32>
    %1465 = vector.broadcast %1463 : f32 to vector<1x16x16xf32>
    %1466 = arith.mulf %1465, %1464 : vector<1x16x16xf32>
    %1467 = arith.addf %1457, %1466 : vector<1x16x16xf32>
    %c267 = arith.constant 267 : index
    %1468 = memref.load %arg2[%c267] : memref<294xf32, #tpu.memory_space<smem>>
    %1469 = vector.extract_strided_slice %1452 {offsets = [0, 0, 1], sizes = [1, 16, 16], strides = [1, 1, 1]} : vector<1x16x22xf32> to vector<1x16x16xf32>
    %1470 = vector.broadcast %1468 : f32 to vector<1x16x16xf32>
    %1471 = arith.mulf %1470, %1469 : vector<1x16x16xf32>
    %1472 = arith.addf %1462, %1471 : vector<1x16x16xf32>
    %c219 = arith.constant 219 : index
    %1473 = memref.load %arg2[%c219] : memref<294xf32, #tpu.memory_space<smem>>
    %1474 = vector.extract_strided_slice %1451 {offsets = [0, 0, 2], sizes = [1, 16, 16], strides = [1, 1, 1]} : vector<1x16x22xf32> to vector<1x16x16xf32>
    %1475 = vector.broadcast %1473 : f32 to vector<1x16x16xf32>
    %1476 = arith.mulf %1475, %1474 : vector<1x16x16xf32>
    %1477 = arith.addf %1467, %1476 : vector<1x16x16xf32>
    %c268 = arith.constant 268 : index
    %1478 = memref.load %arg2[%c268] : memref<294xf32, #tpu.memory_space<smem>>
    %1479 = vector.extract_strided_slice %1452 {offsets = [0, 0, 2], sizes = [1, 16, 16], strides = [1, 1, 1]} : vector<1x16x22xf32> to vector<1x16x16xf32>
    %1480 = vector.broadcast %1478 : f32 to vector<1x16x16xf32>
    %1481 = arith.mulf %1480, %1479 : vector<1x16x16xf32>
    %1482 = arith.addf %1472, %1481 : vector<1x16x16xf32>
    %c220 = arith.constant 220 : index
    %1483 = memref.load %arg2[%c220] : memref<294xf32, #tpu.memory_space<smem>>
    %1484 = vector.extract_strided_slice %1451 {offsets = [0, 0, 3], sizes = [1, 16, 16], strides = [1, 1, 1]} : vector<1x16x22xf32> to vector<1x16x16xf32>
    %1485 = vector.broadcast %1483 : f32 to vector<1x16x16xf32>
    %1486 = arith.mulf %1485, %1484 : vector<1x16x16xf32>
    %1487 = arith.addf %1477, %1486 : vector<1x16x16xf32>
    %c269 = arith.constant 269 : index
    %1488 = memref.load %arg2[%c269] : memref<294xf32, #tpu.memory_space<smem>>
    %1489 = vector.extract_strided_slice %1452 {offsets = [0, 0, 3], sizes = [1, 16, 16], strides = [1, 1, 1]} : vector<1x16x22xf32> to vector<1x16x16xf32>
    %1490 = vector.broadcast %1488 : f32 to vector<1x16x16xf32>
    %1491 = arith.mulf %1490, %1489 : vector<1x16x16xf32>
    %1492 = arith.addf %1482, %1491 : vector<1x16x16xf32>
    %c221 = arith.constant 221 : index
    %1493 = memref.load %arg2[%c221] : memref<294xf32, #tpu.memory_space<smem>>
    %1494 = vector.extract_strided_slice %1451 {offsets = [0, 0, 4], sizes = [1, 16, 16], strides = [1, 1, 1]} : vector<1x16x22xf32> to vector<1x16x16xf32>
    %1495 = vector.broadcast %1493 : f32 to vector<1x16x16xf32>
    %1496 = arith.mulf %1495, %1494 : vector<1x16x16xf32>
    %1497 = arith.addf %1487, %1496 : vector<1x16x16xf32>
    %c270 = arith.constant 270 : index
    %1498 = memref.load %arg2[%c270] : memref<294xf32, #tpu.memory_space<smem>>
    %1499 = vector.extract_strided_slice %1452 {offsets = [0, 0, 4], sizes = [1, 16, 16], strides = [1, 1, 1]} : vector<1x16x22xf32> to vector<1x16x16xf32>
    %1500 = vector.broadcast %1498 : f32 to vector<1x16x16xf32>
    %1501 = arith.mulf %1500, %1499 : vector<1x16x16xf32>
    %1502 = arith.addf %1492, %1501 : vector<1x16x16xf32>
    %c222 = arith.constant 222 : index
    %1503 = memref.load %arg2[%c222] : memref<294xf32, #tpu.memory_space<smem>>
    %1504 = vector.extract_strided_slice %1451 {offsets = [0, 0, 5], sizes = [1, 16, 16], strides = [1, 1, 1]} : vector<1x16x22xf32> to vector<1x16x16xf32>
    %1505 = vector.broadcast %1503 : f32 to vector<1x16x16xf32>
    %1506 = arith.mulf %1505, %1504 : vector<1x16x16xf32>
    %1507 = arith.addf %1497, %1506 : vector<1x16x16xf32>
    %c271 = arith.constant 271 : index
    %1508 = memref.load %arg2[%c271] : memref<294xf32, #tpu.memory_space<smem>>
    %1509 = vector.extract_strided_slice %1452 {offsets = [0, 0, 5], sizes = [1, 16, 16], strides = [1, 1, 1]} : vector<1x16x22xf32> to vector<1x16x16xf32>
    %1510 = vector.broadcast %1508 : f32 to vector<1x16x16xf32>
    %1511 = arith.mulf %1510, %1509 : vector<1x16x16xf32>
    %1512 = arith.addf %1502, %1511 : vector<1x16x16xf32>
    %c223 = arith.constant 223 : index
    %1513 = memref.load %arg2[%c223] : memref<294xf32, #tpu.memory_space<smem>>
    %1514 = vector.extract_strided_slice %1451 {offsets = [0, 0, 6], sizes = [1, 16, 16], strides = [1, 1, 1]} : vector<1x16x22xf32> to vector<1x16x16xf32>
    %1515 = vector.broadcast %1513 : f32 to vector<1x16x16xf32>
    %1516 = arith.mulf %1515, %1514 : vector<1x16x16xf32>
    %1517 = arith.addf %1507, %1516 : vector<1x16x16xf32>
    %c272 = arith.constant 272 : index
    %1518 = memref.load %arg2[%c272] : memref<294xf32, #tpu.memory_space<smem>>
    %1519 = vector.extract_strided_slice %1452 {offsets = [0, 0, 6], sizes = [1, 16, 16], strides = [1, 1, 1]} : vector<1x16x22xf32> to vector<1x16x16xf32>
    %1520 = vector.broadcast %1518 : f32 to vector<1x16x16xf32>
    %1521 = arith.mulf %1520, %1519 : vector<1x16x16xf32>
    %1522 = arith.addf %1512, %1521 : vector<1x16x16xf32>
    %1523 = vector.extract_strided_slice %1226 {offsets = [0, 4, 0], sizes = [1, 16, 22], strides = [1, 1, 1]} : vector<1x22x22xf32> to vector<1x16x22xf32>
    %1524 = vector.extract_strided_slice %1230 {offsets = [0, 4, 0], sizes = [1, 16, 22], strides = [1, 1, 1]} : vector<1x22x22xf32> to vector<1x16x22xf32>
    %c224 = arith.constant 224 : index
    %1525 = memref.load %arg2[%c224] : memref<294xf32, #tpu.memory_space<smem>>
    %1526 = vector.extract_strided_slice %1523 {offsets = [0, 0, 0], sizes = [1, 16, 16], strides = [1, 1, 1]} : vector<1x16x22xf32> to vector<1x16x16xf32>
    %1527 = vector.broadcast %1525 : f32 to vector<1x16x16xf32>
    %1528 = arith.mulf %1527, %1526 : vector<1x16x16xf32>
    %1529 = arith.addf %1445, %1528 : vector<1x16x16xf32>
    %c273 = arith.constant 273 : index
    %1530 = memref.load %arg2[%c273] : memref<294xf32, #tpu.memory_space<smem>>
    %1531 = vector.extract_strided_slice %1524 {offsets = [0, 0, 0], sizes = [1, 16, 16], strides = [1, 1, 1]} : vector<1x16x22xf32> to vector<1x16x16xf32>
    %1532 = vector.broadcast %1530 : f32 to vector<1x16x16xf32>
    %1533 = arith.mulf %1532, %1531 : vector<1x16x16xf32>
    %1534 = arith.addf %1450, %1533 : vector<1x16x16xf32>
    %c225 = arith.constant 225 : index
    %1535 = memref.load %arg2[%c225] : memref<294xf32, #tpu.memory_space<smem>>
    %1536 = vector.extract_strided_slice %1523 {offsets = [0, 0, 1], sizes = [1, 16, 16], strides = [1, 1, 1]} : vector<1x16x22xf32> to vector<1x16x16xf32>
    %1537 = vector.broadcast %1535 : f32 to vector<1x16x16xf32>
    %1538 = arith.mulf %1537, %1536 : vector<1x16x16xf32>
    %1539 = arith.addf %1529, %1538 : vector<1x16x16xf32>
    %c274 = arith.constant 274 : index
    %1540 = memref.load %arg2[%c274] : memref<294xf32, #tpu.memory_space<smem>>
    %1541 = vector.extract_strided_slice %1524 {offsets = [0, 0, 1], sizes = [1, 16, 16], strides = [1, 1, 1]} : vector<1x16x22xf32> to vector<1x16x16xf32>
    %1542 = vector.broadcast %1540 : f32 to vector<1x16x16xf32>
    %1543 = arith.mulf %1542, %1541 : vector<1x16x16xf32>
    %1544 = arith.addf %1534, %1543 : vector<1x16x16xf32>
    %c226 = arith.constant 226 : index
    %1545 = memref.load %arg2[%c226] : memref<294xf32, #tpu.memory_space<smem>>
    %1546 = vector.extract_strided_slice %1523 {offsets = [0, 0, 2], sizes = [1, 16, 16], strides = [1, 1, 1]} : vector<1x16x22xf32> to vector<1x16x16xf32>
    %1547 = vector.broadcast %1545 : f32 to vector<1x16x16xf32>
    %1548 = arith.mulf %1547, %1546 : vector<1x16x16xf32>
    %1549 = arith.addf %1539, %1548 : vector<1x16x16xf32>
    %c275 = arith.constant 275 : index
    %1550 = memref.load %arg2[%c275] : memref<294xf32, #tpu.memory_space<smem>>
    %1551 = vector.extract_strided_slice %1524 {offsets = [0, 0, 2], sizes = [1, 16, 16], strides = [1, 1, 1]} : vector<1x16x22xf32> to vector<1x16x16xf32>
    %1552 = vector.broadcast %1550 : f32 to vector<1x16x16xf32>
    %1553 = arith.mulf %1552, %1551 : vector<1x16x16xf32>
    %1554 = arith.addf %1544, %1553 : vector<1x16x16xf32>
    %c227 = arith.constant 227 : index
    %1555 = memref.load %arg2[%c227] : memref<294xf32, #tpu.memory_space<smem>>
    %1556 = vector.extract_strided_slice %1523 {offsets = [0, 0, 3], sizes = [1, 16, 16], strides = [1, 1, 1]} : vector<1x16x22xf32> to vector<1x16x16xf32>
    %1557 = vector.broadcast %1555 : f32 to vector<1x16x16xf32>
    %1558 = arith.mulf %1557, %1556 : vector<1x16x16xf32>
    %1559 = arith.addf %1549, %1558 : vector<1x16x16xf32>
    %c276 = arith.constant 276 : index
    %1560 = memref.load %arg2[%c276] : memref<294xf32, #tpu.memory_space<smem>>
    %1561 = vector.extract_strided_slice %1524 {offsets = [0, 0, 3], sizes = [1, 16, 16], strides = [1, 1, 1]} : vector<1x16x22xf32> to vector<1x16x16xf32>
    %1562 = vector.broadcast %1560 : f32 to vector<1x16x16xf32>
    %1563 = arith.mulf %1562, %1561 : vector<1x16x16xf32>
    %1564 = arith.addf %1554, %1563 : vector<1x16x16xf32>
    %c228 = arith.constant 228 : index
    %1565 = memref.load %arg2[%c228] : memref<294xf32, #tpu.memory_space<smem>>
    %1566 = vector.extract_strided_slice %1523 {offsets = [0, 0, 4], sizes = [1, 16, 16], strides = [1, 1, 1]} : vector<1x16x22xf32> to vector<1x16x16xf32>
    %1567 = vector.broadcast %1565 : f32 to vector<1x16x16xf32>
    %1568 = arith.mulf %1567, %1566 : vector<1x16x16xf32>
    %1569 = arith.addf %1559, %1568 : vector<1x16x16xf32>
    %c277 = arith.constant 277 : index
    %1570 = memref.load %arg2[%c277] : memref<294xf32, #tpu.memory_space<smem>>
    %1571 = vector.extract_strided_slice %1524 {offsets = [0, 0, 4], sizes = [1, 16, 16], strides = [1, 1, 1]} : vector<1x16x22xf32> to vector<1x16x16xf32>
    %1572 = vector.broadcast %1570 : f32 to vector<1x16x16xf32>
    %1573 = arith.mulf %1572, %1571 : vector<1x16x16xf32>
    %1574 = arith.addf %1564, %1573 : vector<1x16x16xf32>
    %c229 = arith.constant 229 : index
    %1575 = memref.load %arg2[%c229] : memref<294xf32, #tpu.memory_space<smem>>
    %1576 = vector.extract_strided_slice %1523 {offsets = [0, 0, 5], sizes = [1, 16, 16], strides = [1, 1, 1]} : vector<1x16x22xf32> to vector<1x16x16xf32>
    %1577 = vector.broadcast %1575 : f32 to vector<1x16x16xf32>
    %1578 = arith.mulf %1577, %1576 : vector<1x16x16xf32>
    %1579 = arith.addf %1569, %1578 : vector<1x16x16xf32>
    %c278 = arith.constant 278 : index
    %1580 = memref.load %arg2[%c278] : memref<294xf32, #tpu.memory_space<smem>>
    %1581 = vector.extract_strided_slice %1524 {offsets = [0, 0, 5], sizes = [1, 16, 16], strides = [1, 1, 1]} : vector<1x16x22xf32> to vector<1x16x16xf32>
    %1582 = vector.broadcast %1580 : f32 to vector<1x16x16xf32>
    %1583 = arith.mulf %1582, %1581 : vector<1x16x16xf32>
    %1584 = arith.addf %1574, %1583 : vector<1x16x16xf32>
    %c230 = arith.constant 230 : index
    %1585 = memref.load %arg2[%c230] : memref<294xf32, #tpu.memory_space<smem>>
    %1586 = vector.extract_strided_slice %1523 {offsets = [0, 0, 6], sizes = [1, 16, 16], strides = [1, 1, 1]} : vector<1x16x22xf32> to vector<1x16x16xf32>
    %1587 = vector.broadcast %1585 : f32 to vector<1x16x16xf32>
    %1588 = arith.mulf %1587, %1586 : vector<1x16x16xf32>
    %1589 = arith.addf %1579, %1588 : vector<1x16x16xf32>
    %c279 = arith.constant 279 : index
    %1590 = memref.load %arg2[%c279] : memref<294xf32, #tpu.memory_space<smem>>
    %1591 = vector.extract_strided_slice %1524 {offsets = [0, 0, 6], sizes = [1, 16, 16], strides = [1, 1, 1]} : vector<1x16x22xf32> to vector<1x16x16xf32>
    %1592 = vector.broadcast %1590 : f32 to vector<1x16x16xf32>
    %1593 = arith.mulf %1592, %1591 : vector<1x16x16xf32>
    %1594 = arith.addf %1584, %1593 : vector<1x16x16xf32>
    %1595 = vector.extract_strided_slice %1226 {offsets = [0, 5, 0], sizes = [1, 16, 22], strides = [1, 1, 1]} : vector<1x22x22xf32> to vector<1x16x22xf32>
    %1596 = vector.extract_strided_slice %1230 {offsets = [0, 5, 0], sizes = [1, 16, 22], strides = [1, 1, 1]} : vector<1x22x22xf32> to vector<1x16x22xf32>
    %c231 = arith.constant 231 : index
    %1597 = memref.load %arg2[%c231] : memref<294xf32, #tpu.memory_space<smem>>
    %1598 = vector.extract_strided_slice %1595 {offsets = [0, 0, 0], sizes = [1, 16, 16], strides = [1, 1, 1]} : vector<1x16x22xf32> to vector<1x16x16xf32>
    %1599 = vector.broadcast %1597 : f32 to vector<1x16x16xf32>
    %1600 = arith.mulf %1599, %1598 : vector<1x16x16xf32>
    %1601 = arith.addf %1517, %1600 : vector<1x16x16xf32>
    %c280 = arith.constant 280 : index
    %1602 = memref.load %arg2[%c280] : memref<294xf32, #tpu.memory_space<smem>>
    %1603 = vector.extract_strided_slice %1596 {offsets = [0, 0, 0], sizes = [1, 16, 16], strides = [1, 1, 1]} : vector<1x16x22xf32> to vector<1x16x16xf32>
    %1604 = vector.broadcast %1602 : f32 to vector<1x16x16xf32>
    %1605 = arith.mulf %1604, %1603 : vector<1x16x16xf32>
    %1606 = arith.addf %1522, %1605 : vector<1x16x16xf32>
    %c232 = arith.constant 232 : index
    %1607 = memref.load %arg2[%c232] : memref<294xf32, #tpu.memory_space<smem>>
    %1608 = vector.extract_strided_slice %1595 {offsets = [0, 0, 1], sizes = [1, 16, 16], strides = [1, 1, 1]} : vector<1x16x22xf32> to vector<1x16x16xf32>
    %1609 = vector.broadcast %1607 : f32 to vector<1x16x16xf32>
    %1610 = arith.mulf %1609, %1608 : vector<1x16x16xf32>
    %1611 = arith.addf %1601, %1610 : vector<1x16x16xf32>
    %c281 = arith.constant 281 : index
    %1612 = memref.load %arg2[%c281] : memref<294xf32, #tpu.memory_space<smem>>
    %1613 = vector.extract_strided_slice %1596 {offsets = [0, 0, 1], sizes = [1, 16, 16], strides = [1, 1, 1]} : vector<1x16x22xf32> to vector<1x16x16xf32>
    %1614 = vector.broadcast %1612 : f32 to vector<1x16x16xf32>
    %1615 = arith.mulf %1614, %1613 : vector<1x16x16xf32>
    %1616 = arith.addf %1606, %1615 : vector<1x16x16xf32>
    %c233 = arith.constant 233 : index
    %1617 = memref.load %arg2[%c233] : memref<294xf32, #tpu.memory_space<smem>>
    %1618 = vector.extract_strided_slice %1595 {offsets = [0, 0, 2], sizes = [1, 16, 16], strides = [1, 1, 1]} : vector<1x16x22xf32> to vector<1x16x16xf32>
    %1619 = vector.broadcast %1617 : f32 to vector<1x16x16xf32>
    %1620 = arith.mulf %1619, %1618 : vector<1x16x16xf32>
    %1621 = arith.addf %1611, %1620 : vector<1x16x16xf32>
    %c282 = arith.constant 282 : index
    %1622 = memref.load %arg2[%c282] : memref<294xf32, #tpu.memory_space<smem>>
    %1623 = vector.extract_strided_slice %1596 {offsets = [0, 0, 2], sizes = [1, 16, 16], strides = [1, 1, 1]} : vector<1x16x22xf32> to vector<1x16x16xf32>
    %1624 = vector.broadcast %1622 : f32 to vector<1x16x16xf32>
    %1625 = arith.mulf %1624, %1623 : vector<1x16x16xf32>
    %1626 = arith.addf %1616, %1625 : vector<1x16x16xf32>
    %c234 = arith.constant 234 : index
    %1627 = memref.load %arg2[%c234] : memref<294xf32, #tpu.memory_space<smem>>
    %1628 = vector.extract_strided_slice %1595 {offsets = [0, 0, 3], sizes = [1, 16, 16], strides = [1, 1, 1]} : vector<1x16x22xf32> to vector<1x16x16xf32>
    %1629 = vector.broadcast %1627 : f32 to vector<1x16x16xf32>
    %1630 = arith.mulf %1629, %1628 : vector<1x16x16xf32>
    %1631 = arith.addf %1621, %1630 : vector<1x16x16xf32>
    %c283 = arith.constant 283 : index
    %1632 = memref.load %arg2[%c283] : memref<294xf32, #tpu.memory_space<smem>>
    %1633 = vector.extract_strided_slice %1596 {offsets = [0, 0, 3], sizes = [1, 16, 16], strides = [1, 1, 1]} : vector<1x16x22xf32> to vector<1x16x16xf32>
    %1634 = vector.broadcast %1632 : f32 to vector<1x16x16xf32>
    %1635 = arith.mulf %1634, %1633 : vector<1x16x16xf32>
    %1636 = arith.addf %1626, %1635 : vector<1x16x16xf32>
    %c235 = arith.constant 235 : index
    %1637 = memref.load %arg2[%c235] : memref<294xf32, #tpu.memory_space<smem>>
    %1638 = vector.extract_strided_slice %1595 {offsets = [0, 0, 4], sizes = [1, 16, 16], strides = [1, 1, 1]} : vector<1x16x22xf32> to vector<1x16x16xf32>
    %1639 = vector.broadcast %1637 : f32 to vector<1x16x16xf32>
    %1640 = arith.mulf %1639, %1638 : vector<1x16x16xf32>
    %1641 = arith.addf %1631, %1640 : vector<1x16x16xf32>
    %c284 = arith.constant 284 : index
    %1642 = memref.load %arg2[%c284] : memref<294xf32, #tpu.memory_space<smem>>
    %1643 = vector.extract_strided_slice %1596 {offsets = [0, 0, 4], sizes = [1, 16, 16], strides = [1, 1, 1]} : vector<1x16x22xf32> to vector<1x16x16xf32>
    %1644 = vector.broadcast %1642 : f32 to vector<1x16x16xf32>
    %1645 = arith.mulf %1644, %1643 : vector<1x16x16xf32>
    %1646 = arith.addf %1636, %1645 : vector<1x16x16xf32>
    %c236 = arith.constant 236 : index
    %1647 = memref.load %arg2[%c236] : memref<294xf32, #tpu.memory_space<smem>>
    %1648 = vector.extract_strided_slice %1595 {offsets = [0, 0, 5], sizes = [1, 16, 16], strides = [1, 1, 1]} : vector<1x16x22xf32> to vector<1x16x16xf32>
    %1649 = vector.broadcast %1647 : f32 to vector<1x16x16xf32>
    %1650 = arith.mulf %1649, %1648 : vector<1x16x16xf32>
    %1651 = arith.addf %1641, %1650 : vector<1x16x16xf32>
    %c285 = arith.constant 285 : index
    %1652 = memref.load %arg2[%c285] : memref<294xf32, #tpu.memory_space<smem>>
    %1653 = vector.extract_strided_slice %1596 {offsets = [0, 0, 5], sizes = [1, 16, 16], strides = [1, 1, 1]} : vector<1x16x22xf32> to vector<1x16x16xf32>
    %1654 = vector.broadcast %1652 : f32 to vector<1x16x16xf32>
    %1655 = arith.mulf %1654, %1653 : vector<1x16x16xf32>
    %1656 = arith.addf %1646, %1655 : vector<1x16x16xf32>
    %c237 = arith.constant 237 : index
    %1657 = memref.load %arg2[%c237] : memref<294xf32, #tpu.memory_space<smem>>
    %1658 = vector.extract_strided_slice %1595 {offsets = [0, 0, 6], sizes = [1, 16, 16], strides = [1, 1, 1]} : vector<1x16x22xf32> to vector<1x16x16xf32>
    %1659 = vector.broadcast %1657 : f32 to vector<1x16x16xf32>
    %1660 = arith.mulf %1659, %1658 : vector<1x16x16xf32>
    %1661 = arith.addf %1651, %1660 : vector<1x16x16xf32>
    %c286 = arith.constant 286 : index
    %1662 = memref.load %arg2[%c286] : memref<294xf32, #tpu.memory_space<smem>>
    %1663 = vector.extract_strided_slice %1596 {offsets = [0, 0, 6], sizes = [1, 16, 16], strides = [1, 1, 1]} : vector<1x16x22xf32> to vector<1x16x16xf32>
    %1664 = vector.broadcast %1662 : f32 to vector<1x16x16xf32>
    %1665 = arith.mulf %1664, %1663 : vector<1x16x16xf32>
    %1666 = arith.addf %1656, %1665 : vector<1x16x16xf32>
    %1667 = vector.extract_strided_slice %1226 {offsets = [0, 6, 0], sizes = [1, 16, 22], strides = [1, 1, 1]} : vector<1x22x22xf32> to vector<1x16x22xf32>
    %1668 = vector.extract_strided_slice %1230 {offsets = [0, 6, 0], sizes = [1, 16, 22], strides = [1, 1, 1]} : vector<1x22x22xf32> to vector<1x16x22xf32>
    %c238 = arith.constant 238 : index
    %1669 = memref.load %arg2[%c238] : memref<294xf32, #tpu.memory_space<smem>>
    %1670 = vector.extract_strided_slice %1667 {offsets = [0, 0, 0], sizes = [1, 16, 16], strides = [1, 1, 1]} : vector<1x16x22xf32> to vector<1x16x16xf32>
    %1671 = vector.broadcast %1669 : f32 to vector<1x16x16xf32>
    %1672 = arith.mulf %1671, %1670 : vector<1x16x16xf32>
    %1673 = arith.addf %1589, %1672 : vector<1x16x16xf32>
    %c287 = arith.constant 287 : index
    %1674 = memref.load %arg2[%c287] : memref<294xf32, #tpu.memory_space<smem>>
    %1675 = vector.extract_strided_slice %1668 {offsets = [0, 0, 0], sizes = [1, 16, 16], strides = [1, 1, 1]} : vector<1x16x22xf32> to vector<1x16x16xf32>
    %1676 = vector.broadcast %1674 : f32 to vector<1x16x16xf32>
    %1677 = arith.mulf %1676, %1675 : vector<1x16x16xf32>
    %1678 = arith.addf %1594, %1677 : vector<1x16x16xf32>
    %c239 = arith.constant 239 : index
    %1679 = memref.load %arg2[%c239] : memref<294xf32, #tpu.memory_space<smem>>
    %1680 = vector.extract_strided_slice %1667 {offsets = [0, 0, 1], sizes = [1, 16, 16], strides = [1, 1, 1]} : vector<1x16x22xf32> to vector<1x16x16xf32>
    %1681 = vector.broadcast %1679 : f32 to vector<1x16x16xf32>
    %1682 = arith.mulf %1681, %1680 : vector<1x16x16xf32>
    %1683 = arith.addf %1673, %1682 : vector<1x16x16xf32>
    %c288 = arith.constant 288 : index
    %1684 = memref.load %arg2[%c288] : memref<294xf32, #tpu.memory_space<smem>>
    %1685 = vector.extract_strided_slice %1668 {offsets = [0, 0, 1], sizes = [1, 16, 16], strides = [1, 1, 1]} : vector<1x16x22xf32> to vector<1x16x16xf32>
    %1686 = vector.broadcast %1684 : f32 to vector<1x16x16xf32>
    %1687 = arith.mulf %1686, %1685 : vector<1x16x16xf32>
    %1688 = arith.addf %1678, %1687 : vector<1x16x16xf32>
    %c240 = arith.constant 240 : index
    %1689 = memref.load %arg2[%c240] : memref<294xf32, #tpu.memory_space<smem>>
    %1690 = vector.extract_strided_slice %1667 {offsets = [0, 0, 2], sizes = [1, 16, 16], strides = [1, 1, 1]} : vector<1x16x22xf32> to vector<1x16x16xf32>
    %1691 = vector.broadcast %1689 : f32 to vector<1x16x16xf32>
    %1692 = arith.mulf %1691, %1690 : vector<1x16x16xf32>
    %1693 = arith.addf %1683, %1692 : vector<1x16x16xf32>
    %c289 = arith.constant 289 : index
    %1694 = memref.load %arg2[%c289] : memref<294xf32, #tpu.memory_space<smem>>
    %1695 = vector.extract_strided_slice %1668 {offsets = [0, 0, 2], sizes = [1, 16, 16], strides = [1, 1, 1]} : vector<1x16x22xf32> to vector<1x16x16xf32>
    %1696 = vector.broadcast %1694 : f32 to vector<1x16x16xf32>
    %1697 = arith.mulf %1696, %1695 : vector<1x16x16xf32>
    %1698 = arith.addf %1688, %1697 : vector<1x16x16xf32>
    %c241 = arith.constant 241 : index
    %1699 = memref.load %arg2[%c241] : memref<294xf32, #tpu.memory_space<smem>>
    %1700 = vector.extract_strided_slice %1667 {offsets = [0, 0, 3], sizes = [1, 16, 16], strides = [1, 1, 1]} : vector<1x16x22xf32> to vector<1x16x16xf32>
    %1701 = vector.broadcast %1699 : f32 to vector<1x16x16xf32>
    %1702 = arith.mulf %1701, %1700 : vector<1x16x16xf32>
    %1703 = arith.addf %1693, %1702 : vector<1x16x16xf32>
    %c290 = arith.constant 290 : index
    %1704 = memref.load %arg2[%c290] : memref<294xf32, #tpu.memory_space<smem>>
    %1705 = vector.extract_strided_slice %1668 {offsets = [0, 0, 3], sizes = [1, 16, 16], strides = [1, 1, 1]} : vector<1x16x22xf32> to vector<1x16x16xf32>
    %1706 = vector.broadcast %1704 : f32 to vector<1x16x16xf32>
    %1707 = arith.mulf %1706, %1705 : vector<1x16x16xf32>
    %1708 = arith.addf %1698, %1707 : vector<1x16x16xf32>
    %c242 = arith.constant 242 : index
    %1709 = memref.load %arg2[%c242] : memref<294xf32, #tpu.memory_space<smem>>
    %1710 = vector.extract_strided_slice %1667 {offsets = [0, 0, 4], sizes = [1, 16, 16], strides = [1, 1, 1]} : vector<1x16x22xf32> to vector<1x16x16xf32>
    %1711 = vector.broadcast %1709 : f32 to vector<1x16x16xf32>
    %1712 = arith.mulf %1711, %1710 : vector<1x16x16xf32>
    %1713 = arith.addf %1703, %1712 : vector<1x16x16xf32>
    %c291 = arith.constant 291 : index
    %1714 = memref.load %arg2[%c291] : memref<294xf32, #tpu.memory_space<smem>>
    %1715 = vector.extract_strided_slice %1668 {offsets = [0, 0, 4], sizes = [1, 16, 16], strides = [1, 1, 1]} : vector<1x16x22xf32> to vector<1x16x16xf32>
    %1716 = vector.broadcast %1714 : f32 to vector<1x16x16xf32>
    %1717 = arith.mulf %1716, %1715 : vector<1x16x16xf32>
    %1718 = arith.addf %1708, %1717 : vector<1x16x16xf32>
    %c243 = arith.constant 243 : index
    %1719 = memref.load %arg2[%c243] : memref<294xf32, #tpu.memory_space<smem>>
    %1720 = vector.extract_strided_slice %1667 {offsets = [0, 0, 5], sizes = [1, 16, 16], strides = [1, 1, 1]} : vector<1x16x22xf32> to vector<1x16x16xf32>
    %1721 = vector.broadcast %1719 : f32 to vector<1x16x16xf32>
    %1722 = arith.mulf %1721, %1720 : vector<1x16x16xf32>
    %1723 = arith.addf %1713, %1722 : vector<1x16x16xf32>
    %c292 = arith.constant 292 : index
    %1724 = memref.load %arg2[%c292] : memref<294xf32, #tpu.memory_space<smem>>
    %1725 = vector.extract_strided_slice %1668 {offsets = [0, 0, 5], sizes = [1, 16, 16], strides = [1, 1, 1]} : vector<1x16x22xf32> to vector<1x16x16xf32>
    %1726 = vector.broadcast %1724 : f32 to vector<1x16x16xf32>
    %1727 = arith.mulf %1726, %1725 : vector<1x16x16xf32>
    %1728 = arith.addf %1718, %1727 : vector<1x16x16xf32>
    %c244 = arith.constant 244 : index
    %1729 = memref.load %arg2[%c244] : memref<294xf32, #tpu.memory_space<smem>>
    %1730 = vector.extract_strided_slice %1667 {offsets = [0, 0, 6], sizes = [1, 16, 16], strides = [1, 1, 1]} : vector<1x16x22xf32> to vector<1x16x16xf32>
    %1731 = vector.broadcast %1729 : f32 to vector<1x16x16xf32>
    %1732 = arith.mulf %1731, %1730 : vector<1x16x16xf32>
    %1733 = arith.addf %1723, %1732 : vector<1x16x16xf32>
    %c293 = arith.constant 293 : index
    %1734 = memref.load %arg2[%c293] : memref<294xf32, #tpu.memory_space<smem>>
    %1735 = vector.extract_strided_slice %1668 {offsets = [0, 0, 6], sizes = [1, 16, 16], strides = [1, 1, 1]} : vector<1x16x22xf32> to vector<1x16x16xf32>
    %1736 = vector.broadcast %1734 : f32 to vector<1x16x16xf32>
    %1737 = arith.mulf %1736, %1735 : vector<1x16x16xf32>
    %1738 = arith.addf %1728, %1737 : vector<1x16x16xf32>
    %1739 = arith.addf %1733, %1661 : vector<1x16x16xf32>
    %1740 = arith.addf %1738, %1666 : vector<1x16x16xf32>
    %1741 = arith.addf %1739, %1740 : vector<1x16x16xf32>
    %c0_93 = arith.constant 0 : index
    %1742 = memref.load %arg3[%c0_93] : memref<6xf32, #tpu.memory_space<smem>>
    %1743 = vector.broadcast %1742 : f32 to vector<1x4x16xf32>
    %1744 = arith.mulf %703, %1743 : vector<1x4x16xf32>
    %c1_94 = arith.constant 1 : index
    %1745 = memref.load %arg3[%c1_94] : memref<6xf32, #tpu.memory_space<smem>>
    %1746 = vector.broadcast %1745 : f32 to vector<1x4x16xf32>
    %1747 = arith.addf %1744, %1746 : vector<1x4x16xf32>
    %cst_95 = arith.constant 5.000000e-01 : f32
    %1748 = vector.broadcast %cst_95 : f32 to vector<1x4x16xf32>
    %1749 = arith.mulf %1748, %1747 : vector<1x4x16xf32>
    %1750 = math.tanh %1749 : vector<1x4x16xf32>
    %cst_96 = arith.constant 1.000000e+00 : f32
    %1751 = vector.broadcast %cst_96 : f32 to vector<1x4x16xf32>
    %1752 = arith.addf %1750, %1751 : vector<1x4x16xf32>
    %cst_97 = arith.constant 5.000000e-01 : f32
    %1753 = vector.broadcast %cst_97 : f32 to vector<1x4x16xf32>
    %1754 = arith.mulf %1753, %1752 : vector<1x4x16xf32>
    %c2_98 = arith.constant 2 : index
    %1755 = memref.load %arg3[%c2_98] : memref<6xf32, #tpu.memory_space<smem>>
    %1756 = vector.broadcast %1755 : f32 to vector<1x4x16xf32>
    %1757 = arith.mulf %1222, %1756 : vector<1x4x16xf32>
    %c3_99 = arith.constant 3 : index
    %1758 = memref.load %arg3[%c3_99] : memref<6xf32, #tpu.memory_space<smem>>
    %1759 = vector.broadcast %1758 : f32 to vector<1x4x16xf32>
    %1760 = arith.addf %1757, %1759 : vector<1x4x16xf32>
    %cst_100 = arith.constant 5.000000e-01 : f32
    %1761 = vector.broadcast %cst_100 : f32 to vector<1x4x16xf32>
    %1762 = arith.mulf %1761, %1760 : vector<1x4x16xf32>
    %1763 = math.tanh %1762 : vector<1x4x16xf32>
    %cst_101 = arith.constant 1.000000e+00 : f32
    %1764 = vector.broadcast %cst_101 : f32 to vector<1x4x16xf32>
    %1765 = arith.addf %1763, %1764 : vector<1x4x16xf32>
    %cst_102 = arith.constant 5.000000e-01 : f32
    %1766 = vector.broadcast %cst_102 : f32 to vector<1x4x16xf32>
    %1767 = arith.mulf %1766, %1765 : vector<1x4x16xf32>
    %c4_103 = arith.constant 4 : index
    %1768 = memref.load %arg3[%c4_103] : memref<6xf32, #tpu.memory_space<smem>>
    %1769 = vector.broadcast %1768 : f32 to vector<1x16x16xf32>
    %1770 = arith.mulf %1741, %1769 : vector<1x16x16xf32>
    %c5_104 = arith.constant 5 : index
    %1771 = memref.load %arg3[%c5_104] : memref<6xf32, #tpu.memory_space<smem>>
    %1772 = vector.broadcast %1771 : f32 to vector<1x16x16xf32>
    %1773 = arith.addf %1770, %1772 : vector<1x16x16xf32>
    %cst_105 = arith.constant 5.000000e-01 : f32
    %1774 = vector.broadcast %cst_105 : f32 to vector<1x16x16xf32>
    %1775 = arith.mulf %1774, %1773 : vector<1x16x16xf32>
    %1776 = math.tanh %1775 : vector<1x16x16xf32>
    %cst_106 = arith.constant 1.000000e+00 : f32
    %1777 = vector.broadcast %cst_106 : f32 to vector<1x16x16xf32>
    %1778 = arith.addf %1776, %1777 : vector<1x16x16xf32>
    %cst_107 = arith.constant 5.000000e-01 : f32
    %1779 = vector.broadcast %cst_107 : f32 to vector<1x16x16xf32>
    %1780 = arith.mulf %1779, %1778 : vector<1x16x16xf32>
    %1781 = vector.extract_strided_slice %1767 {offsets = [0, 0, 0], sizes = [1, 4, 1], strides = [1, 1, 1]} : vector<1x4x16xf32> to vector<1x4x1xf32>
    %1782 = vector.broadcast %1781 : vector<1x4x1xf32> to vector<1x4x16xf32>
    %1783 = arith.addf %1754, %1782 : vector<1x4x16xf32>
    %1784 = vector.extract_strided_slice %1780 {offsets = [0, 0, 0], sizes = [1, 1, 16], strides = [1, 1, 1]} : vector<1x16x16xf32> to vector<1x1x16xf32>
    %1785 = vector.broadcast %1784 : vector<1x1x16xf32> to vector<1x4x16xf32>
    %1786 = arith.addf %1783, %1785 : vector<1x4x16xf32>
    %cst_108 = arith.constant 0.333333343 : f32
    %1787 = vector.broadcast %cst_108 : f32 to vector<1x4x16xf32>
    %1788 = arith.mulf %1786, %1787 : vector<1x4x16xf32>
    %1789 = vector.extract_strided_slice %1767 {offsets = [0, 0, 1], sizes = [1, 4, 1], strides = [1, 1, 1]} : vector<1x4x16xf32> to vector<1x4x1xf32>
    %1790 = vector.broadcast %1789 : vector<1x4x1xf32> to vector<1x4x16xf32>
    %1791 = arith.addf %1754, %1790 : vector<1x4x16xf32>
    %1792 = vector.extract_strided_slice %1780 {offsets = [0, 1, 0], sizes = [1, 1, 16], strides = [1, 1, 1]} : vector<1x16x16xf32> to vector<1x1x16xf32>
    %1793 = vector.broadcast %1792 : vector<1x1x16xf32> to vector<1x4x16xf32>
    %1794 = arith.addf %1791, %1793 : vector<1x4x16xf32>
    %cst_109 = arith.constant 0.333333343 : f32
    %1795 = vector.broadcast %cst_109 : f32 to vector<1x4x16xf32>
    %1796 = arith.mulf %1794, %1795 : vector<1x4x16xf32>
    %1797 = vector.extract_strided_slice %1767 {offsets = [0, 0, 2], sizes = [1, 4, 1], strides = [1, 1, 1]} : vector<1x4x16xf32> to vector<1x4x1xf32>
    %1798 = vector.broadcast %1797 : vector<1x4x1xf32> to vector<1x4x16xf32>
    %1799 = arith.addf %1754, %1798 : vector<1x4x16xf32>
    %1800 = vector.extract_strided_slice %1780 {offsets = [0, 2, 0], sizes = [1, 1, 16], strides = [1, 1, 1]} : vector<1x16x16xf32> to vector<1x1x16xf32>
    %1801 = vector.broadcast %1800 : vector<1x1x16xf32> to vector<1x4x16xf32>
    %1802 = arith.addf %1799, %1801 : vector<1x4x16xf32>
    %cst_110 = arith.constant 0.333333343 : f32
    %1803 = vector.broadcast %cst_110 : f32 to vector<1x4x16xf32>
    %1804 = arith.mulf %1802, %1803 : vector<1x4x16xf32>
    %1805 = vector.extract_strided_slice %1767 {offsets = [0, 0, 3], sizes = [1, 4, 1], strides = [1, 1, 1]} : vector<1x4x16xf32> to vector<1x4x1xf32>
    %1806 = vector.broadcast %1805 : vector<1x4x1xf32> to vector<1x4x16xf32>
    %1807 = arith.addf %1754, %1806 : vector<1x4x16xf32>
    %1808 = vector.extract_strided_slice %1780 {offsets = [0, 3, 0], sizes = [1, 1, 16], strides = [1, 1, 1]} : vector<1x16x16xf32> to vector<1x1x16xf32>
    %1809 = vector.broadcast %1808 : vector<1x1x16xf32> to vector<1x4x16xf32>
    %1810 = arith.addf %1807, %1809 : vector<1x4x16xf32>
    %cst_111 = arith.constant 0.333333343 : f32
    %1811 = vector.broadcast %cst_111 : f32 to vector<1x4x16xf32>
    %1812 = arith.mulf %1810, %1811 : vector<1x4x16xf32>
    %1813 = vector.extract_strided_slice %1767 {offsets = [0, 0, 4], sizes = [1, 4, 1], strides = [1, 1, 1]} : vector<1x4x16xf32> to vector<1x4x1xf32>
    %1814 = vector.broadcast %1813 : vector<1x4x1xf32> to vector<1x4x16xf32>
    %1815 = arith.addf %1754, %1814 : vector<1x4x16xf32>
    %1816 = vector.extract_strided_slice %1780 {offsets = [0, 4, 0], sizes = [1, 1, 16], strides = [1, 1, 1]} : vector<1x16x16xf32> to vector<1x1x16xf32>
    %1817 = vector.broadcast %1816 : vector<1x1x16xf32> to vector<1x4x16xf32>
    %1818 = arith.addf %1815, %1817 : vector<1x4x16xf32>
    %cst_112 = arith.constant 0.333333343 : f32
    %1819 = vector.broadcast %cst_112 : f32 to vector<1x4x16xf32>
    %1820 = arith.mulf %1818, %1819 : vector<1x4x16xf32>
    %1821 = vector.extract_strided_slice %1767 {offsets = [0, 0, 5], sizes = [1, 4, 1], strides = [1, 1, 1]} : vector<1x4x16xf32> to vector<1x4x1xf32>
    %1822 = vector.broadcast %1821 : vector<1x4x1xf32> to vector<1x4x16xf32>
    %1823 = arith.addf %1754, %1822 : vector<1x4x16xf32>
    %1824 = vector.extract_strided_slice %1780 {offsets = [0, 5, 0], sizes = [1, 1, 16], strides = [1, 1, 1]} : vector<1x16x16xf32> to vector<1x1x16xf32>
    %1825 = vector.broadcast %1824 : vector<1x1x16xf32> to vector<1x4x16xf32>
    %1826 = arith.addf %1823, %1825 : vector<1x4x16xf32>
    %cst_113 = arith.constant 0.333333343 : f32
    %1827 = vector.broadcast %cst_113 : f32 to vector<1x4x16xf32>
    %1828 = arith.mulf %1826, %1827 : vector<1x4x16xf32>
    %1829 = vector.extract_strided_slice %1767 {offsets = [0, 0, 6], sizes = [1, 4, 1], strides = [1, 1, 1]} : vector<1x4x16xf32> to vector<1x4x1xf32>
    %1830 = vector.broadcast %1829 : vector<1x4x1xf32> to vector<1x4x16xf32>
    %1831 = arith.addf %1754, %1830 : vector<1x4x16xf32>
    %1832 = vector.extract_strided_slice %1780 {offsets = [0, 6, 0], sizes = [1, 1, 16], strides = [1, 1, 1]} : vector<1x16x16xf32> to vector<1x1x16xf32>
    %1833 = vector.broadcast %1832 : vector<1x1x16xf32> to vector<1x4x16xf32>
    %1834 = arith.addf %1831, %1833 : vector<1x4x16xf32>
    %cst_114 = arith.constant 0.333333343 : f32
    %1835 = vector.broadcast %cst_114 : f32 to vector<1x4x16xf32>
    %1836 = arith.mulf %1834, %1835 : vector<1x4x16xf32>
    %1837 = vector.extract_strided_slice %1767 {offsets = [0, 0, 7], sizes = [1, 4, 1], strides = [1, 1, 1]} : vector<1x4x16xf32> to vector<1x4x1xf32>
    %1838 = vector.broadcast %1837 : vector<1x4x1xf32> to vector<1x4x16xf32>
    %1839 = arith.addf %1754, %1838 : vector<1x4x16xf32>
    %1840 = vector.extract_strided_slice %1780 {offsets = [0, 7, 0], sizes = [1, 1, 16], strides = [1, 1, 1]} : vector<1x16x16xf32> to vector<1x1x16xf32>
    %1841 = vector.broadcast %1840 : vector<1x1x16xf32> to vector<1x4x16xf32>
    %1842 = arith.addf %1839, %1841 : vector<1x4x16xf32>
    %cst_115 = arith.constant 0.333333343 : f32
    %1843 = vector.broadcast %cst_115 : f32 to vector<1x4x16xf32>
    %1844 = arith.mulf %1842, %1843 : vector<1x4x16xf32>
    %1845 = vector.extract_strided_slice %1767 {offsets = [0, 0, 8], sizes = [1, 4, 1], strides = [1, 1, 1]} : vector<1x4x16xf32> to vector<1x4x1xf32>
    %1846 = vector.broadcast %1845 : vector<1x4x1xf32> to vector<1x4x16xf32>
    %1847 = arith.addf %1754, %1846 : vector<1x4x16xf32>
    %1848 = vector.extract_strided_slice %1780 {offsets = [0, 8, 0], sizes = [1, 1, 16], strides = [1, 1, 1]} : vector<1x16x16xf32> to vector<1x1x16xf32>
    %1849 = vector.broadcast %1848 : vector<1x1x16xf32> to vector<1x4x16xf32>
    %1850 = arith.addf %1847, %1849 : vector<1x4x16xf32>
    %cst_116 = arith.constant 0.333333343 : f32
    %1851 = vector.broadcast %cst_116 : f32 to vector<1x4x16xf32>
    %1852 = arith.mulf %1850, %1851 : vector<1x4x16xf32>
    %1853 = vector.extract_strided_slice %1767 {offsets = [0, 0, 9], sizes = [1, 4, 1], strides = [1, 1, 1]} : vector<1x4x16xf32> to vector<1x4x1xf32>
    %1854 = vector.broadcast %1853 : vector<1x4x1xf32> to vector<1x4x16xf32>
    %1855 = arith.addf %1754, %1854 : vector<1x4x16xf32>
    %1856 = vector.extract_strided_slice %1780 {offsets = [0, 9, 0], sizes = [1, 1, 16], strides = [1, 1, 1]} : vector<1x16x16xf32> to vector<1x1x16xf32>
    %1857 = vector.broadcast %1856 : vector<1x1x16xf32> to vector<1x4x16xf32>
    %1858 = arith.addf %1855, %1857 : vector<1x4x16xf32>
    %cst_117 = arith.constant 0.333333343 : f32
    %1859 = vector.broadcast %cst_117 : f32 to vector<1x4x16xf32>
    %1860 = arith.mulf %1858, %1859 : vector<1x4x16xf32>
    %1861 = vector.extract_strided_slice %1767 {offsets = [0, 0, 10], sizes = [1, 4, 1], strides = [1, 1, 1]} : vector<1x4x16xf32> to vector<1x4x1xf32>
    %1862 = vector.broadcast %1861 : vector<1x4x1xf32> to vector<1x4x16xf32>
    %1863 = arith.addf %1754, %1862 : vector<1x4x16xf32>
    %1864 = vector.extract_strided_slice %1780 {offsets = [0, 10, 0], sizes = [1, 1, 16], strides = [1, 1, 1]} : vector<1x16x16xf32> to vector<1x1x16xf32>
    %1865 = vector.broadcast %1864 : vector<1x1x16xf32> to vector<1x4x16xf32>
    %1866 = arith.addf %1863, %1865 : vector<1x4x16xf32>
    %cst_118 = arith.constant 0.333333343 : f32
    %1867 = vector.broadcast %cst_118 : f32 to vector<1x4x16xf32>
    %1868 = arith.mulf %1866, %1867 : vector<1x4x16xf32>
    %1869 = vector.extract_strided_slice %1767 {offsets = [0, 0, 11], sizes = [1, 4, 1], strides = [1, 1, 1]} : vector<1x4x16xf32> to vector<1x4x1xf32>
    %1870 = vector.broadcast %1869 : vector<1x4x1xf32> to vector<1x4x16xf32>
    %1871 = arith.addf %1754, %1870 : vector<1x4x16xf32>
    %1872 = vector.extract_strided_slice %1780 {offsets = [0, 11, 0], sizes = [1, 1, 16], strides = [1, 1, 1]} : vector<1x16x16xf32> to vector<1x1x16xf32>
    %1873 = vector.broadcast %1872 : vector<1x1x16xf32> to vector<1x4x16xf32>
    %1874 = arith.addf %1871, %1873 : vector<1x4x16xf32>
    %cst_119 = arith.constant 0.333333343 : f32
    %1875 = vector.broadcast %cst_119 : f32 to vector<1x4x16xf32>
    %1876 = arith.mulf %1874, %1875 : vector<1x4x16xf32>
    %1877 = vector.extract_strided_slice %1767 {offsets = [0, 0, 12], sizes = [1, 4, 1], strides = [1, 1, 1]} : vector<1x4x16xf32> to vector<1x4x1xf32>
    %1878 = vector.broadcast %1877 : vector<1x4x1xf32> to vector<1x4x16xf32>
    %1879 = arith.addf %1754, %1878 : vector<1x4x16xf32>
    %1880 = vector.extract_strided_slice %1780 {offsets = [0, 12, 0], sizes = [1, 1, 16], strides = [1, 1, 1]} : vector<1x16x16xf32> to vector<1x1x16xf32>
    %1881 = vector.broadcast %1880 : vector<1x1x16xf32> to vector<1x4x16xf32>
    %1882 = arith.addf %1879, %1881 : vector<1x4x16xf32>
    %cst_120 = arith.constant 0.333333343 : f32
    %1883 = vector.broadcast %cst_120 : f32 to vector<1x4x16xf32>
    %1884 = arith.mulf %1882, %1883 : vector<1x4x16xf32>
    %1885 = vector.extract_strided_slice %1767 {offsets = [0, 0, 13], sizes = [1, 4, 1], strides = [1, 1, 1]} : vector<1x4x16xf32> to vector<1x4x1xf32>
    %1886 = vector.broadcast %1885 : vector<1x4x1xf32> to vector<1x4x16xf32>
    %1887 = arith.addf %1754, %1886 : vector<1x4x16xf32>
    %1888 = vector.extract_strided_slice %1780 {offsets = [0, 13, 0], sizes = [1, 1, 16], strides = [1, 1, 1]} : vector<1x16x16xf32> to vector<1x1x16xf32>
    %1889 = vector.broadcast %1888 : vector<1x1x16xf32> to vector<1x4x16xf32>
    %1890 = arith.addf %1887, %1889 : vector<1x4x16xf32>
    %cst_121 = arith.constant 0.333333343 : f32
    %1891 = vector.broadcast %cst_121 : f32 to vector<1x4x16xf32>
    %1892 = arith.mulf %1890, %1891 : vector<1x4x16xf32>
    %1893 = vector.extract_strided_slice %1767 {offsets = [0, 0, 14], sizes = [1, 4, 1], strides = [1, 1, 1]} : vector<1x4x16xf32> to vector<1x4x1xf32>
    %1894 = vector.broadcast %1893 : vector<1x4x1xf32> to vector<1x4x16xf32>
    %1895 = arith.addf %1754, %1894 : vector<1x4x16xf32>
    %1896 = vector.extract_strided_slice %1780 {offsets = [0, 14, 0], sizes = [1, 1, 16], strides = [1, 1, 1]} : vector<1x16x16xf32> to vector<1x1x16xf32>
    %1897 = vector.broadcast %1896 : vector<1x1x16xf32> to vector<1x4x16xf32>
    %1898 = arith.addf %1895, %1897 : vector<1x4x16xf32>
    %cst_122 = arith.constant 0.333333343 : f32
    %1899 = vector.broadcast %cst_122 : f32 to vector<1x4x16xf32>
    %1900 = arith.mulf %1898, %1899 : vector<1x4x16xf32>
    %1901 = vector.extract_strided_slice %1767 {offsets = [0, 0, 15], sizes = [1, 4, 1], strides = [1, 1, 1]} : vector<1x4x16xf32> to vector<1x4x1xf32>
    %1902 = vector.broadcast %1901 : vector<1x4x1xf32> to vector<1x4x16xf32>
    %1903 = arith.addf %1754, %1902 : vector<1x4x16xf32>
    %1904 = vector.extract_strided_slice %1780 {offsets = [0, 15, 0], sizes = [1, 1, 16], strides = [1, 1, 1]} : vector<1x16x16xf32> to vector<1x1x16xf32>
    %1905 = vector.broadcast %1904 : vector<1x1x16xf32> to vector<1x4x16xf32>
    %1906 = arith.addf %1903, %1905 : vector<1x4x16xf32>
    %cst_123 = arith.constant 0.333333343 : f32
    %1907 = vector.broadcast %cst_123 : f32 to vector<1x4x16xf32>
    %1908 = arith.mulf %1906, %1907 : vector<1x4x16xf32>
    %1909 = tpu.concatenate %1788, %1796, %1804, %1812, %1820, %1828, %1836, %1844, %1852, %1860, %1868, %1876, %1884, %1892, %1900, %1908 in 2 : vector<1x4x16xf32>, vector<1x4x16xf32>, vector<1x4x16xf32>, vector<1x4x16xf32>, vector<1x4x16xf32>, vector<1x4x16xf32>, vector<1x4x16xf32>, vector<1x4x16xf32>, vector<1x4x16xf32>, vector<1x4x16xf32>, vector<1x4x16xf32>, vector<1x4x16xf32>, vector<1x4x16xf32>, vector<1x4x16xf32>, vector<1x4x16xf32>, vector<1x4x16xf32> -> vector<1x4x256xf32>
    %1910 = arith.mulf %0, %1909 : vector<1x4x256xf32>
    %c0_124 = arith.constant 0 : index
    %c0_125 = arith.constant 0 : index
    %c0_126 = arith.constant 0 : index
    %1911 = vector.load %arg4[%c0_124, %c0_125, %c0_126] : memref<1x4x256xf32, #tpu.memory_space<vmem>>, vector<1x4x256xf32>
    tpu.vector_store %arg4[%c0_124, %c0_125, %c0_126], %1910 {strides = array<i32>} : memref<1x4x256xf32, #tpu.memory_space<vmem>>, vector<1x4x256xf32>,
    return
  }
  func.func @transform_0(%arg0: i32) -> (i32, i32, i32) {
    %c0_i32 = arith.constant 0 : i32
    %c0_i32_0 = arith.constant 0 : i32
    %c0_i32_1 = arith.constant 0 : i32
    return %arg0, %c0_i32, %c0_i32_0 : i32, i32, i32
  }
  func.func @transform_1(%arg0: i32) -> i32 {
    %c0_i32 = arith.constant 0 : i32
    %c0_i32_0 = arith.constant 0 : i32
    return %c0_i32 : i32
  }
  func.func @transform_2(%arg0: i32) -> i32 {
    %c0_i32 = arith.constant 0 : i32
    %c0_i32_0 = arith.constant 0 : i32
    return %c0_i32 : i32
  }
  func.func @transform_3(%arg0: i32) -> (i32, i32, i32) {
    %c0_i32 = arith.constant 0 : i32
    %c0_i32_0 = arith.constant 0 : i32
    %c0_i32_1 = arith.constant 0 : i32
    return %arg0, %c0_i32, %c0_i32_0 : i32, i32, i32
  }
}

</mosaic_0001>

<bundles_post_ra>
// kernel: tpu_custom_call.1
= control target key start
LH: loop header
LB: loop body
LE: loop exit
PB: predicated region body
PF: predicated region fallthrough
CT: control target
= control target key end

     0   :  { %8 = vsyncpa [#allocation3], 0  ;;  %s9082_s0 = inlined_call_operand.hbm [shape: f32[2,4,256], index: 0, kind: input, shape index: {}]   ;;  %s9083_s1 = inlined_call_operand.hbm [shape: f32[294], index: 1, kind: input, shape index: {}]   ;;  %s9084_s2 = inlined_call_operand.vmem [shape: f32[6], index: 2, kind: input, shape index: {}]   ;;  %s9085_s3 = inlined_call_operand.hbm [shape: f32[2,4,256], index: 3, kind: output, shape index: {}]  }
   0x1   :  { %10 = vsyncpa [#allocation3 + $0x1], 0 }
   0x2   :  { %11 = vsyncpa [#allocation5], 0 }
   0x3   :  { %12 = vsyncpa [#allocation6], 0 }
   0x4   :  { %13 = vsyncpa [#allocation4], 0 }
   0x5   :  { %15 = vsyncpa [#allocation4 + $0x1], 0  ;;  %s5738_s12 = smov 0   ;;  %s5740_s13 = smov 0  }
   0x6   :  { %s5742_s14 = smov 0   ;;  %s5744_s15 = smov 0  }
   0x7 LB: > { %s5759_s16 = sadd.s32 4294967295, %s5682_s15   ;;  %s5115_s17 = sadd.s32 4294967294, %s5682_s15   ;;  %s5682_s15 = sphi %s5744_s15, %s9589_s15   ;;  %s5678_s14 = sphi %s5742_s14, %s9588_s14   ;;  %s5674_s13 = sphi %s5740_s13, %s9587_s13   ;;  %s5670_s12 = sphi %s5738_s12, %s9586_s12  }
   0x8   : > { %p41_p0 = scmp.ne.s32.totalorder %s5674_s13, %s5670_s12  ;;  %p9086_p1 = scmp.eq.s32.totalorder %s5759_s16, 0 }
   0x9   : > { %p107_p2 = scmp.eq.s32.totalorder %s5759_s16, 1  ;;  %p113_p3 = scmp.eq.s32.totalorder %s5115_s17, 1 }
   0xa   : > { %p5768_p4 = por %p9086_p1, %p41_p0  ;;  %p5116_p5 = scmp.ge.s32.totalorder %s5682_s15, 1 }
   0xb   : > { %p5773_p6 = por %p113_p3, %p41_p0  ;;  %p120_p7 = scmp.lt.s32.totalorder %s5682_s15, 3 }
   0xc   : > { %s9131_s18 = scalar_select %p5768_p4, 1, 0 }
   0xd   : > { %s9132_s19 = scalar_select %p5773_p6, 1, 0 }
   0xe   : > { %p5778_p8 = pnand %p5116_p5, %p120_p7  ;;  %s142_s23 = sshll.u32 %s9084_s2, 4  ;;  %s143_s23 = int_to_ptr.vmem [resolvable:$true] %s142_s23 }
   0xf   : > { %s5789_s24 = sadd.s32 1, %s5682_s15   ;;  %s28_s27 = sadd.s32 1, %s5678_s14 }
  0x10   : > { %s9133_s20 = scalar_select %p5778_p8, 1, 0 }
  0x11   : > { %p5445_p10 = pneg %p5778_p8  ;;  %s25_s26 = ssub.s32 %s5682_s15, %s5789_s24 }
  0x12   : > { %p5800_p12 = scmp.eq.s32.totalorder %s25_s26, 0  ;;  %s5684_s29 = smov [#allocation7]  }
  0x13   : > { %p5793_p11 = pnand %p5445_p10, %p9086_p1  ;;  %s5567_s5 = scalar_lea.vmem %s143_s23, 16 }
  0x14   : > { %p5568_p13 = scmp.ne.s32.totalorder %s143_s23, %s5567_s5  ;;  %p5575_p7 = scmp.lt.s32.totalorder %s143_s23, %s143_s23 }
  0x15   : > { %5448 = dma.hbm_to_smem (!%p5793_p11), %s9083_s1, 48, %s5684_s29, [#allocation5]  }
  0x16   : > { %p5569_p0 = pneg %p5793_p11  ;;  %p5576_p10 = scmp.lt.s32.totalorder %s5567_s5, %s5567_s5 }
  0x18   : > { %p5570_p3 = pnand %p5569_p0, %p5568_p13  ;;  %p5577_p9 = por %p5576_p10, %p5575_p7 }
  0x1a   : > { %p5571_p5 = pneg %p5570_p3 }
  0x1c   : > { %p5578_p1 = pnand %p5577_p9, %p5571_p5 }
  0x1e   : > { %5581 = shalt.err (!%p5578_p1)
}
  0x1f   : > { %s5685_s6 = smov [#allocation8]   ;;  %p35_p13 = scmp.ne.s32.totalorder %s5678_s14, %s5674_s13 }
  0x20   : > { %5451 = dma.vmem_to_smem (!%p5793_p11), %s143_s23, 16, %s5685_s6, [#allocation6]  }
  0x21   : > { %s5816_s7 = scalar_select %p5800_p12, %s5678_s14, %s28_s27  }
  0x22   : > { %p36_p0 = scmp.eq.s32.totalorder %s5682_s15, 0  ;;  %p5462_p9 = scmp.lt.s32.totalorder %s5682_s15, 2 }
  0x23   : > { %s153_s8 = sand.u32 1, %s5678_s14   ;;  %p5825_p3 = por %p107_p2, %p35_p13 }
  0x24   : > { %p37_p1 = por %p36_p0, %p35_p13  ;;  %s5120_s10 = sshll.u32 %s153_s8, 3 }
  0x25   : > { %s9136_s9 = scalar_select %p5825_p3, 1, 0 }
  0x26   : > { %s5431_s11 = sshll.u32 %s5682_s15, 7  ;;  %s157_s23 = scalar_lea.vmem [#allocation2], %s5120_s10 }
  0x27   : > { %s5833_s22 = scalar_lea.hbm %s9082_s0, %s5431_s11  ;;  %s165_s25 = sshll.u32 %s157_s23, 4  ;;  %s166_s25 = int_to_ptr.vmem [resolvable:$true] %s165_s25 }
  0x28   : > { %p5835_p11 = pnand %p5462_p9, %p37_p1  ;;  %s154_s27 = scalar_lea.sflag [#allocation3], %s153_s8 }
  0x29   : > { %s5582_s28 = scalar_lea.hbm %s5833_s22, 128  ;;  %s5587_s4 = scalar_lea.hbm %s9082_s0, 256 }
  0x2a   : > { %p5583_p2 = scmp.ne.s32.totalorder %s5833_s22, %s5582_s28  ;;  %p5584_p12 = pneg %p5835_p11 }
  0x2b   : > { %p5588_p10 = scmp.lt.s32.totalorder %s5833_s22, %s9082_s0  ;;  %p5589_p13 = scmp.lt.s32.totalorder %s5587_s4, %s5582_s28 }
  0x2c   : > { %p5585_p5 = pnand %p5584_p12, %p5583_p2 }
  0x2d   : > { %p5590_p0 = por %p5589_p13, %p5588_p10 }
  0x2e   : > { %p5586_p7 = pneg %p5585_p5 }
  0x30   : > { %p5591_p9 = pnand %p5590_p0, %p5586_p7 }
  0x32   : > { %5594 = shalt.err (!%p5591_p9)
}
  0x33   : > { %s5595_s10 = scalar_lea.vmem %s166_s25, 128  ;;  %s5686_s8 = smov [#allocation2]  }
  0x34   : > { %p5596_p1 = scmp.ne.s32.totalorder %s166_s25, %s5595_s10  ;;  %s5600_s11 = sshll.u32 %s5686_s8, 4  ;;  %s5601_s11 = int_to_ptr.vmem [resolvable:$false] %s5600_s11 }
  0x35   : > { %s5602_s17 = scalar_lea.vmem %s5601_s11, 256  ;;  %p5603_p2 = scmp.lt.s32.totalorder %s166_s25, %s5601_s11 }
  0x36   : > { %p5598_p6 = pnand %p5596_p1, %p5584_p12  ;;  %p5604_p5 = scmp.lt.s32.totalorder %s5602_s17, %s5595_s10 }
  0x38   : > { %p5599_p3 = pneg %p5598_p6  ;;  %p5605_p4 = por %p5604_p5, %p5603_p2 }
  0x3a   : > { %p5606_p8 = pnand %p5605_p4, %p5599_p3 }
  0x3c   : > { %5609 = shalt.err (!%p5606_p8)
}
  0x3d   : > { %5455 = dma.hbm_to_vmem [thread:$0]  (!%p5835_p11), %s5833_s22, 128, %s166_s25, %s154_s27  }
  0x3e   : > { %p9138_p7 = scmp.ne.s32.totalorder %s9133_s20, 0 }
  0x40   : > { %174 = sbr.rel (%p9138_p7) target bundleno = 3158 (0xc56), region = 32 }
  0x45   : > { %s5856_s21 = sand.u32 1, %s5674_s13   ;;  %p9139_p4 = scmp.ne.s32.totalorder %s9131_s18, 0 }
  0x46   : > { %s9098_s23 = sshll.u32 %s5856_s21, 3  ;;  %s177_s28 = scalar_lea.sflag [#allocation3], %s5856_s21 }
  0x47   : > { %s5862_s29 = scalar_lea.vmem [#allocation2], %s9098_s23 }
  0x48   : > { %5653 = dma.done.wait (%p9139_p4), %s177_s28, 128  }
  0x49   : > { %5655 = vsyncadd (%p9139_p4), %s177_s28, 4294967168  ;;  %p9140_p6 = scmp.eq.s32.totalorder %s5759_s16, 0 }
  0x4b   : > { %5657 = dma.done.wait (%p9140_p6), [#allocation5], 48   ;;  %p9141_p8 = pmov %p9140_p6 }
  0x4c   : > { %p9142_p3 = pmov %p9140_p6 }
  0x4d   : > { %5659 = vsyncadd (%p9141_p8), [#allocation5], 4294967248 }
  0x4e   : > { %5661 = dma.done.wait (%p9142_p3), [#allocation6], 16   ;;  %p9143_p11 = pmov %p9142_p3 }
  0x50   : > { %5663 = vsyncadd (%p9143_p11), [#allocation6], 4294967280 }
  0x51   : > { %193 = sfence }
  0x52   : > { %v5877_v0 = vld [vmem:[%s5862_s29] sm:$0xff]  ;;  %vm213_vm0 = vcmask 125952   ;;  %s9099_s20 = smov 112   ;;  %s9101_s18 = smov 96   ;;  %vm238_vm1 = vcmask 257152   ;;  %vm263_vm2 = vcmask 388352  }
  0x53   : > { %233 = vrot.lane.b32.xlu1 %v5877_v0, %s9099_s20  ;;  %v5883_v1 = vsel %vm213_vm0, %v5877_v0, -inf  ;;  %v5888_v2 = vsel %vm213_vm0, %v5877_v0, 0.0  ;;  %v5895_v3 = vsel %vm238_vm1, %v5877_v0, -inf  ;;  %s9103_s22 = smov 80   ;;  %v5902_v4 = vsel %vm263_vm2, %v5877_v0, -inf  ;;  %s9105_s25 = smov 64  }
  0x54   : > { %9144 = vst [vmem:[#allocation14_spill] sm:$0xff] %v5883_v1  ;;  %215 = vmax.xlane.f32.xlu0 %v5883_v1  ;;  %9145 = vst [vmem:[#allocation15_spill] sm:$0xff] %v5888_v2  ;;  %vm288_vm3 = vcmask 519552   ;;  %s9107_s26 = smov 48   ;;  %vm313_vm4 = vcmask 650752   ;;  %vm338_vm5 = vcmask 781952   ;;  %v5990_v35 = vcombine.high %v5877_v0, %v5877_v0 }
  0x55   : > { %v5909_v5 = vsel %vm288_vm3, %v5877_v0, -inf  ;;  %v5934_v15 = vsel %vm313_vm4, %v5877_v0, -inf  ;;  %v5945_v19 = vsel %vm338_vm5, %v5877_v0, -inf  ;;  %s9109_s27 = smov 32   ;;  %vm363_vm6 = vcmask 913152   ;;  %s9111_s30 = smov 16  }
  0x56   : > { %v5960_v24 = vsel %vm363_vm6, %v5877_v0, -inf  ;;  %vm388_vm7 = vcmask 1044352   ;;  %v414_v38 = vsel %vm213_vm0, %v5990_v35, -inf  ;;  %v417_v39 = vsel %vm213_vm0, %v5990_v35, 0.0  ;;  %s5694_s4 = smov 3   ;;  %s5130_s5 = sld [smem:[#allocation7 + $0x32]] }
  0x57   : > { %v5979_v31 = vsel %vm388_vm7, %v5877_v0, -inf  ;;  %v420_v47 = vrot.slane %v414_v38, 4  ;;  %v426_v48 = vrot.slane %v417_v39, 4  ;;  %vm9115_vm8 = vcmask 1040384   ;;  %s5132_s6 = sld [smem:[#allocation7 + $0x33]]  ;;  %s5695_s11 = smov 127  }
  0x58   : > { %218 = vadd.xlane.f32.xlu0 %v5888_v2  ;;  %vm684_vm9 = vcmask 1041408   ;;  %vm9117_vm10 = vcmask 1042432   ;;  %vm688_vm11 = vcmask 1043456   ;;  %vm9114_vm12 = vcmask 1044480   ;;  %s5134_s10 = sld [smem:[#allocation7 + $0x34]]  ;;  %s9124_s28 = smov 126  }
  0x59   : > { %v421_v51 = vmax.f32 %v414_v38, %v420_v47  ;;  %v427_v52 = vadd.f32 %v426_v48, %v417_v39  ;;  %vm9113_vm13 = vcmask 1045504   ;;  %vm9116_vm14 = vcmask 1046528   ;;  %s5136_s8 = sld [smem:[#allocation7 + $0x35]]  ;;  %p9583_p10 = scmp.ne.s32.totalorder %s9136_s9, 0 }
  0x5a   : > { %vm9118_vm15 = vcmask 154624   ;;  %s5138_s17 = sld [smem:[#allocation7 + $0x36]] }
  0x5b   : > { %v422_v56 = vrot.slane %v421_v51, 2  ;;  %v428_v57 = vrot.slane %v427_v52, 2  ;;  %s5144_s23 = sld [smem:[#allocation7 + $0x39]] }
  0x5d   : > { %v423_v61 = vmax.f32 %v421_v51, %v422_v56  ;;  %v429_v62 = vadd.f32 %v428_v57, %v427_v52 }
  0x6e   : > { %258 = vrot.lane.b32.xlu0 %v5877_v0, %s9101_s18 }
  0x77   : > { %240 = vmax.xlane.f32.xlu1 %v5895_v3 }
  0x88   : > { %283 = vrot.lane.b32.xlu1 %v5877_v0, %s9103_s22 }
  0x8d   : > { %265 = vmax.xlane.f32.xlu0 %v5902_v4 }
  0xa3   : > { %308 = vrot.lane.b32.xlu0 %v5877_v0, %s9105_s25 }
  0xac   : > { %290 = vmax.xlane.f32.xlu1 %v5909_v5 }
  0xc5   : > { %v5912_v6 = vpop.permute.xlu1 %233 }
  0xc6   : > { %v242_v7 = vsel %vm213_vm0, %v5912_v6, 0.0  ;;  %v9095_v1 = vrot.slane %v5912_v6, 4 }
  0xc7   : > { %243 = vadd.xlane.f32.xlu0 %v242_v7 }
  0xdd   : > { %v5916_v8 = vpop.xlane.xlu0 %215 }
  0xe1   : > { %v5918_v9 = vpop.xlane.xlu0 %218 }
  0xe5   : > { %v5920_v10 = vpop.permute.xlu0 %258 }
  0xe6   : > { %v267_v11 = vsel %vm213_vm0, %v5920_v10, 0.0 }
  0xe7   : > { %268 = vadd.xlane.f32.xlu1 %v267_v11 }
  0xf8   : > { %333 = vrot.lane.b32.xlu1 %v5877_v0, %s9107_s26 }
 0x100   : > { %v5926_v12 = vpop.xlane.xlu1 %240 }
 0x104   : > { %v5928_v13 = vpop.permute.xlu1 %283 }
 0x105   : > { %v292_v14 = vsel %vm213_vm0, %v5928_v13, 0.0 }
 0x106   : > { %293 = vadd.xlane.f32.xlu0 %v292_v14 }
 0x10a   : > { %315 = vmax.xlane.f32.xlu0 %v5934_v15 }
 0x116   : > { %v5937_v16 = vpop.xlane.xlu0 %265 }
 0x11a   : > { %v5939_v17 = vpop.permute.xlu0 %308 }
 0x11b   : > { %v317_v18 = vsel %vm213_vm0, %v5939_v17, 0.0 }
 0x11c   : > { %318 = vadd.xlane.f32.xlu1 %v317_v18 }
 0x120   : > { %340 = vmax.xlane.f32.xlu1 %v5945_v19 }
 0x135   : > { %v5948_v20 = vpop.xlane.xlu1 %290 }
 0x150   : > { %v5963_v25 = vpop.xlane.xlu0 %243 }
 0x170   : > { %v5950_v21 = vpop.xlane.xlu1 %268 }
 0x174   : > { %v5952_v22 = vpop.permute.xlu1 %333 }
 0x175   : > { %v342_v23 = vsel %vm213_vm0, %v5952_v22, 0.0 }
 0x176   : > { %343 = vadd.xlane.f32.xlu0 %v342_v23 }
 0x18c   : > { %358 = vrot.lane.b32.xlu0 %v5877_v0, %s9109_s27 }
 0x18f   : > { %v5965_v26 = vpop.xlane.xlu0 %293 }
 0x193   : > { %v5967_v27 = vpop.xlane.xlu0 %315 }
 0x1a5   : > { %v5982_v32 = vpop.xlane.xlu1 %318 }
 0x1a9   : > { %v5984_v33 = vpop.xlane.xlu1 %340 }
 0x1aa   : > { %9146 = vst [vmem:[#allocation16_spill] sm:$0xff] %v5984_v33 }
 0x1ab   : > { %365 = vmax.xlane.f32.xlu0 %v5960_v24 }
 0x1ff   : > { %v5969_v28 = vpop.xlane.xlu0 %343 }
 0x203   : > { %v5971_v29 = vpop.permute.xlu0 %358 }
 0x204   : > { %v367_v30 = vsel %vm213_vm0, %v5971_v29, 0.0 }
 0x205   : > { %368 = vadd.xlane.f32.xlu1 %v367_v30 }
 0x216   : > { %383 = vrot.lane.b32.xlu1 %v5877_v0, %s9111_s30 }
 0x234   : > { %v6002_v40 = vpop.xlane.xlu0 %365 }
 0x235   : > { %9147 = vst [vmem:[#allocation17_spill] sm:$0xff] %v6002_v40 }
 0x23a   : > { %390 = vmax.xlane.f32.xlu1 %v5979_v31 }
 0x28e   : > { %v5986_v34 = vpop.xlane.xlu1 %368 }
 0x292   : > { %v5992_v36 = vpop.permute.xlu1 %383 }
 0x293   : > { %v392_v37 = vsel %vm213_vm0, %v5992_v36, 0.0 }
 0x294   : > { %393 = vadd.xlane.f32.xlu0 %v392_v37 }
 0x298   : > { %415 = vmax.xlane.f32.xlu0 %v414_v38 }
 0x29c   : > { %418 = vadd.xlane.f32.xlu0 %v417_v39  ;;  %v424_v39 = vrot.slane %v423_v61, 1 }
 0x29e   : > { %v425_v51 = vmax.f32 %v423_v61, %v424_v39 }
 0x2b2   : > { %436 = vrot.lane.b32.xlu0 %v5990_v35, %s9099_s20 }
 0x2c3   : > { %v6014_v53 = vpop.xlane.xlu1 %390 }
 0x2c4   : > { %9149 = vst [vmem:[#allocation19_spill] sm:$0xff] %v6014_v53 }
 0x31d   : > { %v6004_v41 = vpop.xlane.xlu0 %393 }
 0x321   : > { %v6006_v42 = vpop.xlane.xlu0 %415 }
 0x322   : > { %9148 = vst [vmem:[#allocation18_spill] sm:$0xff] %v6006_v42 }
 0x325   : > { %v6008_v43 = vpop.xlane.xlu0 %418 }
 0x329   : > { %v437_v44 = vpop.permute.xlu0 %436 }
 0x32a   : > { %v442_v45 = vsel %vm213_vm0, %v437_v44, 0.0  ;;  %v439_v46 = vsel %vm213_vm0, %v437_v44, -inf  ;;  %v430_v44 = vrot.slane %v429_v62, 1 }
 0x32b   : > { %443 = vadd.xlane.f32.xlu0 %v442_v45  ;;  %440 = vmax.xlane.f32.xlu1 %v439_v46  ;;  %v451_v49 = vrot.slane %v442_v45, 4  ;;  %v445_v50 = vrot.slane %v439_v46, 4 }
 0x32c   : > { %v431_v52 = vadd.f32 %v430_v44, %v429_v62 }
 0x32d   : > { %v452_v54 = vadd.f32 %v451_v49, %v442_v45  ;;  %v446_v55 = vmax.f32 %v439_v46, %v445_v50 }
 0x32f   : > { %v453_v59 = vrot.slane %v452_v54, 2  ;;  %v447_v60 = vrot.slane %v446_v55, 2 }
 0x331   : > { %v454_v7 = vadd.f32 %v453_v59, %v452_v54  ;;  %v448_v11 = vmax.f32 %v446_v55, %v447_v60 }
 0x333   : > { %v455_v45 = vrot.slane %v454_v7, 1  ;;  %v449_v46 = vrot.slane %v448_v11, 1 }
 0x335   : > { %v456_v54 = vadd.f32 %v455_v45, %v454_v7  ;;  %v450_v55 = vmax.f32 %v448_v11, %v449_v46 }
 0x33c   : > { %461 = vrot.lane.b32.xlu1 %v5990_v35, %s9101_s18 }
 0x3b4   : > { %v6016_v58 = vpop.xlane.xlu1 %440  ;;  %v6026_v61 = vpop.xlane.xlu0 %443 }
 0x3b5   : > { %9150 = vst [vmem:[#allocation20_spill] sm:$0xff] %v6016_v58 }
 0x3b8   : > { %v462_v63 = vpop.permute.xlu1 %461 }
 0x3b9   : > { %v467_v14 = vsel %vm213_vm0, %v462_v63, 0.0  ;;  %v464_v18 = vsel %vm213_vm0, %v462_v63, -inf  ;;  %v738_v63 = vsel %vm9115_vm8, %v431_v52, %v456_v54 }
 0x3ba   : > { %468 = vadd.xlane.f32.xlu0 %v467_v14  ;;  %v476_v23 = vrot.slane %v467_v14, 4  ;;  %465 = vmax.xlane.f32.xlu1 %v464_v18  ;;  %v470_v30 = vrot.slane %v464_v18, 4 }
 0x3bc   : > { %v477_v37 = vadd.f32 %v476_v23, %v467_v14  ;;  %v471_v38 = vmax.f32 %v464_v18, %v470_v30  ;;  %v696_v14 = vsel %vm9115_vm8, %v425_v51, %v450_v55  ;;  %vm628_vm8 = vcmask 89088  }
 0x3be   : > { %v478_v47 = vrot.slane %v477_v37, 2  ;;  %v472_v48 = vrot.slane %v471_v38, 2 }
 0x3c0   : > { %v479_v49 = vadd.f32 %v478_v47, %v477_v37  ;;  %v473_v50 = vmax.f32 %v471_v38, %v472_v48 }
 0x3c2   : > { %v480_v56 = vrot.slane %v479_v49, 1  ;;  %v474_v57 = vrot.slane %v473_v50, 1 }
 0x3c4   : > { %v481_v59 = vadd.f32 %v480_v56, %v479_v49  ;;  %v475_v60 = vmax.f32 %v473_v50, %v474_v57 }
 0x3c6   : > { %v739_v18 = vsel %vm684_vm9, %v738_v63, %v481_v59  ;;  %v697_v23 = vsel %vm684_vm9, %v696_v14, %v475_v60 }
 0x3d0   : > { %486 = vrot.lane.b32.xlu0 %v5990_v35, %s9103_s22 }
 0x443   : > { %v6028_v62 = vpop.xlane.xlu0 %468  ;;  %v6036_v56 = vpop.xlane.xlu1 %465 }
 0x444   : > { %9151 = vst [vmem:[#allocation21_spill] sm:$0xff] %v6036_v56 }
 0x447   : > { %v487_v7 = vpop.permute.xlu0 %486 }
 0x448   : > { %v492_v11 = vsel %vm213_vm0, %v487_v7, 0.0  ;;  %v489_v30 = vsel %vm213_vm0, %v487_v7, -inf }
 0x449   : > { %493 = vadd.xlane.f32.xlu0 %v492_v11  ;;  %v501_v37 = vrot.slane %v492_v11, 4  ;;  %v495_v38 = vrot.slane %v489_v30, 4  ;;  %490 = vmax.xlane.f32.xlu1 %v489_v30 }
 0x44b   : > { %v502_v39 = vadd.f32 %v501_v37, %v492_v11  ;;  %v496_v44 = vmax.f32 %v489_v30, %v495_v38 }
 0x44d   : > { %v503_v45 = vrot.slane %v502_v39, 2  ;;  %v497_v46 = vrot.slane %v496_v44, 2 }
 0x44f   : > { %v504_v47 = vadd.f32 %v503_v45, %v502_v39  ;;  %v498_v48 = vmax.f32 %v496_v44, %v497_v46 }
 0x451   : > { %v505_v49 = vrot.slane %v504_v47, 1  ;;  %v499_v50 = vrot.slane %v498_v48, 1 }
 0x453   : > { %v506_v51 = vadd.f32 %v505_v49, %v504_v47  ;;  %v500_v52 = vmax.f32 %v498_v48, %v499_v50 }
 0x455   : > { %v740_v54 = vsel %vm9117_vm10, %v739_v18, %v506_v51  ;;  %v698_v55 = vsel %vm9117_vm10, %v697_v23, %v500_v52 }
 0x45a   : > { %511 = vrot.lane.b32.xlu1 %v5990_v35, %s9105_s25 }
 0x4d2   : > { %v6038_v57 = vpop.xlane.xlu1 %490  ;;  %v6046_v49 = vpop.xlane.xlu0 %493 }
 0x4d3   : > { %9152 = vst [vmem:[#allocation22_spill] sm:$0xff] %v6038_v57 }
 0x4d6   : > { %v512_v59 = vpop.permute.xlu1 %511 }
 0x4d7   : > { %v517_v60 = vsel %vm213_vm0, %v512_v59, 0.0  ;;  %v514_v63 = vsel %vm213_vm0, %v512_v59, -inf }
 0x4d8   : > { %518 = vadd.xlane.f32.xlu0 %v517_v60  ;;  %v526_v14 = vrot.slane %v517_v60, 4  ;;  %515 = vmax.xlane.f32.xlu1 %v514_v63  ;;  %v520_v7 = vrot.slane %v514_v63, 4 }
 0x4da   : > { %v527_v11 = vadd.f32 %v526_v14, %v517_v60  ;;  %v521_v18 = vmax.f32 %v514_v63, %v520_v7 }
 0x4dc   : > { %v528_v30 = vrot.slane %v527_v11, 2  ;;  %v522_v23 = vrot.slane %v521_v18, 2 }
 0x4de   : > { %v529_v37 = vadd.f32 %v528_v30, %v527_v11  ;;  %v523_v38 = vmax.f32 %v521_v18, %v522_v23 }
 0x4e0   : > { %v530_v39 = vrot.slane %v529_v37, 1  ;;  %v524_v44 = vrot.slane %v523_v38, 1 }
 0x4e2   : > { %v531_v45 = vadd.f32 %v530_v39, %v529_v37  ;;  %v525_v46 = vmax.f32 %v523_v38, %v524_v44 }
 0x4e4   : > { %v741_v47 = vsel %vm688_vm11, %v740_v54, %v531_v45  ;;  %v699_v48 = vsel %vm688_vm11, %v698_v55, %v525_v46 }
 0x4ee   : > { %536 = vrot.lane.b32.xlu0 %v5990_v35, %s9107_s26 }
 0x561   : > { %v6048_v50 = vpop.xlane.xlu0 %518  ;;  %v6056_v45 = vpop.xlane.xlu1 %515 }
 0x562   : > { %9153 = vst [vmem:[#allocation23_spill] sm:$0xff] %v6056_v45 }
 0x565   : > { %v537_v51 = vpop.permute.xlu0 %536 }
 0x566   : > { %v542_v52 = vsel %vm213_vm0, %v537_v51, 0.0  ;;  %v539_v59 = vsel %vm213_vm0, %v537_v51, -inf }
 0x567   : > { %543 = vadd.xlane.f32.xlu0 %v542_v52  ;;  %v551_v60 = vrot.slane %v542_v52, 4  ;;  %v545_v63 = vrot.slane %v539_v59, 4  ;;  %540 = vmax.xlane.f32.xlu1 %v539_v59 }
 0x569   : > { %v552_v14 = vadd.f32 %v551_v60, %v542_v52  ;;  %v546_v54 = vmax.f32 %v539_v59, %v545_v63 }
 0x56b   : > { %v553_v7 = vrot.slane %v552_v14, 2  ;;  %v547_v55 = vrot.slane %v546_v54, 2 }
 0x56d   : > { %v554_v11 = vadd.f32 %v553_v7, %v552_v14  ;;  %v548_v18 = vmax.f32 %v546_v54, %v547_v55 }
 0x56f   : > { %v555_v30 = vrot.slane %v554_v11, 1  ;;  %v549_v23 = vrot.slane %v548_v18, 1 }
 0x571   : > { %v556_v37 = vadd.f32 %v555_v30, %v554_v11  ;;  %v550_v38 = vmax.f32 %v548_v18, %v549_v23 }
 0x573   : > { %v742_v39 = vsel %vm9114_vm12, %v741_v47, %v556_v37  ;;  %v700_v44 = vsel %vm9114_vm12, %v699_v48, %v550_v38  ;;  %vm9119_vm12 = vcmask 80896  }
 0x578   : > { %561 = vrot.lane.b32.xlu1 %v5990_v35, %s9109_s27 }
 0x5f0   : > { %v6058_v46 = vpop.xlane.xlu1 %540 }
 0x5f1   : > { %9154 = vst [vmem:[#allocation24_spill] sm:$0xff] %v6058_v46 }
 0x5f4   : > { %v562_v51 = vpop.permute.xlu1 %561 }
 0x5f5   : > { %v567_v52 = vsel %vm213_vm0, %v562_v51, 0.0  ;;  %v564_v59 = vsel %vm213_vm0, %v562_v51, -inf  ;;  %v237_v51 = vadd.f32 %v5912_v6, %v5877_v0 }
 0x5f6   : > { %568 = vadd.xlane.f32.xlu0 %v567_v52  ;;  %v576_v60 = vrot.slane %v567_v52, 4  ;;  %565 = vmax.xlane.f32.xlu1 %v564_v59  ;;  %v570_v63 = vrot.slane %v564_v59, 4 }
 0x5f8   : > { %v577_v14 = vadd.f32 %v576_v60, %v567_v52  ;;  %v571_v47 = vmax.f32 %v564_v59, %v570_v63  ;;  %v262_v52 = vadd.f32 %v5920_v10, %v237_v51  ;;  %v6075_v63 = vpop.xlane.xlu0 %543 }
 0x5fa   : > { %v578_v54 = vrot.slane %v577_v14, 2  ;;  %v572_v48 = vrot.slane %v571_v47, 2  ;;  %v287_v59 = vadd.f32 %v5928_v13, %v262_v52 }
 0x5fc   : > { %v579_v7 = vadd.f32 %v578_v54, %v577_v14  ;;  %v573_v55 = vmax.f32 %v571_v47, %v572_v48  ;;  %v312_v60 = vadd.f32 %v5939_v17, %v287_v59  ;;  %v245_v14 = vrot.slane %v5895_v3, 4 }
 0x5fd   : > { %v9094_v54 = vrot.slane %v5877_v0, 4 }
 0x5fe   : > { %v580_v11 = vrot.slane %v579_v7, 1  ;;  %v574_v18 = vrot.slane %v573_v55, 1 }
 0x600   : > { %v581_v30 = vadd.f32 %v580_v11, %v579_v7  ;;  %v575_v23 = vmax.f32 %v573_v55, %v574_v18  ;;  %v246_v7 = vmax.f32 %v5895_v3, %v245_v14  ;;  %v270_v55 = vrot.slane %v5902_v4, 4 }
 0x601   : > { %v345_v11 = vrot.slane %v5945_v19, 4 }
 0x602   : > { %v6063_v37 = vsel %vm9113_vm13, %v700_v44, %v575_v23  ;;  %v6066_v38 = vsel %vm9113_vm13, %v742_v39, %v581_v30  ;;  %v337_v44 = vadd.f32 %v5952_v22, %v312_v60  ;;  %v295_v30 = vrot.slane %v5909_v5, 4 }
 0x603   : > { %v247_v3 = vrot.slane %v246_v7, 2  ;;  %v271_v14 = vmax.f32 %v5902_v4, %v270_v55  ;;  %vm624_vm13 = vcmask 72704  }
 0x604   : > { %v362_v39 = vadd.f32 %v5971_v29, %v337_v44  ;;  %v296_v45 = vmax.f32 %v5909_v5, %v295_v30 }
 0x605   : > { %v272_v4 = vrot.slane %v271_v14, 2 }
 0x606   : > { %v387_v48 = vadd.f32 %v5992_v36, %v362_v39  ;;  %v346_v39 = vmax.f32 %v5945_v19, %v345_v11  ;;  %v248_v19 = vmax.f32 %v246_v7, %v247_v3  ;;  %v9096_v11 = vrot.slane %v5920_v10, 4 }
 0x607   : > { %v297_v5 = vrot.slane %v296_v45, 2  ;;  %v9097_v7 = vrot.slane %v5928_v13, 4  ;;  %v273_v53 = vmax.f32 %v271_v14, %v272_v4 }
 0x608   : > { %v411_v59 = vadd.f32 %v9094_v54, %v387_v48  ;;  %v401_v48 = vsel %vm388_vm7, %v5877_v0, 0.0  ;;  %v347_v55 = vrot.slane %v346_v39, 2  ;;  %v249_v3 = vrot.slane %v248_v19, 1 }
 0x609   : > { %v298_v4 = vmax.f32 %v296_v45, %v297_v5  ;;  %vm622_vm7 = vcmask 64512  }
 0x60a   : > { %v435_v54 = vadd.f32 %v9095_v1, %v411_v59 }
 0x60c   : > { %586 = vrot.lane.b32.xlu0 %v5990_v35, %s9111_s30  ;;  %v351_v35 = vsel %vm338_vm5, %v5877_v0, 0.0  ;;  %v460_v42 = vadd.f32 %v9096_v11, %v435_v54  ;;  %vm618_vm5 = vcmask 48128  }
 0x60d   : > { %v352_v23 = vrot.slane %v351_v35, 4 }
 0x60e   : > { %v485_v54 = vadd.f32 %v9097_v7, %v460_v42  ;;  %v276_v42 = vsel %vm263_vm2, %v5877_v0, 0.0  ;;  %vm610_vm2 = vcmask 15360  }
 0x60f   : > { %v353_v57 = vadd.f32 %v352_v23, %v351_v35  ;;  %v236_v35 = vmax.f32 %v5877_v0, %v5912_v6 }
 0x611   : > { %v354_v23 = vrot.slane %v353_v57, 2 }
 0x67f   : > { %v6080_v47 = vpop.xlane.xlu0 %568 }
 0x683   : > { %v587_v18 = vpop.permute.xlu0 %586 }
 0x684   : > { %v592_v51 = vsel %vm213_vm0, %v587_v18, 0.0  ;;  %v589_v52 = vsel %vm213_vm0, %v587_v18, -inf  ;;  %v320_v18 = vrot.slane %v5934_v15, 4  ;;  %vm612_vm0 = vcmask 23552  }
 0x685   : > { %593 = vadd.xlane.f32.xlu0 %v592_v51  ;;  %v601_v60 = vrot.slane %v592_v51, 4  ;;  %v595_v44 = vrot.slane %v589_v52, 4  ;;  %590 = vmax.xlane.f32.xlu1 %v589_v52 }
 0x686   : > { %v321_v30 = vmax.f32 %v5934_v15, %v320_v18  ;;  %v251_v15 = vsel %vm238_vm1, %v5877_v0, 0.0  ;;  %v261_v18 = vmax.f32 %v236_v35, %v5920_v10  ;;  %vm608_vm1 = vcmask 7168  }
 0x687   : > { %v602_v2 = vadd.f32 %v601_v60, %v592_v51  ;;  %v596_v46 = vmax.f32 %v589_v52, %v595_v44  ;;  %v402_v51 = vrot.slane %v401_v48, 4  ;;  %v370_v44 = vrot.slane %v5960_v24, 4 }
 0x688   : > { %v322_v40 = vrot.slane %v321_v30, 2 }
 0x689   : > { %v603_v56 = vrot.slane %v602_v2, 2  ;;  %v597_v58 = vrot.slane %v596_v46, 2  ;;  %v371_v33 = vmax.f32 %v5960_v24, %v370_v44 }
 0x68a   : > { %v323_v5 = vmax.f32 %v321_v30, %v322_v40 }
 0x68b   : > { %v604_v52 = vadd.f32 %v603_v56, %v602_v2  ;;  %v598_v60 = vmax.f32 %v596_v46, %v597_v58  ;;  %v403_v2 = vadd.f32 %v402_v51, %v401_v48  ;;  %v348_v56 = vmax.f32 %v346_v39, %v347_v55 }
 0x68c   : > { %v250_v39 = vmax.f32 %v248_v19, %v249_v3  ;;  %v274_v48 = vrot.slane %v273_v53, 1  ;;  %v507_v55 = vrot.slane %v5939_v17, 4  ;;  %v372_v35 = vrot.slane %v371_v33, 2 }
 0x68d   : > { %v605_v59 = vrot.slane %v604_v52, 1  ;;  %v599_v1 = vrot.slane %v598_v60, 1  ;;  %v404_v51 = vrot.slane %v403_v2, 2  ;;  %v349_v24 = vrot.slane %v348_v56, 1 }
 0x68e   : > { %v275_v45 = vmax.f32 %v273_v53, %v274_v48  ;;  %v299_v19 = vrot.slane %v298_v4, 1  ;;  %v324_v40 = vrot.slane %v323_v5, 1  ;;  %v373_v30 = vmax.f32 %v371_v33, %v372_v35 }
 0x68f   : > { %v606_v58 = vadd.f32 %v605_v59, %v604_v52  ;;  %v600_v46 = vmax.f32 %v598_v60, %v599_v1  ;;  %v395_v1 = vrot.slane %v5979_v31, 4  ;;  %v355_v52 = vadd.f32 %v354_v23, %v353_v57 }
 0x690   : > { %v252_v60 = vrot.slane %v251_v15, 4  ;;  %v532_v59 = vrot.slane %v5952_v22, 4  ;;  %v350_v57 = vmax.f32 %v348_v56, %v349_v24  ;;  %v405_v3 = vadd.f32 %v404_v51, %v403_v2 }
 0x691   : > { %v6119_v11 = vsel %vm9116_vm14, %v6063_v37, %v600_v46  ;;  %v6123_v14 = vsel %vm9116_vm14, %v6066_v38, %v606_v58  ;;  %v286_v37 = vmax.f32 %v261_v18, %v5928_v13  ;;  %v510_v38 = vadd.f32 %v507_v55, %v485_v54 }
 0x692   : > { %9155 = vst [vmem:[#allocation25_spill] sm:$0xff] %v6119_v11  ;;  %9156 = vst [vmem:[#allocation26_spill] sm:$0xff] %v6123_v14  ;;  %v396_v44 = vmax.f32 %v5979_v31, %v395_v1  ;;  %v356_v23 = vrot.slane %v355_v52, 1  ;;  %v253_v58 = vadd.f32 %v252_v60, %v251_v15  ;;  %v277_v46 = vrot.slane %v276_v42, 4 }
 0x693   : > { %v301_v18 = vsel %vm288_vm3, %v5877_v0, 0.0  ;;  %v311_v7 = vmax.f32 %v286_v37, %v5939_v17  ;;  %v535_v31 = vadd.f32 %v532_v59, %v510_v38  ;;  %v300_v53 = vmax.f32 %v298_v4, %v299_v19 }
 0x694   : > { %v397_v54 = vrot.slane %v396_v44, 2  ;;  %v357_v56 = vadd.f32 %v356_v23, %v355_v52  ;;  %v406_v2 = vrot.slane %v405_v3, 1  ;;  %v557_v15 = vrot.slane %v5971_v29, 4 }
 0x695   : > { %v254_v1 = vrot.slane %v253_v58, 2  ;;  %v278_v48 = vadd.f32 %v277_v46, %v276_v42  ;;  %v302_v51 = vrot.slane %v301_v18, 4  ;;  %v326_v24 = vsel %vm313_vm4, %v5877_v0, 0.0 }
 0x696   : > { %655 = vrot.lane.b32.xlu1 %v250_v39, %s9099_s20  ;;  %v336_v39 = vmax.f32 %v311_v7, %v5952_v22  ;;  %v560_v60 = vadd.f32 %v557_v15, %v535_v31  ;;  %v325_v33 = vmax.f32 %v323_v5, %v324_v40  ;;  %v374_v4 = vrot.slane %v373_v30, 1 }
 0x697   : > { %v398_v35 = vmax.f32 %v396_v44, %v397_v54  ;;  %v407_v52 = vadd.f32 %v406_v2, %v405_v3  ;;  %v582_v38 = vrot.slane %v5992_v36, 4  ;;  %v303_v42 = vadd.f32 %v302_v51, %v301_v18 }
 0x698   : > { %v361_v37 = vmax.f32 %v336_v39, %v5971_v29  ;;  %v375_v23 = vmax.f32 %v373_v30, %v374_v4  ;;  %v255_v46 = vadd.f32 %v254_v1, %v253_v58  ;;  %v376_v5 = vsel %vm363_vm6, %v5877_v0, 0.0 }
 0x699   : > { %v585_v19 = vadd.f32 %v582_v38, %v560_v60  ;;  %v399_v29 = vrot.slane %v398_v35, 1  ;;  %v9157_v44 = vrot.slane %v5877_v0, 4  ;;  %v304_v31 = vrot.slane %v303_v42, 2 }
 0x69a   : > { %659 = vrot.lane.b32.xlu1 %v275_v45, %s9101_s18  ;;  %v386_v7 = vmax.f32 %v361_v37, %v5992_v36  ;;  %v327_v45 = vrot.slane %v326_v24, 4  ;;  %v377_v18 = vrot.slane %v376_v5, 4  ;;  %v256_v40 = vrot.slane %v255_v46, 1 }
 0x69b   : > { %671 = vrot.lane.b32.xlu0 %v350_v57, %s9107_s26  ;;  %v279_v57 = vrot.slane %v278_v48, 2  ;;  %v607_v36 = vmul.f32 0.0625, %v585_v19  ;;  %v9158_v58 = vrot.slane %v5912_v6, 4  ;;  %v305_v51 = vadd.f32 %v304_v31, %v303_v42 }
 0x69c   : > { %v410_v3 = vmax.f32 %v386_v7, %v9157_v44  ;;  %v328_v54 = vadd.f32 %v327_v45, %v326_v24  ;;  %v378_v1 = vadd.f32 %v377_v18, %v376_v5  ;;  %v257_v0 = vadd.f32 %v256_v40, %v255_v46  ;;  %v6176_v46 = vpop.xlane.xlu1 %565 }
 0x69d   : > { %v9159_v24 = vrot.slane %v5920_v10, 4  ;;  %v787_v40 = vstv %s5130_s5  ;;  %s5140_s5 = sld [smem:[#allocation7 + $0x37]]  ;;  %vm614_vm3 = vcmask 31744   ;;  %vm616_vm4 = vcmask 39936  }
 0x69e   : > { %663 = vrot.lane.b32.xlu1 %v300_v53, %s9103_s22  ;;  %v400_v53 = vmax.f32 %v398_v35, %v399_v29  ;;  %v434_v30 = vmax.f32 %v410_v3, %v9158_v58  ;;  %v329_v2 = vrot.slane %v328_v54, 2  ;;  %v379_v37 = vrot.slane %v378_v1, 2 }
 0x69f   : > { %720 = vrot.lane.b32.xlu0 %v357_v56, %s9107_s26  ;;  %v280_v56 = vadd.f32 %v279_v57, %v278_v48  ;;  %v9160_v35 = vrot.slane %v5928_v13, 4  ;;  %s5133_s26 = sld [smem:[#allocation7 + $0x3]]  ;;  %vm620_vm6 = vcmask 56320  }
 0x6a0   : > { %v459_v60 = vmax.f32 %v434_v30, %v9159_v24  ;;  %v330_v4 = vadd.f32 %v329_v2, %v328_v54  ;;  %v380_v45 = vadd.f32 %v379_v37, %v378_v1  ;;  %v803_v1 = vstv %s5132_s6  ;;  %s5697_s6 = smov 125  }
 0x6a1   : > { %v281_v39 = vrot.slane %v280_v56, 1  ;;  %v835_v37 = vstv %s5136_s8  ;;  %s9122_s8 = smov 123  }
 0x6a2   : > { %667 = vrot.lane.b32.xlu1 %v325_v33, %s9105_s25  ;;  %v306_v33 = vrot.slane %v305_v51, 1  ;;  %v484_v6 = vmax.f32 %v459_v60, %v9160_v35  ;;  %v331_v7 = vrot.slane %v330_v4, 1  ;;  %v381_v19 = vrot.slane %v380_v45, 1 }
 0x6a3   : > { %728 = vrot.lane.b32.xlu0 %v407_v52, %s9111_s30  ;;  %v282_v48 = vadd.f32 %v281_v39, %v280_v56 }
 0x6a4   : > { %v307_v52 = vadd.f32 %v306_v33, %v305_v51  ;;  %v509_v42 = vmax.f32 %v484_v6, %v507_v55  ;;  %v332_v10 = vadd.f32 %v331_v7, %v330_v4  ;;  %v819_v51 = vstv %s5134_s10  ;;  %s9126_s10 = smov 124  }
 0x6a5   : > { %v851_v4 = vstv %s5138_s17  ;;  %s5129_s17 = sld [smem:[#allocation7 + $0x1]] }
 0x6a6   : > { %675 = vrot.lane.b32.xlu1 %v375_v23, %s9109_s27  ;;  %v534_v57 = vmax.f32 %v509_v42, %v532_v59  ;;  %v382_v23 = vadd.f32 %v381_v19, %v380_v45  ;;  %v891_v42 = vstv %s5144_s23  ;;  %s5152_s23 = sld [smem:[#allocation7 + $0x3d]] }
 0x6a7   : > { %760 = vrot.lane.b32.xlu0 %v607_v36, %s5694_s4 }
 0x6a8   : > { %v559_v13 = vmax.f32 %v534_v57, %v557_v15 }
 0x6aa   : > { %679 = vrot.lane.b32.xlu1 %v400_v53, %s9111_s30  ;;  %v584_v29 = vmax.f32 %v559_v13, %v582_v38  ;;  %s5135_s30 = sld [smem:[#allocation7 + $0x4]] }
 0x6ae   : > { %704 = vrot.lane.b32.xlu1 %v257_v0, %s9099_s20  ;;  %s5146_s20 = sld [smem:[#allocation7 + $0x3a]] }
 0x6b2   : > { %708 = vrot.lane.b32.xlu1 %v282_v48, %s9101_s18  ;;  %s5148_s18 = sld [smem:[#allocation7 + $0x3b]] }
 0x6b4   : > { %v907_v57 = vstv %s5146_s20  ;;  %s5154_s20 = sld [smem:[#allocation7 + $0x3e]] }
 0x6b6   : > { %712 = vrot.lane.b32.xlu1 %v307_v52, %s9103_s22  ;;  %v867_v52 = vstv %s5140_s5  ;;  %s9120_s22 = smov 122   ;;  %s5131_s5 = sld [smem:[#allocation7 + $0x2]] }
 0x6ba   : > { %716 = vrot.lane.b32.xlu1 %v332_v10, %s9105_s25  ;;  %s5150_s25 = sld [smem:[#allocation7 + $0x3c]] }
 0x6be   : > { %724 = vrot.lane.b32.xlu1 %v382_v23, %s9109_s27  ;;  %s5158_s27 = sld [smem:[#allocation7 + $0x40]] }
 0x6c2   : > { %748 = vrot.lane.b32.xlu1 %v584_v29, %s5694_s4 }
 0x70e   : > { %v6178_v17 = vpop.xlane.xlu0 %593  ;;  %v6180_v55 = vpop.xlane.xlu1 %590 }
 0x712   : > { %v6182_v5 = vpop.permute.xlu0 %671  ;;  %v6184_v44 = vpop.permute.xlu1 %655 }
 0x713   : > { %9161 = vst [vmem:[#allocation27_spill] sm:$0xff] %v6182_v5  ;;  %9162 = vst [vmem:[#allocation28_spill] sm:$0xff] %v6184_v44 }
 0x716   : > { %v6186_v22 = vpop.permute.xlu0 %720  ;;  %v6188_v59 = vpop.permute.xlu1 %659 }
 0x717   : > { %9163 = vst [vmem:[#allocation29_spill] sm:$0xff] %v6186_v22  ;;  %9164 = vst [vmem:[#allocation30_spill] sm:$0xff] %v6188_v59 }
 0x71a   : > { %v6190_v15 = vpop.permute.xlu0 %728  ;;  %v6192_v3 = vpop.permute.xlu1 %663 }
 0x71b   : > { %9165 = vst [vmem:[#allocation31_spill] sm:$0xff] %v6190_v15  ;;  %9166 = vst [vmem:[#allocation32_spill] sm:$0xff] %v6192_v3 }
 0x71e   : > { %v761_v38 = vpop.permute.xlu0 %760  ;;  %v6194_v31 = vpop.permute.xlu1 %667 }
 0x71f   : > { %9167 = vst [vmem:[#allocation33_spill] sm:$0xff] %v6194_v31  ;;  %v763_v54 = vsel %vm612_vm0, 0.0, %v761_v38 }
 0x720   : > { %v764_v36 = vsel %vm9118_vm15, %v763_v54, 0.0  ;;  %v923_v54 = vstv %s5148_s18  ;;  %s5160_s18 = sld [smem:[#allocation7 + $0x41]] }
 0x721   : > { %v766_v18 = vrot.slane %v764_v36, 5  ;;  %v779_v36 = vstv %s5129_s17  ;;  %s5137_s17 = sld [smem:[#allocation7 + $0x5]] }
 0x722   : > { %v6198_v53 = vpop.permute.xlu1 %675 }
 0x723   : > { %9168 = vst [vmem:[#allocation34_spill] sm:$0xff] %v6198_v53  ;;  %v768_v56 = vsel %vm9117_vm10, 0.0, %v766_v18 }
 0x724   : > { %v6202_v58 = vsel %vm9116_vm14, %v768_v56, 0.0 }
 0x725   : > { %v788_v30 = vmul.f32 %v787_v40, %v6202_v58  ;;  %v804_v0 = vmul.f32 %v803_v1, %v6202_v58  ;;  %v820_v24 = vmul.f32 %v819_v51, %v6202_v58  ;;  %v836_v48 = vmul.f32 %v835_v37, %v6202_v58 }
 0x726   : > { %v6205_v2 = vpop.permute.xlu1 %679  ;;  %v852_v35 = vmul.f32 %v851_v4, %v6202_v58  ;;  %v868_v7 = vmul.f32 %v867_v52, %v6202_v58  ;;  %v892_v10 = vmul.f32 %v891_v42, %v6202_v58  ;;  %v908_v38 = vmul.f32 %v907_v57, %v6202_v58 }
 0x727   : > { %9169 = vst [vmem:[#allocation35_spill] sm:$0xff] %v6205_v2  ;;  %790 = vrot.lane.b32.xlu0 %v788_v30, %s5695_s11  ;;  %v924_v56 = vmul.f32 %v923_v54, %v6202_v58  ;;  %v939_v1 = vstv %s5150_s25  ;;  %v955_v37 = vstv %s5152_s23  ;;  %s5162_s25 = sld [smem:[#allocation7 + $0x42]]  ;;  %v971_v52 = vstv %s5154_s20 }
 0x728   : > { %v940_v51 = vmul.f32 %v939_v1, %v6202_v58  ;;  %v956_v4 = vmul.f32 %v955_v37, %v6202_v58  ;;  %v1002_v42 = vstv %s5158_s27  ;;  %s5143_s23 = sld [smem:[#allocation7 + $0x8]] }
 0x729   : > { %v1003_v57 = vmul.f32 %v1002_v42, %v6202_v58  ;;  %s5166_s27 = sld [smem:[#allocation7 + $0x44]] }
 0x72a   : > { %v6209_v39 = vpop.permute.xlu1 %704  ;;  %s5168_s20 = sld [smem:[#allocation7 + $0x45]] }
 0x72b   : > { %9170 = vst [vmem:[#allocation36_spill] sm:$0xff] %v6209_v39  ;;  %806 = vrot.lane.b32.xlu0 %v804_v0, %s9124_s28  ;;  %v795_v0 = vstv %s5131_s5  ;;  %s5139_s5 = sld [smem:[#allocation7 + $0x6]] }
 0x72e   : > { %v6213_v60 = vpop.permute.xlu1 %708 }
 0x72f   : > { %9171 = vst [vmem:[#allocation37_spill] sm:$0xff] %v6213_v60  ;;  %822 = vrot.lane.b32.xlu0 %v820_v24, %s5697_s6 }
 0x732   : > { %v6217_v33 = vpop.permute.xlu1 %712 }
 0x733   : > { %9172 = vst [vmem:[#allocation38_spill] sm:$0xff] %v6217_v33  ;;  %838 = vrot.lane.b32.xlu0 %v836_v48, %s9126_s10  ;;  %v811_v48 = vstv %s5133_s26  ;;  %s5164_s26 = sld [smem:[#allocation7 + $0x43]] }
 0x736   : > { %v6221_v6 = vpop.permute.xlu1 %716 }
 0x737   : > { %9173 = vst [vmem:[#allocation39_spill] sm:$0xff] %v6221_v6  ;;  %854 = vrot.lane.b32.xlu0 %v852_v35, %s9122_s8 }
 0x73a   : > { %v6225_v45 = vpop.permute.xlu1 %724 }
 0x73b   : > { %9174 = vst [vmem:[#allocation40_spill] sm:$0xff] %v6225_v45  ;;  %870 = vrot.lane.b32.xlu0 %v868_v7, %s9120_s22  ;;  %v827_v7 = vstv %s5135_s30  ;;  %s5145_s30 = sld [smem:[#allocation7 + $0x9]] }
 0x73e   : > { %v749_v19 = vpop.permute.xlu1 %748 }
 0x73f   : > { %v751_v23 = vsel %vm612_vm0, 0.0, %v749_v19  ;;  %894 = vrot.lane.b32.xlu0 %v892_v10, %s5695_s11  ;;  %v972_v10 = vmul.f32 %v971_v52, %v6202_v58 }
 0x740   : > { %v753_v13 = vsel %vm9118_vm15, %v751_v23, 0.0  ;;  %v843_v23 = vstv %s5137_s17  ;;  %s5172_s17 = sld [smem:[#allocation7 + $0x47]]  ;;  %vm634_vm15 = vcmask 113664  }
 0x741   : > { %v755_v29 = vrot.slane %v753_v13, 5  ;;  %v1020_v13 = vstv %s5160_s18  ;;  %s5147_s18 = sld [smem:[#allocation7 + $0xa]] }
 0x742   : > { %v1021_v54 = vmul.f32 %v1020_v13, %v6202_v58 }
 0x743   : > { %v757_v18 = vsel %vm9117_vm10, 0.0, %v755_v29  ;;  %910 = vrot.lane.b32.xlu0 %v908_v38, %s9124_s28  ;;  %v1005_v29 = vrot.slane %v1003_v57, 2  ;;  %vm632_vm10 = vcmask 105472  }
 0x744   : > { %v6236_v40 = vsel %vm9116_vm14, %v757_v18, 0.0  ;;  %v1038_v18 = vstv %s5162_s25  ;;  %s5149_s25 = sld [smem:[#allocation7 + $0xb]]  ;;  %vm630_vm14 = vcmask 97280  }
 0x745   : > { %v780_v30 = vmul.f32 %v779_v36, %v6236_v40  ;;  %v796_v24 = vmul.f32 %v795_v0, %v6236_v40  ;;  %v812_v35 = vmul.f32 %v811_v48, %v6236_v40  ;;  %v828_v19 = vmul.f32 %v827_v7, %v6236_v40 }
 0x746   : > { %v844_v38 = vmul.f32 %v843_v23, %v6236_v40  ;;  %v859_v36 = vstv %s5139_s5  ;;  %v1039_v1 = vmul.f32 %v1038_v18, %v6202_v58  ;;  %v883_v0 = vstv %s5143_s23  ;;  %s5174_s5 = sld [smem:[#allocation7 + $0x48]] }
 0x747   : > { %926 = vrot.lane.b32.xlu0 %v924_v56, %s5697_s6  ;;  %782 = vrot.lane.b32.xlu1 %v780_v30, %s5695_s11  ;;  %v1023_v56 = vrot.slane %v1021_v54, 2  ;;  %v860_v30 = vmul.f32 %v859_v36, %v6236_v40  ;;  %v884_v37 = vmul.f32 %v883_v0, %v6236_v40  ;;  %s6271_s23 = sld [smem:[#allocation7 + $0x49]] }
 0x74b   : > { %942 = vrot.lane.b32.xlu0 %v940_v51, %s9126_s10  ;;  %798 = vrot.lane.b32.xlu1 %v796_v24, %s9124_s28  ;;  %v1056_v51 = vstv %s5164_s26  ;;  %v1041_v24 = vrot.slane %v1039_v1, 2  ;;  %s5151_s26 = sld [smem:[#allocation7 + $0xc]] }
 0x74c   : > { %v1057_v48 = vmul.f32 %v1056_v51, %v6202_v58 }
 0x74e   : > { %v1059_v52 = vrot.slane %v1057_v48, 2 }
 0x74f   : > { %958 = vrot.lane.b32.xlu0 %v956_v4, %s9122_s8  ;;  %814 = vrot.lane.b32.xlu1 %v812_v35, %s5697_s6  ;;  %v899_v4 = vstv %s5145_s30  ;;  %v1074_v35 = vstv %s5166_s27  ;;  %s5153_s27 = sld [smem:[#allocation7 + $0xd]] }
 0x750   : > { %v900_v7 = vmul.f32 %v899_v4, %v6236_v40  ;;  %v1075_v42 = vmul.f32 %v1074_v35, %v6202_v58  ;;  %s5157_s30 = sld [smem:[#allocation7 + $0xf]] }
 0x752   : > { %v1077_v57 = vrot.slane %v1075_v42, 2 }
 0x753   : > { %974 = vrot.lane.b32.xlu0 %v972_v10, %s9120_s22  ;;  %830 = vrot.lane.b32.xlu1 %v828_v19, %s9126_s10  ;;  %v915_v10 = vstv %s5147_s18  ;;  %v1092_v19 = vstv %s5168_s20  ;;  %s5178_s20 = sld [smem:[#allocation7 + $0x4a]] }
 0x754   : > { %v916_v23 = vmul.f32 %v915_v10, %v6236_v40  ;;  %v1093_v13 = vmul.f32 %v1092_v19, %v6202_v58  ;;  %s5159_s18 = sld [smem:[#allocation7 + $0x10]] }
 0x756   : > { %v1095_v54 = vrot.slane %v1093_v13, 2  ;;  %v993_v48 = vstv %s5157_s30  ;;  %s5188_s30 = sld [smem:[#allocation7 + $0x4f]] }
 0x757   : > { %1006 = vrot.lane.b32.xlu0 %v1005_v29, %s5695_s11  ;;  %846 = vrot.lane.b32.xlu1 %v844_v38, %s9122_s8  ;;  %v931_v29 = vstv %s5149_s25  ;;  %v1124_v38 = vstv %s5172_s17  ;;  %s5180_s17 = sld [smem:[#allocation7 + $0x4b]] }
 0x758   : > { %v932_v36 = vmul.f32 %v931_v29, %v6236_v40  ;;  %v1125_v18 = vmul.f32 %v1124_v38, %v6202_v58  ;;  %s5161_s25 = sld [smem:[#allocation7 + $0x11]] }
 0x759   : > { %v1178_v42 = vstv %s5178_s20  ;;  %s5167_s20 = sld [smem:[#allocation7 + $0x14]] }
 0x75a   : > { %v1127_v1 = vrot.slane %v1125_v18, 2  ;;  %v1011_v10 = vstv %s5159_s18  ;;  %s5190_s18 = sld [smem:[#allocation7 + $0x50]] }
 0x75b   : > { %1024 = vrot.lane.b32.xlu0 %v1023_v56, %s9124_s28  ;;  %862 = vrot.lane.b32.xlu1 %v860_v30, %s9120_s22  ;;  %v947_v56 = vstv %s5151_s26  ;;  %v1142_v30 = vstv %s5174_s5  ;;  %s5182_s5 = sld [smem:[#allocation7 + $0x4c]]  ;;  %v1012_v13 = vmul.f32 %v1011_v10, %v6236_v40 }
 0x75c   : > { %v948_v0 = vmul.f32 %v947_v56, %v6236_v40  ;;  %v1143_v51 = vmul.f32 %v1142_v30, %v6202_v58  ;;  %s5163_s26 = sld [smem:[#allocation7 + $0x12]]  ;;  %v1264_v10 = vstv %s5188_s30 }
 0x75d   : > { %v1196_v29 = vstv %s5180_s17  ;;  %s5171_s17 = sld [smem:[#allocation7 + $0x16]] }
 0x75e   : > { %v1145_v4 = vrot.slane %v1143_v51, 2  ;;  %v1029_v38 = vstv %s5161_s25  ;;  %v1197_v18 = vmul.f32 %v1196_v29, %v6202_v58  ;;  %s5192_s25 = sld [smem:[#allocation7 + $0x51]] }
 0x75f   : > { %1042 = vrot.lane.b32.xlu0 %v1041_v24, %s5697_s6  ;;  %886 = vrot.lane.b32.xlu1 %v884_v37, %s5695_s11  ;;  %v963_v24 = vstv %s5153_s27  ;;  %v1160_v37 = vstv %s6271_s23  ;;  %s5186_s23 = sld [smem:[#allocation7 + $0x4e]]  ;;  %v1030_v56 = vmul.f32 %v1029_v38, %v6236_v40 }
 0x760   : > { %v964_v35 = vmul.f32 %v963_v24, %v6236_v40  ;;  %s5165_s27 = sld [smem:[#allocation7 + $0x13]]  ;;  %v1282_v38 = vstv %s5190_s18 }
 0x761   : > { %v1214_v30 = vstv %s5182_s5  ;;  %v1032_v51 = vrot.slane %v1030_v56, 2  ;;  %s5173_s5 = sld [smem:[#allocation7 + $0x17]]  ;;  %v1283_v56 = vmul.f32 %v1282_v38, %v6202_v58 }
 0x762   : > { %v1215_v24 = vmul.f32 %v1214_v30, %v6202_v58  ;;  %s5177_s30 = sld [smem:[#allocation7 + $0x19]] }
 0x763   : > { %1060 = vrot.lane.b32.xlu0 %v1059_v52, %s9126_s10  ;;  %902 = vrot.lane.b32.xlu1 %v900_v7, %s9124_s28  ;;  %v1161_v52 = vmul.f32 %v1160_v37, %v6202_v58  ;;  %v994_v7 = vmul.f32 %v993_v48, %v6236_v40  ;;  %s6317_s18 = sld [smem:[#allocation7 + $0x56]] }
 0x765   : > { %v1163_v19 = vrot.slane %v1161_v52, 2  ;;  %v1246_v48 = vstv %s5186_s23  ;;  %s5175_s23 = sld [smem:[#allocation7 + $0x18]] }
 0x767   : > { %1078 = vrot.lane.b32.xlu0 %v1077_v57, %s9122_s8  ;;  %918 = vrot.lane.b32.xlu1 %v916_v23, %s5697_s6  ;;  %v996_v57 = vrot.slane %v994_v7, 2  ;;  %v1179_v23 = vmul.f32 %v1178_v42, %v6202_v58  ;;  %v1247_v7 = vmul.f32 %v1246_v48, %v6202_v58 }
 0x76b   : > { %1096 = vrot.lane.b32.xlu0 %v1095_v54, %s9120_s22  ;;  %934 = vrot.lane.b32.xlu1 %v932_v36, %s9126_s10  ;;  %v1181_v54 = vrot.slane %v1179_v23, 2  ;;  %v1014_v36 = vrot.slane %v1012_v13, 2  ;;  %v1265_v13 = vmul.f32 %v1264_v10, %v6202_v58 }
 0x76f   : > { %1128 = vrot.lane.b32.xlu0 %v1127_v1, %s5695_s11  ;;  %950 = vrot.lane.b32.xlu1 %v948_v0, %s9122_s8  ;;  %v1047_v1 = vstv %s5163_s26  ;;  %v1199_v0 = vrot.slane %v1197_v18, 2  ;;  %s5194_s26 = sld [smem:[#allocation7 + $0x52]] }
 0x770   : > { %v1048_v37 = vmul.f32 %v1047_v1, %v6236_v40  ;;  %v1300_v1 = vstv %s5192_s25  ;;  %s6325_s25 = sld [smem:[#allocation7 + $0x57]] }
 0x772   : > { %v1050_v52 = vrot.slane %v1048_v37, 2  ;;  %v1301_v37 = vmul.f32 %v1300_v1, %v6202_v58 }
 0x773   : > { %1146 = vrot.lane.b32.xlu0 %v1145_v4, %s9124_s28  ;;  %966 = vrot.lane.b32.xlu1 %v964_v35, %s9120_s22  ;;  %v1065_v4 = vstv %s5165_s27  ;;  %v1217_v35 = vrot.slane %v1215_v24, 2  ;;  %s6313_s27 = sld [smem:[#allocation7 + $0x53]] }
 0x774   : > { %v1066_v42 = vmul.f32 %v1065_v4, %v6236_v40 }
 0x775   : > { %v1318_v4 = vstv %s5194_s26  ;;  %s6335_s26 = sld [smem:[#allocation7 + $0x1d]] }
 0x776   : > { %v1068_v23 = vrot.slane %v1066_v42, 2  ;;  %v1319_v42 = vmul.f32 %v1318_v4, %v6202_v58 }
 0x777   : > { %1164 = vrot.lane.b32.xlu0 %v1163_v19, %s5697_s6  ;;  %997 = vrot.lane.b32.xlu1 %v996_v57, %s5695_s11  ;;  %v1083_v19 = vstv %s5167_s20  ;;  %v1249_v57 = vrot.slane %v1247_v7, 4  ;;  %s5200_s20 = sld [smem:[#allocation7 + $0x55]] }
 0x778   : > { %v1084_v29 = vmul.f32 %v1083_v19, %v6236_v40 }
 0x779   : > { %v1336_v19 = vstv %s6313_s27  ;;  %s6346_s27 = sld [smem:[#allocation7 + $0x59]] }
 0x77a   : > { %v1086_v18 = vrot.slane %v1084_v29, 2  ;;  %v1321_v29 = vrot.slane %v1319_v42, 4 }
 0x77b   : > { %1182 = vrot.lane.b32.xlu0 %v1181_v54, %s9126_s10  ;;  %1015 = vrot.lane.b32.xlu1 %v1014_v36, %s9124_s28  ;;  %v1115_v54 = vstv %s5171_s17  ;;  %v1267_v36 = vrot.slane %v1265_v13, 4  ;;  %s5179_s17 = sld [smem:[#allocation7 + $0x1a]]  ;;  %v1406_v13 = vstv %s6317_s18 }
 0x77c   : > { %v1116_v30 = vmul.f32 %v1115_v54, %v6236_v40  ;;  %v1337_v54 = vmul.f32 %v1336_v19, %v6202_v58  ;;  %v1408_v1 = vmul.f32 0.0, %v1406_v13  ;;  %s6363_s18 = sld [smem:[#allocation7 + $0x5a]] }
 0x77e   : > { %v1118_v24 = vrot.slane %v1116_v30, 2 }
 0x77f   : > { %1200 = vrot.lane.b32.xlu0 %v1199_v0, %s9122_s8  ;;  %1033 = vrot.lane.b32.xlu1 %v1032_v51, %s5697_s6  ;;  %v1133_v0 = vstv %s5173_s5  ;;  %v1285_v51 = vrot.slane %v1283_v56, 4  ;;  %s6328_s5 = sld [smem:[#allocation7 + $0x1b]] }
 0x780   : > { %v1134_v48 = vmul.f32 %v1133_v0, %v6236_v40 }
 0x781   : > { %v1187_v30 = vstv %s5179_s17  ;;  %s6371_s17 = sld [smem:[#allocation7 + $0x5c]] }
 0x782   : > { %v1136_v7 = vrot.slane %v1134_v48, 2  ;;  %v1432_v48 = vstv %s6325_s25  ;;  %s6376_s25 = sld [smem:[#allocation7 + $0x20]] }
 0x783   : > { %1218 = vrot.lane.b32.xlu0 %v1217_v35, %s9120_s22  ;;  %1051 = vrot.lane.b32.xlu1 %v1050_v52, %s9126_s10  ;;  %v1151_v35 = vstv %s5175_s23  ;;  %v1303_v52 = vrot.slane %v1301_v37, 4  ;;  %s6338_s23 = sld [smem:[#allocation7 + $0x58]]  ;;  %v1188_v37 = vmul.f32 %v1187_v30, %v6236_v40  ;;  %v1434_v42 = vmul.f32 0.0, %v1432_v48 }
 0x784   : > { %v1152_v10 = vmul.f32 %v1151_v35, %v6236_v40 }
 0x785   : > { %v1190_v19 = vrot.slane %v1188_v37, 2 }
 0x786   : > { %v1154_v38 = vrot.slane %v1152_v10, 2 }
 0x787   : > { %1250 = vrot.lane.b32.xlu0 %v1249_v57, %s5695_s11  ;;  %1069 = vrot.lane.b32.xlu1 %v1068_v23, %s9122_s8  ;;  %v1169_v57 = vstv %s5177_s30  ;;  %v1380_v23 = vstv %s5200_s20  ;;  %s6350_s30 = sld [smem:[#allocation7 + $0x1e]] }
 0x788   : > { %v1382_v56 = vmul.f32 0.0, %v1380_v23  ;;  %s6358_s20 = sld [smem:[#allocation7 + $0x1f]] }
 0x78a   : > { %v1386_v35 = vrot.slane %v1382_v56, 4 }
 0x78b   : > { %1268 = vrot.lane.b32.xlu0 %v1267_v36, %s9124_s28  ;;  %1087 = vrot.lane.b32.xlu1 %v1086_v18, %s9120_s22  ;;  %v1170_v36 = vmul.f32 %v1169_v57, %v6236_v40  ;;  %v1381_v18 = vmul.f32 %v1380_v23, %v6202_v58  ;;  %v1412_v57 = vrot.slane %v1408_v1, 4 }
 0x78d   : > { %v1385_v4 = vrot.slane %v1381_v18, 4  ;;  %v1438_v18 = vrot.slane %v1434_v42, 4 }
 0x78f   : > { %1286 = vrot.lane.b32.xlu0 %v1285_v51, %s5697_s6  ;;  %1119 = vrot.lane.b32.xlu1 %v1118_v24, %s5695_s11  ;;  %v1339_v51 = vrot.slane %v1337_v54, 4  ;;  %v1172_v24 = vrot.slane %v1170_v36, 2  ;;  %v1433_v54 = vmul.f32 %v1432_v48, %v6202_v58  ;;  %v1458_v36 = vstv %s6338_s23  ;;  %s6396_s23 = sld [smem:[#allocation7 + $0x5e]] }
 0x791   : > { %v1437_v48 = vrot.slane %v1433_v54, 4  ;;  %v1510_v54 = vstv %s6363_s18  ;;  %s6421_s18 = sld [smem:[#allocation7 + $0x25]] }
 0x793   : > { %1304 = vrot.lane.b32.xlu0 %v1303_v52, %s9126_s10  ;;  %1137 = vrot.lane.b32.xlu1 %v1136_v7, %s9124_s28  ;;  %v1407_v52 = vmul.f32 %v1406_v13, %v6202_v58  ;;  %v1205_v7 = vstv %s6328_s5  ;;  %v1387_v13 = vsel %vm688_vm11, %v1385_v4, %v1386_v35  ;;  %v1459_v4 = vmul.f32 %v1458_v36, %v6202_v58  ;;  %s6384_s5 = sld [smem:[#allocation7 + $0x5d]] }
 0x794   : > { %v1206_v23 = vmul.f32 %v1205_v7, %v6236_v40  ;;  %v1255_v35 = vstv %s6350_s30  ;;  %s6407_s30 = sld [smem:[#allocation7 + $0x22]] }
 0x796   : > { %v1208_v30 = vrot.slane %v1206_v23, 2  ;;  %v1256_v23 = vmul.f32 %v1255_v35, %v6236_v40  ;;  %v1511_v35 = vmul.f32 %v1510_v54, %v6202_v58 }
 0x797   : > { %1322 = vrot.lane.b32.xlu0 %v1321_v29, %s9122_s8  ;;  %1155 = vrot.lane.b32.xlu1 %v1154_v38, %s5697_s6  ;;  %v1237_v29 = vstv %s6335_s26  ;;  %v1411_v38 = vrot.slane %v1407_v52, 4  ;;  %s6389_s26 = sld [smem:[#allocation7 + $0x21]] }
 0x798   : > { %v1238_v1 = vmul.f32 %v1237_v29, %v6236_v40  ;;  %v1273_v29 = vstv %s6358_s20  ;;  %s6415_s20 = sld [smem:[#allocation7 + $0x5f]] }
 0x799   : > { %v6342_v0 = vpop.permute.xlu0 %790  ;;  %v1413_v37 = vsel %vm688_vm11, %v1411_v38, %v1412_v57  ;;  %v1439_v57 = vsel %vm688_vm11, %v1437_v48, %v1438_v18 }
 0x79a   : > { %v1240_v42 = vrot.slane %v1238_v1, 4  ;;  %v1258_v1 = vrot.slane %v1256_v23, 4 }
 0x79b   : > { %1340 = vrot.lane.b32.xlu0 %v1339_v51, %s9120_s22  ;;  %1173 = vrot.lane.b32.xlu1 %v1172_v24, %s9126_s10  ;;  %v1460_v51 = vmul.f32 0.0, %v1458_v36  ;;  %v1484_v24 = vstv %s6346_s27  ;;  %v638_v36 = vsel %vm608_vm1, %v5918_v9, %v5963_v25  ;;  %s6402_s27 = sld [smem:[#allocation7 + $0x24]] }
 0x79c   : > { %v1486_v52 = vmul.f32 0.0, %v1484_v24  ;;  %v1485_v38 = vmul.f32 %v1484_v24, %v6202_v58  ;;  %v1512_v24 = vmul.f32 0.0, %v1510_v54  ;;  %v639_v9 = vsel %vm610_vm2, %v638_v36, %v5950_v21 }
 0x79d   : > { %v6354_v10 = vpop.permute.xlu0 %806  ;;  %v640_v25 = vsel %vm612_vm0, %v639_v9, %v5965_v26  ;;  %v1309_v54 = vstv %s6389_s26  ;;  %v1327_v9 = vstv %s6407_s30  ;;  %s6457_s26 = sld [smem:[#allocation7 + $0x27]] }
 0x79e   : > { %v641_v36 = vsel %vm614_vm3, %v640_v25, %v5982_v32  ;;  %v1610_v32 = vstv %s6396_s23  ;;  %s6473_s23 = sld [smem:[#allocation7 + $0x28]] }
 0x79f   : > { %1388 = vrot.lane.b32.xlu0 %v1387_v13, %s5695_s11  ;;  %1191 = vrot.lane.b32.xlu1 %v1190_v19, %s9122_s8  ;;  %v1464_v19 = vrot.slane %v1460_v51, 4  ;;  %v1463_v13 = vrot.slane %v1459_v4, 4  ;;  %v1274_v51 = vmul.f32 %v1273_v29, %v6236_v40  ;;  %v1489_v4 = vrot.slane %v1485_v38, 4  ;;  %s6503_s30 = sld [smem:[#allocation7 + $0x2b]] }
 0x7a0   : > { %v1516_v29 = vrot.slane %v1512_v24, 4  ;;  %v1515_v38 = vrot.slane %v1511_v35, 4 }
 0x7a1   : > { %v6367_v56 = vpop.permute.xlu0 %822  ;;  %v1465_v48 = vsel %vm688_vm11, %v1463_v13, %v1464_v19  ;;  %v1276_v23 = vrot.slane %v1274_v51, 4  ;;  %v1584_v13 = vstv %s6384_s5  ;;  %s6450_s5 = sld [smem:[#allocation7 + $0x61]] }
 0x7a2   : > { %v1586_v51 = vmul.f32 0.0, %v1584_v13  ;;  %v1517_v35 = vsel %vm688_vm11, %v1515_v38, %v1516_v29  ;;  %v1612_v29 = vmul.f32 0.0, %v1610_v32  ;;  %v1328_v38 = vmul.f32 %v1327_v9, %v6236_v40 }
 0x7a3   : > { %1414 = vrot.lane.b32.xlu0 %v1413_v37, %s9124_s28  ;;  %1209 = vrot.lane.b32.xlu1 %v1208_v30, %s9120_s22  ;;  %v1490_v30 = vrot.slane %v1486_v52, 4  ;;  %v1558_v37 = vstv %s6371_s17  ;;  %s6432_s17 = sld [smem:[#allocation7 + $0x60]] }
 0x7a4   : > { %v1560_v52 = vmul.f32 0.0, %v1558_v37  ;;  %v1559_v26 = vmul.f32 %v1558_v37, %v6202_v58 }
 0x7a5   : > { %v6380_v7 = vpop.permute.xlu0 %838  ;;  %v1491_v21 = vsel %vm688_vm11, %v1489_v4, %v1490_v30  ;;  %v1367_v4 = vstv %s6402_s27  ;;  %s6488_s27 = sld [smem:[#allocation7 + $0x29]] }
 0x7a6   : > { %v1564_v30 = vrot.slane %v1560_v52, 6 }
 0x7a7   : > { %1440 = vrot.lane.b32.xlu0 %v1439_v57, %s5697_s6  ;;  %1241 = vrot.lane.b32.xlu1 %v1240_v42, %s5695_s11  ;;  %v1291_v42 = vstv %s6376_s25  ;;  %s6439_s25 = sld [smem:[#allocation7 + $0x26]] }
 0x7a8   : > { %v1292_v57 = vmul.f32 %v1291_v42, %v6236_v40  ;;  %v1563_v42 = vrot.slane %v1559_v26, 6  ;;  %v1393_v26 = vstv %s6421_s18  ;;  %s6537_s18 = sld [smem:[#allocation7 + $0x2d]] }
 0x7a9   : > { %v6398_v18 = vpop.permute.xlu0 %854  ;;  %v1395_v9 = vmul.f32 0.0, %v1393_v26 }
 0x7aa   : > { %v1294_v37 = vrot.slane %v1292_v57, 4  ;;  %v1369_v57 = vmul.f32 0.0, %v1367_v4 }
 0x7ab   : > { %1466 = vrot.lane.b32.xlu0 %v1465_v48, %s9126_s10  ;;  %1259 = vrot.lane.b32.xlu1 %v1258_v1, %s9124_s28  ;;  %v642_v1 = vsel %vm616_vm4, %v641_v36, %v5969_v28  ;;  %v1310_v48 = vmul.f32 %v1309_v54, %v6236_v40  ;;  %v1585_v28 = vmul.f32 %v1584_v13, %v6202_v58 }
 0x7ac   : > { %v643_v25 = vsel %vm618_vm5, %v642_v1, %v5986_v34  ;;  %v1636_v34 = vstv %s6415_s20  ;;  %v1565_v54 = vsel %vm684_vm9, %v1563_v42, %v1564_v30  ;;  %v1368_v1 = vmul.f32 %v1367_v4, %v6236_v40  ;;  %s6520_s20 = sld [smem:[#allocation7 + $0x2c]] }
 0x7ad   : > { %v6417_v19 = vpop.permute.xlu0 %870  ;;  %v644_v52 = vsel %vm620_vm6, %v643_v25, %v6004_v41  ;;  %v1589_v36 = vrot.slane %v1585_v28, 6  ;;  %v1611_v41 = vmul.f32 %v1610_v32, %v6202_v58  ;;  %v1330_v28 = vrot.slane %v1328_v38, 4 }
 0x7ae   : > { %v1637_v32 = vmul.f32 %v1636_v34, %v6202_v58  ;;  %v1662_v4 = vstv %s6432_s17  ;;  %v1419_v25 = vstv %s6439_s25  ;;  %s5219_s17 = sld [smem:[#allocation7 + $0x2e]] }
 0x7af   : > { %1492 = vrot.lane.b32.xlu0 %v1491_v21, %s9122_s8  ;;  %1277 = vrot.lane.b32.xlu1 %v1276_v23, %s5697_s6  ;;  %v1590_v23 = vrot.slane %v1586_v51, 6  ;;  %v1312_v21 = vrot.slane %v1310_v48, 4  ;;  %v645_v51 = vsel %vm622_vm7, %v644_v52, %v6008_v43  ;;  %v1373_v48 = vrot.slane %v1369_v57, 4  ;;  %s5221_s25 = sld [smem:[#allocation7 + $0x2f]] }
 0x7b0   : > { %v1615_v52 = vrot.slane %v1611_v41, 6  ;;  %v1394_v57 = vmul.f32 %v1393_v26, %v6236_v40  ;;  %v1421_v15 = vmul.f32 0.0, %v1419_v25  ;;  %v1663_v41 = vmul.f32 %v1662_v4, %v6202_v58 }
 0x7b1   : > { %v6434_v24 = vpop.permute.xlu0 %894  ;;  %v1591_v43 = vsel %vm684_vm9, %v1589_v36, %v1590_v23  ;;  %v1641_v36 = vrot.slane %v1637_v32, 6  ;;  %v1688_v26 = vstv %s6450_s5  ;;  %s5223_s5 = sld [smem:[#allocation7 + $0x30]] }
 0x7b3   : > { %1518 = vrot.lane.b32.xlu0 %v1517_v35, %s9120_s22  ;;  %1295 = vrot.lane.b32.xlu1 %v1294_v37, %s9126_s10  ;;  %v1616_v37 = vrot.slane %v1612_v29, 6  ;;  %v1638_v35 = vmul.f32 0.0, %v1636_v34  ;;  %v1372_v29 = vrot.slane %v1368_v1, 4  ;;  %v1399_v34 = vrot.slane %v1395_v9, 4 }
 0x7b4   : > { %v1445_v1 = vstv %s6457_s26  ;;  %v1420_v9 = vmul.f32 %v1419_v25, %v6236_v40  ;;  %s5128_s26 = sld [smem:[#allocation7 + $0x31]] }
 0x7b5   : > { %v6452_v13 = vpop.permute.xlu0 %910  ;;  %v1642_v38 = vrot.slane %v1638_v35, 6  ;;  %v1398_v35 = vrot.slane %v1394_v57, 4  ;;  %v1447_v25 = vmul.f32 0.0, %v1445_v1 }
 0x7b7   : > { %1566 = vrot.lane.b32.xlu0 %v1565_v54, %s5695_s11  ;;  %1313 = vrot.lane.b32.xlu1 %v1312_v21, %s9122_s8  ;;  %v646_v21 = vsel %vm624_vm13, %v645_v51, %v6026_v61  ;;  %v1664_v54 = vmul.f32 0.0, %v1662_v4  ;;  %v1617_v61 = vsel %vm684_vm9, %v1615_v52, %v1616_v37  ;;  %v1374_v51 = vsel %vm688_vm11, %v1372_v29, %v1373_v48 }
 0x7b8   : > { %v1425_v4 = vrot.slane %v1421_v15, 4  ;;  %v1667_v48 = vrot.slane %v1663_v41, 6  ;;  %v1689_v52 = vmul.f32 %v1688_v26, %v6202_v58  ;;  %v1471_v29 = vstv %s6473_s23  ;;  %s770_s23 = sld [smem:[#allocation7]] }
 0x7b9   : > { %v6466_v30 = vpop.permute.xlu0 %926  ;;  %v6468_v42 = vpop.permute.xlu1 %782  ;;  %v1668_v32 = vrot.slane %v1664_v54, 6  ;;  %v1400_v57 = vsel %vm688_vm11, %v1398_v35, %v1399_v34  ;;  %v1446_v15 = vmul.f32 %v1445_v1, %v6236_v40  ;;  %v1451_v1 = vrot.slane %v1447_v25, 4 }
 0x7ba   : > { %v1693_v35 = vrot.slane %v1689_v52, 6  ;;  %v775_v44 = vstv %s5128_s26  ;;  %s6727_s26 = sld [smem:[#allocation7 + $0x54]] }
 0x7bb   : > { %1592 = vrot.lane.b32.xlu0 %v1591_v43, %s9124_s28  ;;  %1331 = vrot.lane.b32.xlu1 %v1330_v28, %s9120_s22  ;;  %v647_v28 = vsel %vm9119_vm12, %v646_v21, %v6028_v62  ;;  %v1690_v43 = vmul.f32 0.0, %v1688_v26  ;;  %v1643_v62 = vsel %vm684_vm9, %v1641_v36, %v1642_v38  ;;  %v1424_v21 = vrot.slane %v1420_v9, 4 }
 0x7bc   : > { %v648_v54 = vsel %vm628_vm8, %v647_v28, %v6046_v49  ;;  %vm636_vm12 = vcmask 121856   ;;  %v1669_v26 = vsel %vm684_vm9, %v1667_v48, %v1668_v32  ;;  %v1497_v49 = vstv %s6488_s27  ;;  %s5156_s27 = sld [smem:[#allocation7 + $0x3f]] }
 0x7bd   : > { %v6481_v2 = vpop.permute.xlu0 %942  ;;  %v6483_v23 = vpop.permute.xlu1 %798  ;;  %v649_v41 = vsel %vm630_vm14, %v648_v54, %v6048_v50  ;;  %v1694_v38 = vrot.slane %v1690_v43, 6  ;;  %v1450_v9 = vrot.slane %v1446_v15, 4  ;;  %v1472_v50 = vmul.f32 %v1471_v29, %v6236_v40 }
 0x7be   : > { %v650_v28 = vsel %vm632_vm10, %v649_v41, %v6075_v63  ;;  %v1499_v25 = vmul.f32 0.0, %v1497_v49  ;;  %v1571_v41 = vstv %s6520_s20  ;;  %v771_v11 = vstv %s770_s23  ;;  %s5142_s20 = sld [smem:[#allocation7 + $0x38]] }
 0x7bf   : > { %1618 = vrot.lane.b32.xlu0 %v1617_v61, %s5697_s6  ;;  %1375 = vrot.lane.b32.xlu1 %v1374_v51, %s5695_s11  ;;  %v1473_v61 = vmul.f32 0.0, %v1471_v29  ;;  %v1426_v51 = vsel %vm688_vm11, %v1424_v21, %v1425_v4  ;;  %v651_v32 = vsel %vm634_vm15, %v650_v28, %v6080_v47  ;;  %v1545_v29 = vstv %s6503_s30  ;;  %s5155_s30 = sld [smem:[#allocation7 + $0xe]] }
 0x7c0   : > { %v652_v43 = vsel %vm636_vm12, %v651_v32, %v6178_v17  ;;  %v1695_v63 = vsel %vm684_vm9, %v1693_v35, %v1694_v38  ;;  %v1498_v47 = vmul.f32 %v1497_v49, %v6236_v40  ;;  %v1547_v54 = vmul.f32 0.0, %v1545_v29  ;;  %s6730_s23 = sld [smem:[#allocation7 + $0x1c]] }
 0x7c1   : > { %v6497_v53 = vpop.permute.xlu0 %958  ;;  %v6499_v37 = vpop.permute.xlu1 %814  ;;  %v1477_v52 = vrot.slane %v1473_v61, 4  ;;  %v653_v17 = vmul.f32 0.0625, %v652_v43  ;;  %v1503_v61 = vrot.slane %v1499_v25, 4  ;;  %v1573_v35 = vmul.f32 0.0, %v1571_v41 }
 0x7c2   : > { %v1502_v38 = vrot.slane %v1498_v47, 4  ;;  %v1551_v32 = vrot.slane %v1547_v54, 6  ;;  %v1572_v43 = vmul.f32 %v1571_v41, %v6236_v40 }
 0x7c3   : > { %1644 = vrot.lane.b32.xlu0 %v1643_v62, %s9126_s10  ;;  %1401 = vrot.lane.b32.xlu1 %v1400_v57, %s9124_s28  ;;  %v1452_v62 = vsel %vm688_vm11, %v1450_v9, %v1451_v1  ;;  %v1476_v57 = vrot.slane %v1472_v50, 4  ;;  %v1546_v1 = vmul.f32 %v1545_v29, %v6236_v40  ;;  %v1597_v9 = vstv %s6537_s18  ;;  %s5141_s18 = sld [smem:[#allocation7 + $0x7]] }
 0x7c4   : > { %v1504_v50 = vsel %vm688_vm11, %v1502_v38, %v1503_v61  ;;  %v1577_v29 = vrot.slane %v1573_v35, 6  ;;  %v1598_v47 = vmul.f32 %v1597_v9, %v6236_v40 }
 0x7c5   : > { %v6514_v36 = vpop.permute.xlu0 %974  ;;  %v6516_v34 = vpop.permute.xlu1 %830  ;;  %v1550_v28 = vrot.slane %v1546_v1, 6 }
 0x7c6   : > { %v1602_v1 = vrot.slane %v1598_v47, 6 }
 0x7c7   : > { %1670 = vrot.lane.b32.xlu0 %v1669_v26, %s9122_s8  ;;  %1427 = vrot.lane.b32.xlu1 %v1426_v51, %s5697_s6  ;;  %v1478_v26 = vsel %vm688_vm11, %v1476_v57, %v1477_v52  ;;  %v1576_v57 = vrot.slane %v1572_v43, 6 }
 0x7c9   : > { %v6532_v48 = vpop.permute.xlu0 %1006  ;;  %v6534_v4 = vpop.permute.xlu1 %846  ;;  %v1578_v61 = vsel %vm684_vm9, %v1576_v57, %v1577_v29  ;;  %v609_v29 = vsel %vm608_vm1, %v5916_v8, %v5926_v12  ;;  %v1675_v57 = vstv %s5223_s5  ;;  %vm9181_vm1 = vcmask 80896   ;;  %s6724_s5 = sld [smem:[#allocation7 + $0x4d]] }
 0x7ca   : > { %v611_v47 = vsel %vm610_vm2, %v609_v29, %v5937_v16  ;;  %v1677_v8 = vmul.f32 0.0, %v1675_v57  ;;  %v9175_v16 = vld [vmem:[#allocation16_spill] sm:$0xff]  ;;  %vm9223_vm2 = vcmask 1040384  }
 0x7cb   : > { %1696 = vrot.lane.b32.xlu0 %v1695_v63, %s9120_s22  ;;  %1453 = vrot.lane.b32.xlu1 %v1452_v62, %s9126_s10  ;;  %v1599_v63 = vmul.f32 0.0, %v1597_v9  ;;  %v1552_v62 = vsel %vm684_vm9, %v1550_v28, %v1551_v32 }
 0x7cc   : > { %v1681_v45 = vrot.slane %v1677_v8, 6 }
 0x7cd   : > { %v6544_v21 = vpop.permute.xlu0 %1024  ;;  %v6546_v15 = vpop.permute.xlu1 %862 }
 0x7cf   : > { %1721 = vrot.lane.b32.xlu0 %v653_v17, %s5694_s4  ;;  %1479 = vrot.lane.b32.xlu1 %v1478_v26, %s9122_s8  ;;  %v1623_v17 = vstv %s5219_s17  ;;  %v1603_v26 = vrot.slane %v1599_v63, 6  ;;  %s6711_s17 = sld [smem:[#allocation7 + $0x46]] }
 0x7d0   : > { %v1625_v38 = vmul.f32 0.0, %v1623_v17  ;;  %v1624_v35 = vmul.f32 %v1623_v17, %v6236_v40  ;;  %v613_v17 = vsel %vm612_vm0, %v611_v47, %v5948_v20  ;;  %v9176_v20 = vld [vmem:[#allocation17_spill] sm:$0xff] }
 0x7d1   : > { %v6553_v49 = vpop.permute.xlu0 %1042  ;;  %v6555_v51 = vpop.permute.xlu1 %886  ;;  %v1604_v43 = vsel %vm684_vm9, %v1602_v1, %v1603_v26  ;;  %v615_v12 = vsel %vm614_vm3, %v613_v17, %v5967_v27  ;;  %v9178_v27 = vld [vmem:[#allocation18_spill] sm:$0xff]  ;;  %vm9225_vm3 = vmmov %vm9223_vm2 }
 0x7d2   : > { %v1629_v5 = vrot.slane %v1625_v38, 6 }
 0x7d3   : > { %1505 = vrot.lane.b32.xlu1 %v1504_v50, %s9120_s22  ;;  %v1649_v50 = vstv %s5221_s25  ;;  %s6715_s25 = sld [smem:[#allocation7 + $0x15]] }
 0x7d4   : > { %v1651_v32 = vmul.f32 0.0, %v1649_v50  ;;  %v1650_v63 = vmul.f32 %v1649_v50, %v6236_v40  ;;  %v1676_v50 = vmul.f32 %v1675_v57, %v6236_v40 }
 0x7d5   : > { %v6561_v52 = vpop.permute.xlu0 %1060  ;;  %v6563_v25 = vpop.permute.xlu1 %902 }
 0x7d6   : > { %v1655_v38 = vrot.slane %v1651_v32, 6  ;;  %v1680_v57 = vrot.slane %v1676_v50, 6  ;;  %v9183_v50 = vld [vmem:[#allocation23_spill] sm:$0xff] }
 0x7d7   : > { %1553 = vrot.lane.b32.xlu1 %v1552_v62, %s5695_s11  ;;  %v1628_v62 = vrot.slane %v1624_v35, 6  ;;  %v1654_v35 = vrot.slane %v1650_v63, 6 }
 0x7d9   : > { %v6568_v54 = vpop.permute.xlu0 %1078  ;;  %v6570_v41 = vpop.permute.xlu1 %918  ;;  %v1630_v1 = vsel %vm684_vm9, %v1628_v62, %v1629_v5  ;;  %v9177_v5 = vld [vmem:[#allocation19_spill] sm:$0xff]  ;;  %v1656_v63 = vsel %vm684_vm9, %v1654_v35, %v1655_v38  ;;  %v1682_v35 = vsel %vm684_vm9, %v1680_v57, %v1681_v45 }
 0x7db   : > { %1579 = vrot.lane.b32.xlu1 %v1578_v61, %s9124_s28 }
 0x7dd   : > { %v6575_v28 = vpop.permute.xlu0 %1096  ;;  %v6577_v9 = vpop.permute.xlu1 %934 }
 0x7df   : > { %1605 = vrot.lane.b32.xlu1 %v1604_v43, %s5697_s6  ;;  %v617_v43 = vsel %vm616_vm4, %v615_v12, %v9175_v16  ;;  %v9180_v16 = vld [vmem:[#allocation21_spill] sm:$0xff] }
 0x7e0   : > { %v619_v29 = vsel %vm618_vm5, %v617_v43, %v9176_v20 }
 0x7e1   : > { %v6589_v61 = vpop.permute.xlu0 %1128  ;;  %v6591_v26 = vpop.permute.xlu1 %950  ;;  %v621_v62 = vsel %vm620_vm6, %v619_v29, %v9177_v5  ;;  %v9182_v29 = vld [vmem:[#allocation22_spill] sm:$0xff]  ;;  %v9184_v5 = vld [vmem:[#allocation24_spill] sm:$0xff]  ;;  %vm9235_vm6 = vcmask 1044480  }
 0x7e2   : > { %v623_v17 = vsel %vm622_vm7, %v621_v62, %v9178_v27  ;;  %vm9237_vm7 = vcmask 1045504  }
 0x7e3   : > { %1631 = vrot.lane.b32.xlu1 %v1630_v1, %s9126_s10  ;;  %v9179_v1 = vld [vmem:[#allocation20_spill] sm:$0xff] }
 0x7e4   : > { %v625_v12 = vsel %vm624_vm13, %v623_v17, %v9179_v1 }
 0x7e5   : > { %v6602_v47 = vpop.permute.xlu0 %1146  ;;  %v6604_v32 = vpop.permute.xlu1 %966  ;;  %v627_v43 = vsel %vm9181_vm1, %v625_v12, %v9180_v16  ;;  %vm9239_vm1 = vmmov %vm9235_vm6 }
 0x7e6   : > { %v629_v38 = vsel %vm628_vm8, %v627_v43, %v9182_v29  ;;  %vm9198_vm8 = vcmask 154624  }
 0x7e7   : > { %1657 = vrot.lane.b32.xlu1 %v1656_v63, %s9122_s8  ;;  %v631_v8 = vsel %vm630_vm14, %v629_v38, %v9183_v50  ;;  %vm9215_vm13 = vmmov %vm9198_vm8 }
 0x7e8   : > { %v633_v62 = vsel %vm632_vm10, %v631_v8, %v9184_v5  ;;  %vm9199_vm10 = vcmask 1042432  }
 0x7e9   : > { %v6616_v20 = vpop.permute.xlu0 %1164  ;;  %v6618_v22 = vpop.permute.xlu1 %997  ;;  %v635_v63 = vsel %vm634_vm15, %v633_v62, %v6176_v46  ;;  %vm9216_vm14 = vmmov %vm9199_vm10 }
 0x7ea   : > { %v637_v1 = vsel %vm636_vm12, %v635_v63, %v6180_v55  ;;  %vm9201_vm12 = vcmask 1046528   ;;  %vm9228_vm4 = vmmov %vm9199_vm10 }
 0x7eb   : > { %1683 = vrot.lane.b32.xlu1 %v1682_v35, %s9120_s22  ;;  %vm9217_vm15 = vmmov %vm9201_vm12 }
 0x7ec   : > { %vm9232_vm5 = vmmov %vm9228_vm4 }
 0x7ed   : > { %v6630_v27 = vpop.permute.xlu0 %1182  ;;  %v6632_v17 = vpop.permute.xlu1 %1015 }
 0x7ef   : > { %1710 = vrot.lane.b32.xlu1 %v637_v1, %s5694_s4 }
 0x7f1   : > { %v6637_v45 = vpop.permute.xlu0 %1200  ;;  %v6639_v57 = vpop.permute.xlu1 %1033 }
 0x7f2   : > { %9185 = vst [vmem:[#allocation16_spill] sm:$0xff] %v6637_v45 }
 0x7f5   : > { %v6641_v12 = vpop.permute.xlu0 %1218  ;;  %v6643_v16 = vpop.permute.xlu1 %1051 }
 0x7f6   : > { %9186 = vst [vmem:[#allocation17_spill] sm:$0xff] %v6641_v12 }
 0x7f9   : > { %v6645_v43 = vpop.permute.xlu0 %1250  ;;  %v6647_v46 = vpop.permute.xlu1 %1069 }
 0x7fd   : > { %v6649_v29 = vpop.permute.xlu0 %1268  ;;  %v6651_v38 = vpop.permute.xlu1 %1087 }
 0x801   : > { %v6653_v35 = vpop.permute.xlu0 %1286  ;;  %v6655_v55 = vpop.permute.xlu1 %1119 }
 0x805   : > { %v6657_v50 = vpop.permute.xlu0 %1304  ;;  %v6659_v8 = vpop.permute.xlu1 %1137 }
 0x806   : > { %9187 = vst [vmem:[#allocation19_spill] sm:$0xff] %v6657_v50  ;;  %v986_v50 = vstv %s5156_s27  ;;  %s6745_s27 = sld [smem:[#allocation7 + $0x5b]] }
 0x809   : > { %v6661_v5 = vpop.permute.xlu0 %1322  ;;  %v6663_v62 = vpop.permute.xlu1 %1155 }
 0x80a   : > { %9188 = vst [vmem:[#allocation18_spill] sm:$0xff] %v6661_v5 }
 0x80d   : > { %v6665_v63 = vpop.permute.xlu0 %1340  ;;  %v6667_v1 = vpop.permute.xlu1 %1173 }
 0x80e   : > { %9189 = vst [vmem:[#allocation20_spill] sm:$0xff] %v6665_v63 }
 0x811   : > { %v6669_v31 = vpop.permute.xlu0 %1388  ;;  %v6671_v3 = vpop.permute.xlu1 %1191 }
 0x812   : > { %9190 = vst [vmem:[#allocation21_spill] sm:$0xff] %v6669_v31  ;;  %9191 = vst [vmem:[#allocation22_spill] sm:$0xff] %v6671_v3  ;;  %v776_v31 = vmul.f32 %v775_v44, %v6202_v58 }
 0x815   : > { %v6673_v6 = vpop.permute.xlu0 %1414  ;;  %v6675_v59 = vpop.permute.xlu1 %1209 }
 0x816   : > { %9192 = vst [vmem:[#allocation23_spill] sm:$0xff] %v6673_v6  ;;  %9193 = vst [vmem:[#allocation24_spill] sm:$0xff] %v6675_v59  ;;  %v793_v59 = vadd.f32 %v6342_v0, %v776_v31  ;;  %v979_v0 = vstv %s5155_s30  ;;  %s6754_s30 = sld [smem:[#allocation7 + $0x23]] }
 0x818   : > { %v809_v5 = vadd.f32 %v6354_v10, %v793_v59 }
 0x819   : > { %v6677_v33 = vpop.permute.xlu0 %1440  ;;  %v6679_v60 = vpop.permute.xlu1 %1241 }
 0x81a   : > { %9194 = vst [vmem:[#allocation41_spill] sm:$0xff] %v6677_v33  ;;  %v772_v33 = vmul.f32 %v771_v11, %v6236_v40  ;;  %v825_v44 = vadd.f32 %v6367_v56, %v809_v5  ;;  %v875_v56 = vstv %s5141_s18  ;;  %s6786_s18 = sld [smem:[#allocation7 + $0x9a]] }
 0x81d   : > { %v6681_v39 = vpop.permute.xlu0 %1466  ;;  %v6683_v14 = vpop.permute.xlu1 %1259 }
 0x81e   : > { %9195 = vst [vmem:[#allocation42_spill] sm:$0xff] %v6681_v39  ;;  %v785_v39 = vadd.f32 %v6468_v42, %v772_v33  ;;  %v879_v33 = vstv %s5142_s20  ;;  %v987_v42 = vmul.f32 %v986_v50, %v6202_v58  ;;  %v876_v50 = vmul.f32 %v875_v56, %v6236_v40  ;;  %s6763_s20 = sld [smem:[#allocation7 + $0x2a]] }
 0x81f   : > { %v1108_v56 = vstv %s6711_s17  ;;  %s6799_s17 = sld [smem:[#allocation7 + $0xa1]] }
 0x821   : > { %v6686_v63 = vpop.permute.xlu0 %1492  ;;  %v6688_v6 = vpop.permute.xlu1 %1277 }
 0x822   : > { %9196 = vst [vmem:[#allocation43_spill] sm:$0xff] %v6686_v63  ;;  %9197 = vst [vmem:[#allocation44_spill] sm:$0xff] %v6688_v6  ;;  %v801_v63 = vadd.f32 %v6483_v23, %v785_v39  ;;  %v841_v6 = vadd.f32 %v6380_v7, %v825_v44  ;;  %v980_v7 = vmul.f32 %v979_v0, %v6236_v40 }
 0x824   : > { %v817_v31 = vadd.f32 %v6499_v37, %v801_v63  ;;  %v857_v59 = vadd.f32 %v6398_v18, %v841_v6  ;;  %v880_v37 = vmul.f32 %v879_v33, %v6202_v58  ;;  %v989_v18 = vrot.slane %v987_v42, 2 }
 0x825   : > { %v6694_v12 = vpop.permute.xlu0 %1518  ;;  %v6696_v3 = vpop.permute.xlu1 %1295  ;;  %v889_v63 = vadd.f32 %v6555_v51, %v876_v50  ;;  %v982_v44 = vrot.slane %v980_v7, 2  ;;  %v1230_v7 = vstv %s6724_s5  ;;  %s6833_s5 = sld [smem:[#allocation7 + $0xaf]] }
 0x826   : > { %v833_v10 = vadd.f32 %v6516_v34, %v817_v31  ;;  %v873_v39 = vadd.f32 %v6417_v19, %v857_v59  ;;  %v897_v19 = vadd.f32 %v6434_v24, %v880_v37 }
 0x827   : > { %v905_v59 = vadd.f32 %v6563_v25, %v889_v63 }
 0x828   : > { %v849_v23 = vadd.f32 %v6534_v4, %v833_v10  ;;  %v991_v4 = vadd.f32 %v989_v18, %v873_v39  ;;  %v913_v31 = vadd.f32 %v6452_v13, %v897_v19 }
 0x829   : > { %v6702_v11 = vpop.permute.xlu0 %1566  ;;  %v6704_v45 = vpop.permute.xlu1 %1313  ;;  %v921_v42 = vadd.f32 %v6570_v41, %v905_v59 }
 0x82a   : > { %v865_v34 = vadd.f32 %v6546_v15, %v849_v23  ;;  %v1009_v24 = vadd.f32 %v6532_v48, %v991_v4  ;;  %v929_v10 = vadd.f32 %v6466_v30, %v913_v31  ;;  %v1101_v23 = vstv %s6715_s25  ;;  %s6815_s25 = sld [smem:[#allocation7 + $0xa8]] }
 0x82b   : > { %v1102_v50 = vmul.f32 %v1101_v23, %v6236_v40  ;;  %v1523_v23 = vstv %s6763_s20  ;;  %s5246_s20 = sld [smem:[#allocation7 + $0xa9]] }
 0x82c   : > { %v984_v33 = vadd.f32 %v982_v44, %v865_v34  ;;  %v1027_v51 = vadd.f32 %v6544_v21, %v1009_v24  ;;  %v945_v39 = vadd.f32 %v6481_v2, %v929_v10  ;;  %v937_v21 = vadd.f32 %v6577_v9, %v921_v42 }
 0x82d   : > { %v6717_v5 = vpop.permute.xlu0 %1592  ;;  %v6719_v6 = vpop.permute.xlu1 %1331  ;;  %v1109_v2 = vmul.f32 %v1108_v56, %v6202_v58  ;;  %v1356_v9 = vstv %s6727_s26  ;;  %v1104_v31 = vrot.slane %v1102_v50, 2  ;;  %v1345_v42 = vstv %s6754_s30  ;;  %s6846_s26 = sld [smem:[#allocation7 + $0xb6]] }
 0x82e   : > { %v1000_v13 = vadd.f32 %v6618_v22, %v984_v33  ;;  %v1045_v30 = vadd.f32 %v6553_v49, %v1027_v51  ;;  %v961_v22 = vadd.f32 %v6497_v53, %v945_v39  ;;  %v953_v18 = vadd.f32 %v6591_v26, %v937_v21  ;;  %s5244_s30 = sld [smem:[#allocation7 + $0xa2]] }
 0x82f   : > { %v1111_v63 = vrot.slane %v1109_v2, 2  ;;  %v6779_v33 = vmul.f32 0.0, %v1356_v9  ;;  %v1525_v50 = vmul.f32 0.0, %v1523_v23 }
 0x830   : > { %v1018_v41 = vadd.f32 %v6632_v17, %v1000_v13  ;;  %v1063_v37 = vadd.f32 %v6561_v52, %v1045_v30  ;;  %v977_v49 = vadd.f32 %v6514_v36, %v961_v22  ;;  %v1223_v17 = vstv %s6730_s23  ;;  %s6857_s23 = sld [smem:[#allocation7 + $0xbd]] }
 0x831   : > { %v6732_v0 = vpop.permute.xlu0 %1618  ;;  %v6734_v15 = vpop.permute.xlu1 %1375  ;;  %v969_v52 = vadd.f32 %v6604_v32, %v953_v18  ;;  %v1224_v24 = vmul.f32 %v1223_v17, %v6236_v40  ;;  %v1362_v21 = vrot.slane %v6779_v33, 4  ;;  %v1347_v22 = vmul.f32 0.0, %v1345_v42  ;;  %v9203_v33 = vld [vmem:[#allocation22_spill] sm:$0xff] }
 0x832   : > { %v1036_v34 = vadd.f32 %v6639_v57, %v1018_v41  ;;  %v1081_v4 = vadd.f32 %v6568_v54, %v1063_v37  ;;  %v1231_v57 = vmul.f32 %v1230_v7, %v6202_v58  ;;  %v1113_v59 = vadd.f32 %v1111_v63, %v977_v49  ;;  %v9200_v63 = vld [vmem:[#allocation16_spill] sm:$0xff] }
 0x833   : > { %v1534_v54 = vstv %s6745_s27  ;;  %v1226_v39 = vrot.slane %v1224_v24, 4  ;;  %v1357_v18 = vmul.f32 %v1356_v9, %v6202_v58  ;;  %v9202_v24 = vld [vmem:[#allocation19_spill] sm:$0xff]  ;;  %s6868_s27 = sld [smem:[#allocation7 + $0x9b]] }
 0x834   : > { %v1054_v26 = vadd.f32 %v6643_v16, %v1036_v34  ;;  %v1099_v44 = vadd.f32 %v6575_v28, %v1081_v4  ;;  %v1233_v16 = vrot.slane %v1231_v57, 4  ;;  %v1106_v28 = vadd.f32 %v1104_v31, %v969_v52 }
 0x835   : > { %v6747_v48 = vpop.permute.xlu0 %1644  ;;  %v6749_v25 = vpop.permute.xlu1 %1401  ;;  %v6795_v41 = vmul.f32 0.0, %v1534_v54 }
 0x836   : > { %v1072_v36 = vadd.f32 %v6647_v46, %v1054_v26  ;;  %v1131_v46 = vadd.f32 %v6589_v61, %v1113_v59  ;;  %v1235_v56 = vadd.f32 %v1233_v16, %v1099_v44  ;;  %v1122_v13 = vadd.f32 %v6655_v55, %v1106_v28  ;;  %v9205_v28 = vld [vmem:[#allocation17_spill] sm:$0xff] }
 0x837   : > { %v1351_v26 = vrot.slane %v1347_v22, 4 }
 0x838   : > { %v1090_v51 = vadd.f32 %v6651_v38, %v1072_v36  ;;  %v1149_v30 = vadd.f32 %v6602_v47, %v1131_v46  ;;  %v1253_v38 = vadd.f32 %v6645_v43, %v1235_v56  ;;  %v1140_v61 = vadd.f32 %v6659_v8, %v1122_v13 }
 0x839   : > { %v6768_v19 = vpop.permute.xlu0 %1670  ;;  %v6770_v53 = vpop.permute.xlu1 %1427  ;;  %v1346_v8 = vmul.f32 %v1345_v42, %v6236_v40  ;;  %v1535_v36 = vmul.f32 %v1534_v54, %v6202_v58  ;;  %v1524_v46 = vmul.f32 %v1523_v23, %v6236_v40  ;;  %v1764_v13 = vstv %s6799_s17  ;;  %v9206_v58 = vld [vmem:[#allocation18_spill] sm:$0xff]  ;;  %s5248_s17 = sld [smem:[#allocation7 + $0xb0]] }
 0x83a   : > { %v1228_v55 = vadd.f32 %v1226_v39, %v1090_v51  ;;  %v1167_v47 = vadd.f32 %v6616_v20, %v1149_v30  ;;  %v1271_v49 = vadd.f32 %v6649_v29, %v1253_v38  ;;  %v1158_v17 = vadd.f32 %v6663_v62, %v1140_v61  ;;  %v9207_v39 = vld [vmem:[#allocation24_spill] sm:$0xff] }
 0x83b   : > { %v1748_v20 = vstv %s6786_s18  ;;  %v1350_v42 = vrot.slane %v1346_v8, 4  ;;  %v1540_v38 = vrot.slane %v6795_v41, 6  ;;  %v1529_v61 = vrot.slane %v1525_v50, 6  ;;  %s5227_s18 = sld [smem:[#allocation7 + $0x69]] }
 0x83c   : > { %v1244_v4 = vadd.f32 %v6679_v60, %v1228_v55  ;;  %v1185_v52 = vadd.f32 %v6630_v27, %v1167_v47  ;;  %v1289_v9 = vadd.f32 %v6653_v35, %v1271_v49  ;;  %v1176_v29 = vadd.f32 %v6667_v1, %v1158_v17  ;;  %v9204_v35 = vld [vmem:[#allocation44_spill] sm:$0xff] }
 0x83d   : > { %v6782_v10 = vpop.permute.xlu0 %1696  ;;  %v6784_v32 = vpop.permute.xlu1 %1453  ;;  %v1361_v27 = vrot.slane %v1357_v18, 4  ;;  %v9208_v55 = vld [vmem:[#allocation20_spill] sm:$0xff]  ;;  %v1528_v49 = vrot.slane %v1524_v46, 6  ;;  %v1780_v17 = vstv %s6815_s25  ;;  %s5229_s25 = sld [smem:[#allocation7 + $0x70]] }
 0x83e   : > { %v1262_v62 = vadd.f32 %v6683_v14, %v1244_v4  ;;  %v1203_v44 = vadd.f32 %v9200_v63, %v1185_v52  ;;  %v1307_v59 = vadd.f32 %v9202_v24, %v1289_v9  ;;  %v1194_v16 = vadd.f32 %v9203_v33, %v1176_v29  ;;  %v9209_v4 = vld [vmem:[#allocation21_spill] sm:$0xff]  ;;  %v9212_v33 = vld [vmem:[#allocation42_spill] sm:$0xff] }
 0x83f   : > { %v1363_v40 = vsel %vm688_vm11, %v1361_v27, %v1362_v21  ;;  %v1530_v9 = vsel %vm684_vm9, %v1528_v49, %v1529_v61 }
 0x840   : > { %v1280_v51 = vadd.f32 %v9204_v35, %v1262_v62  ;;  %v1221_v14 = vadd.f32 %v9205_v28, %v1203_v44  ;;  %v1325_v54 = vadd.f32 %v9206_v58, %v1307_v59  ;;  %v1212_v30 = vadd.f32 %v9207_v39, %v1194_v16  ;;  %v9211_v44 = vld [vmem:[#allocation41_spill] sm:$0xff] }
 0x841   : > { %v1722_v2 = vpop.permute.xlu0 %1721  ;;  %v6797_v7 = vpop.permute.xlu1 %1479  ;;  %v1796_v62 = vstv %s6833_s5  ;;  %s5250_s5 = sld [smem:[#allocation7 + $0xb7]]  ;;  %v1740_v49 = vstv %s5227_s18 }
 0x842   : > { %v1724_v37 = vsel %vm612_vm0, 0.0, %v1722_v2  ;;  %v1298_v22 = vadd.f32 %v6696_v3, %v1280_v51  ;;  %v1539_v2 = vrot.slane %v1535_v36, 6  ;;  %v1365_v18 = vadd.f32 %v1363_v40, %v1221_v14  ;;  %s5235_s18 = sld [smem:[#allocation7 + $0x85]] }
 0x843   : > { %v1725_v34 = vsel %vm9198_vm8, %v1724_v37, 0.0  ;;  %v1343_v37 = vadd.f32 %v9208_v55, %v1325_v54  ;;  %v1812_v51 = vstv %s6846_s26  ;;  %s5231_s26 = sld [smem:[#allocation7 + $0x77]]  ;;  %vm9241_vm8 = vmmov %vm9237_vm7 }
 0x844   : > { %v1727_v43 = vrot.slane %v1725_v34, 5  ;;  %v1316_v23 = vadd.f32 %v6704_v45, %v1298_v22  ;;  %v1352_v34 = vsel %vm688_vm11, %v1350_v42, %v1351_v26  ;;  %v1391_v21 = vadd.f32 %v9209_v4, %v1365_v18  ;;  %v9210_v26 = vld [vmem:[#allocation23_spill] sm:$0xff] }
 0x845   : > { %v6812_v57 = vpop.permute.xlu1 %1505  ;;  %v1354_v50 = vadd.f32 %v1352_v34, %v1212_v30  ;;  %v1541_v45 = vsel %vm684_vm9, %v1539_v2, %v1540_v38  ;;  %v1852_v22 = vstv %s6868_s27  ;;  %v1884_v34 = vstv %s5246_s20  ;;  %s5256_s27 = sld [smem:[#allocation7 + $0x9c]] }
 0x846   : > { %v1729_v60 = vsel %vm9199_vm10, 0.0, %v1727_v43  ;;  %v1334_v41 = vadd.f32 %v6719_v6, %v1316_v23  ;;  %v1543_v43 = vadd.f32 %v1541_v45, %v1343_v37  ;;  %v1868_v37 = vstv %s5244_s30  ;;  %s5233_s30 = sld [smem:[#allocation7 + $0x7e]]  ;;  %vm9243_vm10 = vmmov %vm9201_vm12 }
 0x847   : > { %v6824_v31 = vsel %vm9201_vm12, %v1729_v60, 0.0  ;;  %v1378_v52 = vadd.f32 %v6734_v15, %v1354_v50  ;;  %v1900_v4 = vstv %s5248_s17  ;;  %s5258_s20 = sld [smem:[#allocation7 + $0xa3]]  ;;  %vm9245_vm12 = vmmov %vm9243_vm10 }
 0x848   : > { %v1749_v1 = vmul.f32 %v1748_v20, %v6824_v31  ;;  %v1765_v47 = vmul.f32 %v1764_v13, %v6824_v31  ;;  %v1781_v8 = vmul.f32 %v1780_v17, %v6824_v31  ;;  %v1417_v20 = vadd.f32 %v9210_v26, %v1391_v21  ;;  %s5260_s17 = sld [smem:[#allocation7 + $0xaa]] }
 0x849   : > { %v1554_v56 = vpop.permute.xlu1 %1553  ;;  %v1569_v6 = vadd.f32 %v6702_v11, %v1543_v43  ;;  %v1404_v60 = vadd.f32 %v6749_v25, %v1378_v52  ;;  %v1532_v63 = vadd.f32 %v1530_v9, %v1334_v41  ;;  %v1797_v59 = vmul.f32 %v1796_v62, %v6824_v31 }
 0x84a   : > { %1751 = vrot.lane.b32.xlu0 %v1749_v1, %s5695_s11  ;;  %v1443_v15 = vadd.f32 %v9211_v44, %v1417_v20  ;;  %v1813_v46 = vmul.f32 %v1812_v51, %v6824_v31  ;;  %v1828_v13 = vstv %s6857_s23  ;;  %v1869_v18 = vmul.f32 %v1868_v37, %v6824_v31  ;;  %s5252_s23 = sld [smem:[#allocation7 + $0xbe]] }
 0x84b   : > { %v1595_v27 = vadd.f32 %v6717_v5, %v1569_v6  ;;  %v1430_v36 = vadd.f32 %v6770_v53, %v1404_v60  ;;  %v1556_v24 = vadd.f32 %v1554_v56, %v1532_v63  ;;  %v9213_v5 = vld [vmem:[#allocation43_spill] sm:$0xff]  ;;  %v1885_v41 = vmul.f32 %v1884_v34, %v6824_v31 }
 0x84c   : > { %v1469_v16 = vadd.f32 %v9212_v33, %v1443_v15  ;;  %v1756_v21 = vstv %s5229_s25  ;;  %v1901_v45 = vmul.f32 %v1900_v4, %v6824_v31  ;;  %v1916_v52 = vstv %s5250_s5  ;;  %s5237_s25 = sld [smem:[#allocation7 + $0x8c]] }
 0x84d   : > { %v1580_v3 = vpop.permute.xlu1 %1579  ;;  %v1621_v11 = vadd.f32 %v6732_v0, %v1595_v27  ;;  %v1456_v25 = vadd.f32 %v6784_v32, %v1430_v36  ;;  %v1917_v26 = vmul.f32 %v1916_v52, %v6824_v31  ;;  %v1963_v62 = vstv %s5256_s27  ;;  %s5262_s5 = sld [smem:[#allocation7 + $0xb1]] }
 0x84e   : > { %1767 = vrot.lane.b32.xlu0 %v1765_v47, %s9124_s28  ;;  %v1582_v1 = vadd.f32 %v1580_v3, %v1556_v24  ;;  %v1495_v28 = vadd.f32 %v9213_v5, %v1469_v16  ;;  %v1964_v63 = vmul.f32 %v1963_v62, %v6824_v31  ;;  %v1804_v44 = vstv %s5235_s18  ;;  %s5243_s27 = sld [smem:[#allocation7 + $0x71]] }
 0x84f   : > { %v1647_v53 = vadd.f32 %v6747_v48, %v1621_v11  ;;  %v1482_v14 = vadd.f32 %v6797_v7, %v1456_v25  ;;  %v1829_v7 = vmul.f32 %v1828_v13, %v6824_v31  ;;  %v1981_v15 = vstv %s5258_s20  ;;  %s5245_s20 = sld [smem:[#allocation7 + $0x78]] }
 0x850   : > { %v1521_v0 = vadd.f32 %v6694_v12, %v1495_v28  ;;  %v1932_v9 = vstv %s5252_s23  ;;  %v1966_v27 = vrot.slane %v1964_v63, 2  ;;  %v1982_v24 = vmul.f32 %v1981_v15, %v6824_v31  ;;  %s5264_s23 = sld [smem:[#allocation7 + $0xb8]] }
 0x851   : > { %v1606_v29 = vpop.permute.xlu1 %1605  ;;  %v1673_v32 = vadd.f32 %v6768_v19, %v1647_v53  ;;  %v1508_v58 = vadd.f32 %v6812_v57, %v1482_v14  ;;  %v1853_v57 = vmul.f32 %v1852_v22, %v6824_v31  ;;  %v1933_v6 = vmul.f32 %v1932_v9, %v6824_v31  ;;  %s5270_s18 = sld [smem:[#allocation7 + $0x9d]] }
 0x852   : > { %1783 = vrot.lane.b32.xlu0 %v1781_v8, %s5697_s6  ;;  %v1608_v42 = vadd.f32 %v1606_v29, %v1582_v1  ;;  %v1705_v2 = vrot.slane %v1521_v0, 1  ;;  %v1772_v8 = vstv %s5231_s26  ;;  %v1788_v29 = vstv %s5233_s30  ;;  %s5241_s26 = sld [smem:[#allocation7 + $0x6a]] }
 0x853   : > { %v1699_v48 = vadd.f32 %v6782_v10, %v1673_v32  ;;  %v1701_v38 = vrot.slane %v1508_v58, 1  ;;  %v1999_v33 = vstv %s5260_s17  ;;  %v1984_v16 = vrot.slane %v1982_v24, 2  ;;  %s5266_s30 = sld [smem:[#allocation7 + $0xbf]] }
 0x854   : > { %v2000_v51 = vmul.f32 %v1999_v33, %v6824_v31  ;;  %v2017_v25 = vstv %s5262_s5  ;;  %v1860_v53 = vstv %s5243_s27  ;;  %s5247_s17 = sld [smem:[#allocation7 + $0x7f]] }
 0x855   : > { %v1632_v35 = vpop.permute.xlu1 %1631  ;;  %v1707_v12 = vadd.f32 %v1705_v2, %v1699_v48  ;;  %v2018_v28 = vmul.f32 %v2017_v25, %v6824_v31  ;;  %v1876_v13 = vstv %s5245_s20  ;;  %s5249_s5 = sld [smem:[#allocation7 + $0x86]] }
 0x856   : > { %1799 = vrot.lane.b32.xlu0 %v1797_v59, %s9126_s10  ;;  %v1634_v54 = vadd.f32 %v1632_v35, %v1608_v42  ;;  %v1820_v59 = vstv %s5237_s25  ;;  %v2002_v1 = vrot.slane %v2000_v51, 2  ;;  %v2035_v14 = vstv %s5264_s23  ;;  %s5272_s25 = sld [smem:[#allocation7 + $0xa4]] }
 0x857   : > { %v2020_v42 = vrot.slane %v2018_v28, 2  ;;  %s5251_s23 = sld [smem:[#allocation7 + $0x8d]] }
 0x858   : > { %v1844_v11 = vstv %s5241_s26  ;;  %s6931_s26 = sld [smem:[#allocation7 + $0xab]] }
 0x859   : > { %v1658_v56 = vpop.permute.xlu1 %1657  ;;  %v2053_v0 = vstv %s5266_s30  ;;  %s5255_s27 = sld [smem:[#allocation7 + $0x6b]] }
 0x85a   : > { %1815 = vrot.lane.b32.xlu0 %v1813_v46, %s9122_s8  ;;  %v1660_v39 = vadd.f32 %v1658_v56, %v1634_v54  ;;  %v2036_v56 = vmul.f32 %v2035_v14, %v6824_v31  ;;  %v2054_v54 = vmul.f32 %v2053_v0, %v6824_v31  ;;  %v1892_v48 = vstv %s5247_s17  ;;  %s5276_s30 = sld [smem:[#allocation7 + $0xb2]] }
 0x85b   : > { %v1908_v2 = vstv %s5249_s5  ;;  %s5257_s20 = sld [smem:[#allocation7 + $0x72]] }
 0x85c   : > { %v2038_v32 = vrot.slane %v2036_v56, 2  ;;  %s5259_s17 = sld [smem:[#allocation7 + $0x79]] }
 0x85d   : > { %v1684_v30 = vpop.permute.xlu1 %1683  ;;  %s5261_s5 = sld [smem:[#allocation7 + $0x80]] }
 0x85e   : > { %v1686_v61 = vadd.f32 %v1684_v30, %v1660_v39  ;;  %1831 = vrot.lane.b32.xlu0 %v1829_v7, %s9120_s22  ;;  %v2085_v39 = vstv %s5270_s18  ;;  %v2056_v7 = vrot.slane %v2054_v54, 2  ;;  %s5278_s18 = sld [smem:[#allocation7 + $0xb9]] }
 0x85f   : > { %v2086_v22 = vmul.f32 %v2085_v39, %v6824_v31  ;;  %v1954_v37 = vstv %s5255_s27  ;;  %s5286_s27 = sld [smem:[#allocation7 + $0xa5]] }
 0x860   : > { %v1703_v19 = vadd.f32 %v1701_v38, %v1686_v61  ;;  %v2103_v38 = vstv %s5272_s25  ;;  %s5280_s25 = sld [smem:[#allocation7 + $0xc0]]  ;;  %v2139_v34 = vstv %s5276_s30 }
 0x861   : > { %v1711_v55 = vpop.permute.xlu1 %1710  ;;  %v2088_v61 = vrot.slane %v2086_v22, 2  ;;  %s5265_s30 = sld [smem:[#allocation7 + $0x8e]] }
 0x862   : > { %v6887_v10 = vadd.f32 %v1707_v12, %v1703_v19  ;;  %v1713_v40 = vsel %vm612_vm0, 0.0, %v1711_v55  ;;  %1855 = vrot.lane.b32.xlu0 %v1853_v57, %s5695_s11  ;;  %v2104_v19 = vmul.f32 %v2103_v38, %v6824_v31  ;;  %v1924_v57 = vstv %s5251_s23  ;;  %s5263_s23 = sld [smem:[#allocation7 + $0x87]] }
 0x863   : > { %v1714_v23 = vsel %vm9215_vm13, %v1713_v40, 0.0  ;;  %v2121_v55 = vstv %s6931_s26  ;;  %s5284_s26 = sld [smem:[#allocation7 + $0x9e]]  ;;  %v2008_v9 = vstv %s5261_s5 }
 0x864   : > { %9214 = vst [vmem:[#allocation16_spill] sm:$0xff] %v6887_v10  ;;  %v1716_v47 = vrot.slane %v1714_v23, 5  ;;  %v2106_v40 = vrot.slane %v2104_v19, 2  ;;  %s5292_s5 = sld [smem:[#allocation7 + $0xba]] }
 0x866   : > { %v1718_v3 = vsel %vm9216_vm14, 0.0, %v1716_v47  ;;  %1871 = vrot.lane.b32.xlu0 %v1869_v18, %s9124_s28  ;;  %v2122_v47 = vmul.f32 %v2121_v55, %v6824_v31  ;;  %vm9268_vm14 = vmmov %vm9215_vm13 }
 0x867   : > { %v6896_v17 = vsel %vm9217_vm15, %v1718_v3, 0.0  ;;  %v2044_v33 = vstv %s5265_s30  ;;  %s5298_s30 = sld [smem:[#allocation7 + $0x9f]]  ;;  %vm9269_vm15 = vmmov %vm9215_vm13 }
 0x868   : > { %v1741_v50 = vmul.f32 %v1740_v49, %v6896_v17  ;;  %v1757_v43 = vmul.f32 %v1756_v21, %v6896_v17  ;;  %v1773_v20 = vmul.f32 %v1772_v8, %v6896_v17  ;;  %v1789_v60 = vmul.f32 %v1788_v29, %v6896_v17 }
 0x869   : > { %v1805_v36 = vmul.f32 %v1804_v44, %v6896_v17  ;;  %v1821_v35 = vmul.f32 %v1820_v59, %v6896_v17  ;;  %v1845_v5 = vmul.f32 %v1844_v11, %v6896_v17  ;;  %v1861_v46 = vmul.f32 %v1860_v53, %v6896_v17 }
 0x86a   : > { %1887 = vrot.lane.b32.xlu0 %v1885_v41, %s5697_s6  ;;  %1743 = vrot.lane.b32.xlu1 %v1741_v50, %s5695_s11  ;;  %v1877_v58 = vmul.f32 %v1876_v13, %v6896_v17  ;;  %v1893_v30 = vmul.f32 %v1892_v48, %v6896_v17  ;;  %v1909_v12 = vmul.f32 %v1908_v2, %v6896_v17  ;;  %v1972_v49 = vstv %s5257_s20  ;;  %s5288_s20 = sld [smem:[#allocation7 + $0xac]] }
 0x86b   : > { %v1925_v23 = vmul.f32 %v1924_v57, %v6896_v17  ;;  %v1955_v18 = vmul.f32 %v1954_v37, %v6896_v17  ;;  %v2124_v3 = vrot.slane %v2122_v47, 2  ;;  %v2140_v50 = vmul.f32 %v2139_v34, %v6824_v31 }
 0x86c   : > { %v1973_v4 = vmul.f32 %v1972_v49, %v6896_v17  ;;  %v2157_v21 = vstv %s5278_s18  ;;  %v2207_v63 = vstv %s5284_s26  ;;  %v2026_v44 = vstv %s5263_s23  ;;  %s5269_s18 = sld [smem:[#allocation7 + $0x6c]] }
 0x86d   : > { %v1957_v41 = vrot.slane %v1955_v18, 2  ;;  %v2158_v8 = vmul.f32 %v2157_v21, %v6824_v31  ;;  %v2027_v24 = vmul.f32 %v2026_v44, %v6896_v17  ;;  %v2225_v59 = vstv %s5286_s27  ;;  %s5273_s26 = sld [smem:[#allocation7 + $0x7a]] }
 0x86e   : > { %1903 = vrot.lane.b32.xlu0 %v1901_v45, %s9126_s10  ;;  %1759 = vrot.lane.b32.xlu1 %v1757_v43, %s9124_s28  ;;  %v1990_v45 = vstv %s5259_s17  ;;  %v2142_v43 = vrot.slane %v2140_v50, 2  ;;  %v1975_v52 = vrot.slane %v1973_v4, 2  ;;  %s5290_s17 = sld [smem:[#allocation7 + $0xb3]]  ;;  %v2226_v51 = vmul.f32 %v2225_v59, %v6824_v31 }
 0x86f   : > { %v2160_v29 = vrot.slane %v2158_v8, 2  ;;  %v2045_v11 = vmul.f32 %v2044_v33, %v6896_v17  ;;  %s6973_s23 = sld [smem:[#allocation7 + $0xc1]]  ;;  %v2341_v38 = vstv %s5298_s30 }
 0x870   : > { %v2243_v25 = vstv %s5288_s20  ;;  %s5275_s27 = sld [smem:[#allocation7 + $0x81]]  ;;  %v2342_v37 = vmul.f32 %v2341_v38, %v6824_v31 }
 0x871   : > { %v2047_v28 = vrot.slane %v2045_v11, 2  ;;  %v2244_v53 = vmul.f32 %v2243_v25, %v6824_v31  ;;  %s6977_s20 = sld [smem:[#allocation7 + $0xa6]] }
 0x872   : > { %1919 = vrot.lane.b32.xlu0 %v1917_v26, %s9122_s8  ;;  %1775 = vrot.lane.b32.xlu1 %v1773_v20, %s5697_s6  ;;  %v1991_v26 = vmul.f32 %v1990_v45, %v6896_v17  ;;  %v2175_v20 = vstv %s5280_s25  ;;  %s5271_s25 = sld [smem:[#allocation7 + $0x73]]  ;;  %v2346_v50 = vrot.slane %v2342_v37, 4 }
 0x873   : > { %v2246_v56 = vrot.slane %v2244_v53, 4  ;;  %v2112_v54 = vstv %s5273_s26  ;;  %s6998_s26 = sld [smem:[#allocation7 + $0xb4]] }
 0x874   : > { %v1993_v62 = vrot.slane %v1991_v26, 2  ;;  %s7018_s30 = sld [smem:[#allocation7 + $0x7b]] }
 0x875   : > { %v2297_v22 = vstv %s6973_s23  ;;  %s7006_s23 = sld [smem:[#allocation7 + $0xbb]] }
 0x876   : > { %1935 = vrot.lane.b32.xlu0 %v1933_v6, %s9120_s22  ;;  %1791 = vrot.lane.b32.xlu1 %v1789_v60, %s9126_s10  ;;  %v2176_v6 = vmul.f32 %v2175_v20, %v6824_v31  ;;  %v2009_v60 = vmul.f32 %v2008_v9, %v6896_v17  ;;  %v2130_v2 = vstv %s5275_s27  ;;  %v2298_v57 = vmul.f32 %v2297_v22, %v6824_v31  ;;  %s7010_s27 = sld [smem:[#allocation7 + $0x74]] }
 0x877   : > { %v2131_v55 = vmul.f32 %v2130_v2, %v6896_v17 }
 0x878   : > { %v2178_v15 = vrot.slane %v2176_v6, 2  ;;  %v2300_v34 = vrot.slane %v2298_v57, 4 }
 0x879   : > { %v2133_v49 = vrot.slane %v2131_v55, 2 }
 0x87a   : > { %1967 = vrot.lane.b32.xlu0 %v1966_v27, %s5695_s11  ;;  %1807 = vrot.lane.b32.xlu1 %v1805_v36, %s9122_s8  ;;  %v2011_v27 = vrot.slane %v2009_v60, 2  ;;  %v2208_v36 = vmul.f32 %v2207_v63, %v6824_v31  ;;  %v2419_v60 = vstv %s6998_s26  ;;  %s7053_s26 = sld [smem:[#allocation7 + $0xae]] }
 0x87e   : > { %1985 = vrot.lane.b32.xlu0 %v1984_v16, %s9124_s28  ;;  %1823 = vrot.lane.b32.xlu1 %v1821_v35, %s9120_s22  ;;  %v2210_v16 = vrot.slane %v2208_v36, 4  ;;  %v2029_v35 = vrot.slane %v2027_v24, 2  ;;  %v2421_v36 = vmul.f32 0.0, %v2419_v60  ;;  %v2445_v24 = vstv %s7006_s23  ;;  %s7059_s23 = sld [smem:[#allocation7 + $0x6e]] }
 0x882   : > { %2003 = vrot.lane.b32.xlu0 %v2002_v1, %s5697_s6  ;;  %1847 = vrot.lane.b32.xlu1 %v1845_v5, %s5695_s11  ;;  %v2076_v1 = vstv %s5269_s18  ;;  %v2228_v5 = vrot.slane %v2226_v51, 4  ;;  %s5277_s18 = sld [smem:[#allocation7 + $0x88]]  ;;  %v2447_v51 = vmul.f32 0.0, %v2445_v24 }
 0x883   : > { %v2077_v14 = vmul.f32 %v2076_v1, %v6896_v17  ;;  %v2425_v1 = vrot.slane %v2421_v36, 4 }
 0x885   : > { %v2079_v13 = vrot.slane %v2077_v14, 2 }
 0x886   : > { %2021 = vrot.lane.b32.xlu0 %v2020_v42, %s9126_s10  ;;  %1863 = vrot.lane.b32.xlu1 %v1861_v46, %s9124_s28  ;;  %v2261_v42 = vstv %s5290_s17  ;;  %v2094_v46 = vstv %s5271_s25  ;;  %s6985_s17 = sld [smem:[#allocation7 + $0xad]] }
 0x887   : > { %v2262_v0 = vmul.f32 %v2261_v42, %v6824_v31  ;;  %s6988_s25 = sld [smem:[#allocation7 + $0x8f]]  ;;  %v2446_v42 = vmul.f32 %v2445_v24, %v6824_v31 }
 0x889   : > { %v2264_v48 = vrot.slane %v2262_v0, 4 }
 0x88a   : > { %2039 = vrot.lane.b32.xlu0 %v2038_v32, %s9122_s8  ;;  %1879 = vrot.lane.b32.xlu1 %v1877_v58, %s5697_s6  ;;  %v2095_v32 = vmul.f32 %v2094_v46, %v6896_v17  ;;  %v2279_v58 = vstv %s5292_s5  ;;  %s6995_s5 = sld [smem:[#allocation7 + $0x6d]] }
 0x88c   : > { %v2097_v39 = vrot.slane %v2095_v32, 2 }
 0x88d   : > { %v2166_v45 = vstv %s6988_s25  ;;  %s7044_s25 = sld [smem:[#allocation7 + $0xa7]] }
 0x88e   : > { %2057 = vrot.lane.b32.xlu0 %v2056_v7, %s9120_s22  ;;  %1895 = vrot.lane.b32.xlu1 %v1893_v30, %s9126_s10  ;;  %v2280_v7 = vmul.f32 %v2279_v58, %v6824_v31  ;;  %v2113_v30 = vmul.f32 %v2112_v54, %v6896_v17  ;;  %v2167_v20 = vmul.f32 %v2166_v45, %v6896_v17 }
 0x890   : > { %v2115_v19 = vrot.slane %v2113_v30, 2  ;;  %v2198_v9 = vstv %s6995_s5  ;;  %s7049_s5 = sld [smem:[#allocation7 + $0x89]] }
 0x892   : > { %2089 = vrot.lane.b32.xlu0 %v2088_v61, %s5695_s11  ;;  %1911 = vrot.lane.b32.xlu1 %v1909_v12, %s9122_s8  ;;  %v2367_v61 = vstv %s6977_s20  ;;  %v2282_v12 = vrot.slane %v2280_v7, 4  ;;  %s7023_s20 = sld [smem:[#allocation7 + $0xc2]] }
 0x893   : > { %v2369_v47 = vmul.f32 0.0, %v2367_v61  ;;  %v2368_v21 = vmul.f32 %v2367_v61, %v6824_v31 }
 0x895   : > { %v2373_v26 = vrot.slane %v2369_v47, 4 }
 0x896   : > { %2107 = vrot.lane.b32.xlu0 %v2106_v40, %s9124_s28  ;;  %1927 = vrot.lane.b32.xlu1 %v1925_v23, %s9120_s22  ;;  %v2343_v40 = vmul.f32 0.0, %v2341_v38  ;;  %v2148_v23 = vstv %s5277_s18  ;;  %s7031_s18 = sld [smem:[#allocation7 + $0xa0]] }
 0x898   : > { %v2347_v4 = vrot.slane %v2343_v40, 4  ;;  %v2471_v46 = vstv %s7023_s20  ;;  %s7074_s20 = sld [smem:[#allocation7 + $0x75]]  ;;  %v2270_v40 = vstv %s7049_s5 }
 0x899   : > { %v2473_v58 = vmul.f32 0.0, %v2471_v46  ;;  %v2472_v7 = vmul.f32 %v2471_v46, %v6824_v31  ;;  %s7102_s5 = sld [smem:[#allocation7 + $0x83]] }
 0x89a   : > { %2125 = vrot.lane.b32.xlu0 %v2124_v3, %s5697_s6  ;;  %1958 = vrot.lane.b32.xlu1 %v1957_v41, %s5695_s11  ;;  %v2149_v3 = vmul.f32 %v2148_v23, %v6896_v17  ;;  %v2393_v41 = vstv %s6985_s17  ;;  %s7036_s17 = sld [smem:[#allocation7 + $0x82]] }
 0x89b   : > { %v2394_v6 = vmul.f32 %v2393_v41, %v6824_v31  ;;  %v2477_v61 = vrot.slane %v2473_v58, 4  ;;  %v2476_v55 = vrot.slane %v2472_v7, 4 }
 0x89c   : > { %v2151_v8 = vrot.slane %v2149_v3, 2  ;;  %v2519_v54 = vstv %s7031_s18  ;;  %s7081_s18 = sld [smem:[#allocation7 + $0xbc]]  ;;  %v2271_v3 = vmul.f32 %v2270_v40, %v6896_v17 }
 0x89d   : > { %v2398_v33 = vrot.slane %v2394_v6, 4  ;;  %v2521_v22 = vmul.f32 0.0, %v2519_v54  ;;  %v2520_v37 = vmul.f32 %v2519_v54, %v6824_v31 }
 0x89e   : > { %2143 = vrot.lane.b32.xlu0 %v2142_v43, %s9126_s10  ;;  %1976 = vrot.lane.b32.xlu1 %v1975_v52, %s9124_s28  ;;  %v2395_v43 = vmul.f32 0.0, %v2393_v41  ;;  %v2571_v41 = vstv %s7053_s26  ;;  %s7116_s26 = sld [smem:[#allocation7 + $0x8a]] }
 0x89f   : > { %v2525_v23 = vrot.slane %v2521_v22, 6  ;;  %v2406_v22 = vstv %s7102_s5  ;;  %s5225_s5 = sld [smem:[#allocation7 + $0x62]] }
 0x8a0   : > { %v2399_v63 = vrot.slane %v2395_v43, 4  ;;  %v2252_v30 = vstv %s7036_s17  ;;  %s7088_s17 = sld [smem:[#allocation7 + $0x7c]] }
 0x8a2   : > { %2161 = vrot.lane.b32.xlu0 %v2160_v29, %s9122_s8  ;;  %1994 = vrot.lane.b32.xlu1 %v1993_v62, %s5697_s6  ;;  %v2348_v29 = vsel %vm688_vm11, %v2346_v50, %v2347_v4  ;;  %v2372_v62 = vrot.slane %v2368_v21, 4  ;;  %v2400_v53 = vsel %vm688_vm11, %v2398_v33, %v2399_v63  ;;  %v2328_v50 = vstv %s7059_s23  ;;  %s7129_s23 = sld [smem:[#allocation7 + $0x91]] }
 0x8a3   : > { %v2478_v4 = vsel %vm688_vm11, %v2476_v55, %v2477_v61  ;;  %v2524_v21 = vrot.slane %v2520_v37, 6  ;;  %v2329_v36 = vmul.f32 %v2328_v50, %v6896_v17 }
 0x8a4   : > { %v2374_v59 = vsel %vm688_vm11, %v2372_v62, %v2373_v26  ;;  %v2573_v26 = vmul.f32 0.0, %v2571_v41 }
 0x8a5   : > { %v2526_v63 = vsel %vm684_vm9, %v2524_v21, %v2525_v23 }
 0x8a6   : > { %2179 = vrot.lane.b32.xlu0 %v2178_v15, %s9120_s22  ;;  %2012 = vrot.lane.b32.xlu1 %v2011_v27, %s9126_s10  ;;  %v2169_v15 = vrot.slane %v2167_v20, 2  ;;  %v2199_v27 = vmul.f32 %v2198_v9, %v6896_v17  ;;  %v2330_v20 = vmul.f32 0.0, %v2328_v50  ;;  %v2577_v24 = vrot.slane %v2573_v26, 6 }
 0x8a8   : > { %v2201_v25 = vrot.slane %v2199_v27, 4  ;;  %v2572_v27 = vmul.f32 %v2571_v41, %v6824_v31  ;;  %v2432_v41 = vstv %s7116_s26  ;;  %s5254_s26 = sld [smem:[#allocation7 + $0x95]] }
 0x8aa   : > { %2211 = vrot.lane.b32.xlu0 %v2210_v16, %s5695_s11  ;;  %2030 = vrot.lane.b32.xlu1 %v2029_v35, %s9122_s8  ;;  %v2420_v16 = vmul.f32 %v2419_v60, %v6824_v31  ;;  %v2216_v35 = vstv %s7010_s27  ;;  %s7064_s27 = sld [smem:[#allocation7 + $0x90]]  ;;  %v2354_v60 = vstv %s7074_s20 }
 0x8ab   : > { %v2355_v46 = vmul.f32 %v2354_v60, %v6896_v17  ;;  %s7166_s20 = sld [smem:[#allocation7 + $0x7d]] }
 0x8ac   : > { %v2424_v14 = vrot.slane %v2420_v16, 4  ;;  %v2623_v16 = vstv %s7081_s18  ;;  %s7179_s18 = sld [smem:[#allocation7 + $0x84]] }
 0x8ae   : > { %2229 = vrot.lane.b32.xlu0 %v2228_v5, %s9124_s28  ;;  %2048 = vrot.lane.b32.xlu1 %v2047_v28, %s9120_s22  ;;  %v2217_v5 = vmul.f32 %v2216_v35, %v6896_v17  ;;  %v2234_v28 = vstv %s7018_s30  ;;  %s7068_s30 = sld [smem:[#allocation7 + $0xb5]] }
 0x8af   : > { %v2235_v32 = vmul.f32 %v2234_v28, %v6896_v17  ;;  %v2380_v28 = vstv %s7088_s17  ;;  %s7197_s17 = sld [smem:[#allocation7 + $0x8b]] }
 0x8b0   : > { %v2219_v0 = vrot.slane %v2217_v5, 4  ;;  %v2288_v43 = vstv %s7064_s27  ;;  %v2356_v5 = vmul.f32 0.0, %v2354_v60  ;;  %s7142_s27 = sld [smem:[#allocation7 + $0x6f]] }
 0x8b1   : > { %v2237_v38 = vrot.slane %v2235_v32, 4  ;;  %v2289_v62 = vmul.f32 %v2288_v43, %v6896_v17  ;;  %v2382_v32 = vmul.f32 0.0, %v2380_v28 }
 0x8b2   : > { %2247 = vrot.lane.b32.xlu0 %v2246_v56, %s5697_s6  ;;  %2080 = vrot.lane.b32.xlu1 %v2079_v13, %s5695_s11  ;;  %v2451_v56 = vrot.slane %v2447_v51, 4  ;;  %v2360_v7 = vrot.slane %v2356_v5, 4 }
 0x8b3   : > { %v2386_v55 = vrot.slane %v2382_v32, 4 }
 0x8b4   : > { %v2597_v6 = vstv %s7068_s30  ;;  %s7159_s30 = sld [smem:[#allocation7 + $0x76]] }
 0x8b5   : > { %v2599_v33 = vmul.f32 0.0, %v2597_v6 }
 0x8b6   : > { %2265 = vrot.lane.b32.xlu0 %v2264_v48, %s9126_s10  ;;  %2098 = vrot.lane.b32.xlu1 %v2097_v39, %s9124_s28  ;;  %v2426_v48 = vsel %vm688_vm11, %v2424_v14, %v2425_v1  ;;  %v2450_v39 = vrot.slane %v2446_v42, 4  ;;  %v2598_v1 = vmul.f32 %v2597_v6, %v6824_v31  ;;  %v2576_v14 = vrot.slane %v2572_v27, 6 }
 0x8b7   : > { %v2333_v42 = vrot.slane %v2329_v36, 4  ;;  %v2458_v6 = vstv %s7129_s23  ;;  %v2433_v27 = vmul.f32 %v2432_v41, %v6896_v17  ;;  %s5253_s23 = sld [smem:[#allocation7 + $0x64]] }
 0x8b8   : > { %v2452_v57 = vsel %vm688_vm11, %v2450_v39, %v2451_v56  ;;  %v2603_v56 = vrot.slane %v2599_v33, 6  ;;  %v2602_v39 = vrot.slane %v2598_v1, 6  ;;  %v2460_v33 = vmul.f32 0.0, %v2458_v6 }
 0x8b9   : > { %v2437_v5 = vrot.slane %v2433_v27, 4 }
 0x8ba   : > { %2283 = vrot.lane.b32.xlu0 %v2282_v12, %s9122_s8  ;;  %2116 = vrot.lane.b32.xlu1 %v2115_v19, %s5697_s6  ;;  %v2253_v12 = vmul.f32 %v2252_v30, %v6896_v17  ;;  %v2545_v19 = vstv %s7044_s25  ;;  %s7095_s25 = sld [smem:[#allocation7 + $0xc3]]  ;;  %v2624_v30 = vmul.f32 %v2623_v16, %v6824_v31  ;;  %v2604_v50 = vsel %vm684_vm9, %v2602_v39, %v2603_v56 }
 0x8bb   : > { %v2547_v47 = vmul.f32 0.0, %v2545_v19  ;;  %v2546_v45 = vmul.f32 %v2545_v19, %v6824_v31  ;;  %v2381_v19 = vmul.f32 %v2380_v28, %v6896_v17  ;;  %v2459_v28 = vmul.f32 %v2458_v6, %v6896_v17 }
 0x8bc   : > { %v7002_v18 = vpop.permute.xlu0 %1751 }
 0x8bd   : > { %v2385_v21 = vrot.slane %v2381_v19, 4  ;;  %v2463_v39 = vrot.slane %v2459_v28, 4 }
 0x8be   : > { %2301 = vrot.lane.b32.xlu0 %v2300_v34, %s9120_s22  ;;  %2134 = vrot.lane.b32.xlu1 %v2133_v49, %s9126_s10  ;;  %v2255_v49 = vrot.slane %v2253_v12, 4  ;;  %v2359_v12 = vrot.slane %v2355_v46, 4 }
 0x8c0   : > { %v7014_v52 = vpop.permute.xlu0 %1767  ;;  %v2649_v58 = vstv %s7095_s25  ;;  %s7206_s25 = sld [smem:[#allocation7 + $0x92]] }
 0x8c1   : > { %v2651_v37 = vmul.f32 0.0, %v2649_v58 }
 0x8c2   : > { %2349 = vrot.lane.b32.xlu0 %v2348_v29, %s5695_s11  ;;  %2152 = vrot.lane.b32.xlu1 %v2151_v8, %s9122_s8  ;;  %v2551_v8 = vrot.slane %v2547_v47, 6  ;;  %v2273_v29 = vrot.slane %v2271_v3, 4  ;;  %v2628_v47 = vrot.slane %v2624_v30, 6  ;;  %v2408_v3 = vmul.f32 0.0, %v2406_v22 }
 0x8c3   : > { %v2655_v43 = vrot.slane %v2651_v37, 6 }
 0x8c4   : > { %v7027_v44 = vpop.permute.xlu0 %1783 }
 0x8c6   : > { %2375 = vrot.lane.b32.xlu0 %v2374_v59, %s9124_s28  ;;  %2170 = vrot.lane.b32.xlu1 %v2169_v15, %s9120_s22  ;;  %v2550_v15 = vrot.slane %v2546_v45, 6  ;;  %v2334_v59 = vrot.slane %v2330_v20, 4  ;;  %v2407_v45 = vmul.f32 %v2406_v22, %v6896_v17  ;;  %v9220_v22 = vld [vmem:[#allocation25_spill] sm:$0xff] }
 0x8c8   : > { %v7040_v11 = vpop.permute.xlu0 %1799  ;;  %v2335_v61 = vsel %vm688_vm11, %v2333_v42, %v2334_v59  ;;  %v9219_v42 = vld [vmem:[#allocation14_spill] sm:$0xff] }
 0x8c9   : > { %v220_v46 = vrot.slane %v9219_v42, 4 }
 0x8ca   : > { %2401 = vrot.lane.b32.xlu0 %v2400_v53, %s5697_s6  ;;  %2202 = vrot.lane.b32.xlu1 %v2201_v25, %s5695_s11  ;;  %v2291_v25 = vrot.slane %v2289_v62, 4  ;;  %v2552_v53 = vsel %vm684_vm9, %v2550_v15, %v2551_v8  ;;  %v2434_v62 = vmul.f32 0.0, %v2432_v41  ;;  %v2411_v15 = vrot.slane %v2407_v45, 4 }
 0x8cc   : > { %v7055_v13 = vpop.permute.xlu0 %1815  ;;  %v2438_v59 = vrot.slane %v2434_v62, 4  ;;  %v2584_v62 = vstv %s7179_s18  ;;  %s7350_s18 = sld [smem:[#allocation7 + $0x65]] }
 0x8ce   : > { %2427 = vrot.lane.b32.xlu0 %v2426_v48, %s9126_s10  ;;  %2220 = vrot.lane.b32.xlu1 %v2219_v0, %s9124_s28  ;;  %v2625_v0 = vmul.f32 0.0, %v2623_v16  ;;  %v2506_v16 = vstv %s7142_s27  ;;  %s5240_s27 = sld [smem:[#allocation7 + $0x94]] }
 0x8cf   : > { %v2508_v32 = vmul.f32 0.0, %v2506_v16  ;;  %v2507_v30 = vmul.f32 %v2506_v16, %v6896_v17 }
 0x8d0   : > { %v7070_v2 = vpop.permute.xlu0 %1831 }
 0x8d1   : > { %v2511_v41 = vrot.slane %v2507_v30, 6 }
 0x8d2   : > { %2453 = vrot.lane.b32.xlu0 %v2452_v57, %s9122_s8  ;;  %2238 = vrot.lane.b32.xlu1 %v2237_v38, %s5697_s6  ;;  %v2578_v38 = vsel %vm684_vm9, %v2576_v14, %v2577_v24  ;;  %v2629_v57 = vrot.slane %v2625_v0, 6 }
 0x8d4   : > { %v7083_v34 = vpop.permute.xlu0 %1855  ;;  %v2630_v60 = vsel %vm684_vm9, %v2628_v47, %v2629_v57  ;;  %v2512_v47 = vrot.slane %v2508_v32, 6 }
 0x8d6   : > { %2479 = vrot.lane.b32.xlu0 %v2478_v4, %s9120_s22  ;;  %2256 = vrot.lane.b32.xlu1 %v2255_v49, %s9126_s10  ;;  %v2650_v49 = vmul.f32 %v2649_v58, %v6824_v31  ;;  %v2361_v4 = vsel %vm688_vm11, %v2359_v12, %v2360_v7  ;;  %v2439_v58 = vsel %vm688_vm11, %v2437_v5, %v2438_v59  ;;  %v2464_v7 = vrot.slane %v2460_v33, 4 }
 0x8d7   : > { %v221_v12 = vmax.f32 %v9219_v42, %v220_v46  ;;  %v2513_v6 = vsel %vm684_vm9, %v2511_v41, %v2512_v47 }
 0x8d8   : > { %v7097_v9 = vpop.permute.xlu0 %1871  ;;  %v2654_v20 = vrot.slane %v2650_v49, 6  ;;  %v2558_v49 = vstv %s7166_s20  ;;  %s7348_s20 = sld [smem:[#allocation7 + $0x96]] }
 0x8d9   : > { %v222_v45 = vrot.slane %v221_v12, 2 }
 0x8da   : > { %2527 = vrot.lane.b32.xlu0 %v2526_v63, %s5695_s11  ;;  %2274 = vrot.lane.b32.xlu1 %v2273_v29, %s9122_s8  ;;  %v2412_v29 = vrot.slane %v2408_v3, 4  ;;  %v2387_v63 = vsel %vm688_vm11, %v2385_v21, %v2386_v55  ;;  %v9221_v55 = vld [vmem:[#allocation26_spill] sm:$0xff]  ;;  %v2465_v3 = vsel %vm688_vm11, %v2463_v39, %v2464_v7  ;;  %v2636_v7 = vstv %s7206_s25  ;;  %s7366_s25 = sld [smem:[#allocation7 + $0x66]] }
 0x8db   : > { %v746_v37 = vmul.f32 0.25, %v9221_v55  ;;  %v223_v59 = vmax.f32 %v221_v12, %v222_v45 }
 0x8dc   : > { %v7110_v35 = vpop.permute.xlu0 %1887  ;;  %v7112_v51 = vpop.permute.xlu1 %1743  ;;  %v2413_v1 = vsel %vm688_vm11, %v2411_v15, %v2412_v29  ;;  %v2560_v29 = vmul.f32 0.0, %v2558_v49  ;;  %v2559_v15 = vmul.f32 %v2558_v49, %v6896_v17  ;;  %v2638_v49 = vmul.f32 0.0, %v2636_v7 }
 0x8dd   : > { %v224_v46 = vrot.slane %v223_v59, 1 }
 0x8de   : > { %2553 = vrot.lane.b32.xlu0 %v2552_v53, %s9124_s28  ;;  %2292 = vrot.lane.b32.xlu1 %v2291_v25, %s9120_s22  ;;  %v2656_v25 = vsel %vm684_vm9, %v2654_v20, %v2655_v43  ;;  %v9218_v53 = vld [vmem:[#allocation15_spill] sm:$0xff]  ;;  %v2563_v28 = vrot.slane %v2559_v15, 6 }
 0x8df   : > { %v226_v14 = vrot.slane %v9218_v53, 4  ;;  %v225_v55 = vmax.f32 %v223_v59, %v224_v46  ;;  %v9231_v46 = vld [vmem:[#allocation32_spill] sm:$0xff] }
 0x8e0   : > { %v7123_v54 = vpop.permute.xlu0 %1903  ;;  %v7125_v48 = vpop.permute.xlu1 %1759 }
 0x8e2   : > { %2579 = vrot.lane.b32.xlu0 %v2578_v38, %s5697_s6  ;;  %2336 = vrot.lane.b32.xlu1 %v2335_v61, %s5695_s11  ;;  %v2532_v38 = vstv %s7159_s30  ;;  %v227_v61 = vadd.f32 %v226_v14, %v9218_v53  ;;  %v2585_v53 = vmul.f32 %v2584_v62, %v6896_v17  ;;  %v2610_v14 = vstv %s7197_s17  ;;  %s5239_s30 = sld [smem:[#allocation7 + $0x63]] }
 0x8e3   : > { %v2612_v39 = vmul.f32 0.0, %v2610_v14  ;;  %s7355_s17 = sld [smem:[#allocation7 + $0x97]] }
 0x8e4   : > { %v7136_v40 = vpop.permute.xlu0 %1919  ;;  %v7138_v23 = vpop.permute.xlu1 %1775  ;;  %v228_v21 = vrot.slane %v227_v61, 2 }
 0x8e6   : > { %2605 = vrot.lane.b32.xlu0 %v2604_v50, %s9126_s10  ;;  %2362 = vrot.lane.b32.xlu1 %v2361_v4, %s9124_s28  ;;  %v2533_v50 = vmul.f32 %v2532_v38, %v6896_v17  ;;  %v2534_v4 = vmul.f32 0.0, %v2532_v38  ;;  %v229_v27 = vadd.f32 %v228_v21, %v227_v61  ;;  %v2611_v61 = vmul.f32 %v2610_v14, %v6896_v17  ;;  %v9222_v21 = vld [vmem:[#allocation36_spill] sm:$0xff]  ;;  %v9230_v14 = vld [vmem:[#allocation39_spill] sm:$0xff] }
 0x8e8   : > { %v7149_v8 = vpop.permute.xlu0 %1935  ;;  %v7151_v26 = vpop.permute.xlu1 %1791  ;;  %v230_v42 = vrot.slane %v229_v27, 1  ;;  %v2615_v41 = vrot.slane %v2611_v61, 6  ;;  %v9234_v61 = vld [vmem:[#allocation29_spill] sm:$0xff] }
 0x8ea   : > { %2631 = vrot.lane.b32.xlu0 %v2630_v60, %s9122_s8  ;;  %2388 = vrot.lane.b32.xlu1 %v2387_v63, %s5697_s6  ;;  %v2537_v60 = vrot.slane %v2533_v50, 6  ;;  %v2538_v63 = vrot.slane %v2534_v4, 6  ;;  %v231_v12 = vadd.f32 %v230_v42, %v229_v27  ;;  %v2616_v50 = vrot.slane %v2612_v39, 6  ;;  %v9227_v27 = vld [vmem:[#allocation38_spill] sm:$0xff] }
 0x8eb   : > { %v2637_v4 = vmul.f32 %v2636_v7, %v6896_v17  ;;  %v9233_v7 = vld [vmem:[#allocation33_spill] sm:$0xff] }
 0x8ec   : > { %v7161_v36 = vpop.permute.xlu0 %1967  ;;  %v7163_v24 = vpop.permute.xlu1 %1807  ;;  %v2539_v5 = vsel %vm684_vm9, %v2537_v60, %v2538_v63  ;;  %v731_v45 = vsel %vm9223_vm2, %v231_v12, %v9222_v21  ;;  %vm9270_vm2 = vmmov %vm9228_vm4 }
 0x8ee   : > { %2657 = vrot.lane.b32.xlu0 %v2656_v25, %s9120_s22  ;;  %2414 = vrot.lane.b32.xlu1 %v2413_v1, %s9126_s10  ;;  %v2564_v25 = vrot.slane %v2560_v29, 6  ;;  %v2586_v1 = vmul.f32 0.0, %v2584_v62  ;;  %v9224_v29 = vld [vmem:[#allocation28_spill] sm:$0xff] }
 0x8ef   : > { %v683_v62 = vsel %vm9225_vm3, %v225_v55, %v9224_v29  ;;  %vm9271_vm3 = vmmov %vm9270_vm2 }
 0x8f0   : > { %v7175_v56 = vpop.permute.xlu0 %1985  ;;  %v7177_v0 = vpop.permute.xlu1 %1823  ;;  %v2565_v30 = vsel %vm684_vm9, %v2563_v28, %v2564_v25  ;;  %v2590_v38 = vrot.slane %v2586_v1, 6  ;;  %v2617_v25 = vsel %vm684_vm9, %v2615_v41, %v2616_v50  ;;  %v2641_v1 = vrot.slane %v2637_v4, 6  ;;  %v9229_v28 = vld [vmem:[#allocation30_spill] sm:$0xff]  ;;  %v9238_v41 = vld [vmem:[#allocation27_spill] sm:$0xff] }
 0x8f1   : > { %v9240_v4 = vld [vmem:[#allocation34_spill] sm:$0xff] }
 0x8f2   : > { %2440 = vrot.lane.b32.xlu1 %v2439_v58, %s9122_s8  ;;  %2674 = vrot.lane.b32.xlu0 %v9220_v22, %s5694_s4  ;;  %v2589_v22 = vrot.slane %v2585_v53, 6  ;;  %v685_v53 = vsel %vm684_vm9, %v683_v62, %v9229_v28  ;;  %v9242_v62 = vld [vmem:[#allocation35_spill] sm:$0xff] }
 0x8f3   : > { %v687_v39 = vsel %vm9232_vm5, %v685_v53, %v9231_v46  ;;  %vm9273_vm5 = vmmov %vm9270_vm2 }
 0x8f4   : > { %v7189_v19 = vpop.permute.xlu0 %2003  ;;  %v7191_v57 = vpop.permute.xlu1 %1847 }
 0x8f6   : > { %2466 = vrot.lane.b32.xlu1 %v2465_v3, %s9120_s22  ;;  %2696 = vrot.lane.b32.xlu0 %v746_v37, %s5694_s4  ;;  %v2591_v3 = vsel %vm684_vm9, %v2589_v22, %v2590_v38 }
 0x8f8   : > { %v7201_v43 = vpop.permute.xlu0 %2021  ;;  %v7203_v20 = vpop.permute.xlu1 %1863 }
 0x8fa   : > { %2514 = vrot.lane.b32.xlu1 %v2513_v6, %s5695_s11  ;;  %v9226_v6 = vld [vmem:[#allocation37_spill] sm:$0xff] }
 0x8fb   : > { %v732_v60 = vsel %vm684_vm9, %v731_v45, %v9226_v6 }
 0x8fc   : > { %v7211_v33 = vpop.permute.xlu0 %2039  ;;  %v7213_v16 = vpop.permute.xlu1 %1879  ;;  %v733_v59 = vsel %vm9228_vm4, %v732_v60, %v9227_v27  ;;  %v9244_v60 = vld [vmem:[#allocation31_spill] sm:$0xff]  ;;  %vm9272_vm4 = vmmov %vm9215_vm13 }
 0x8fd   : > { %v734_v42 = vsel %vm688_vm11, %v733_v59, %v9230_v14 }
 0x8fe   : > { %2540 = vrot.lane.b32.xlu1 %v2539_v5, %s9124_s28  ;;  %v2642_v5 = vrot.slane %v2638_v49, 6  ;;  %v735_v12 = vsel %vm9235_vm6, %v734_v42, %v9234_v61  ;;  %v9236_v49 = vld [vmem:[#allocation40_spill] sm:$0xff] }
 0x900   : > { %v7219_v32 = vpop.permute.xlu0 %2057  ;;  %v7221_v58 = vpop.permute.xlu1 %1895  ;;  %v2643_v55 = vsel %vm684_vm9, %v2641_v1, %v2642_v5 }
 0x902   : > { %2566 = vrot.lane.b32.xlu1 %v2565_v30, %s5697_s6  ;;  %v689_v30 = vsel %vm688_vm11, %v687_v39, %v9233_v7 }
 0x903   : > { %v691_v50 = vsel %vm9239_vm1, %v689_v30, %v9238_v41  ;;  %vm9278_vm1 = vmmov %vm9241_vm8 }
 0x904   : > { %v7227_v37 = vpop.permute.xlu0 %2089  ;;  %v7229_v47 = vpop.permute.xlu1 %1911  ;;  %v693_v21 = vsel %vm9241_vm8, %v691_v50, %v9240_v4  ;;  %vm9279_vm8 = vmmov %vm9278_vm1 }
 0x905   : > { %v695_v6 = vsel %vm9243_vm10, %v693_v21, %v9242_v62  ;;  %vm9281_vm10 = vmmov %vm9278_vm1 }
 0x906   : > { %2592 = vrot.lane.b32.xlu1 %v2591_v3, %s9126_s10  ;;  %v736_v3 = vsel %vm9237_vm7, %v735_v12, %v9236_v49 }
 0x907   : > { %v737_v27 = vsel %vm9245_vm12, %v736_v3, %v9244_v60  ;;  %vm9282_vm12 = vmmov %vm9278_vm1 }
 0x908   : > { %v7240_v63 = vpop.permute.xlu0 %2107  ;;  %v7242_v15 = vpop.permute.xlu1 %1927  ;;  %v745_v59 = vmul.f32 0.25, %v737_v27 }
 0x90a   : > { %2618 = vrot.lane.b32.xlu1 %v2617_v25, %s9122_s8 }
 0x90c   : > { %v7256_v22 = vpop.permute.xlu0 %2125  ;;  %v7258_v38 = vpop.permute.xlu1 %1958 }
 0x90e   : > { %2644 = vrot.lane.b32.xlu1 %v2643_v55, %s9120_s22 }
 0x910   : > { %v7270_v45 = vpop.permute.xlu0 %2143  ;;  %v7272_v29 = vpop.permute.xlu1 %1976 }
 0x912   : > { %2672 = vrot.lane.b32.xlu1 %v695_v6, %s5694_s4 }
 0x914   : > { %v7279_v25 = vpop.permute.xlu0 %2161  ;;  %v7281_v1 = vpop.permute.xlu1 %1994 }
 0x915   : > { %9246 = vst [vmem:[#allocation19_spill] sm:$0xff] %v7279_v25 }
 0x916   : > { %2694 = vrot.lane.b32.xlu1 %v745_v59, %s5694_s4  ;;  %s5226_s4 = sld [smem:[#allocation7 + $0x93]]  ;;  %v1732_v59 = vstv %s5225_s5 }
 0x917   : > { %s7398_s5 = sld [smem:[#allocation7 + $0x67]] }
 0x918   : > { %v7284_v5 = vpop.permute.xlu0 %2179  ;;  %v7286_v28 = vpop.permute.xlu1 %2012 }
 0x919   : > { %9247 = vst [vmem:[#allocation22_spill] sm:$0xff] %v7284_v5 }
 0x91c   : > { %v7288_v53 = vpop.permute.xlu0 %2211  ;;  %v7290_v14 = vpop.permute.xlu1 %2030  ;;  %v1736_v6 = vstv %s5226_s4  ;;  %s7390_s4 = sld [smem:[#allocation7 + $0x98]] }
 0x91d   : > { %v1737_v10 = vmul.f32 %v1736_v6, %v6824_v31 }
 0x920   : > { %v7292_v42 = vpop.permute.xlu0 %2229  ;;  %v7294_v46 = vpop.permute.xlu1 %2048 }
 0x924   : > { %v7296_v39 = vpop.permute.xlu0 %2247  ;;  %v7298_v7 = vpop.permute.xlu1 %2080 }
 0x928   : > { %v7300_v30 = vpop.permute.xlu0 %2265  ;;  %v7302_v61 = vpop.permute.xlu1 %2098 }
 0x929   : > { %9248 = vst [vmem:[#allocation44_spill] sm:$0xff] %v7300_v30  ;;  %v1947_v30 = vstv %s5254_s26  ;;  %s7406_s26 = sld [smem:[#allocation7 + $0x99]] }
 0x92c   : > { %v7304_v12 = vpop.permute.xlu0 %2283  ;;  %v7306_v55 = vpop.permute.xlu1 %2116 }
 0x92d   : > { %9249 = vst [vmem:[#allocation17_spill] sm:$0xff] %v7304_v12 }
 0x930   : > { %v7308_v49 = vpop.permute.xlu0 %2301  ;;  %v7310_v3 = vpop.permute.xlu1 %2134 }
 0x931   : > { %9250 = vst [vmem:[#allocation18_spill] sm:$0xff] %v7308_v49  ;;  %v1754_v49 = vadd.f32 %v7002_v18, %v1737_v10  ;;  %v1940_v18 = vstv %s5253_s23  ;;  %s7410_s23 = sld [smem:[#allocation7 + $0x68]] }
 0x933   : > { %v1770_v12 = vadd.f32 %v7014_v52, %v1754_v49  ;;  %v1948_v49 = vmul.f32 %v1947_v30, %v6824_v31 }
 0x934   : > { %v7312_v41 = vpop.permute.xlu0 %2349  ;;  %v7314_v50 = vpop.permute.xlu1 %2152 }
 0x935   : > { %9251 = vst [vmem:[#allocation24_spill] sm:$0xff] %v7312_v41  ;;  %9252 = vst [vmem:[#allocation20_spill] sm:$0xff] %v7314_v50  ;;  %v1786_v50 = vadd.f32 %v7027_v44, %v1770_v12  ;;  %v1840_v44 = vstv %s5240_s27  ;;  %v1941_v12 = vmul.f32 %v1940_v18, %v6896_v17  ;;  %s5325_s27 = sld [smem:[#allocation7 + $0xc5]] }
 0x938   : > { %v7316_v4 = vpop.permute.xlu1 %2170  ;;  %v7318_v21 = vpop.permute.xlu0 %2375 }
 0x939   : > { %9253 = vst [vmem:[#allocation21_spill] sm:$0xff] %v7316_v4  ;;  %9254 = vst [vmem:[#allocation23_spill] sm:$0xff] %v7318_v21  ;;  %v1733_v4 = vmul.f32 %v1732_v59, %v6896_v17 }
 0x93c   : > { %v7320_v62 = vpop.permute.xlu1 %2202  ;;  %v7322_v60 = vpop.permute.xlu0 %2401 }
 0x93d   : > { %9255 = vst [vmem:[#allocation41_spill] sm:$0xff] %v7322_v60  ;;  %v1746_v60 = vadd.f32 %v7112_v51, %v1733_v4 }
 0x93f   : > { %v1762_v6 = vadd.f32 %v7125_v48, %v1746_v60  ;;  %v1836_v48 = vstv %s5239_s30  ;;  %s5326_s30 = sld [smem:[#allocation7 + $0xf6]] }
 0x940   : > { %v7324_v27 = vpop.permute.xlu1 %2220  ;;  %v7331_v21 = vpop.permute.xlu0 %2427 }
 0x941   : > { %v1778_v10 = vadd.f32 %v7138_v23, %v1762_v6  ;;  %v1943_v6 = vrot.slane %v1941_v12, 2 }
 0x943   : > { %v1794_v51 = vadd.f32 %v7151_v26, %v1778_v10  ;;  %v1950_v26 = vrot.slane %v1948_v49, 2  ;;  %v2069_v49 = vstv %s7348_s20  ;;  %s5327_s20 = sld [smem:[#allocation7 + $0xc6]] }
 0x944   : > { %v7327_v41 = vpop.permute.xlu1 %2238  ;;  %v7341_v59 = vpop.permute.xlu0 %2453 }
 0x945   : > { %9256 = vst [vmem:[#allocation42_spill] sm:$0xff] %v7327_v41  ;;  %v1802_v41 = vadd.f32 %v7040_v11, %v1786_v50  ;;  %v1810_v23 = vadd.f32 %v7163_v24, %v1794_v51 }
 0x947   : > { %v1818_v52 = vadd.f32 %v7055_v13, %v1802_v41  ;;  %v1841_v13 = vmul.f32 %v1840_v44, %v6824_v31  ;;  %v1826_v30 = vadd.f32 %v7177_v0, %v1810_v23  ;;  %v1837_v41 = vmul.f32 %v1836_v48, %v6896_v17 }
 0x948   : > { %v7335_v5 = vpop.permute.xlu1 %2256  ;;  %v7362_v4 = vpop.permute.xlu0 %2479  ;;  %v2062_v44 = vstv %s7350_s18  ;;  %v2191_v23 = vstv %s7355_s17  ;;  %s5328_s18 = sld [smem:[#allocation7 + $0xf7]] }
 0x949   : > { %v1834_v11 = vadd.f32 %v7070_v2, %v1818_v52  ;;  %v1858_v2 = vadd.f32 %v7083_v34, %v1841_v13  ;;  %v1850_v60 = vadd.f32 %v7191_v57, %v1837_v41  ;;  %v1945_v51 = vadd.f32 %v1943_v6, %v1826_v30  ;;  %s5329_s17 = sld [smem:[#allocation7 + $0xc7]] }
 0x94a   : > { %v2184_v41 = vstv %s7366_s25  ;;  %s5330_s25 = sld [smem:[#allocation7 + $0xf8]] }
 0x94b   : > { %v1952_v24 = vadd.f32 %v1950_v26, %v1834_v11  ;;  %v1874_v18 = vadd.f32 %v7097_v9, %v1858_v2  ;;  %v1866_v0 = vadd.f32 %v7203_v20, %v1850_v60  ;;  %v1961_v11 = vadd.f32 %v7258_v38, %v1945_v51 }
 0x94c   : > { %v7343_v25 = vpop.permute.xlu1 %2274  ;;  %v7380_v12 = vpop.permute.xlu0 %2527 }
 0x94d   : > { %v1970_v52 = vadd.f32 %v7161_v36, %v1952_v24  ;;  %v1890_v34 = vadd.f32 %v7110_v35, %v1874_v18  ;;  %v1882_v57 = vadd.f32 %v7213_v16, %v1866_v0  ;;  %v1979_v35 = vadd.f32 %v7272_v29, %v1961_v11 }
 0x94e   : > { %v2063_v16 = vmul.f32 %v2062_v44, %v6896_v17  ;;  %v2317_v0 = vstv %s7390_s4  ;;  %s5331_s4 = sld [smem:[#allocation7 + $0xc8]] }
 0x94f   : > { %v1988_v48 = vadd.f32 %v7175_v56, %v1970_v52  ;;  %v1906_v36 = vadd.f32 %v7123_v54, %v1890_v34  ;;  %v1898_v13 = vadd.f32 %v7221_v58, %v1882_v57  ;;  %v2070_v56 = vmul.f32 %v2069_v49, %v6824_v31 }
 0x950   : > { %v7357_v50 = vpop.permute.xlu1 %2292  ;;  %v1997_v54 = vadd.f32 %v7281_v1, %v1979_v35  ;;  %v7408_v1 = vpop.permute.xlu0 %2553  ;;  %v2306_v34 = vstv %s7398_s5  ;;  %s5332_s5 = sld [smem:[#allocation7 + $0xf9]] }
 0x951   : > { %v2006_v20 = vadd.f32 %v7189_v19, %v1988_v48  ;;  %v1922_v38 = vadd.f32 %v7136_v40, %v1906_v36  ;;  %v1914_v30 = vadd.f32 %v7229_v47, %v1898_v13  ;;  %v2192_v19 = vmul.f32 %v2191_v23, %v6824_v31 }
 0x952   : > { %v2072_v47 = vrot.slane %v2070_v56, 2  ;;  %v2319_v36 = vmul.f32 0.0, %v2317_v0  ;;  %v2484_v13 = vstv %s7410_s23  ;;  %s5334_s23 = sld [smem:[#allocation7 + $0xfa]] }
 0x953   : > { %v2024_v26 = vadd.f32 %v7201_v43, %v2006_v20  ;;  %v1938_v29 = vadd.f32 %v7149_v8, %v1922_v38  ;;  %v1930_v40 = vadd.f32 %v7242_v15, %v1914_v30  ;;  %v2015_v43 = vadd.f32 %v7286_v28, %v1997_v54 }
 0x954   : > { %v7368_v10 = vpop.permute.xlu1 %2336  ;;  %v2065_v8 = vrot.slane %v2063_v16, 2  ;;  %v2194_v18 = vrot.slane %v2192_v19, 4  ;;  %v2495_v20 = vstv %s7406_s26  ;;  %v2318_v16 = vmul.f32 %v2317_v0, %v6824_v31  ;;  %s5333_s26 = sld [smem:[#allocation7 + $0xc9]] }
 0x955   : > { %v2042_v2 = vadd.f32 %v7211_v33, %v2024_v26  ;;  %v2033_v60 = vadd.f32 %v7290_v14, %v2015_v43  ;;  %v2185_v33 = vmul.f32 %v2184_v41, %v6896_v17  ;;  %v2074_v15 = vadd.f32 %v2072_v47, %v1938_v29  ;;  %v7421_v14 = vpop.permute.xlu0 %2579  ;;  %v9257_v41 = vld [vmem:[#allocation19_spill] sm:$0xff]  ;;  %v9259_v43 = vld [vmem:[#allocation20_spill] sm:$0xff] }
 0x956   : > { %v2067_v52 = vadd.f32 %v2065_v8, %v1930_v40  ;;  %v2308_v38 = vmul.f32 0.0, %v2306_v34  ;;  %v2497_v54 = vmul.f32 0.0, %v2495_v20  ;;  %v2486_v19 = vmul.f32 0.0, %v2484_v13 }
 0x957   : > { %v2060_v24 = vadd.f32 %v7219_v32, %v2042_v2  ;;  %v2051_v28 = vadd.f32 %v7294_v46, %v2033_v60  ;;  %v2092_v51 = vadd.f32 %v7227_v37, %v2074_v15  ;;  %v2187_v44 = vrot.slane %v2185_v33, 4  ;;  %v9258_v2 = vld [vmem:[#allocation44_spill] sm:$0xff]  ;;  %v9261_v33 = vld [vmem:[#allocation22_spill] sm:$0xff] }
 0x958   : > { %v7382_v9 = vpop.permute.xlu1 %2362  ;;  %v2083_v32 = vadd.f32 %v7298_v7, %v2067_v52  ;;  %v2322_v60 = vrot.slane %v2318_v16, 4  ;;  %v2312_v8 = vrot.slane %v2308_v38, 4  ;;  %v9266_v38 = vld [vmem:[#allocation23_spill] sm:$0xff] }
 0x959   : > { %v2196_v49 = vadd.f32 %v2194_v18, %v2060_v24  ;;  %v2110_v57 = vadd.f32 %v7240_v63, %v2092_v51  ;;  %v2189_v23 = vadd.f32 %v2187_v44, %v2051_v28  ;;  %v2307_v63 = vmul.f32 %v2306_v34, %v6896_v17  ;;  %v9260_v24 = vld [vmem:[#allocation42_spill] sm:$0xff]  ;;  %v9263_v28 = vld [vmem:[#allocation21_spill] sm:$0xff] }
 0x95a   : > { %v2101_v46 = vadd.f32 %v7302_v61, %v2083_v32  ;;  %v9264_v32 = vld [vmem:[#allocation18_spill] sm:$0xff] }
 0x95b   : > { %v2214_v11 = vadd.f32 %v7288_v53, %v2196_v49  ;;  %v2128_v37 = vadd.f32 %v7256_v22, %v2110_v57  ;;  %v2205_v56 = vadd.f32 %v7320_v62, %v2189_v23  ;;  %v2606_v62 = vpop.permute.xlu0 %2605  ;;  %v2501_v49 = vrot.slane %v2497_v54, 6 }
 0x95c   : > { %v7400_v58 = vpop.permute.xlu1 %2388  ;;  %v2119_v35 = vadd.f32 %v7306_v55, %v2101_v46  ;;  %v2496_v55 = vmul.f32 %v2495_v20, %v6824_v31  ;;  %v9262_v31 = vld [vmem:[#allocation17_spill] sm:$0xff]  ;;  %v2490_v23 = vrot.slane %v2486_v19, 6 }
 0x95d   : > { %v2232_v7 = vadd.f32 %v7292_v42, %v2214_v11  ;;  %v2146_v61 = vadd.f32 %v7270_v45, %v2128_v37  ;;  %v2223_v22 = vadd.f32 %v7324_v27, %v2205_v56  ;;  %v2323_v42 = vrot.slane %v2319_v36, 4 }
 0x95e   : > { %v2137_v30 = vadd.f32 %v7310_v3, %v2119_v35  ;;  %v2485_v3 = vmul.f32 %v2484_v13, %v6896_v17  ;;  %v2500_v51 = vrot.slane %v2496_v55, 6 }
 0x95f   : > { %v2250_v26 = vadd.f32 %v7296_v39, %v2232_v7  ;;  %v2164_v29 = vadd.f32 %v9257_v41, %v2146_v61  ;;  %v2241_v45 = vadd.f32 %v9260_v24, %v2223_v22  ;;  %v2311_v39 = vrot.slane %v2307_v63, 4  ;;  %v2632_v17 = vpop.permute.xlu0 %2631  ;;  %v9265_v7 = vld [vmem:[#allocation24_spill] sm:$0xff] }
 0x960   : > { %v7415_v6 = vpop.permute.xlu1 %2414  ;;  %v2155_v47 = vadd.f32 %v9259_v43, %v2137_v30  ;;  %v2324_v57 = vsel %vm688_vm11, %v2322_v60, %v2323_v42  ;;  %v2489_v46 = vrot.slane %v2485_v3, 6 }
 0x961   : > { %v2268_v40 = vadd.f32 %v9258_v2, %v2250_v26  ;;  %v2182_v15 = vadd.f32 %v9261_v33, %v2164_v29  ;;  %v2259_v0 = vadd.f32 %v7335_v5, %v2241_v45  ;;  %v2313_v11 = vsel %vm688_vm11, %v2311_v39, %v2312_v8 }
 0x962   : > { %v2173_v52 = vadd.f32 %v9263_v28, %v2155_v47  ;;  %v2502_v5 = vsel %vm684_vm9, %v2500_v51, %v2501_v49  ;;  %v2727_v49 = vstv %s5325_s27  ;;  %s5335_s27 = sld [smem:[#allocation7 + $0xca]] }
 0x963   : > { %v2286_v18 = vadd.f32 %v9262_v31, %v2268_v40  ;;  %v2277_v34 = vadd.f32 %v7343_v25, %v2259_v0  ;;  %v2326_v20 = vadd.f32 %v2324_v57, %v2182_v15  ;;  %v2491_v25 = vsel %vm684_vm9, %v2489_v46, %v2490_v23  ;;  %v2658_v42 = vpop.permute.xlu0 %2657 }
 0x964   : > { %v7424_v48 = vpop.permute.xlu1 %2440  ;;  %v2315_v37 = vadd.f32 %v2313_v11, %v2173_v52 }
 0x965   : > { %v2304_v44 = vadd.f32 %v9264_v32, %v2286_v18  ;;  %v2295_v13 = vadd.f32 %v7357_v50, %v2277_v34  ;;  %v2352_v35 = vadd.f32 %v9265_v7, %v2326_v20  ;;  %v9267_v50 = vld [vmem:[#allocation41_spill] sm:$0xff] }
 0x966   : > { %v2339_v16 = vadd.f32 %v7368_v10, %v2315_v37 }
 0x967   : > { %v2504_v56 = vadd.f32 %v2502_v5, %v2304_v44  ;;  %v2378_v61 = vadd.f32 %v9266_v38, %v2352_v35  ;;  %v2493_v22 = vadd.f32 %v2491_v25, %v2295_v13  ;;  %v2675_v45 = vpop.permute.xlu0 %2674  ;;  %v2741_v13 = vstv %s5326_s30  ;;  %s5336_s30 = sld [smem:[#allocation7 + $0xfb]] }
 0x968   : > { %v7437_v53 = vpop.permute.xlu1 %2466  ;;  %v2365_v30 = vadd.f32 %v7382_v9, %v2339_v16 }
 0x969   : > { %v2530_v26 = vadd.f32 %v7380_v12, %v2504_v56  ;;  %v2404_v55 = vadd.f32 %v9267_v50, %v2378_v61  ;;  %v2755_v56 = vstv %s5327_s20  ;;  %s5339_s20 = sld [smem:[#allocation7 + $0xcc]] }
 0x96a   : > { %v2391_v19 = vadd.f32 %v7400_v58, %v2365_v30 }
 0x96b   : > { %v2556_v54 = vadd.f32 %v7408_v1, %v2530_v26  ;;  %v2430_v10 = vadd.f32 %v7331_v21, %v2404_v55  ;;  %v2697_v33 = vpop.permute.xlu0 %2696  ;;  %v2783_v26 = vstv %s5329_s17  ;;  %s5341_s17 = sld [smem:[#allocation7 + $0xcd]] }
 0x96c   : > { %v2515_v27 = vpop.permute.xlu1 %2514  ;;  %v2417_v40 = vadd.f32 %v7415_v6, %v2391_v19 }
 0x96d   : > { %v2517_v41 = vadd.f32 %v2515_v27, %v2493_v22  ;;  %v2582_v2 = vadd.f32 %v7421_v14, %v2556_v54  ;;  %v2456_v12 = vadd.f32 %v7341_v59, %v2430_v10  ;;  %v2679_v27 = vsel %vm612_vm0, 0.0, %v2675_v45 }
 0x96e   : > { %v2443_v47 = vadd.f32 %v7424_v48, %v2417_v40  ;;  %v7477_v31 = vsel %vm9215_vm13, %v2679_v27, 0.0  ;;  %v2811_v54 = vstv %s5331_s4  ;;  %v2839_v40 = vstv %s5333_s26  ;;  %s5343_s4 = sld [smem:[#allocation7 + $0xce]]  ;;  %vm9284_vm13 = vmmov %vm9278_vm1 }
 0x96f   : > { %v2608_v9 = vadd.f32 %v2606_v62, %v2582_v2  ;;  %v2482_v1 = vadd.f32 %v7362_v4, %v2456_v12  ;;  %v2685_v0 = vrot.slane %v7477_v31, 5  ;;  %v2867_v45 = vstv %s5335_s27  ;;  %s5345_s26 = sld [smem:[#allocation7 + $0xcf]] }
 0x970   : > { %v2541_v36 = vpop.permute.xlu1 %2540  ;;  %v2469_v39 = vadd.f32 %v7437_v53, %v2443_v47  ;;  %v2701_v53 = vsel %vm612_vm0, 0.0, %v2697_v33  ;;  %s5347_s27 = sld [smem:[#allocation7 + $0xd0]] }
 0x971   : > { %v2543_v43 = vadd.f32 %v2541_v36, %v2517_v41  ;;  %v2634_v58 = vadd.f32 %v2632_v17, %v2608_v9  ;;  %v2666_v6 = vrot.slane %v2482_v1, 1  ;;  %v7486_v32 = vsel %vm9269_vm15, %v2701_v53, 0.0  ;;  %vm9287_vm15 = vmmov %vm9278_vm1 }
 0x972   : > { %v2662_v59 = vrot.slane %v2469_v39, 1  ;;  %v2707_v36 = vrot.slane %v7486_v32, 5  ;;  %v2853_v9 = vstv %s5334_s23  ;;  %v2951_v31 = vstv %s5341_s17  ;;  %s5346_s23 = sld [smem:[#allocation7 + $0x100]] }
 0x973   : > { %v2660_v21 = vadd.f32 %v2658_v42, %v2634_v58  ;;  %v2797_v42 = vstv %s5330_s25  ;;  %v2881_v58 = vstv %s5336_s30  ;;  %s5342_s25 = sld [smem:[#allocation7 + $0xfe]] }
 0x974   : > { %v2567_v63 = vpop.permute.xlu1 %2566  ;;  %v2991_v32 = vstv %s5343_s4  ;;  %s5348_s30 = sld [smem:[#allocation7 + $0x101]] }
 0x975   : > { %v2569_v24 = vadd.f32 %v2567_v63, %v2543_v43  ;;  %v2668_v48 = vadd.f32 %v2666_v6, %v2660_v21  ;;  %v2769_v63 = vstv %s5328_s18  ;;  %s5340_s18 = sld [smem:[#allocation7 + $0xfd]]  ;;  %v2911_v21 = vstv %s5339_s20 }
 0x976   : > { %s5349_s20 = sld [smem:[#allocation7 + $0xd1]] }
 0x977   : > { %s5353_s17 = sld [smem:[#allocation7 + $0xd3]] }
 0x978   : > { %v2593_v29 = vpop.permute.xlu1 %2592  ;;  %s5355_s4 = sld [smem:[#allocation7 + $0xd4]] }
 0x979   : > { %v2595_v8 = vadd.f32 %v2593_v29, %v2569_v24  ;;  %v2825_v29 = vstv %s5332_s5  ;;  %s5344_s5 = sld [smem:[#allocation7 + $0xff]] }
 0x97b   : > { %v2931_v27 = vstv %s5340_s18  ;;  %s5350_s18 = sld [smem:[#allocation7 + $0x102]] }
 0x97c   : > { %v2619_v60 = vpop.permute.xlu1 %2618 }
 0x97d   : > { %v2621_v3 = vadd.f32 %v2619_v60, %v2595_v8 }
 0x980   : > { %v2645_v14 = vpop.permute.xlu1 %2644 }
 0x981   : > { %v2647_v62 = vadd.f32 %v2645_v14, %v2621_v3 }
 0x983   : > { %v2664_v15 = vadd.f32 %v2662_v59, %v2647_v62 }
 0x984   : > { %v2673_v4 = vpop.permute.xlu1 %2672 }
 0x985   : > { %v7480_v18 = vadd.f32 %v2668_v48, %v2664_v15  ;;  %v2678_v28 = vsel %vm612_vm0, 0.0, %v2673_v4 }
 0x986   : > { %v2680_v52 = vsel %vm9268_vm14, %v2678_v28, 0.0  ;;  %v2971_v28 = vstv %s5342_s25  ;;  %s5354_s25 = sld [smem:[#allocation7 + $0x104]]  ;;  %vm9285_vm14 = vmmov %vm9278_vm1 }
 0x987   : > { %v2684_v51 = vrot.slane %v2680_v52, 5 }
 0x988   : > { %v2695_v44 = vpop.permute.xlu1 %2694 }
 0x989   : > { %v7491_v34 = vsel %vm9270_vm2, %v2684_v51, %v2685_v0  ;;  %v7494_v57 = vsel %vm9271_vm3, 0.0, %v2684_v51  ;;  %v2700_v11 = vsel %vm612_vm0, 0.0, %v2695_v44  ;;  %vm9274_vm0 = vmmov %vm9270_vm2 }
 0x98a   : > { %v2702_v17 = vsel %vm9272_vm4, %v2700_v11, 0.0  ;;  %v2728_v46 = vmul.f32 %v2727_v49, %v7494_v57  ;;  %v2729_v23 = vmul.f32 %v2727_v49, %v7491_v34  ;;  %v2756_v16 = vmul.f32 %v2755_v56, %v7494_v57  ;;  %vm9275_vm6 = vmmov %vm9274_vm0 }
 0x98b   : > { %v2706_v20 = vrot.slane %v2702_v17, 5  ;;  %v2757_v25 = vmul.f32 %v2755_v56, %v7491_v34  ;;  %v2784_v30 = vmul.f32 %v2783_v26, %v7494_v57  ;;  %v2785_v22 = vmul.f32 %v2783_v26, %v7491_v34  ;;  %vm9276_vm7 = vmmov %vm9274_vm0 }
 0x98c   : > { %2732 = vrot.lane.b32.xlu1 %v2728_v46, %s5695_s11  ;;  %2734 = vrot.lane.b32.xlu0 %v2729_v23, %s5695_s11  ;;  %v2812_v19 = vmul.f32 %v2811_v54, %v7494_v57  ;;  %v2813_v41 = vmul.f32 %v2811_v54, %v7491_v34  ;;  %v2840_v43 = vmul.f32 %v2839_v40, %v7494_v57  ;;  %v7560_v6 = vsel %vm9275_vm6, %v2685_v0, 0.0  ;;  %vm9288_vm2 = vmmov %vm9278_vm1 }
 0x98d   : > { %v7506_v37 = vsel %vm9273_vm5, %v2706_v20, %v2707_v36  ;;  %v7509_v5 = vsel %vm9274_vm0, 0.0, %v2706_v20  ;;  %v2841_v12 = vmul.f32 %v2839_v40, %v7491_v34  ;;  %v2868_v60 = vmul.f32 %v2867_v45, %v7494_v57  ;;  %vm9290_vm3 = vmmov %vm9278_vm1 }
 0x98e   : > { %v2742_v7 = vmul.f32 %v2741_v13, %v7509_v5  ;;  %v2743_v35 = vmul.f32 %v2741_v13, %v7506_v37  ;;  %v2770_v38 = vmul.f32 %v2769_v63, %v7509_v5  ;;  %v2771_v61 = vmul.f32 %v2769_v63, %v7506_v37  ;;  %vm9291_vm4 = vmmov %vm9278_vm1 }
 0x98f   : > { %v2798_v50 = vmul.f32 %v2797_v42, %v7509_v5  ;;  %v2799_v55 = vmul.f32 %v2797_v42, %v7506_v37  ;;  %v2826_v10 = vmul.f32 %v2825_v29, %v7509_v5  ;;  %v2827_v2 = vmul.f32 %v2825_v29, %v7506_v37  ;;  %vm9293_vm5 = vmmov %vm9278_vm1 }
 0x990   : > { %2746 = vrot.lane.b32.xlu1 %v2742_v7, %s5695_s11  ;;  %2748 = vrot.lane.b32.xlu0 %v2743_v35, %s5695_s11  ;;  %v2854_v47 = vmul.f32 %v2853_v9, %v7509_v5  ;;  %v2855_v24 = vmul.f32 %v2853_v9, %v7506_v37  ;;  %v2869_v1 = vmul.f32 %v2867_v45, %v7491_v34  ;;  %v7569_v33 = vsel %vm9276_vm7, %v2707_v36, 0.0  ;;  %vm9294_vm0 = vmmov %vm9278_vm1 }
 0x991   : > { %v2882_v39 = vmul.f32 %v2881_v58, %v7509_v5  ;;  %v2883_v8 = vmul.f32 %v2881_v58, %v7506_v37  ;;  %v2912_v3 = vmul.f32 %v2911_v21, %v7494_v57  ;;  %v2913_v14 = vmul.f32 %v2911_v21, %v7491_v34  ;;  %vm9296_vm6 = vmmov %vm9294_vm0 }
 0x992   : > { %v2914_v59 = vmul.f32 %v2911_v21, %v7560_v6  ;;  %v2932_v62 = vmul.f32 %v2931_v27, %v7509_v5  ;;  %v2933_v48 = vmul.f32 %v2931_v27, %v7506_v37  ;;  %v2934_v15 = vmul.f32 %v2931_v27, %v7569_v33  ;;  %vm9297_vm7 = vmmov %vm9294_vm0 }
 0x993   : > { %v2952_v4 = vmul.f32 %v2951_v31, %v7494_v57  ;;  %v2953_v53 = vmul.f32 %v2951_v31, %v7491_v34  ;;  %v2954_v52 = vmul.f32 %v2951_v31, %v7560_v6  ;;  %v2972_v0 = vmul.f32 %v2971_v28, %v7509_v5 }
 0x994   : > { %2760 = vrot.lane.b32.xlu1 %v2756_v16, %s9124_s28  ;;  %2762 = vrot.lane.b32.xlu0 %v2757_v25, %s9124_s28  ;;  %v2973_v51 = vmul.f32 %v2971_v28, %v7506_v37  ;;  %v2974_v49 = vmul.f32 %v2971_v28, %v7569_v33  ;;  %v2992_v44 = vmul.f32 %v2991_v32, %v7494_v57  ;;  %v3011_v17 = vstv %s5344_s5  ;;  %s5356_s5 = sld [smem:[#allocation7 + $0x105]] }
 0x995   : > { %v2993_v11 = vmul.f32 %v2991_v32, %v7491_v34  ;;  %v2994_v46 = vmul.f32 %v2991_v32, %v7560_v6  ;;  %v3012_v23 = vmul.f32 %v3011_v17, %v7509_v5  ;;  %v3013_v36 = vmul.f32 %v3011_v17, %v7506_v37 }
 0x996   : > { %v3014_v20 = vmul.f32 %v3011_v17, %v7569_v33  ;;  %v3031_v13 = vstv %s5345_s26  ;;  %v3051_v56 = vstv %s5346_s23  ;;  %v3206_v58 = vstv %s5354_s25  ;;  %s5357_s26 = sld [smem:[#allocation7 + $0xd5]] }
 0x997   : > { %v3032_v7 = vmul.f32 %v3031_v13, %v7494_v57  ;;  %v3033_v35 = vmul.f32 %v3031_v13, %v7491_v34  ;;  %v3034_v16 = vmul.f32 %v3031_v13, %v7560_v6  ;;  %v3052_v25 = vmul.f32 %v3051_v56, %v7509_v5  ;;  %s5358_s23 = sld [smem:[#allocation7 + $0x106]] }
 0x998   : > { %2774 = vrot.lane.b32.xlu1 %v2770_v38, %s9124_s28  ;;  %2776 = vrot.lane.b32.xlu0 %v2771_v61, %s9124_s28  ;;  %v3053_v63 = vmul.f32 %v3051_v56, %v7506_v37  ;;  %v3054_v38 = vmul.f32 %v3051_v56, %v7569_v33  ;;  %v3071_v61 = vstv %s5347_s27  ;;  %v3207_v21 = vmul.f32 %v3206_v58, %v7509_v5  ;;  %s5359_s27 = sld [smem:[#allocation7 + $0xd6]] }
 0x999   : > { %v3072_v26 = vmul.f32 %v3071_v61, %v7494_v57  ;;  %v3074_v42 = vmul.f32 %v3071_v61, %v7560_v6  ;;  %v3209_v27 = vmul.f32 %v3206_v58, %v7569_v33  ;;  %s5364_s25 = sld [smem:[#allocation7 + $0x109]] }
 0x99a   : > { %v3213_v28 = vrot.slane %v3207_v21, 2  ;;  %v3248_v17 = vstv %s5356_s5  ;;  %s5368_s5 = sld [smem:[#allocation7 + $0x10b]] }
 0x99c   : > { %2788 = vrot.lane.b32.xlu1 %v2784_v30, %s5697_s6  ;;  %2790 = vrot.lane.b32.xlu0 %v2785_v22, %s5697_s6  ;;  %v3073_v30 = vmul.f32 %v3071_v61, %v7491_v34  ;;  %v3091_v22 = vstv %s5348_s30  ;;  %s5360_s30 = sld [smem:[#allocation7 + $0x107]] }
 0x99d   : > { %v3094_v54 = vmul.f32 %v3091_v22, %v7569_v33 }
 0x9a0   : > { %2802 = vrot.lane.b32.xlu1 %v2798_v50, %s5697_s6  ;;  %2804 = vrot.lane.b32.xlu0 %v2799_v55, %s5697_s6  ;;  %v3092_v50 = vmul.f32 %v3091_v22, %v7509_v5  ;;  %v3093_v55 = vmul.f32 %v3091_v22, %v7506_v37 }
 0x9a4   : > { %2816 = vrot.lane.b32.xlu1 %v2812_v19, %s9126_s10  ;;  %2818 = vrot.lane.b32.xlu0 %v2813_v41, %s9126_s10  ;;  %v3111_v19 = vstv %s5349_s20  ;;  %s5361_s20 = sld [smem:[#allocation7 + $0xd7]] }
 0x9a5   : > { %v3112_v41 = vmul.f32 %v3111_v19, %v7494_v57  ;;  %v3113_v29 = vmul.f32 %v3111_v19, %v7491_v34 }
 0x9a8   : > { %2830 = vrot.lane.b32.xlu1 %v2826_v10, %s9126_s10  ;;  %2832 = vrot.lane.b32.xlu0 %v2827_v2, %s9126_s10  ;;  %v3131_v10 = vstv %s5350_s18  ;;  %v3114_v2 = vmul.f32 %v3111_v19, %v7560_v6  ;;  %s5362_s18 = sld [smem:[#allocation7 + $0x108]] }
 0x9a9   : > { %v3132_v40 = vmul.f32 %v3131_v10, %v7509_v5 }
 0x9ac   : > { %2844 = vrot.lane.b32.xlu1 %v2840_v43, %s9122_s8  ;;  %2846 = vrot.lane.b32.xlu0 %v2841_v12, %s9122_s8  ;;  %v3185_v43 = vstv %s5353_s17  ;;  %s5363_s17 = sld [smem:[#allocation7 + $0xd8]] }
 0x9ad   : > { %v3186_v12 = vmul.f32 %v3185_v43, %v7494_v57  ;;  %v3187_v9 = vmul.f32 %v3185_v43, %v7491_v34 }
 0x9b0   : > { %2858 = vrot.lane.b32.xlu1 %v2854_v47, %s9122_s8  ;;  %2860 = vrot.lane.b32.xlu0 %v2855_v24, %s9122_s8  ;;  %v3188_v47 = vmul.f32 %v3185_v43, %v7560_v6 }
 0x9b4   : > { %2872 = vrot.lane.b32.xlu1 %v2868_v60, %s9120_s22  ;;  %2874 = vrot.lane.b32.xlu0 %v2869_v1, %s9120_s22  ;;  %v3133_v60 = vmul.f32 %v3131_v10, %v7506_v37  ;;  %v3134_v1 = vmul.f32 %v3131_v10, %v7569_v33 }
 0x9b8   : > { %2886 = vrot.lane.b32.xlu1 %v2882_v39, %s9120_s22  ;;  %2888 = vrot.lane.b32.xlu0 %v2883_v8, %s9120_s22  ;;  %v3192_v39 = vrot.slane %v3186_v12, 2  ;;  %v3193_v8 = vrot.slane %v3187_v9, 2  ;;  %v3311_v9 = vstv %s5359_s27  ;;  %s5371_s27 = sld [smem:[#allocation7 + $0xdc]] }
 0x9bc   : > { %2918 = vrot.lane.b32.xlu1 %v2912_v3, %s5695_s11  ;;  %2920 = vrot.lane.b32.xlu0 %v2913_v14, %s5695_s11  ;;  %v3208_v3 = vmul.f32 %v3206_v58, %v7506_v37  ;;  %v3195_v14 = vrot.slane %v3188_v47, 2  ;;  %v3312_v58 = vmul.f32 %v3311_v9, %v7494_v57 }
 0x9c0   : > { %2922 = vrot.lane.b32.xlu1 %v2914_v59, %s5695_s11  ;;  %2938 = vrot.lane.b32.xlu0 %v2932_v62, %s5695_s11  ;;  %v3227_v59 = vstv %s5355_s4  ;;  %s5367_s4 = sld [smem:[#allocation7 + $0xda]] }
 0x9c1   : > { %v3229_v31 = vmul.f32 %v3227_v59, %v7491_v34 }
 0x9c4   : > { %2940 = vrot.lane.b32.xlu1 %v2933_v48, %s5695_s11  ;;  %2942 = vrot.lane.b32.xlu0 %v2934_v15, %s5695_s11  ;;  %v3228_v15 = vmul.f32 %v3227_v59, %v7494_v57 }
 0x9c8   : > { %2958 = vrot.lane.b32.xlu1 %v2952_v4, %s9124_s28  ;;  %2960 = vrot.lane.b32.xlu0 %v2953_v53, %s9124_s28  ;;  %v3194_v4 = vsel %vm9278_vm1, %v3192_v39, %v3193_v8  ;;  %v3196_v53 = vsel %vm9279_vm8, %v3193_v8, %v3195_v14  ;;  %vm9299_vm1 = vmmov %vm9294_vm0 }
 0x9c9   : > { %vm9300_vm8 = vmmov %vm9294_vm0 }
 0x9cc   : > { %2962 = vrot.lane.b32.xlu1 %v2954_v52, %s9124_s28  ;;  %2978 = vrot.lane.b32.xlu0 %v2972_v0, %s9124_s28  ;;  %v3214_v52 = vrot.slane %v3208_v3, 2  ;;  %v3230_v0 = vmul.f32 %v3227_v59, %v7560_v6  ;;  %v3313_v3 = vmul.f32 %v3311_v9, %v7491_v34  ;;  %v3332_v59 = vstv %s5360_s30  ;;  %s5372_s30 = sld [smem:[#allocation7 + $0x10d]] }
 0x9ce   : > { %v3237_v13 = vrot.slane %v3230_v0, 2  ;;  %v3319_v0 = vrot.slane %v3313_v3, 2 }
 0x9d0   : > { %2980 = vrot.lane.b32.xlu1 %v2973_v51, %s9124_s28  ;;  %2982 = vrot.lane.b32.xlu0 %v2974_v49, %s9124_s28  ;;  %v3216_v51 = vrot.slane %v3209_v27, 2  ;;  %v3314_v27 = vmul.f32 %v3311_v9, %v7560_v6 }
 0x9d4   : > { %2998 = vrot.lane.b32.xlu1 %v2992_v44, %s5697_s6  ;;  %3000 = vrot.lane.b32.xlu0 %v2993_v11, %s5697_s6  ;;  %v3234_v44 = vrot.slane %v3228_v15, 2  ;;  %v3235_v11 = vrot.slane %v3229_v31, 2 }
 0x9d8   : > { %3002 = vrot.lane.b32.xlu1 %v2994_v46, %s5697_s6  ;;  %3018 = vrot.lane.b32.xlu0 %v3012_v23, %s5697_s6  ;;  %v3215_v46 = vsel %vm9281_vm10, %v3213_v28, %v3214_v52  ;;  %v3217_v23 = vsel %vm9282_vm12, %v3214_v52, %v3216_v51  ;;  %v3334_v51 = vmul.f32 %v3332_v59, %v7506_v37  ;;  %vm9302_vm10 = vmmov %vm9294_vm0 }
 0x9d9   : > { %vm9303_vm12 = vmmov %vm9294_vm0 }
 0x9dc   : > { %3020 = vrot.lane.b32.xlu1 %v3013_v36, %s5697_s6  ;;  %3022 = vrot.lane.b32.xlu0 %v3014_v20, %s5697_s6  ;;  %v3249_v36 = vmul.f32 %v3248_v17, %v7509_v5  ;;  %v3250_v20 = vmul.f32 %v3248_v17, %v7506_v37 }
 0x9de   : > { %v3256_v61 = vrot.slane %v3250_v20, 2 }
 0x9e0   : > { %3038 = vrot.lane.b32.xlu1 %v3032_v7, %s9126_s10  ;;  %3040 = vrot.lane.b32.xlu0 %v3033_v35, %s9126_s10  ;;  %v3251_v7 = vmul.f32 %v3248_v17, %v7569_v33  ;;  %v3353_v17 = vstv %s5361_s20  ;;  %s5373_s20 = sld [smem:[#allocation7 + $0xdd]] }
 0x9e1   : > { %v3354_v20 = vmul.f32 %v3353_v17, %v7494_v57 }
 0x9e2   : > { %v3258_v22 = vrot.slane %v3251_v7, 2 }
 0x9e4   : > { %3042 = vrot.lane.b32.xlu1 %v3034_v16, %s9126_s10  ;;  %3058 = vrot.lane.b32.xlu0 %v3052_v25, %s9126_s10  ;;  %v3236_v16 = vsel %vm9284_vm13, %v3234_v44, %v3235_v11  ;;  %v3238_v25 = vsel %vm9285_vm14, %v3235_v11, %v3237_v13  ;;  %v3259_v10 = vsel %vm9288_vm2, %v3256_v61, %v3258_v22  ;;  %v3321_v44 = vrot.slane %v3314_v27, 2  ;;  %vm9305_vm13 = vmmov %vm9294_vm0 }
 0x9e5   : > { %v3335_v11 = vmul.f32 %v3332_v59, %v7569_v33  ;;  %v3416_v27 = vstv %s5364_s25  ;;  %vm9306_vm14 = vmmov %vm9294_vm0  ;;  %s5376_s25 = sld [smem:[#allocation7 + $0x10f]] }
 0x9e6   : > { %v3322_v7 = vsel %vm9297_vm7, %v3319_v0, %v3321_v44  ;;  %v3418_v44 = vmul.f32 %v3416_v27, %v7506_v37  ;;  %vm9309_vm2 = vmmov %vm9294_vm0 }
 0x9e7   : > { %vm9322_vm7 = vmmov %vm9294_vm0 }
 0x9e8   : > { %3060 = vrot.lane.b32.xlu1 %v3053_v63, %s9126_s10  ;;  %3062 = vrot.lane.b32.xlu0 %v3054_v38, %s9126_s10  ;;  %v3269_v63 = vstv %s5357_s26  ;;  %v3255_v38 = vrot.slane %v3249_v36, 2  ;;  %s5369_s26 = sld [smem:[#allocation7 + $0xdb]] }
 0x9ec   : > { %3078 = vrot.lane.b32.xlu1 %v3072_v26, %s9122_s8  ;;  %3080 = vrot.lane.b32.xlu0 %v3073_v30, %s9122_s8  ;;  %v3270_v26 = vmul.f32 %v3269_v63, %v7494_v57  ;;  %v3271_v30 = vmul.f32 %v3269_v63, %v7491_v34 }
 0x9f0   : > { %3082 = vrot.lane.b32.xlu1 %v3074_v42, %s9122_s8  ;;  %3098 = vrot.lane.b32.xlu0 %v3092_v50, %s9122_s8  ;;  %v3272_v42 = vmul.f32 %v3269_v63, %v7560_v6  ;;  %v3290_v50 = vstv %s5358_s23  ;;  %v3342_v63 = vrot.slane %v3335_v11, 2  ;;  %s5370_s23 = sld [smem:[#allocation7 + $0x10c]] }
 0x9f1   : > { %v3291_v19 = vmul.f32 %v3290_v50, %v7509_v5  ;;  %v3293_v12 = vmul.f32 %v3290_v50, %v7569_v33 }
 0x9f2   : > { %v3279_v43 = vrot.slane %v3272_v42, 2 }
 0x9f3   : > { %v3300_v14 = vrot.slane %v3293_v12, 2 }
 0x9f4   : > { %3100 = vrot.lane.b32.xlu1 %v3093_v55, %s9122_s8  ;;  %3102 = vrot.lane.b32.xlu0 %v3094_v54, %s9122_s8 }
 0x9f8   : > { %3118 = vrot.lane.b32.xlu1 %v3112_v41, %s9120_s22  ;;  %3120 = vrot.lane.b32.xlu0 %v3113_v29, %s9120_s22  ;;  %v3292_v41 = vmul.f32 %v3290_v50, %v7506_v37  ;;  %v3257_v29 = vsel %vm9287_vm15, %v3255_v38, %v3256_v61  ;;  %v3356_v38 = vmul.f32 %v3353_v17, %v7560_v6  ;;  %v3374_v61 = vstv %s5362_s18  ;;  %vm9308_vm15 = vmmov %vm9294_vm0  ;;  %s5374_s18 = sld [smem:[#allocation7 + $0x10e]] }
 0x9f9   : > { %v3375_v22 = vmul.f32 %v3374_v61, %v7509_v5  ;;  %v3376_v42 = vmul.f32 %v3374_v61, %v7506_v37 }
 0x9fa   : > { %v3298_v21 = vrot.slane %v3292_v41, 2  ;;  %v3360_v41 = vrot.slane %v3354_v20, 2 }
 0x9fb   : > { %v3381_v12 = vrot.slane %v3375_v22, 2  ;;  %v3382_v9 = vrot.slane %v3376_v42, 2 }
 0x9fc   : > { %3122 = vrot.lane.b32.xlu1 %v3114_v2, %s9120_s22  ;;  %3138 = vrot.lane.b32.xlu0 %v3132_v40, %s9120_s22  ;;  %v3276_v2 = vrot.slane %v3270_v26, 2  ;;  %v3277_v40 = vrot.slane %v3271_v30, 2  ;;  %v3301_v52 = vsel %vm9294_vm0, %v3298_v21, %v3300_v14 }
 0x9fe   : > { %v7636_v24 = vpop.permute.xlu0 %2734  ;;  %v7638_v45 = vpop.permute.xlu1 %2732  ;;  %v3278_v39 = vsel %vm9290_vm3, %v3276_v2, %v3277_v40  ;;  %v3280_v8 = vsel %vm9291_vm4, %v3277_v40, %v3279_v43  ;;  %v3377_v2 = vmul.f32 %v3374_v61, %v7569_v33  ;;  %vm9312_vm3 = vmmov %vm9294_vm0 }
 0x9ff   : > { %vm9313_vm4 = vmmov %vm9294_vm0 }
 0xa00   : > { %3140 = vrot.lane.b32.xlu1 %v3133_v60, %s9120_s22  ;;  %3142 = vrot.lane.b32.xlu0 %v3134_v1, %s9120_s22  ;;  %v3297_v1 = vrot.slane %v3291_v19, 2  ;;  %v3384_v3 = vrot.slane %v3377_v2, 2 }
 0xa02   : > { %v7647_v62 = vpop.permute.xlu0 %2748  ;;  %v7649_v48 = vpop.permute.xlu1 %2746  ;;  %v3299_v28 = vsel %vm9293_vm5, %v3297_v1, %v3298_v21  ;;  %v3395_v1 = vstv %s5363_s17  ;;  %vm9316_vm5 = vmmov %vm9294_vm0  ;;  %s5375_s17 = sld [smem:[#allocation7 + $0xde]] }
 0xa03   : > { %9277 = vst [vmem:[#allocation43_spill] sm:$0xff] %v7649_v48  ;;  %v3397_v21 = vmul.f32 %v3395_v1, %v7491_v34  ;;  %v3398_v14 = vmul.f32 %v3395_v1, %v7560_v6 }
 0xa04   : > { %3197 = vrot.lane.b32.xlu1 %v3194_v4, %s5695_s11  ;;  %3199 = vrot.lane.b32.xlu0 %v3196_v53, %s5695_s11  ;;  %v3318_v4 = vrot.slane %v3312_v58, 2  ;;  %v3333_v53 = vmul.f32 %v3332_v59, %v7509_v5 }
 0xa05   : > { %v3405_v11 = vrot.slane %v3398_v14, 2 }
 0xa06   : > { %v7658_v49 = vpop.permute.xlu0 %2762  ;;  %v7660_v32 = vpop.permute.xlu1 %2760  ;;  %v3339_v36 = vrot.slane %v3333_v53, 2  ;;  %v3320_v13 = vsel %vm9296_vm6, %v3318_v4, %v3319_v0  ;;  %v3383_v53 = vsel %vm9305_vm13, %v3381_v12, %v3382_v9  ;;  %vm9319_vm6 = vmmov %vm9294_vm0 }
 0xa07   : > { %9280 = vst [vmem:[#allocation15_spill] sm:$0xff] %v7660_v32  ;;  %vm9335_vm13 = vmmov %vm9294_vm0 }
 0xa08   : > { %3218 = vrot.lane.b32.xlu1 %v3215_v46, %s5695_s11  ;;  %3220 = vrot.lane.b32.xlu0 %v3217_v23, %s5695_s11 }
 0xa0a   : > { %v7669_v35 = vpop.permute.xlu0 %2776  ;;  %v7671_v56 = vpop.permute.xlu1 %2774 }
 0xa0b   : > { %9283 = vst [vmem:[#allocation14_spill] sm:$0xff] %v7671_v56 }
 0xa0c   : > { %3239 = vrot.lane.b32.xlu1 %v3236_v16, %s9124_s28  ;;  %3241 = vrot.lane.b32.xlu0 %v3238_v25, %s9124_s28  ;;  %v3340_v16 = vrot.slane %v3334_v51, 2  ;;  %v3355_v25 = vmul.f32 %v3353_v17, %v7491_v34  ;;  %v3403_v51 = vrot.slane %v3397_v21, 2  ;;  %v3419_v17 = vmul.f32 %v3416_v27, %v7569_v33 }
 0xa0e   : > { %v7680_v55 = vpop.permute.xlu0 %2790  ;;  %v7682_v54 = vpop.permute.xlu1 %2788  ;;  %v3341_v50 = vsel %vm9299_vm1, %v3339_v36, %v3340_v16  ;;  %v3343_v19 = vsel %vm9300_vm8, %v3340_v16, %v3342_v63  ;;  %v3475_v36 = vstv %s5367_s4  ;;  %v3406_v63 = vsel %vm9309_vm2, %v3403_v51, %v3405_v11  ;;  %vm9325_vm1 = vmmov %vm9294_vm0  ;;  %s5377_s4 = sld [smem:[#allocation7 + $0xdf]] }
 0xa0f   : > { %9286 = vst [vmem:[#allocation25_spill] sm:$0xff] %v7682_v54  ;;  %v3476_v16 = vmul.f32 %v3475_v36, %v7494_v57  ;;  %v3477_v61 = vmul.f32 %v3475_v36, %v7491_v34  ;;  %v3426_v22 = vrot.slane %v3419_v17, 2  ;;  %v3478_v42 = vmul.f32 %v3475_v36, %v7560_v6  ;;  %vm9326_vm8 = vmmov %vm9294_vm0 }
 0xa10   : > { %3260 = vrot.lane.b32.xlu1 %v3257_v29, %s9124_s28  ;;  %3262 = vrot.lane.b32.xlu0 %v3259_v10, %s9124_s28  ;;  %v3361_v29 = vrot.slane %v3355_v25, 2  ;;  %v3363_v10 = vrot.slane %v3356_v38, 2  ;;  %v3424_v38 = vrot.slane %v3418_v44, 2  ;;  %vm9342_vm2 = vmmov %vm9294_vm0 }
 0xa12   : > { %v7691_v47 = vpop.permute.xlu0 %2804  ;;  %v7693_v60 = vpop.permute.xlu1 %2802  ;;  %v3362_v58 = vsel %vm9302_vm10, %v3360_v41, %v3361_v29  ;;  %v3427_v12 = vsel %vm9313_vm4, %v3424_v38, %v3426_v22  ;;  %vm9329_vm10 = vmmov %vm9294_vm0 }
 0xa13   : > { %9289 = vst [vmem:[#allocation26_spill] sm:$0xff] %v7693_v60  ;;  %vm9346_vm4 = vmmov %vm9294_vm0 }
 0xa14   : > { %3281 = vrot.lane.b32.xlu1 %v3278_v39, %s5697_s6  ;;  %3283 = vrot.lane.b32.xlu0 %v3280_v8, %s5697_s6  ;;  %v3364_v39 = vsel %vm9303_vm12, %v3361_v29, %v3363_v10  ;;  %v3396_v8 = vmul.f32 %v3395_v1, %v7494_v57  ;;  %v3482_v29 = vrot.slane %v3476_v16, 2  ;;  %vm9332_vm12 = vmmov %vm9294_vm0  ;;  %v3725_v60 = vstv %s5377_s4  ;;  %s5389_s4 = sld [smem:[#allocation7 + $0xe5]] }
 0xa16   : > { %v7702_v15 = vpop.permute.xlu0 %2818  ;;  %v7704_v31 = vpop.permute.xlu1 %2816  ;;  %v3402_v0 = vrot.slane %v3396_v8, 2 }
 0xa17   : > { %9292 = vst [vmem:[#allocation36_spill] sm:$0xff] %v7704_v31 }
 0xa18   : > { %3302 = vrot.lane.b32.xlu1 %v3299_v28, %s5697_s6  ;;  %3304 = vrot.lane.b32.xlu0 %v3301_v52, %s5697_s6  ;;  %v3417_v28 = vmul.f32 %v3416_v27, %v7509_v5  ;;  %v3385_v52 = vsel %vm9306_vm14, %v3382_v9, %v3384_v3  ;;  %v3404_v25 = vsel %vm9308_vm15, %v3402_v0, %v3403_v51  ;;  %v3483_v9 = vrot.slane %v3477_v61, 2  ;;  %vm9336_vm14 = vmmov %vm9294_vm0 }
 0xa19   : > { %v3525_v0 = vstv %s5369_s26  ;;  %vm9339_vm15 = vmmov %vm9294_vm0  ;;  %s5381_s26 = sld [smem:[#allocation7 + $0xe1]] }
 0xa1a   : > { %v7713_v46 = vpop.permute.xlu0 %2832  ;;  %v7715_v23 = vpop.permute.xlu1 %2830  ;;  %v3484_v21 = vsel %vm9316_vm5, %v3482_v29, %v3483_v9  ;;  %v3526_v44 = vmul.f32 %v3525_v0, %v7494_v57  ;;  %v3527_v11 = vmul.f32 %v3525_v0, %v7491_v34  ;;  %v3528_v36 = vmul.f32 %v3525_v0, %v7560_v6  ;;  %vm9349_vm5 = vmmov %vm9294_vm0 }
 0xa1b   : > { %9295 = vst [vmem:[#allocation28_spill] sm:$0xff] %v7715_v23 }
 0xa1c   : > { %3323 = vrot.lane.b32.xlu1 %v3320_v13, %s9126_s10  ;;  %3325 = vrot.lane.b32.xlu0 %v3322_v7, %s9126_s10  ;;  %v3423_v7 = vrot.slane %v3417_v28, 2  ;;  %v3532_v61 = vrot.slane %v3526_v44, 2  ;;  %v3533_v22 = vrot.slane %v3527_v11, 2  ;;  %v3600_v11 = vstv %s5372_s30  ;;  %s5384_s30 = sld [smem:[#allocation7 + $0x113]] }
 0xa1e   : > { %v7724_v26 = vpop.permute.xlu0 %2846  ;;  %v7726_v30 = vpop.permute.xlu1 %2844  ;;  %v3425_v2 = vsel %vm9312_vm3, %v3423_v7, %v3424_v38  ;;  %v3550_v7 = vstv %s5370_s23  ;;  %vm9345_vm3 = vmmov %vm9294_vm0  ;;  %s5382_s23 = sld [smem:[#allocation7 + $0x112]] }
 0xa1f   : > { %9298 = vst [vmem:[#allocation37_spill] sm:$0xff] %v7726_v30 }
 0xa20   : > { %3344 = vrot.lane.b32.xlu1 %v3341_v50, %s9126_s10  ;;  %3346 = vrot.lane.b32.xlu0 %v3343_v19, %s9126_s10  ;;  %v3500_v50 = vstv %s5368_s5  ;;  %s5378_s5 = sld [smem:[#allocation7 + $0x110]] }
 0xa21   : > { %v3501_v10 = vmul.f32 %v3500_v50, %v7509_v5  ;;  %v3502_v1 = vmul.f32 %v3500_v50, %v7506_v37 }
 0xa22   : > { %v7735_v40 = vpop.permute.xlu0 %2860  ;;  %v7737_v43 = vpop.permute.xlu1 %2858 }
 0xa23   : > { %9301 = vst [vmem:[#allocation38_spill] sm:$0xff] %v7737_v43  ;;  %v3507_v14 = vrot.slane %v3501_v10, 2  ;;  %v3508_v27 = vrot.slane %v3502_v1, 2 }
 0xa24   : > { %3365 = vrot.lane.b32.xlu1 %v3362_v58, %s9122_s8  ;;  %3367 = vrot.lane.b32.xlu0 %v3364_v39, %s9122_s8  ;;  %v3485_v58 = vrot.slane %v3478_v42, 2  ;;  %v3552_v42 = vmul.f32 %v3550_v7, %v7506_v37 }
 0xa25   : > { %v3509_v51 = vsel %vm9319_vm6, %v3507_v14, %v3508_v27  ;;  %v3575_v14 = vstv %s5371_s27  ;;  %vm9354_vm6 = vmmov %vm9294_vm0  ;;  %s5383_s27 = sld [smem:[#allocation7 + $0xe2]] }
 0xa26   : > { %v7746_v59 = vpop.permute.xlu0 %2874  ;;  %v7748_v4 = vpop.permute.xlu1 %2872  ;;  %v3486_v3 = vsel %vm9294_vm0, %v3483_v9, %v3485_v58  ;;  %v3558_v1 = vrot.slane %v3552_v42, 2  ;;  %v3577_v0 = vmul.f32 %v3575_v14, %v7491_v34  ;;  %v3578_v44 = vmul.f32 %v3575_v14, %v7560_v6 }
 0xa27   : > { %9304 = vst [vmem:[#allocation30_spill] sm:$0xff] %v7748_v4 }
 0xa28   : > { %3386 = vrot.lane.b32.xlu1 %v3383_v53, %s9122_s8  ;;  %3388 = vrot.lane.b32.xlu0 %v3385_v52, %s9122_s8  ;;  %v3503_v53 = vmul.f32 %v3500_v50, %v7569_v33  ;;  %v3535_v50 = vrot.slane %v3528_v36, 2  ;;  %v3585_v42 = vrot.slane %v3578_v44, 2 }
 0xa2a   : > { %v7757_v20 = vpop.permute.xlu0 %2888  ;;  %v7759_v13 = vpop.permute.xlu1 %2886  ;;  %v3510_v17 = vrot.slane %v3503_v53, 2  ;;  %v3576_v53 = vmul.f32 %v3575_v14, %v7494_v57  ;;  %v3603_v14 = vmul.f32 %v3600_v11, %v7569_v33 }
 0xa2b   : > { %9307 = vst [vmem:[#allocation39_spill] sm:$0xff] %v7759_v13 }
 0xa2c   : > { %3407 = vrot.lane.b32.xlu1 %v3404_v25, %s9120_s22  ;;  %3409 = vrot.lane.b32.xlu0 %v3406_v63, %s9120_s22  ;;  %v3551_v63 = vmul.f32 %v3550_v7, %v7509_v5  ;;  %v3511_v38 = vsel %vm9322_vm7, %v3508_v27, %v3510_v17  ;;  %vm9355_vm7 = vmmov %vm9294_vm0 }
 0xa2e   : > { %v7768_v19 = vpop.permute.xlu0 %2920  ;;  %v7770_v41 = vpop.permute.xlu1 %2918  ;;  %v3557_v9 = vrot.slane %v3551_v63, 2 }
 0xa2f   : > { %9310 = vst [vmem:[#allocation32_spill] sm:$0xff] %v7768_v19  ;;  %9311 = vst [vmem:[#allocation33_spill] sm:$0xff] %v7770_v41 }
 0xa30   : > { %3428 = vrot.lane.b32.xlu1 %v3425_v2, %s9120_s22  ;;  %3430 = vrot.lane.b32.xlu0 %v3427_v12, %s9120_s22  ;;  %v3534_v2 = vsel %vm9325_vm1, %v3532_v61, %v3533_v22  ;;  %v3536_v12 = vsel %vm9326_vm8, %v3533_v22, %v3535_v50  ;;  %v3559_v27 = vsel %vm9329_vm10, %v3557_v9, %v3558_v1  ;;  %v3583_v61 = vrot.slane %v3577_v0, 2  ;;  %vm9358_vm1 = vmmov %vm9294_vm0 }
 0xa31   : > { %v3602_v22 = vmul.f32 %v3600_v11, %v7506_v37  ;;  %v3625_v0 = vstv %s5373_s20  ;;  %vm9361_vm8 = vmmov %vm9294_vm0  ;;  %s5385_s20 = sld [smem:[#allocation7 + $0xe3]] }
 0xa32   : > { %v7778_v39 = vpop.permute.xlu0 %2938  ;;  %v7780_v8 = vpop.permute.xlu1 %2922  ;;  %v3586_v9 = vsel %vm9336_vm14, %v3583_v61, %v3585_v42  ;;  %v3627_v44 = vmul.f32 %v3625_v0, %v7491_v34  ;;  %vm9364_vm10 = vmmov %vm9294_vm0 }
 0xa33   : > { %9314 = vst [vmem:[#allocation29_spill] sm:$0xff] %v7778_v39  ;;  %9315 = vst [vmem:[#allocation40_spill] sm:$0xff] %v7780_v8 }
 0xa34   : > { %3487 = vrot.lane.b32.xlu1 %v3484_v21, %s5695_s11  ;;  %3489 = vrot.lane.b32.xlu0 %v3486_v3, %s5695_s11  ;;  %vm9370_vm14 = vmmov %vm9294_vm0 }
 0xa36   : > { %v7787_v28 = vpop.permute.xlu0 %2942  ;;  %v7789_v52 = vpop.permute.xlu1 %2940 }
 0xa37   : > { %9317 = vst [vmem:[#allocation27_spill] sm:$0xff] %v7787_v28  ;;  %9318 = vst [vmem:[#allocation34_spill] sm:$0xff] %v7789_v52 }
 0xa38   : > { %3491 = vrot.lane.b32.xlu1 %v3485_v58, %s5695_s11  ;;  %3512 = vrot.lane.b32.xlu0 %v3509_v51, %s5695_s11  ;;  %v3553_v58 = vmul.f32 %v3550_v7, %v7569_v33  ;;  %v3601_v7 = vmul.f32 %v3600_v11, %v7509_v5 }
 0xa3a   : > { %v7797_v16 = vpop.permute.xlu0 %2960  ;;  %v7799_v25 = vpop.permute.xlu1 %2958  ;;  %v3560_v51 = vrot.slane %v3553_v58, 2  ;;  %v3607_v58 = vrot.slane %v3601_v7, 2  ;;  %v3610_v7 = vrot.slane %v3603_v14, 2 }
 0xa3b   : > { %9320 = vst [vmem:[#allocation35_spill] sm:$0xff] %v7797_v16  ;;  %9321 = vst [vmem:[#allocation31_spill] sm:$0xff] %v7799_v25 }
 0xa3c   : > { %3514 = vrot.lane.b32.xlu1 %v3511_v38, %s5695_s11  ;;  %3516 = vrot.lane.b32.xlu0 %v3510_v17, %s5695_s11  ;;  %v3561_v63 = vsel %vm9332_vm12, %v3558_v1, %v3560_v51  ;;  %v3582_v38 = vrot.slane %v3576_v53, 2  ;;  %v3608_v1 = vrot.slane %v3602_v22, 2  ;;  %vm9365_vm12 = vmmov %vm9294_vm0 }
 0xa3e   : > { %v7806_v29 = vpop.permute.xlu0 %2978  ;;  %v7808_v10 = vpop.permute.xlu1 %2962 }
 0xa3f   : > { %9323 = vst [vmem:[#allocation19_spill] sm:$0xff] %v7806_v29  ;;  %9324 = vst [vmem:[#allocation44_spill] sm:$0xff] %v7808_v10 }
 0xa40   : > { %3537 = vrot.lane.b32.xlu1 %v3534_v2, %s9124_s28  ;;  %3539 = vrot.lane.b32.xlu0 %v3536_v12, %s9124_s28  ;;  %v3584_v12 = vsel %vm9335_vm13, %v3582_v38, %v3583_v61  ;;  %v3628_v38 = vmul.f32 %v3625_v0, %v7560_v6  ;;  %v3650_v61 = vstv %s5374_s18  ;;  %vm9368_vm13 = vmmov %vm9294_vm0  ;;  %s5386_s18 = sld [smem:[#allocation7 + $0x114]] }
 0xa41   : > { %v3652_v13 = vmul.f32 %v3650_v61, %v7506_v37 }
 0xa42   : > { %v7815_v21 = vpop.permute.xlu0 %2982  ;;  %v7817_v3 = vpop.permute.xlu1 %2980 }
 0xa43   : > { %9327 = vst [vmem:[#allocation20_spill] sm:$0xff] %v7815_v21  ;;  %9328 = vst [vmem:[#allocation42_spill] sm:$0xff] %v7817_v3 }
 0xa44   : > { %3541 = vrot.lane.b32.xlu1 %v3535_v50, %s9124_s28  ;;  %3562 = vrot.lane.b32.xlu0 %v3559_v27, %s9124_s28 }
 0xa46   : > { %v7825_v17 = vpop.permute.xlu0 %3000  ;;  %v7827_v36 = vpop.permute.xlu1 %2998 }
 0xa47   : > { %9330 = vst [vmem:[#allocation22_spill] sm:$0xff] %v7825_v17  ;;  %9331 = vst [vmem:[#allocation17_spill] sm:$0xff] %v7827_v36 }
 0xa48   : > { %3564 = vrot.lane.b32.xlu1 %v3561_v63, %s9124_s28  ;;  %3566 = vrot.lane.b32.xlu0 %v3560_v51, %s9124_s28  ;;  %v3609_v51 = vsel %vm9339_vm15, %v3607_v58, %v3608_v1  ;;  %v3626_v63 = vmul.f32 %v3625_v0, %v7494_v57  ;;  %v3633_v58 = vrot.slane %v3627_v44, 2  ;;  %v3653_v44 = vmul.f32 %v3650_v61, %v7569_v33  ;;  %vm9427_vm15 = vmmov %vm9294_vm0 }
 0xa4a   : > { %v7834_v50 = vpop.permute.xlu0 %3018  ;;  %v7836_v2 = vpop.permute.xlu1 %3002  ;;  %v3632_v4 = vrot.slane %v3626_v63, 2  ;;  %v3675_v63 = vstv %s5375_s17  ;;  %s5387_s17 = sld [smem:[#allocation7 + $0xe4]] }
 0xa4b   : > { %9333 = vst [vmem:[#allocation21_spill] sm:$0xff] %v7834_v50  ;;  %9334 = vst [vmem:[#allocation18_spill] sm:$0xff] %v7836_v2  ;;  %v3676_v23 = vmul.f32 %v3675_v63, %v7494_v57 }
 0xa4c   : > { %3587 = vrot.lane.b32.xlu1 %v3584_v12, %s5697_s6  ;;  %3589 = vrot.lane.b32.xlu0 %v3586_v9, %s5697_s6  ;;  %v3651_v12 = vmul.f32 %v3650_v61, %v7509_v5  ;;  %v3611_v9 = vsel %vm9342_vm2, %v3608_v1, %v3610_v7  ;;  %v3634_v30 = vsel %vm9346_vm4, %v3632_v4, %v3633_v58  ;;  %v3658_v1 = vrot.slane %v3652_v13, 2  ;;  %vm9428_vm2 = vmmov %vm9294_vm0 }
 0xa4d   : > { %v3660_v4 = vrot.slane %v3653_v44, 2  ;;  %vm9431_vm4 = vmmov %vm9294_vm0 }
 0xa4e   : > { %v7843_v27 = vpop.permute.xlu0 %3022  ;;  %v7845_v53 = vpop.permute.xlu1 %3020  ;;  %v3657_v43 = vrot.slane %v3651_v12, 2 }
 0xa4f   : > { %9337 = vst [vmem:[#allocation24_spill] sm:$0xff] %v7843_v27  ;;  %9338 = vst [vmem:[#allocation23_spill] sm:$0xff] %v7845_v53  ;;  %v3727_v53 = vmul.f32 %v3725_v60, %v7491_v34 }
 0xa50   : > { %3612 = vrot.lane.b32.xlu0 %v3609_v51, %s5697_s6  ;;  %3591 = vrot.lane.b32.xlu1 %v3585_v42, %s5697_s6  ;;  %v3635_v42 = vrot.slane %v3628_v38, 2  ;;  %v3659_v31 = vsel %vm9349_vm5, %v3657_v43, %v3658_v1  ;;  %vm9435_vm5 = vmmov %vm9294_vm0 }
 0xa52   : > { %v7853_v11 = vpop.permute.xlu0 %3040  ;;  %v7855_v22 = vpop.permute.xlu1 %3038  ;;  %v3636_v51 = vsel %vm9345_vm3, %v3633_v58, %v3635_v42  ;;  %v3700_v58 = vstv %s5376_s25  ;;  %s5388_s25 = sld [smem:[#allocation7 + $0x115]]  ;;  %vm9430_vm3 = vmmov %vm9294_vm0 }
 0xa53   : > { %9340 = vst [vmem:[#allocation41_spill] sm:$0xff] %v7853_v11  ;;  %9341 = vst [vmem:[#allocation45_spill] sm:$0xff] %v7855_v22  ;;  %v3701_v43 = vmul.f32 %v3700_v58, %v7509_v5 }
 0xa54   : > { %3616 = vrot.lane.b32.xlu0 %v3610_v7, %s5697_s6  ;;  %3614 = vrot.lane.b32.xlu1 %v3611_v9, %s5697_s6  ;;  %v3677_v9 = vmul.f32 %v3675_v63, %v7491_v34 }
 0xa56   : > { %v7862_v14 = vpop.permute.xlu0 %3058  ;;  %v7864_v0 = vpop.permute.xlu1 %3042  ;;  %v3683_v12 = vrot.slane %v3677_v9, 2 }
 0xa57   : > { %9343 = vst [vmem:[#allocation46_spill] sm:$0xff] %v7862_v14  ;;  %9344 = vst [vmem:[#allocation47_spill] sm:$0xff] %v7864_v0 }
 0xa58   : > { %3639 = vrot.lane.b32.xlu0 %v3636_v51, %s9126_s10  ;;  %3637 = vrot.lane.b32.xlu1 %v3634_v30, %s9126_s10  ;;  %v3678_v30 = vmul.f32 %v3675_v63, %v7560_v6  ;;  %v3661_v51 = vsel %vm9294_vm0, %v3658_v1, %v3660_v4  ;;  %v3707_v1 = vrot.slane %v3701_v43, 2  ;;  %v3733_v43 = vrot.slane %v3727_v53, 2 }
 0xa5a   : > { %v7871_v7 = vpop.permute.xlu0 %3062  ;;  %v7873_v38 = vpop.permute.xlu1 %3060 }
 0xa5b   : > { %9347 = vst [vmem:[#allocation48_spill] sm:$0xff] %v7871_v7  ;;  %9348 = vst [vmem:[#allocation49_spill] sm:$0xff] %v7873_v38  ;;  %v3682_v38 = vrot.slane %v3676_v23, 2  ;;  %v3702_v7 = vmul.f32 %v3700_v58, %v7506_v37 }
 0xa5c   : > { %3662 = vrot.lane.b32.xlu0 %v3659_v31, %s9126_s10  ;;  %3641 = vrot.lane.b32.xlu1 %v3635_v42, %s9126_s10  ;;  %v3685_v31 = vrot.slane %v3678_v30, 2 }
 0xa5d   : > { %v3684_v9 = vsel %vm9355_vm7, %v3682_v38, %v3683_v12  ;;  %v3708_v23 = vrot.slane %v3702_v7, 2  ;;  %v3728_v38 = vmul.f32 %v3725_v60, %v7560_v6  ;;  %vm9439_vm7 = vmmov %vm9294_vm0 }
 0xa5e   : > { %v7881_v13 = vpop.permute.xlu0 %3080  ;;  %v7883_v61 = vpop.permute.xlu1 %3078  ;;  %v3686_v63 = vsel %vm9354_vm6, %v3683_v12, %v3685_v31  ;;  %vm9437_vm6 = vmmov %vm9294_vm0 }
 0xa5f   : > { %9350 = vst [vmem:[#allocation50_spill] sm:$0xff] %v7881_v13  ;;  %9351 = vst [vmem:[#allocation51_spill] sm:$0xff] %v7883_v61  ;;  %v3709_v54 = vsel %vm9358_vm1, %v3707_v1, %v3708_v23  ;;  %v3977_v13 = vstv %s5389_s4  ;;  %s8115_s4 = sld [smem:[#allocation8 + $0x2]] }
 0xa60   : > { %3666 = vrot.lane.b32.xlu0 %v3660_v4, %s9126_s10  ;;  %3664 = vrot.lane.b32.xlu1 %v3661_v51, %s9126_s10  ;;  %v3703_v4 = vmul.f32 %v3700_v58, %v7569_v33 }
 0xa62   : > { %v7890_v42 = vpop.permute.xlu0 %3098  ;;  %v7892_v44 = vpop.permute.xlu1 %3082  ;;  %v3710_v7 = vrot.slane %v3703_v4, 2 }
 0xa63   : > { %9352 = vst [vmem:[#allocation52_spill] sm:$0xff] %v7890_v42  ;;  %9353 = vst [vmem:[#allocation53_spill] sm:$0xff] %v7892_v44  ;;  %v3726_v44 = vmul.f32 %v3725_v60, %v7494_v57  ;;  %v3809_v42 = vstv %s5381_s26  ;;  %s5391_s26 = sld [smem:[#allocation7 + $0xe6]] }
 0xa64   : > { %3689 = vrot.lane.b32.xlu0 %v3686_v63, %s9122_s8  ;;  %3687 = vrot.lane.b32.xlu1 %v3684_v9, %s9122_s8  ;;  %v3750_v63 = vstv %s5378_s5  ;;  %v3711_v9 = vsel %vm9361_vm8, %v3708_v23, %v3710_v7  ;;  %s5390_s5 = sld [smem:[#allocation7 + $0x116]] }
 0xa65   : > { %v3751_v1 = vmul.f32 %v3750_v63, %v7509_v5 }
 0xa66   : > { %v7899_v51 = vpop.permute.xlu0 %3102  ;;  %v7901_v30 = vpop.permute.xlu1 %3100 }
 0xa67   : > { %9356 = vst [vmem:[#allocation54_spill] sm:$0xff] %v7899_v51  ;;  %9357 = vst [vmem:[#allocation55_spill] sm:$0xff] %v7901_v30  ;;  %v3732_v30 = vrot.slane %v3726_v44, 2  ;;  %v3752_v51 = vmul.f32 %v3750_v63, %v7506_v37  ;;  %v3757_v23 = vrot.slane %v3751_v1, 2 }
 0xa68   : > { %3712 = vrot.lane.b32.xlu0 %v3709_v54, %s9122_s8  ;;  %3691 = vrot.lane.b32.xlu1 %v3685_v31, %s9122_s8  ;;  %v3735_v54 = vrot.slane %v3728_v38, 2 }
 0xa69   : > { %v3734_v4 = vsel %vm9365_vm12, %v3732_v30, %v3733_v43  ;;  %v3758_v44 = vrot.slane %v3752_v51, 2  ;;  %v3810_v30 = vmul.f32 %v3809_v42, %v7494_v57  ;;  %v3812_v51 = vmul.f32 %v3809_v42, %v7560_v6 }
 0xa6a   : > { %v7909_v12 = vpop.permute.xlu0 %3120  ;;  %v7911_v58 = vpop.permute.xlu1 %3118  ;;  %v3736_v53 = vsel %vm9364_vm10, %v3733_v43, %v3735_v54  ;;  %vm4981_vm12 = vcmask 261120  }
 0xa6b   : > { %9359 = vst [vmem:[#allocation56_spill] sm:$0xff] %v7909_v12  ;;  %9360 = vst [vmem:[#allocation57_spill] sm:$0xff] %v7911_v58 }
 0xa6c   : > { %3716 = vrot.lane.b32.xlu0 %v3710_v7, %s9122_s8  ;;  %3714 = vrot.lane.b32.xlu1 %v3711_v9, %s9122_s8  ;;  %v3753_v7 = vmul.f32 %v3750_v63, %v7569_v33 }
 0xa6e   : > { %v7918_v60 = vpop.permute.xlu0 %3138  ;;  %v7920_v31 = vpop.permute.xlu1 %3122  ;;  %v3760_v43 = vrot.slane %v3753_v7, 2 }
 0xa6f   : > { %9362 = vst [vmem:[#allocation58_spill] sm:$0xff] %v7918_v60  ;;  %9363 = vst [vmem:[#allocation59_spill] sm:$0xff] %v7920_v31  ;;  %v3811_v31 = vmul.f32 %v3809_v42, %v7491_v34  ;;  %v3759_v60 = vsel %vm9368_vm13, %v3757_v23, %v3758_v44  ;;  %v3819_v42 = vrot.slane %v3812_v51, 4  ;;  %vm4983_vm13 = vcmask 392192  }
 0xa70   : > { %3739 = vrot.lane.b32.xlu0 %v3736_v53, %s9120_s22  ;;  %3737 = vrot.lane.b32.xlu1 %v3734_v4, %s9120_s22  ;;  %v3830_v4 = vstv %s5382_s23  ;;  %s5392_s23 = sld [smem:[#allocation7 + $0x117]] }
 0xa71   : > { %v3817_v53 = vrot.slane %v3811_v31, 4  ;;  %v3832_v23 = vmul.f32 %v3830_v4, %v7506_v37  ;;  %v3831_v27 = vmul.f32 %v3830_v4, %v7509_v5 }
 0xa72   : > { %v7927_v38 = vpop.permute.xlu0 %3142  ;;  %v7929_v9 = vpop.permute.xlu1 %3140 }
 0xa73   : > { %9366 = vst [vmem:[#allocation60_spill] sm:$0xff] %v7927_v38  ;;  %9367 = vst [vmem:[#allocation61_spill] sm:$0xff] %v7929_v9  ;;  %v3761_v9 = vsel %vm9370_vm14, %v3758_v44, %v3760_v43  ;;  %v3816_v38 = vrot.slane %v3810_v30, 4  ;;  %v3820_v44 = vsel %vm688_vm11, %v3817_v53, %v3819_v42  ;;  %v3838_v58 = vrot.slane %v3832_v23, 4 }
 0xa74   : > { %3762 = vrot.lane.b32.xlu0 %v3759_v60, %s9120_s22  ;;  %3741 = vrot.lane.b32.xlu1 %v3735_v54, %s9120_s22  ;;  %v3833_v54 = vmul.f32 %v3830_v4, %v7569_v33  ;;  %v3851_v60 = vstv %s5383_s27  ;;  %v3837_v12 = vrot.slane %v3831_v27, 4  ;;  %v3872_v4 = vstv %s5384_s30  ;;  %s5395_s27 = sld [smem:[#allocation7 + $0xe8]] }
 0xa75   : > { %v3853_v30 = vmul.f32 %v3851_v60, %v7491_v34  ;;  %s5396_s30 = sld [smem:[#allocation7 + $0x119]]  ;;  %vm4985_vm14 = vcmask 523264  }
 0xa76   : > { %v7937_v63 = vpop.permute.xlu0 %3199  ;;  %v7939_v1 = vpop.permute.xlu1 %3197  ;;  %v3840_v51 = vrot.slane %v3833_v54, 4  ;;  %v3875_v54 = vmul.f32 %v3872_v4, %v7569_v33 }
 0xa77   : > { %9369 = vst [vmem:[#allocation62_spill] sm:$0xff] %v7939_v1  ;;  %v3818_v1 = vsel %vm688_vm11, %v3816_v38, %v3817_v53  ;;  %v3859_v3 = vrot.slane %v3853_v30, 4  ;;  %v3874_v38 = vmul.f32 %v3872_v4, %v7506_v37  ;;  %v3839_v53 = vsel %vm688_vm11, %v3837_v12, %v3838_v58 }
 0xa78   : > { %3766 = vrot.lane.b32.xlu0 %v3760_v43, %s9120_s22  ;;  %3764 = vrot.lane.b32.xlu1 %v3761_v9, %s9120_s22  ;;  %v3852_v43 = vmul.f32 %v3851_v60, %v7494_v57  ;;  %v3854_v9 = vmul.f32 %v3851_v60, %v7560_v6  ;;  %v3841_v27 = vsel %vm688_vm11, %v3838_v58, %v3840_v51  ;;  %v3893_v60 = vstv %s5385_s20  ;;  %s5397_s20 = sld [smem:[#allocation7 + $0xe9]] }
 0xa79   : > { %v3895_v12 = vmul.f32 %v3893_v60, %v7491_v34 }
 0xa7a   : > { %v7947_v7 = vpop.permute.xlu0 %3220  ;;  %v7949_v31 = vpop.permute.xlu1 %3218  ;;  %v3858_v23 = vrot.slane %v3852_v43, 4  ;;  %v3880_v43 = vrot.slane %v3874_v38, 4 }
 0xa7b   : > { %9371 = vst [vmem:[#allocation63_spill] sm:$0xff] %v7949_v31  ;;  %v3901_v14 = vrot.slane %v3895_v12, 4 }
 0xa7c   : > { %3823 = vrot.lane.b32.xlu0 %v3820_v44, %s5695_s11  ;;  %3821 = vrot.lane.b32.xlu1 %v3818_v1, %s5695_s11  ;;  %v3873_v44 = vmul.f32 %v3872_v4, %v7509_v5  ;;  %v3861_v1 = vrot.slane %v3854_v9, 4  ;;  %v3860_v58 = vsel %vm688_vm11, %v3858_v23, %v3859_v3  ;;  %v3896_v9 = vmul.f32 %v3893_v60, %v7560_v6 }
 0xa7d   : > { %v3882_v4 = vrot.slane %v3875_v54, 4 }
 0xa7e   : > { %v7958_v31 = vpop.permute.xlu0 %3241  ;;  %v7960_v42 = vpop.permute.xlu1 %3239  ;;  %v3862_v51 = vsel %vm688_vm11, %v3859_v3, %v3861_v1  ;;  %v3879_v0 = vrot.slane %v3873_v44, 4  ;;  %v3903_v54 = vrot.slane %v3896_v9, 4 }
 0xa7f   : > { %9372 = vst [vmem:[#allocation64_spill] sm:$0xff] %v7960_v42  ;;  %v3883_v38 = vsel %vm688_vm11, %v3880_v43, %v3882_v4 }
 0xa80   : > { %3844 = vrot.lane.b32.xlu0 %v3841_v27, %s5695_s11  ;;  %3842 = vrot.lane.b32.xlu1 %v3839_v53, %s5695_s11  ;;  %v3894_v27 = vmul.f32 %v3893_v60, %v7494_v57  ;;  %v3914_v53 = vstv %s5386_s18  ;;  %v3881_v23 = vsel %vm688_vm11, %v3879_v0, %v3880_v43  ;;  %s5398_s18 = sld [smem:[#allocation7 + $0x11a]] }
 0xa81   : > { %v3916_v3 = vmul.f32 %v3914_v53, %v7506_v37  ;;  %v3917_v60 = vmul.f32 %v3914_v53, %v7569_v33 }
 0xa82   : > { %v7969_v42 = vpop.permute.xlu0 %3262  ;;  %v7971_v30 = vpop.permute.xlu1 %3260  ;;  %v3900_v44 = vrot.slane %v3894_v27, 4 }
 0xa83   : > { %9373 = vst [vmem:[#allocation65_spill] sm:$0xff] %v7971_v30  ;;  %v3922_v43 = vrot.slane %v3916_v3, 4 }
 0xa84   : > { %3865 = vrot.lane.b32.xlu0 %v3862_v51, %s9124_s28  ;;  %3863 = vrot.lane.b32.xlu1 %v3860_v58, %s9124_s28  ;;  %v3915_v51 = vmul.f32 %v3914_v53, %v7509_v5  ;;  %v3935_v58 = vstv %s5387_s17  ;;  %v3902_v0 = vsel %vm688_vm11, %v3900_v44, %v3901_v14  ;;  %v3924_v53 = vrot.slane %v3917_v60, 4  ;;  %s5399_s17 = sld [smem:[#allocation7 + $0xea]] }
 0xa85   : > { %v3937_v4 = vmul.f32 %v3935_v58, %v7491_v34  ;;  %v3938_v9 = vmul.f32 %v3935_v58, %v7560_v6 }
 0xa86   : > { %v7980_v30 = vpop.permute.xlu0 %3283  ;;  %v7982_v1 = vpop.permute.xlu1 %3281  ;;  %v3921_v27 = vrot.slane %v3915_v51, 4  ;;  %v3925_v3 = vsel %vm688_vm11, %v3922_v43, %v3924_v53 }
 0xa87   : > { %9374 = vst [vmem:[#allocation66_spill] sm:$0xff] %v7982_v1  ;;  %v3904_v1 = vsel %vm688_vm11, %v3901_v14, %v3903_v54  ;;  %v3943_v61 = vrot.slane %v3937_v4, 4  ;;  %v3945_v60 = vrot.slane %v3938_v9, 4 }
 0xa88   : > { %3886 = vrot.lane.b32.xlu0 %v3883_v38, %s9124_s28  ;;  %3884 = vrot.lane.b32.xlu1 %v3881_v23, %s9124_s28  ;;  %v3936_v38 = vmul.f32 %v3935_v58, %v7494_v57  ;;  %v3956_v23 = vstv %s5388_s25  ;;  %v3923_v44 = vsel %vm688_vm11, %v3921_v27, %v3922_v43  ;;  %s5400_s25 = sld [smem:[#allocation7 + $0x11b]] }
 0xa89   : > { %v3958_v14 = vmul.f32 %v3956_v23, %v7506_v37  ;;  %v3959_v58 = vmul.f32 %v3956_v23, %v7569_v33 }
 0xa8a   : > { %v7991_v21 = vpop.permute.xlu0 %3304  ;;  %v7993_v12 = vpop.permute.xlu1 %3302  ;;  %v3942_v51 = vrot.slane %v3936_v38, 4  ;;  %v3979_v38 = vmul.f32 %v3977_v13, %v7491_v34 }
 0xa8b   : > { %9375 = vst [vmem:[#allocation67_spill] sm:$0xff] %v7993_v12  ;;  %v3964_v53 = vrot.slane %v3958_v14, 4  ;;  %v3966_v9 = vrot.slane %v3959_v58, 4 }
 0xa8c   : > { %3907 = vrot.lane.b32.xlu0 %v3904_v1, %s5697_s6  ;;  %3905 = vrot.lane.b32.xlu1 %v3902_v0, %s5697_s6  ;;  %v3957_v1 = vmul.f32 %v3956_v23, %v7509_v5  ;;  %v3944_v43 = vsel %vm688_vm11, %v3942_v51, %v3943_v61  ;;  %v3980_v23 = vmul.f32 %v3977_v13, %v7560_v6 }
 0xa8e   : > { %v8002_v12 = vpop.permute.xlu0 %3325  ;;  %v8004_v54 = vpop.permute.xlu1 %3323  ;;  %v3963_v27 = vrot.slane %v3957_v1, 4  ;;  %v3967_v1 = vsel %vm688_vm11, %v3964_v53, %v3966_v9 }
 0xa8f   : > { %9376 = vst [vmem:[#allocation68_spill] sm:$0xff] %v8004_v54  ;;  %v3946_v54 = vsel %vm688_vm11, %v3943_v61, %v3945_v60 }
 0xa90   : > { %3928 = vrot.lane.b32.xlu0 %v3925_v3, %s5697_s6  ;;  %3926 = vrot.lane.b32.xlu1 %v3923_v44, %s5697_s6  ;;  %v3978_v3 = vmul.f32 %v3977_v13, %v7494_v57  ;;  %v3998_v44 = vstv %s5390_s5  ;;  %v3965_v60 = vsel %vm688_vm11, %v3963_v27, %v3964_v53  ;;  %v3987_v13 = vrot.slane %v3980_v23, 4  ;;  %s8122_s5 = sld [smem:[#allocation8 + $0x3]] }
 0xa91   : > { %v4000_v61 = vmul.f32 %v3998_v44, %v7506_v37  ;;  %v3999_v51 = vmul.f32 %v3998_v44, %v7509_v5  ;;  %v4001_v58 = vmul.f32 %v3998_v44, %v7569_v33 }
 0xa92   : > { %v8013_v0 = vpop.permute.xlu0 %3346  ;;  %v8015_v4 = vpop.permute.xlu1 %3344  ;;  %v3984_v52 = vrot.slane %v3978_v3, 4 }
 0xa93   : > { %9377 = vst [vmem:[#allocation69_spill] sm:$0xff] %v8015_v4  ;;  %v4005_v3 = vrot.slane %v3999_v51, 4  ;;  %v4008_v44 = vrot.slane %v4001_v58, 4 }
 0xa94   : > { %3949 = vrot.lane.b32.xlu0 %v3946_v54, %s9126_s10  ;;  %3947 = vrot.lane.b32.xlu1 %v3944_v43, %s9126_s10  ;;  %v3985_v54 = vrot.slane %v3979_v38, 4  ;;  %v4019_v43 = vstv %s5391_s26  ;;  %v4006_v38 = vrot.slane %v4000_v61, 4  ;;  %s8126_s26 = sld [smem:[#allocation7 + $0xcb]] }
 0xa95   : > { %v4021_v50 = vmul.f32 %v4019_v43, %v7491_v34  ;;  %v4020_v9 = vmul.f32 %v4019_v43, %v7494_v57  ;;  %v4022_v23 = vmul.f32 %v4019_v43, %v7560_v6  ;;  %v4099_v43 = vstv %s5395_s27  ;;  %s5401_s27 = sld [smem:[#allocation7 + $0xeb]] }
 0xa96   : > { %v8024_v4 = vpop.permute.xlu0 %3367  ;;  %v8026_v14 = vpop.permute.xlu1 %3365  ;;  %v3988_v53 = vsel %vm688_vm11, %v3985_v54, %v3987_v13  ;;  %v3986_v27 = vsel %vm688_vm11, %v3984_v52, %v3985_v54  ;;  %v4009_v52 = vsel %vm688_vm11, %v4006_v38, %v4008_v44  ;;  %v4007_v61 = vsel %vm688_vm11, %v4005_v3, %v4006_v38 }
 0xa97   : > { %9378 = vst [vmem:[#allocation70_spill] sm:$0xff] %v8024_v4  ;;  %9379 = vst [vmem:[#allocation71_spill] sm:$0xff] %v8026_v14  ;;  %v4027_v28 = vrot.slane %v4021_v50, 4  ;;  %v4026_v22 = vrot.slane %v4020_v9, 4  ;;  %v4029_v54 = vrot.slane %v4022_v23, 4  ;;  %v4101_v38 = vmul.f32 %v4099_v43, %v7491_v34 }
 0xa98   : > { %3970 = vrot.lane.b32.xlu0 %v3967_v1, %s9126_s10  ;;  %3968 = vrot.lane.b32.xlu1 %v3965_v60, %s9126_s10  ;;  %v4040_v1 = vstv %s5392_s23  ;;  %s5409_s23 = sld [smem:[#allocation7 + $0xef]] }
 0xa99   : > { %v4042_v13 = vmul.f32 %v4040_v1, %v7506_v37  ;;  %v4041_v51 = vmul.f32 %v4040_v1, %v7509_v5  ;;  %v4043_v58 = vmul.f32 %v4040_v1, %v7569_v33  ;;  %v4030_v9 = vsel %vm688_vm11, %v4027_v28, %v4029_v54  ;;  %s8174_s10 = sld [smem:[#allocation7 + $0xf5]] }
 0xa9a   : > { %v8035_v14 = vpop.permute.xlu0 %3388  ;;  %v8037_v2 = vpop.permute.xlu1 %3386  ;;  %v4102_v1 = vmul.f32 %v4099_v43, %v7560_v6 }
 0xa9b   : > { %9380 = vst [vmem:[#allocation72_spill] sm:$0xff] %v8037_v2  ;;  %v4048_v44 = vrot.slane %v4042_v13, 4  ;;  %v4047_v3 = vrot.slane %v4041_v51, 4  ;;  %v4050_v23 = vrot.slane %v4043_v58, 4  ;;  %v4107_v13 = vrot.slane %v4101_v38, 4 }
 0xa9c   : > { %3991 = vrot.lane.b32.xlu0 %v3988_v53, %s9122_s8  ;;  %3989 = vrot.lane.b32.xlu1 %v3986_v27, %s9122_s8  ;;  %v4028_v27 = vsel %vm688_vm11, %v4026_v22, %v4027_v28  ;;  %v4124_v51 = vstv %s5396_s30  ;;  %s8135_s30 = sld [smem:[#allocation7 + $0xfc]] }
 0xa9d   : > { %v4051_v22 = vsel %vm688_vm11, %v4048_v44, %v4050_v23  ;;  %v4125_v58 = vmul.f32 %v4124_v51, %v7509_v5 }
 0xa9e   : > { %v8046_v60 = vpop.permute.xlu0 %3409  ;;  %v8048_v2 = vpop.permute.xlu1 %3407 }
 0xa9f   : > { %9381 = vst [vmem:[#allocation73_spill] sm:$0xff] %v8046_v60  ;;  %9382 = vst [vmem:[#allocation74_spill] sm:$0xff] %v8048_v2  ;;  %v5702_v2 = vmov 1  }
 0xaa0   : > { %4012 = vrot.lane.b32.xlu0 %v4009_v52, %s9122_s8  ;;  %4010 = vrot.lane.b32.xlu1 %v4007_v61, %s9122_s8  ;;  %v4100_v52 = vmul.f32 %v4099_v43, %v7494_v57  ;;  %v5701_v61 = vmov 9   ;;  %v4126_v43 = vmul.f32 %v4124_v51, %v7506_v37  ;;  %s8161_s8 = sld [smem:[#allocation7 + $0xf0]] }
 0xaa1   : > { %5531 = vset.pattern.permute.xlu0 %v5701_v61  ;;  %5530 = vset.pattern.permute.xlu1 %v5702_v2  ;;  %v4109_v2 = vrot.slane %v4102_v1, 4 }
 0xaa2   : > { %v8057_v53 = vpop.permute.xlu0 %3430  ;;  %v8059_v50 = vpop.permute.xlu1 %3428  ;;  %v8203_v36 = vstv %s8135_s30  ;;  %s8429_s30 = sld [smem:[#allocation7 + $0xf2]] }
 0xaa3   : > { %9383 = vst [vmem:[#allocation75_spill] sm:$0xff] %v8057_v53  ;;  %9384 = vst [vmem:[#allocation76_spill] sm:$0xff] %v8059_v50  ;;  %v4106_v50 = vrot.slane %v4100_v52, 4  ;;  %v4110_v38 = vsel %vm688_vm11, %v4107_v13, %v4109_v2  ;;  %v4127_v52 = vmul.f32 %v4124_v51, %v7569_v33 }
 0xaa4   : > { %4033 = vrot.lane.b32.xlu0 %v4030_v9, %s9120_s22  ;;  %4031 = vrot.lane.b32.xlu1 %v4028_v27, %s9120_s22  ;;  %v4049_v9 = vsel %vm688_vm11, %v4047_v3, %v4048_v44  ;;  %v4131_v44 = vrot.slane %v4125_v58, 4  ;;  %v4132_v3 = vrot.slane %v4126_v43, 4  ;;  %v4174_v58 = vstv %s5398_s18  ;;  %s8144_s18 = sld [smem:[#allocation7 + $0x120]] }
 0xaa5   : > { %v4108_v23 = vsel %vm688_vm11, %v4106_v50, %v4107_v13  ;;  %v4134_v50 = vrot.slane %v4127_v52, 4 }
 0xaa6   : > { %v8068_v54 = vpop.permute.xlu0 %3489  ;;  %v8070_v28 = vpop.permute.xlu1 %3487 }
 0xaa7   : > { %9385 = vst [vmem:[#allocation77_spill] sm:$0xff] %v8068_v54  ;;  %9386 = vst [vmem:[#allocation78_spill] sm:$0xff] %v8070_v28 }
 0xaa8   : > { %4054 = vrot.lane.b32.xlu0 %v4051_v22, %s9120_s22  ;;  %4052 = vrot.lane.b32.xlu1 %v4049_v9, %s9120_s22  ;;  %v4149_v9 = vstv %s5397_s20  ;;  %s8140_s20 = sld [smem:[#allocation7 + $0xc4]] }
 0xaa9   : > { %v4150_v28 = vmul.f32 %v4149_v9, %v7494_v57  ;;  %v4152_v13 = vmul.f32 %v4149_v9, %v7560_v6  ;;  %s8156_s22 = sld [smem:[#allocation7 + $0xd9]] }
 0xaaa   : > { %v8078_v27 = vpop.permute.xlu0 %3512  ;;  %v8080_v61 = vpop.permute.xlu1 %3491 }
 0xaab   : > { %9387 = vst [vmem:[#allocation79_spill] sm:$0xff] %v8078_v27  ;;  %9388 = vst [vmem:[#allocation80_spill] sm:$0xff] %v8080_v61  ;;  %v4133_v27 = vsel %vm688_vm11, %v4131_v44, %v4132_v3  ;;  %v4151_v61 = vmul.f32 %v4149_v9, %v7491_v34 }
 0xaac   : > { %4113 = vrot.lane.b32.xlu0 %v4110_v38, %s5695_s11  ;;  %4111 = vrot.lane.b32.xlu1 %v4108_v23, %s5695_s11  ;;  %v4175_v38 = vmul.f32 %v4174_v58, %v7509_v5  ;;  %v4135_v23 = vsel %vm688_vm11, %v4132_v3, %v4134_v50 }
 0xaad   : > { %v4157_v44 = vrot.slane %v4151_v61, 4  ;;  %v4199_v61 = vstv %s5399_s17  ;;  %s8146_s17 = sld [smem:[#allocation7 + $0xd2]] }
 0xaae   : > { %v8087_v22 = vpop.permute.xlu0 %3516  ;;  %v8089_v1 = vpop.permute.xlu1 %3514 }
 0xaaf   : > { %9389 = vst [vmem:[#allocation81_spill] sm:$0xff] %v8087_v22  ;;  %9390 = vst [vmem:[#allocation82_spill] sm:$0xff] %v8089_v1  ;;  %v4156_v1 = vrot.slane %v4150_v28, 4  ;;  %v4176_v22 = vmul.f32 %v4174_v58, %v7506_v37  ;;  %v4177_v28 = vmul.f32 %v4174_v58, %v7569_v33 }
 0xab0   : > { %4136 = vrot.lane.b32.xlu0 %v4133_v27, %s5695_s11  ;;  %4115 = vrot.lane.b32.xlu1 %v4109_v2, %s5695_s11  ;;  %v4159_v2 = vrot.slane %v4152_v13, 4 }
 0xab1   : > { %v4182_v3 = vrot.slane %v4176_v22, 4  ;;  %v4200_v22 = vmul.f32 %v4199_v61, %v7494_v57  ;;  %v4184_v58 = vrot.slane %v4177_v28, 4 }
 0xab2   : > { %v8097_v51 = vpop.permute.xlu0 %3539  ;;  %v8099_v43 = vpop.permute.xlu1 %3537  ;;  %v4160_v9 = vsel %vm688_vm11, %v4157_v44, %v4159_v2 }
 0xab3   : > { %9391 = vst [vmem:[#allocation83_spill] sm:$0xff] %v8097_v51  ;;  %9392 = vst [vmem:[#allocation84_spill] sm:$0xff] %v8099_v43  ;;  %v4158_v43 = vsel %vm688_vm11, %v4156_v1, %v4157_v44  ;;  %v4181_v51 = vrot.slane %v4175_v38, 4 }
 0xab4   : > { %4140 = vrot.lane.b32.xlu0 %v4134_v50, %s5695_s11  ;;  %4138 = vrot.lane.b32.xlu1 %v4135_v23, %s5695_s11  ;;  %v4201_v23 = vmul.f32 %v4199_v61, %v7491_v34 }
 0xab5   : > { %v4183_v1 = vsel %vm688_vm11, %v4181_v51, %v4182_v3  ;;  %v4185_v51 = vsel %vm688_vm11, %v4182_v3, %v4184_v58 }
 0xab6   : > { %v8106_v27 = vpop.permute.xlu0 %3562  ;;  %v8108_v52 = vpop.permute.xlu1 %3541 }
 0xab7   : > { %9393 = vst [vmem:[#allocation85_spill] sm:$0xff] %v8106_v27  ;;  %9394 = vst [vmem:[#allocation86_spill] sm:$0xff] %v8108_v52 }
 0xab8   : > { %4163 = vrot.lane.b32.xlu0 %v4160_v9, %s9124_s28  ;;  %4161 = vrot.lane.b32.xlu1 %v4158_v43, %s9124_s28  ;;  %v4202_v43 = vmul.f32 %v4199_v61, %v7560_v6  ;;  %v4207_v9 = vrot.slane %v4201_v23, 4 }
 0xaba   : > { %v8117_v50 = vpop.permute.xlu0 %3566  ;;  %v8119_v13 = vpop.permute.xlu1 %3564  ;;  %v4209_v28 = vrot.slane %v4202_v43, 4 }
 0xabb   : > { %9395 = vst [vmem:[#allocation87_spill] sm:$0xff] %v8117_v50  ;;  %9396 = vst [vmem:[#allocation88_spill] sm:$0xff] %v8119_v13  ;;  %v4224_v13 = vstv %s5400_s25  ;;  %v4206_v50 = vrot.slane %v4200_v22, 4  ;;  %s8152_s25 = sld [smem:[#allocation7 + $0x103]] }
 0xabc   : > { %4186 = vrot.lane.b32.xlu0 %v4183_v1, %s9124_s28  ;;  %4165 = vrot.lane.b32.xlu1 %v4159_v2, %s9124_s28  ;;  %v4225_v1 = vmul.f32 %v4224_v13, %v7509_v5  ;;  %v4226_v2 = vmul.f32 %v4224_v13, %v7506_v37  ;;  %v4210_v3 = vsel %vm688_vm11, %v4207_v9, %v4209_v28 }
 0xabd   : > { %v4208_v22 = vsel %vm688_vm11, %v4206_v50, %v4207_v9  ;;  %v4227_v43 = vmul.f32 %v4224_v13, %v7569_v33 }
 0xabe   : > { %v8131_v38 = vpop.permute.xlu0 %3589  ;;  %v8133_v44 = vpop.permute.xlu1 %3587  ;;  %v4231_v52 = vrot.slane %v4225_v1, 4 }
 0xabf   : > { %9397 = vst [vmem:[#allocation89_spill] sm:$0xff] %v8131_v38  ;;  %9398 = vst [vmem:[#allocation90_spill] sm:$0xff] %v8133_v44  ;;  %v4234_v27 = vrot.slane %v4227_v43, 4  ;;  %v4475_v43 = vstv %s8161_s8  ;;  %s9417_s8 = smov 126  }
 0xac0   : > { %4190 = vrot.lane.b32.xlu0 %v4184_v58, %s9124_s28  ;;  %4188 = vrot.lane.b32.xlu1 %v4185_v51, %s9124_s28  ;;  %v4232_v58 = vrot.slane %v4226_v2, 4  ;;  %v4433_v51 = vstv %s5409_s23  ;;  %s8163_s28 = sld [smem:[#allocation7 + $0x10a]]  ;;  %v8171_v2 = vstv %s5401_s27  ;;  %v8233_v56 = vmul.f32 %v4475_v43, %v7491_v34 }
 0xac1   : > { %v4434_v9 = vmul.f32 %v4433_v51, %v7494_v57  ;;  %v4435_v1 = vmul.f32 %v4433_v51, %v7491_v34  ;;  %s8185_s23 = sld [smem:[#allocation7 + $0x121]]  ;;  %v4478_v19 = vmul.f32 %v4475_v43, %v7560_v6 }
 0xac2   : > { %v8148_v61 = vpop.permute.xlu0 %3612  ;;  %v8150_v23 = vpop.permute.xlu1 %3591  ;;  %v4233_v13 = vsel %vm688_vm11, %v4231_v52, %v4232_v58  ;;  %v4454_v52 = vstv %s8144_s18  ;;  %v4235_v10 = vsel %vm688_vm11, %v4232_v58, %v4234_v27  ;;  %v8214_v58 = vstv %s8152_s25  ;;  %s8367_s27 = sld [smem:[#allocation7 + $0x11d]]  ;;  %s9442_s25 = smov 123  }
 0xac3   : > { %9399 = vst [vmem:[#allocation91_spill] sm:$0xff] %v8148_v61  ;;  %9400 = vst [vmem:[#allocation92_spill] sm:$0xff] %v8150_v23  ;;  %v8189_v61 = vstv %s8126_s26  ;;  %v4455_v11 = vmul.f32 %v4454_v52, %v7509_v5  ;;  %v4483_v60 = vrot.slane %v8233_v56, 6  ;;  %s8324_s26 = sld [smem:[#allocation7 + $0x111]] }
 0xac4   : > { %4213 = vrot.lane.b32.xlu0 %v4210_v3, %s5697_s6  ;;  %4211 = vrot.lane.b32.xlu1 %v4208_v22, %s5697_s6  ;;  %v4721_v3 = vstv %s8115_s4  ;;  %v4250_v22 = vmul.f32 %v8171_v2, %v7494_v57  ;;  %s8208_s4 = sld [smem:[#allocation7 + $0xf1]] }
 0xac5   : > { %v4722_v44 = vmul.f32 %v4721_v3, %v7480_v18  ;;  %v4456_v18 = vmul.f32 %v4454_v52, %v7506_v37  ;;  %v2715_v3 = vstv %s8140_s20  ;;  %s8461_s20 = sld [smem:[#allocation7 + $0x123]] }
 0xac6   : > { %v8165_v23 = vpop.permute.xlu0 %3616  ;;  %v8167_v50 = vpop.permute.xlu1 %3614  ;;  %v4256_v29 = vrot.slane %v4250_v22, 4  ;;  %v8217_v22 = vstv %s8156_s22  ;;  %s9408_s22 = smov 124   ;;  %s8473_s18 = sld [smem:[#allocation7 + $0xed]] }
 0xac7   : > { %9401 = vst [vmem:[#allocation93_spill] sm:$0xff] %v8165_v23  ;;  %9402 = vst [vmem:[#allocation94_spill] sm:$0xff] %v8167_v50  ;;  %v8181_v23 = vmul.f32 %v8171_v2, %v7491_v34  ;;  %v4724_v50 = vstv %s8122_s5  ;;  %v4462_v16 = vrot.slane %v4456_v18, 6  ;;  %s8315_s5 = sld [smem:[#allocation7 + $0x122]] }
 0xac8   : > { %4236 = vrot.lane.b32.xlu0 %v4233_v13, %s5697_s6  ;;  %4215 = vrot.lane.b32.xlu1 %v4209_v28, %s5697_s6  ;;  %v4440_v13 = vrot.slane %v4434_v9, 6  ;;  %v4441_v28 = vrot.slane %v4435_v1, 6  ;;  %v4436_v9 = vmul.f32 %v4433_v51, %v7560_v6  ;;  %v8211_v1 = vstv %s8146_s17  ;;  %s8510_s17 = sld [smem:[#allocation7 + $0x11e]] }
 0xac9   : > { %v4476_v51 = vmul.f32 %v4475_v43, %v7494_v57  ;;  %v9407_v39 = vrot.slane %v8181_v23, 4 }
 0xaca   : > { %v8193_v38 = vpop.permute.xlu0 %3639  ;;  %v8195_v54 = vpop.permute.xlu1 %3637  ;;  %v4442_v8 = vsel %vm684_vm9, %v4440_v13, %v4441_v28  ;;  %v8282_v56 = vstv %s8208_s4  ;;  %s8549_s4 = sld [smem:[#allocation7 + $0xf4]] }
 0xacb   : > { %9403 = vst [vmem:[#allocation95_spill] sm:$0xff] %v8193_v38  ;;  %9404 = vst [vmem:[#allocation96_spill] sm:$0xff] %v8195_v54  ;;  %v4725_v54 = vadd.f32 %v4724_v50, %v4722_v44  ;;  %v8221_v38 = vstv %s8163_s28  ;;  %v4258_v25 = vsel %vm688_vm11, %v4256_v29, %v9407_v39  ;;  %v2721_v44 = vstv %s8174_s10  ;;  %s8243_s28 = sld [smem:[#allocation7 + $0x11c]] }
 0xacc   : > { %4240 = vrot.lane.b32.xlu0 %v4234_v27, %s5697_s6  ;;  %4238 = vrot.lane.b32.xlu1 %v4235_v10, %s5697_s6  ;;  %v4461_v10 = vrot.slane %v4455_v11, 6  ;;  %v8238_v50 = vmul.f32 %v8211_v1, %v7560_v6  ;;  %v4443_v11 = vrot.slane %v4436_v9, 6  ;;  %v8247_v39 = vmul.f32 %v8214_v58, %v7569_v33  ;;  %s8284_s10 = sld [smem:[#allocation7 + $0xe0]] }
 0xacd   : > { %v8251_v29 = vmul.f32 %v8217_v22, %v7560_v6  ;;  %v8255_v13 = vmul.f32 %v8221_v38, %v7569_v33  ;;  %v4482_v41 = vrot.slane %v4476_v51, 6  ;;  %v8306_v51 = vmul.f32 %v2721_v44, %v7509_v5 }
 0xace   : > { %v8223_v17 = vpop.permute.xlu0 %3662  ;;  %v8225_v27 = vpop.permute.xlu1 %3641  ;;  %v4463_v32 = vsel %vm684_vm9, %v4461_v10, %v4462_v16 }
 0xacf   : > { %9405 = vst [vmem:[#allocation97_spill] sm:$0xff] %v8223_v17  ;;  %9406 = vst [vmem:[#allocation98_spill] sm:$0xff] %v8225_v27  ;;  %v4496_v27 = vstv %s8185_s23  ;;  %v4444_v17 = vsel %vm684_vm9, %v4441_v28, %v4443_v11  ;;  %v4484_v43 = vsel %vm684_vm9, %v4482_v41, %v4483_v60  ;;  %v3152_v41 = vmul.f32 %v8211_v1, %v7494_v57  ;;  %s8533_s23 = sld [smem:[#allocation7 + $0x124]] }
 0xad0   : > { %4445 = vrot.lane.b32.xlu0 %v4442_v8, %s5695_s11  ;;  %4261 = vrot.lane.b32.xlu1 %v4258_v25, %s9408_s22  ;;  %v4457_v8 = vmul.f32 %v4454_v52, %v7569_v33  ;;  %v4726_v25 = vmul.f32 0.5, %v4725_v54  ;;  %v4497_v48 = vmul.f32 %v4496_v27, %v7509_v5  ;;  %v8268_v53 = vmul.f32 %v4496_v27, %v7506_v37 }
 0xad1   : > { %v8272_v54 = vmul.f32 %v8189_v61, %v7560_v6  ;;  %v8276_v52 = vmul.f32 %v8203_v36, %v7569_v33  ;;  %9415 = vst [vmem:[#allocation105_spill] sm:$0xff] %v8306_v51 }
 0xad2   : > { %v8258_v18 = vpop.permute.xlu0 %3666  ;;  %v8260_v9 = vpop.permute.xlu1 %3664  ;;  %v4464_v11 = vrot.slane %v4457_v8, 6  ;;  %5547 = vtanh.f32 %v4726_v25  ;;  %v4504_v8 = vrot.slane %v8268_v53, 6  ;;  %v8303_v25 = vmul.f32 %v2721_v44, %v7506_v37 }
 0xad3   : > { %9409 = vst [vmem:[#allocation99_spill] sm:$0xff] %v8258_v18  ;;  %9410 = vst [vmem:[#allocation100_spill] sm:$0xff] %v8260_v9  ;;  %v8290_v9 = vmul.f32 %v2715_v3, %v7491_v34  ;;  %v4485_v18 = vrot.slane %v4478_v19, 6  ;;  %v4274_v19 = vstv %s8243_s28  ;;  %v4499_v53 = vmul.f32 %v4496_v27, %v7569_v33  ;;  %s8572_s28 = sld [smem:[#allocation7 + $0xe7]] }
 0xad4   : > { %9411 = vst [vmem:[#allocation101_spill] sm:$0xff] %v8272_v54  ;;  %9412 = vst [vmem:[#allocation102_spill] sm:$0xff] %v8276_v52  ;;  %4466 = vrot.lane.b32.xlu0 %v4463_v32, %s5695_s11  ;;  %4447 = vrot.lane.b32.xlu1 %v4444_v17, %s5695_s11  ;;  %v8293_v32 = vmul.f32 %v2715_v3, %v7494_v57  ;;  %v4465_v10 = vsel %vm684_vm9, %v4462_v16, %v4464_v11  ;;  %v4503_v52 = vrot.slane %v4497_v48, 6 }
 0xad5   : > { %v8310_v3 = vmul.f32 %v8189_v61, %v7491_v34  ;;  %v3153_v48 = vmul.f32 %v8211_v1, %v7491_v34  ;;  %v4252_v16 = vmul.f32 %v8171_v2, %v7560_v6  ;;  %v3170_v44 = vmul.f32 %v8214_v58, %v7506_v37 }
 0xad6   : > { %v8295_v17 = vpop.permute.xlu0 %3689  ;;  %v8297_v28 = vpop.permute.xlu1 %3687  ;;  %v3438_v1 = vmul.f32 %v8217_v22, %v7494_v57  ;;  %v4505_v27 = vsel %vm684_vm9, %v4503_v52, %v4504_v8  ;;  %v8342_v54 = vmul.f32 %v4274_v19, %v7506_v37  ;;  %v8356_v52 = vmul.f32 %v8203_v36, %v7506_v37 }
 0xad7   : > { %9413 = vst [vmem:[#allocation103_spill] sm:$0xff] %v8295_v17  ;;  %9414 = vst [vmem:[#allocation104_spill] sm:$0xff] %v8297_v28  ;;  %v4486_v28 = vsel %vm684_vm9, %v4483_v60, %v4485_v18  ;;  %v4275_v17 = vmul.f32 %v4274_v19, %v7509_v5  ;;  %v8361_v60 = vstv %s8284_s10  ;;  %v3159_v18 = vrot.slane %v3153_v48, 2  ;;  %s8605_s10 = sld [smem:[#allocation7 + $0x125]] }
 0xad8   : > { %9416 = vst [vmem:[#allocation106_spill] sm:$0xff] %v8310_v3  ;;  %4487 = vrot.lane.b32.xlu0 %v4484_v43, %s9417_s8  ;;  %4468 = vrot.lane.b32.xlu1 %v4465_v10, %s5695_s11  ;;  %v3169_v43 = vmul.f32 %v8214_v58, %v7509_v5  ;;  %v3439_v10 = vmul.f32 %v8217_v22, %v7491_v34  ;;  %s8344_s11 = sld [smem:[#allocation7 + $0xec]]  ;;  %9422 = vst [vmem:[#allocation111_spill] sm:$0xff] %v8361_v60  ;;  %v4506_v3 = vrot.slane %v4499_v53, 6 }
 0xad9   : > { %v8348_v58 = vmul.f32 %v8189_v61, %v7494_v57  ;;  %v8352_v22 = vmul.f32 %v8203_v36, %v7509_v5  ;;  %v3176_v61 = vrot.slane %v3170_v44, 2  ;;  %v3444_v4 = vrot.slane %v3438_v1, 2 }
 0xada   : > { %v8334_v11 = vpop.permute.xlu0 %3712  ;;  %v8336_v2 = vpop.permute.xlu1 %3691  ;;  %v3445_v51 = vrot.slane %v3439_v10, 2  ;;  %v4507_v48 = vsel %vm684_vm9, %v4504_v8, %v4506_v3  ;;  %v3457_v53 = vmul.f32 %v8221_v38, %v7509_v5  ;;  %v3458_v44 = vmul.f32 %v8221_v38, %v7506_v37 }
 0xadb   : > { %9418 = vst [vmem:[#allocation107_spill] sm:$0xff] %v8334_v11  ;;  %9419 = vst [vmem:[#allocation108_spill] sm:$0xff] %v8336_v2  ;;  %v3158_v2 = vrot.slane %v3152_v41, 2  ;;  %v4259_v11 = vrot.slane %v4252_v16, 4  ;;  %v4281_v41 = vrot.slane %v4275_v17, 4  ;;  %v4282_v16 = vrot.slane %v8342_v54, 4 }
 0xadc   : > { %9420 = vst [vmem:[#allocation109_spill] sm:$0xff] %v8348_v58  ;;  %9421 = vst [vmem:[#allocation110_spill] sm:$0xff] %v8352_v22  ;;  %4508 = vrot.lane.b32.xlu0 %v4505_v27, %s9417_s8  ;;  %4489 = vrot.lane.b32.xlu1 %v4486_v28, %s9417_s8  ;;  %v3175_v58 = vrot.slane %v3169_v43, 2  ;;  %v9425_v28 = vrot.slane %v8181_v23, 4  ;;  %v4519_v23 = vmul.f32 %v8282_v56, %v7491_v34  ;;  %v4538_v43 = vstv %s8315_s5  ;;  %s8869_s5 = sld [smem:[#allocation7 + $0xee]] }
 0xadd   : > { %v9426_v8 = vrot.slane %v8238_v50, 2  ;;  %v8389_v54 = vsel %vm9428_vm2, %v3158_v2, %v3159_v18  ;;  %v4277_v3 = vmul.f32 %v4274_v19, %v7569_v33  ;;  %v8393_v38 = vstv %s8324_s26  ;;  %s5408_s26 = sld [smem:[#allocation7 + $0x11f]] }
 0xade   : > { %v8363_v22 = vpop.permute.xlu0 %3716  ;;  %v8365_v36 = vpop.permute.xlu1 %3714  ;;  %v4260_v27 = vsel %vm688_vm11, %v9425_v28, %v4259_v11  ;;  %v9429_v10 = vrot.slane %v8247_v39, 2  ;;  %v8401_v28 = vsel %vm9431_vm4, %v3175_v58, %v3176_v61  ;;  %v4520_v2 = vmul.f32 %v8282_v56, %v7560_v6 }
 0xadf   : > { %9423 = vst [vmem:[#allocation112_spill] sm:$0xff] %v8363_v22  ;;  %9424 = vst [vmem:[#allocation113_spill] sm:$0xff] %v8365_v36  ;;  %v8386_v17 = vsel %vm9427_vm15, %v3159_v18, %v9426_v8  ;;  %v4518_v19 = vmul.f32 %v8282_v56, %v7494_v57  ;;  %v8411_v18 = vpop.eup %5547  ;;  %v9434_v39 = vrot.slane %v8251_v29, 2  ;;  %v8419_v58 = vsel %vm9294_vm0, %v3444_v4, %v3445_v51 }
 0xae0   : > { %4263 = vrot.lane.b32.xlu0 %v4260_v27, %s9408_s22  ;;  %4510 = vrot.lane.b32.xlu1 %v4507_v48, %s9417_s8  ;;  %v8398_v1 = vsel %vm9430_vm3, %v3176_v61, %v9429_v10  ;;  %v4283_v61 = vsel %vm688_vm11, %v4281_v41, %v4282_v16  ;;  %v4299_v8 = vstv %s8344_s11  ;;  %v3463_v10 = vrot.slane %v3457_v53, 2  ;;  %s8662_s8 = sld [smem:[#allocation7 + $0x118]] }
 0xae1   : > { %v8416_v48 = vsel %vm9435_vm5, %v3445_v51, %v9434_v39  ;;  %v3464_v36 = vrot.slane %v3458_v44, 2  ;;  %v4525_v56 = vrot.slane %v4519_v23, 6  ;;  %v8427_v22 = vmul.f32 %v8361_v60, %v7491_v34  ;;  %s8959_s11 = sld [smem:[#allocation8]] }
 0xae2   : > { %v8403_v27 = vpop.permute.xlu0 %3739  ;;  %v8405_v50 = vpop.permute.xlu1 %3737  ;;  %v2753_v4 = vadd.f32 %v7647_v62, %v8303_v25  ;;  %v4284_v51 = vrot.slane %v4277_v3, 4  ;;  %v3778_v41 = vmul.f32 %v8361_v60, %v7560_v6  ;;  %v4540_v53 = vmul.f32 %v4538_v43, %v7506_v37 }
 0xae3   : > { %9432 = vst [vmem:[#allocation114_spill] sm:$0xff] %v8403_v27  ;;  %9433 = vst [vmem:[#allocation115_spill] sm:$0xff] %v8405_v50  ;;  %v4524_v23 = vrot.slane %v4518_v19, 6  ;;  %v4324_v50 = vstv %s8367_s27  ;;  %v2739_v27 = vadd.f32 %v7636_v24, %v8290_v9  ;;  %v4541_v3 = vmul.f32 %v4538_v43, %v7569_v33  ;;  %s8962_s27 = sld [smem:[#allocation8 + $0x1]] }
 0xae4   : > { %4286 = vrot.lane.b32.xlu0 %v4283_v61, %s9408_s22  ;;  %4265 = vrot.lane.b32.xlu1 %v4259_v11, %s9408_s22  ;;  %v4527_v11 = vrot.slane %v4520_v2, 6  ;;  %v4539_v61 = vmul.f32 %v4538_v43, %v7509_v5  ;;  %v2781_v62 = vadd.f32 %v7669_v35, %v2753_v4  ;;  %v4285_v25 = vsel %vm688_vm11, %v4282_v16, %v4284_v51 }
 0xae5   : > { %v8448_v60 = vsel %vm9437_vm6, %v3463_v10, %v3464_v36  ;;  %v9129_v35 = vrot.slane %v8427_v22, 4  ;;  %v2767_v9 = vadd.f32 %v7658_v49, %v2739_v27  ;;  %v3785_v43 = vrot.slane %v3778_v41, 4 }
 0xae6   : > { %v8436_v44 = vpop.permute.xlu0 %3762  ;;  %v8438_v39 = vpop.permute.xlu1 %3741  ;;  %v4528_v24 = vsel %vm684_vm9, %v4525_v56, %v4527_v11  ;;  %v2809_v16 = vadd.f32 %v7691_v47, %v2781_v62  ;;  %v4546_v19 = vrot.slane %v4540_v53, 6  ;;  %v4526_v4 = vsel %vm684_vm9, %v4524_v23, %v4525_v56 }
 0xae7   : > { %9436 = vst [vmem:[#allocation116_spill] sm:$0xff] %v8436_v44  ;;  %v9438_v44 = vrot.slane %v8255_v13, 2  ;;  %v4301_v49 = vmul.f32 %v4299_v8, %v7491_v34  ;;  %v2795_v47 = vadd.f32 %v7680_v55, %v2767_v9  ;;  %v4548_v41 = vrot.slane %v4541_v3, 6 }
 0xae8   : > { %4290 = vrot.lane.b32.xlu0 %v4284_v51, %s9408_s22  ;;  %4288 = vrot.lane.b32.xlu1 %v4285_v25, %s9408_s22  ;;  %v4545_v51 = vrot.slane %v4539_v61, 6  ;;  %v2837_v27 = vadd.f32 %v7713_v46, %v2809_v16  ;;  %v4300_v53 = vmul.f32 %v4299_v8, %v7494_v57  ;;  %v8483_v56 = vsel %vm688_vm11, %v9129_v35, %v3785_v43 }
 0xae9   : > { %v8453_v2 = vsel %vm9439_vm7, %v3464_v36, %v9438_v44  ;;  %v8470_v44 = vmul.f32 %v8393_v38, %v7506_v37  ;;  %v3795_v11 = vmul.f32 %v8393_v38, %v7569_v33  ;;  %v4302_v23 = vmul.f32 %v4299_v8, %v7560_v6 }
 0xaea   : > { %v8463_v10 = vpop.permute.xlu0 %3766  ;;  %v8465_v36 = vpop.permute.xlu1 %3764  ;;  %v4559_v55 = vstv %s8429_s30  ;;  %v2823_v46 = vadd.f32 %v7702_v15, %v2795_v47  ;;  %v2865_v61 = vadd.f32 %v7735_v40, %v2837_v27  ;;  %v4549_v62 = vsel %vm684_vm9, %v4546_v19, %v4548_v41  ;;  %s5424_s30 = sld [smem:[#allocation8 + $0x4]] }
 0xaeb   : > { %v4325_v25 = vmul.f32 %v4324_v50, %v7509_v5  ;;  %v4547_v9 = vsel %vm684_vm9, %v4545_v51, %v4546_v19  ;;  %v4307_v43 = vrot.slane %v4301_v49, 4  ;;  %v4326_v8 = vmul.f32 %v4324_v50, %v7506_v37 }
 0xaec   : > { %4531 = vrot.lane.b32.xlu0 %v4528_v24, %s5697_s6  ;;  %4529 = vrot.lane.b32.xlu1 %v4526_v4, %s5697_s6  ;;  %v2851_v15 = vadd.f32 %v7724_v26, %v2823_v46  ;;  %v2893_v40 = vadd.f32 %v7757_v20, %v2865_v61  ;;  %v4306_v4 = vrot.slane %v4300_v53, 4  ;;  %v4561_v47 = vmul.f32 %v4559_v55, %v7491_v34 }
 0xaed   : > { %v3802_v27 = vrot.slane %v3795_v11, 4  ;;  %v4309_v19 = vrot.slane %v4302_v23, 4  ;;  %v4327_v51 = vmul.f32 %v4324_v50, %v7569_v33  ;;  %v4560_v49 = vmul.f32 %v4559_v55, %v7494_v57 }
 0xaee   : > { %v8493_v3 = vpop.permute.xlu0 %3823  ;;  %v8495_v24 = vpop.permute.xlu1 %3821  ;;  %v2879_v41 = vadd.f32 %v7746_v59, %v2851_v15  ;;  %v4331_v35 = vrot.slane %v4325_v25, 4  ;;  %v4562_v26 = vmul.f32 %v4559_v55, %v7560_v6  ;;  %v4580_v20 = vstv %s8461_s20  ;;  %s5425_s20 = sld [smem:[#allocation8 + $0x5]] }
 0xaef   : > { %9440 = vst [vmem:[#allocation117_spill] sm:$0xff] %v8495_v24  ;;  %v4310_v61 = vsel %vm688_vm11, %v4307_v43, %v4309_v19  ;;  %v4332_v11 = vrot.slane %v4326_v8, 4  ;;  %v4582_v23 = vmul.f32 %v4580_v20, %v7506_v37  ;;  %v4349_v50 = vstv %s8473_s18  ;;  %s9575_s18 = smov 16  }
 0xaf0   : > { %4552 = vrot.lane.b32.xlu0 %v4549_v62, %s5697_s6  ;;  %4550 = vrot.lane.b32.xlu1 %v4547_v9, %s5697_s6  ;;  %s8519_s6 = sld [smem:[#allocation7 + $0xf3]]  ;;  %v3183_v59 = vadd.f32 %v8398_v1, %v2893_v40  ;;  %v4308_v62 = vsel %vm688_vm11, %v4306_v4, %v4307_v43  ;;  %v4567_v55 = vrot.slane %v4561_v47, 6  ;;  %v4581_v25 = vmul.f32 %v4580_v20, %v7509_v5 }
 0xaf1   : > { %v4334_v9 = vrot.slane %v4327_v51, 4  ;;  %v4566_v15 = vrot.slane %v4560_v49, 6  ;;  %v4583_v8 = vmul.f32 %v4580_v20, %v7569_v33  ;;  %v4351_v16 = vmul.f32 %v4349_v50, %v7491_v34 }
 0xaf2   : > { %v8512_v53 = vpop.permute.xlu0 %3844  ;;  %v8514_v46 = vpop.permute.xlu1 %3842  ;;  %v3166_v24 = vadd.f32 %v8386_v17, %v2879_v41  ;;  %v4569_v1 = vrot.slane %v4562_v26, 6  ;;  %v8531_v43 = vmul.f32 %v4349_v50, %v7560_v6  ;;  %v9443_v40 = vrot.slane %v8470_v44, 4 }
 0xaf3   : > { %9441 = vst [vmem:[#allocation118_spill] sm:$0xff] %v8514_v46  ;;  %v3225_v46 = vadd.f32 %v7947_v7, %v3183_v59  ;;  %v4333_v49 = vsel %vm688_vm11, %v4331_v35, %v4332_v11  ;;  %v4335_v17 = vsel %vm688_vm11, %v4332_v11, %v4334_v9  ;;  %v4588_v7 = vrot.slane %v4582_v23, 6 }
 0xaf4   : > { %4313 = vrot.lane.b32.xlu0 %v4310_v61, %s9442_s25  ;;  %4311 = vrot.lane.b32.xlu1 %v4308_v62, %s9442_s25  ;;  %v8538_v4 = vsel %vm688_vm11, %v9443_v40, %v3802_v27  ;;  %v3204_v41 = vadd.f32 %v7937_v63, %v3166_v24  ;;  %v4570_v20 = vsel %vm684_vm9, %v4567_v55, %v4569_v1  ;;  %v4587_v61 = vrot.slane %v4581_v25, 6 }
 0xaf5   : > { %v3267_v26 = vadd.f32 %v7969_v42, %v3225_v46  ;;  %v4568_v35 = vsel %vm684_vm9, %v4566_v15, %v4567_v55  ;;  %v4590_v27 = vrot.slane %v4583_v8, 6  ;;  %v4357_v11 = vrot.slane %v4351_v16, 4 }
 0xaf6   : > { %v8540_v47 = vpop.permute.xlu0 %3865  ;;  %v8542_v51 = vpop.permute.xlu1 %3863  ;;  %v4350_v23 = vmul.f32 %v4349_v50, %v7494_v57  ;;  %v3246_v63 = vadd.f32 %v7958_v31, %v3204_v41  ;;  %v9130_v24 = vrot.slane %v8531_v43, 4  ;;  %v4374_v46 = vstv %s8510_s17  ;;  %s9576_s17 = smov 32  }
 0xaf7   : > { %9444 = vst [vmem:[#allocation119_spill] sm:$0xff] %v8542_v51  ;;  %v3309_v42 = vadd.f32 %v7991_v21, %v3267_v26  ;;  %v4591_v25 = vsel %vm684_vm9, %v4588_v7, %v4590_v27  ;;  %v4376_v55 = vmul.f32 %v4374_v46, %v7506_v37  ;;  %v4601_v16 = vstv %s8519_s6  ;;  %v9447_v27 = vld [vmem:[#allocation70_spill] sm:$0xff]  ;;  %s9577_s6 = smov 48  }
 0xaf8   : > { %4336 = vrot.lane.b32.xlu0 %v4333_v49, %s9442_s25  ;;  %4315 = vrot.lane.b32.xlu1 %v4309_v19, %s9442_s25  ;;  %v4375_v19 = vmul.f32 %v4374_v46, %v7509_v5  ;;  %v2738_v31 = vadd.f32 %v7638_v45, %v8293_v32  ;;  %v3288_v21 = vadd.f32 %v7980_v30, %v3246_v63  ;;  %v4356_v1 = vrot.slane %v4350_v23, 4  ;;  %v9448_v63 = vld [vmem:[#allocation75_spill] sm:$0xff] }
 0xaf9   : > { %v3351_v50 = vadd.f32 %v8013_v0, %v3309_v42  ;;  %v4589_v15 = vsel %vm684_vm9, %v4587_v61, %v4588_v7  ;;  %v4360_v8 = vsel %vm688_vm11, %v4357_v11, %v9130_v24  ;;  %v8580_v45 = vmul.f32 %v4374_v46, %v7569_v33 }
 0xafa   : > { %v8559_v59 = vpop.permute.xlu0 %3886  ;;  %v8561_v62 = vpop.permute.xlu1 %3884  ;;  %v4603_v30 = vmul.f32 %v4601_v16, %v7491_v34  ;;  %v3330_v0 = vadd.f32 %v8002_v12, %v3288_v21  ;;  %v4602_v40 = vmul.f32 %v4601_v16, %v7494_v57  ;;  %v4381_v7 = vrot.slane %v4375_v19, 4  ;;  %v9449_v21 = vld [vmem:[#allocation105_spill] sm:$0xff] }
 0xafb   : > { %9445 = vst [vmem:[#allocation120_spill] sm:$0xff] %v8561_v62  ;;  %v3393_v32 = vadd.f32 %v8035_v14, %v3351_v50  ;;  %v4382_v41 = vrot.slane %v4376_v55, 4  ;;  %v4604_v26 = vmul.f32 %v4601_v16, %v7560_v6  ;;  %v4643_v14 = vstv %s8549_s4  ;;  %v9450_v50 = vld [vmem:[#allocation43_spill] sm:$0xff]  ;;  %s9580_s4 = smov 96  }
 0xafc   : > { %4340 = vrot.lane.b32.xlu0 %v4334_v9, %s9442_s25  ;;  %4338 = vrot.lane.b32.xlu1 %v4335_v17, %s9442_s25  ;;  %v4622_v9 = vstv %s8533_s23  ;;  %v3372_v23 = vadd.f32 %v9447_v27, %v3330_v0  ;;  %v4358_v46 = vsel %vm688_vm11, %v4356_v1, %v4357_v11  ;;  %v8603_v16 = vmul.f32 %v4643_v14, %v7491_v34  ;;  %s9579_s23 = smov 80  }
 0xafd   : > { %v4624_v61 = vmul.f32 %v4622_v9, %v7506_v37  ;;  %v3435_v42 = vadd.f32 %v9448_v63, %v3393_v32  ;;  %v4623_v12 = vmul.f32 %v4622_v9, %v7509_v5  ;;  %v4625_v55 = vmul.f32 %v4622_v9, %v7569_v33  ;;  %v9451_v32 = vld [vmem:[#allocation73_spill] sm:$0xff] }
 0xafe   : > { %v8587_v49 = vpop.permute.xlu0 %3907  ;;  %v8589_v17 = vpop.permute.xlu1 %3905  ;;  %v2752_v0 = vadd.f32 %v9450_v50, %v9449_v21  ;;  %v3414_v27 = vadd.f32 %v9451_v32, %v3372_v23  ;;  %v4608_v63 = vrot.slane %v4602_v40, 6  ;;  %v4383_v11 = vsel %vm688_vm11, %v4381_v7, %v4382_v41 }
 0xaff   : > { %9446 = vst [vmem:[#allocation121_spill] sm:$0xff] %v8589_v17  ;;  %v4611_v1 = vrot.slane %v4604_v26, 6  ;;  %v4630_v9 = vrot.slane %v4624_v61, 6  ;;  %v4646_v19 = vmul.f32 %v4643_v14, %v7560_v6  ;;  %v3807_v17 = vadd.f32 %v8538_v4, %v3435_v42 }
 0xb00   : > { %4573 = vrot.lane.b32.xlu0 %v4570_v20, %s9408_s22  ;;  %4571 = vrot.lane.b32.xlu1 %v4568_v35, %s9408_s22  ;;  %v4609_v20 = vrot.slane %v4603_v30, 6  ;;  %v9452_v51 = vrot.slane %v8580_v45, 4  ;;  %v4629_v21 = vrot.slane %v4623_v12, 6  ;;  %v4061_v23 = vstv %s8572_s28  ;;  %s9581_s28 = smov 112  }
 0xb01   : > { %v4632_v30 = vrot.slane %v4625_v55, 6  ;;  %v4651_v40 = vrot.slane %v8603_v16, 6  ;;  %v4644_v7 = vmul.f32 %v4643_v14, %v7494_v57  ;;  %v4063_v26 = vmul.f32 %v4061_v23, %v7491_v34 }
 0xb02   : > { %v3929_v35 = vpop.permute.xlu0 %3928  ;;  %v8610_v24 = vpop.permute.xlu1 %3926  ;;  %v8618_v62 = vsel %vm688_vm11, %v4382_v41, %v9452_v51  ;;  %v3790_v4 = vadd.f32 %v8483_v56, %v3414_v27  ;;  %v3849_v61 = vadd.f32 %v8512_v53, %v3807_v17  ;;  %v8629_v51 = vsel %vm684_vm9, %v4609_v20, %v4611_v1  ;;  %v9454_v53 = vld [vmem:[#allocation15_spill] sm:$0xff] }
 0xb03   : > { %v8632_v41 = vsel %vm684_vm9, %v4608_v63, %v4609_v20  ;;  %v8637_v42 = vsel %vm684_vm9, %v4630_v9, %v4632_v30  ;;  %v4653_v12 = vrot.slane %v4646_v19, 6  ;;  %v8640_v14 = vmul.f32 %v4061_v23, %v7560_v6  ;;  %v9456_v63 = vld [vmem:[#allocation106_spill] sm:$0xff] }
 0xb04   : > { %4594 = vrot.lane.b32.xlu0 %v4591_v25, %s9408_s22  ;;  %4592 = vrot.lane.b32.xlu1 %v4589_v15, %s9408_s22  ;;  %v4062_v56 = vmul.f32 %v4061_v23, %v7494_v57  ;;  %v8644_v17 = vadd.f32 %v9454_v53, %v2738_v31  ;;  %v3828_v55 = vadd.f32 %v8493_v3, %v3790_v4  ;;  %s9455_s22 = smov 122   ;;  %v4650_v32 = vrot.slane %v4644_v7, 6  ;;  %v9457_v31 = vld [vmem:[#allocation32_spill] sm:$0xff]  ;;  %v9458_v23 = vld [vmem:[#allocation109_spill] sm:$0xff] }
 0xb05   : > { %v3891_v16 = vadd.f32 %v8559_v59, %v3849_v61  ;;  %v8649_v50 = vsel %vm684_vm9, %v4629_v21, %v4630_v9  ;;  %v8654_v19 = vsel %vm684_vm9, %v4651_v40, %v4653_v12  ;;  %v4069_v27 = vrot.slane %v4063_v26, 4  ;;  %v9459_v3 = vld [vmem:[#allocation33_spill] sm:$0xff]  ;;  %v9461_v12 = vld [vmem:[#allocation35_spill] sm:$0xff] }
 0xb06   : > { %v3950_v25 = vpop.permute.xlu0 %3949  ;;  %v8634_v15 = vpop.permute.xlu1 %3947  ;;  %v4664_v20 = vstv %s8605_s10  ;;  %v2928_v1 = vadd.f32 %v9457_v31, %v9456_v63  ;;  %v2927_v30 = vadd.f32 %v9459_v3, %v9458_v23  ;;  %v3870_v59 = vadd.f32 %v8540_v47, %v3828_v55  ;;  %v9462_v63 = vld [vmem:[#allocation31_spill] sm:$0xff]  ;;  %v9465_v3 = vld [vmem:[#allocation101_spill] sm:$0xff]  ;;  %s5432_s10 = sshll.u32 %s5759_s16, 7 }
 0xb07   : > { %9453 = vst [vmem:[#allocation70_spill] sm:$0xff] %v8634_v15  ;;  %v3933_v9 = vadd.f32 %v3929_v35, %v3891_v16  ;;  %v4068_v26 = vrot.slane %v4062_v56, 4  ;;  %v8669_v61 = vmul.f32 %v4664_v20, %v7506_v37  ;;  %v8675_v55 = vadd.f32 1.0, %v8411_v18  ;;  %v9464_v16 = vld [vmem:[#allocation29_spill] sm:$0xff] }
 0xb08   : > { %4363 = vrot.lane.b32.xlu0 %v4360_v8, %s9455_s22  ;;  %4361 = vrot.lane.b32.xlu1 %v4358_v46, %s9455_s22  ;;  %v9460_v8 = vld [vmem:[#allocation14_spill] sm:$0xff]  ;;  %v2968_v53 = vadd.f32 %v9461_v12, %v2928_v1  ;;  %v2967_v31 = vadd.f32 %v9462_v63, %v2927_v30  ;;  %v3912_v47 = vadd.f32 %v8587_v49, %v3870_v59  ;;  %v9467_v56 = vrot.slane %v8531_v43, 4  ;;  %v9469_v59 = vld [vmem:[#allocation17_spill] sm:$0xff]  ;;  %v9471_v63 = vld [vmem:[#allocation19_spill] sm:$0xff] }
 0xb09   : > { %v2780_v21 = vadd.f32 %v9460_v8, %v2752_v0  ;;  %v9463_v0 = vld [vmem:[#allocation110_spill] sm:$0xff]  ;;  %v9466_v8 = vld [vmem:[#allocation40_spill] sm:$0xff]  ;;  %v8686_v1 = vsel %vm684_vm9, %v4650_v32, %v4651_v40  ;;  %v4667_v40 = vmul.f32 %v4664_v20, %v7569_v33  ;;  %v8701_v32 = vmul.f32 %v4664_v20, %v7509_v5 }
 0xb0a   : > { %v3971_v46 = vpop.permute.xlu0 %3970  ;;  %v8665_v4 = vpop.permute.xlu1 %3968  ;;  %v2947_v23 = vadd.f32 %v9464_v16, %v9463_v0  ;;  %v2929_v7 = vadd.f32 %v9466_v8, %v9465_v3  ;;  %v9468_v49 = vld [vmem:[#allocation22_spill] sm:$0xff]  ;;  %v3007_v18 = vadd.f32 %v9469_v59, %v2967_v31  ;;  %v9475_v31 = vld [vmem:[#allocation45_spill] sm:$0xff]  ;;  %vm4987_vm15 = vcmask 654336  }
 0xb0b   : > { %v3975_v35 = vadd.f32 %v3971_v46, %v3933_v9  ;;  %v3008_v30 = vadd.f32 %v9468_v49, %v2968_v53  ;;  %v3954_v9 = vadd.f32 %v3950_v25, %v3912_v47  ;;  %v9470_v46 = vrot.slane %v8640_v14, 4  ;;  %v9474_v53 = vld [vmem:[#allocation41_spill] sm:$0xff]  ;;  %v9477_v49 = vld [vmem:[#allocation27_spill] sm:$0xff] }
 0xb0c   : > { %4386 = vrot.lane.b32.xlu0 %v4383_v11, %s9455_s22  ;;  %4365 = vrot.lane.b32.xlu1 %v9467_v56, %s9455_s22  ;;  %v2987_v0 = vadd.f32 %v9471_v63, %v2947_v23  ;;  %v9472_v11 = vld [vmem:[#allocation44_spill] sm:$0xff]  ;;  %v3047_v47 = vadd.f32 %v9475_v31, %v3007_v18  ;;  %v8706_v56 = vsel %vm688_vm11, %v4068_v26, %v4069_v27  ;;  %v9476_v23 = vld [vmem:[#allocation102_spill] sm:$0xff]  ;;  %v9478_v59 = vld [vmem:[#allocation21_spill] sm:$0xff]  ;;  %vm4989_vm2 = vcmask 785408  }
 0xb0d   : > { %v8693_v12 = vsel %vm688_vm11, %v4069_v27, %v9470_v46  ;;  %v2969_v16 = vadd.f32 %v9472_v11, %v2929_v7  ;;  %v3048_v25 = vadd.f32 %v9474_v53, %v3008_v30  ;;  %v2949_v7 = vadd.f32 %v9477_v49, %v9476_v23  ;;  %v9479_v63 = vld [vmem:[#allocation18_spill] sm:$0xff]  ;;  %v9486_v49 = vld [vmem:[#allocation47_spill] sm:$0xff] }
 0xb0e   : > { %v3992_v3 = vpop.permute.xlu0 %3991  ;;  %v8697_v43 = vpop.permute.xlu1 %3989  ;;  %v3027_v46 = vadd.f32 %v9478_v59, %v2987_v0  ;;  %v9481_v30 = vld [vmem:[#allocation34_spill] sm:$0xff]  ;;  %v4080_v53 = vstv %s8662_s8  ;;  %v9484_v0 = vld [vmem:[#allocation20_spill] sm:$0xff]  ;;  %vm4991_vm3 = vcmask 916480  }
 0xb0f   : > { %9473 = vst [vmem:[#allocation75_spill] sm:$0xff] %v8697_v43  ;;  %v3996_v8 = vadd.f32 %v3992_v3, %v3954_v9  ;;  %v3009_v11 = vadd.f32 %v9479_v63, %v2969_v16  ;;  %v9480_v43 = vrot.slane %v8580_v45, 4  ;;  %v2948_v27 = vadd.f32 %v9481_v30, %v8356_v52  ;;  %v9482_v26 = vld [vmem:[#allocation50_spill] sm:$0xff]  ;;  %v9483_v9 = vld [vmem:[#allocation51_spill] sm:$0xff]  ;;  %v9488_v52 = vld [vmem:[#allocation56_spill] sm:$0xff] }
 0xb10   : > { %4388 = vrot.lane.b32.xlu1 %v8618_v62, %s9455_s22  ;;  %v3088_v18 = vadd.f32 %v9482_v26, %v3048_v25  ;;  %v3087_v3 = vadd.f32 %v9483_v9, %v3047_v47  ;;  %v2989_v31 = vadd.f32 %v9484_v0, %v2949_v7  ;;  %v9485_v16 = vld [vmem:[#allocation46_spill] sm:$0xff]  ;;  %v8729_v62 = vmul.f32 %v4080_v53, %v7509_v5  ;;  %v9489_v25 = vld [vmem:[#allocation57_spill] sm:$0xff]  ;;  %v9490_v9 = vld [vmem:[#allocation24_spill] sm:$0xff] }
 0xb11   : > { %4390 = vrot.lane.b32.xlu0 %v9480_v43, %s9455_s22  ;;  %v3067_v23 = vadd.f32 %v9485_v16, %v3027_v46  ;;  %v3049_v45 = vadd.f32 %v9486_v49, %v3009_v11  ;;  %v9487_v63 = vld [vmem:[#allocation42_spill] sm:$0xff]  ;;  %v9491_v7 = vld [vmem:[#allocation52_spill] sm:$0xff]  ;;  %v9492_v46 = vld [vmem:[#allocation53_spill] sm:$0xff]  ;;  %v4674_v11 = vrot.slane %v4667_v40, 6 }
 0xb12   : > { %v4013_v43 = vpop.permute.xlu0 %4012  ;;  %v8726_v59 = vpop.permute.xlu1 %4010  ;;  %v2988_v20 = vadd.f32 %v9487_v63, %v2948_v27  ;;  %v3128_v30 = vadd.f32 %v9488_v52, %v3088_v18  ;;  %v3127_v26 = vadd.f32 %v9489_v25, %v3087_v3  ;;  %v3029_v15 = vadd.f32 %v9490_v9, %v2989_v31  ;;  %v9493_v27 = vld [vmem:[#allocation25_spill] sm:$0xff]  ;;  %v9494_v18 = vld [vmem:[#allocation23_spill] sm:$0xff]  ;;  %v9495_v31 = vld [vmem:[#allocation26_spill] sm:$0xff] }
 0xb13   : > { %v4017_v47 = vadd.f32 %v4013_v43, %v3975_v35  ;;  %v3107_v0 = vadd.f32 %v9491_v7, %v3067_v23  ;;  %v3089_v16 = vadd.f32 %v9492_v46, %v3049_v45  ;;  %v2794_v49 = vadd.f32 %v9493_v27, %v8644_v17  ;;  %v9496_v45 = vld [vmem:[#allocation48_spill] sm:$0xff]  ;;  %v9498_v25 = vld [vmem:[#allocation59_spill] sm:$0xff]  ;;  %v9499_v17 = vld [vmem:[#allocation49_spill] sm:$0xff] }
 0xb14   : > { %4613 = vrot.lane.b32.xlu1 %v8632_v41, %s9442_s25  ;;  %v3028_v63 = vadd.f32 %v9494_v18, %v2988_v20  ;;  %v8745_v35 = vmul.f32 %v4080_v53, %v7506_v37  ;;  %v8748_v3 = vmul.f32 %v4080_v53, %v7569_v33  ;;  %v2808_v23 = vadd.f32 %v9495_v31, %v2780_v21  ;;  %v9500_v53 = vld [vmem:[#allocation28_spill] sm:$0xff]  ;;  %v9501_v21 = vld [vmem:[#allocation54_spill] sm:$0xff] }
 0xb15   : > { %4615 = vrot.lane.b32.xlu0 %v8629_v51, %s9442_s25  ;;  %v3069_v43 = vadd.f32 %v9496_v45, %v3029_v15  ;;  %v9497_v51 = vld [vmem:[#allocation58_spill] sm:$0xff]  ;;  %v3129_v41 = vadd.f32 %v9498_v25, %v3089_v16  ;;  %v3453_v20 = vadd.f32 %v8416_v48, %v3128_v30  ;;  %v3452_v46 = vadd.f32 %v8419_v58, %v3127_v26  ;;  %v9503_v30 = vld [vmem:[#allocation36_spill] sm:$0xff]  ;;  %v9505_v16 = vld [vmem:[#allocation77_spill] sm:$0xff] }
 0xb16   : > { %v3147_v52 = vadd.f32 %v9497_v51, %v3107_v0  ;;  %v4034_v40 = vpop.permute.xlu0 %4033  ;;  %v8754_v9 = vpop.permute.xlu1 %4031  ;;  %v3068_v7 = vadd.f32 %v9499_v17, %v3028_v63  ;;  %v2836_v18 = vadd.f32 %v9500_v53, %v2808_v23  ;;  %v9502_v15 = vrot.slane %v8669_v61, 6  ;;  %v9506_v23 = vld [vmem:[#allocation78_spill] sm:$0xff] }
 0xb17   : > { %v8759_v27 = vadd.f32 %v4034_v40, %v3996_v8  ;;  %v3109_v31 = vadd.f32 %v9501_v21, %v3069_v43  ;;  %v4671_v48 = vrot.slane %v8701_v32, 6  ;;  %v2822_v58 = vadd.f32 %v9503_v30, %v2794_v49  ;;  %v9504_v8 = vld [vmem:[#allocation55_spill] sm:$0xff]  ;;  %v9507_v43 = vld [vmem:[#allocation38_spill] sm:$0xff]  ;;  %v9510_v32 = vld [vmem:[#allocation61_spill] sm:$0xff] }
 0xb18   : > { %4634 = vrot.lane.b32.xlu1 %v8649_v50, %s9442_s25  ;;  %v4675_v0 = vsel %vm684_vm9, %v9502_v15, %v4674_v11  ;;  %v3108_v26 = vadd.f32 %v9504_v8, %v3068_v7  ;;  %v3497_v63 = vadd.f32 %v9505_v16, %v3453_v20  ;;  %v3496_v45 = vadd.f32 %v9506_v23, %v3452_v46  ;;  %v9511_v21 = vld [vmem:[#allocation83_spill] sm:$0xff]  ;;  %v9512_v15 = vld [vmem:[#allocation84_spill] sm:$0xff]  ;;  %v9517_v16 = vld [vmem:[#allocation89_spill] sm:$0xff] }
 0xb19   : > { %4636 = vrot.lane.b32.xlu0 %v8637_v42, %s9442_s25  ;;  %v2864_v51 = vadd.f32 %v9507_v43, %v2836_v18  ;;  %v9508_v42 = vld [vmem:[#allocation60_spill] sm:$0xff]  ;;  %v3471_v50 = vadd.f32 %v8448_v60, %v3147_v52  ;;  %v9509_v40 = vrot.slane %v8251_v29, 2  ;;  %v8788_v46 = vmul.f32 0.5, %v8675_v55  ;;  %v9513_v18 = vld [vmem:[#allocation37_spill] sm:$0xff]  ;;  %v9514_v60 = vld [vmem:[#allocation79_spill] sm:$0xff]  ;;  %s9578_s25 = smov 64  }
 0xb1a   : > { %v3149_v25 = vadd.f32 %v9508_v42, %v3109_v31  ;;  %v4055_v11 = vpop.permute.xlu0 %4054  ;;  %v8780_v53 = vpop.permute.xlu1 %4052  ;;  %v3148_v49 = vadd.f32 %v9510_v32, %v3108_v26  ;;  %v3547_v7 = vadd.f32 %v9511_v21, %v3497_v63  ;;  %v3546_v20 = vadd.f32 %v9512_v15, %v3496_v45  ;;  %v9515_v29 = vld [vmem:[#allocation80_spill] sm:$0xff]  ;;  %v9516_v8 = vld [vmem:[#allocation39_spill] sm:$0xff]  ;;  %v9518_v63 = vld [vmem:[#allocation90_spill] sm:$0xff] }
 0xb1b   : > { %v3454_v17 = vadd.f32 %v9509_v40, %v3129_v41  ;;  %v8785_v30 = vadd.f32 %v4055_v11, %v4017_v47  ;;  %v2850_v31 = vadd.f32 %v9513_v18, %v2822_v58  ;;  %v3521_v52 = vadd.f32 %v9514_v60, %v3471_v50  ;;  %v9520_v45 = vld [vmem:[#allocation30_spill] sm:$0xff]  ;;  %v9522_v40 = vld [vmem:[#allocation85_spill] sm:$0xff]  ;;  %v9524_v21 = vld [vmem:[#allocation95_spill] sm:$0xff] }
 0xb1c   : > { %4655 = vrot.lane.b32.xlu1 %v8686_v1, %s9455_s22  ;;  %v2892_v26 = vadd.f32 %v9516_v8, %v2864_v51  ;;  %v3597_v47 = vadd.f32 %v9517_v16, %v3547_v7  ;;  %v3596_v23 = vadd.f32 %v9518_v63, %v3546_v20  ;;  %v9519_v55 = vrot.slane %v8669_v61, 6  ;;  %v9525_v15 = vld [vmem:[#allocation96_spill] sm:$0xff]  ;;  %v9532_v63 = vld [vmem:[#allocation87_spill] sm:$0xff] }
 0xb1d   : > { %v3498_v41 = vadd.f32 %v9515_v29, %v3454_v17  ;;  %4657 = vrot.lane.b32.xlu0 %v8654_v19, %s9455_s22  ;;  %v2878_v43 = vadd.f32 %v9520_v45, %v2850_v31  ;;  %v9521_v42 = vrot.slane %v8255_v13, 2  ;;  %v3571_v19 = vadd.f32 %v9522_v40, %v3521_v52  ;;  %v9523_v17 = vld [vmem:[#allocation86_spill] sm:$0xff]  ;;  %v9527_v31 = vld [vmem:[#allocation91_spill] sm:$0xff]  ;;  %v9528_v13 = vld [vmem:[#allocation92_spill] sm:$0xff] }
 0xb1e   : > { %v4673_v58 = vsel %vm684_vm9, %v4671_v48, %v9519_v55  ;;  %v4114_v1 = vpop.permute.xlu0 %4113  ;;  %v4112_v32 = vpop.permute.xlu1 %4111  ;;  %v3472_v51 = vadd.f32 %v8453_v2, %v3148_v49  ;;  %v3647_v7 = vadd.f32 %v9524_v21, %v3597_v47  ;;  %v3646_v20 = vadd.f32 %v9525_v15, %v3596_v23  ;;  %v9526_v48 = vld [vmem:[#allocation81_spill] sm:$0xff]  ;;  %v9529_v49 = vld [vmem:[#allocation82_spill] sm:$0xff]  ;;  %v9531_v16 = vld [vmem:[#allocation104_spill] sm:$0xff] }
 0xb1f   : > { %v3473_v50 = vadd.f32 %v9521_v42, %v3149_v25  ;;  %v3548_v11 = vadd.f32 %v9523_v17, %v3498_v41  ;;  %v4087_v61 = vrot.slane %v8729_v62, 4  ;;  %v3621_v60 = vadd.f32 %v9527_v31, %v3571_v19  ;;  %v9530_v41 = vld [vmem:[#allocation103_spill] sm:$0xff]  ;;  %v9533_v55 = vld [vmem:[#allocation97_spill] sm:$0xff]  ;;  %v9534_v42 = vld [vmem:[#allocation98_spill] sm:$0xff] }
 0xb20   : > { %4676 = vrot.lane.b32.xlu1 %v4673_v58, %s9455_s22  ;;  %v4088_v52 = vrot.slane %v8745_v35, 4  ;;  %v3182_v2 = vadd.f32 %v8401_v28, %v2892_v26  ;;  %v3522_v29 = vadd.f32 %v9529_v49, %v3472_v51  ;;  %v3697_v8 = vadd.f32 %v9530_v41, %v3647_v7  ;;  %v9535_v40 = vld [vmem:[#allocation63_spill] sm:$0xff]  ;;  %v9536_v19 = vld [vmem:[#allocation88_spill] sm:$0xff]  ;;  %v9537_v26 = vld [vmem:[#allocation114_spill] sm:$0xff] }
 0xb21   : > { %v3523_v18 = vadd.f32 %v9526_v48, %v3473_v50  ;;  %v3598_v25 = vadd.f32 %v9528_v13, %v3548_v11  ;;  %4678 = vrot.lane.b32.xlu0 %v4675_v0, %s9455_s22  ;;  %v3696_v62 = vadd.f32 %v9531_v16, %v3646_v20  ;;  %v3165_v47 = vadd.f32 %v8389_v54, %v2878_v43  ;;  %v9538_v11 = vld [vmem:[#allocation115_spill] sm:$0xff]  ;;  %v9539_v21 = vld [vmem:[#allocation93_spill] sm:$0xff]  ;;  %v9541_v43 = vld [vmem:[#allocation108_spill] sm:$0xff]  ;;  %s9582_s22 = sshll.u32 %s5856_s21, 3 }
 0xb22   : > { %v3671_v45 = vadd.f32 %v9533_v55, %v3621_v60  ;;  %v4137_v50 = vpop.permute.xlu0 %4136  ;;  %v4116_v58 = vpop.permute.xlu1 %4115  ;;  %v3224_v35 = vadd.f32 %v9535_v40, %v3182_v2  ;;  %v3572_v28 = vadd.f32 %v9536_v19, %v3522_v29  ;;  %v3747_v17 = vadd.f32 %v9537_v26, %v3697_v8  ;;  %v9540_v15 = vld [vmem:[#allocation107_spill] sm:$0xff]  ;;  %v9542_v48 = vld [vmem:[#allocation62_spill] sm:$0xff]  ;;  %v9544_v13 = vld [vmem:[#allocation65_spill] sm:$0xff]  ;;  %s211_s8 = scalar_lea.vmem [#allocation9], %s9582_s22 }
 0xb23   : > { %v3573_v23 = vadd.f32 %v9532_v63, %v3523_v18  ;;  %v3648_v0 = vadd.f32 %v9534_v42, %v3598_v25  ;;  %v3746_v51 = vadd.f32 %v9538_v11, %v3696_v62  ;;  %v3203_v18 = vadd.f32 %v9542_v48, %v3165_v47  ;;  %v9543_v31 = vld [vmem:[#allocation94_spill] sm:$0xff]  ;;  %v9545_v2 = vld [vmem:[#allocation99_spill] sm:$0xff]  ;;  %v9546_v29 = vld [vmem:[#allocation116_spill] sm:$0xff] }
 0xb24   : > { %v3721_v54 = vadd.f32 %v9540_v15, %v3671_v45  ;;  %4759 = vperm.xlu1 %5530, %v8788_v46   ;;  %v3622_v60 = vadd.f32 %v9543_v31, %v3572_v28  ;;  %v3266_v25 = vadd.f32 %v9544_v13, %v3224_v35  ;;  %v9547_v63 = vld [vmem:[#allocation100_spill] sm:$0xff]  ;;  %v4077_v55 = vadd.f32 %v8693_v12, %v3747_v17  ;;  %v9549_v40 = vld [vmem:[#allocation67_spill] sm:$0xff]  ;;  %v9554_v31 = vld [vmem:[#allocation69_spill] sm:$0xff] }
 0xb25   : > { %v3623_v7 = vadd.f32 %v9539_v21, %v3573_v23  ;;  %v3698_v20 = vadd.f32 %v9541_v43, %v3648_v0  ;;  %4847 = vperm.xlu0 %5531, %v8788_v46   ;;  %v4076_v45 = vadd.f32 %v8706_v56, %v3746_v51  ;;  %v4089_v47 = vsel %vm688_vm11, %v4087_v61, %v4088_v52  ;;  %v9548_v42 = vld [vmem:[#allocation64_spill] sm:$0xff] }
 0xb26   : > { %v3771_v41 = vadd.f32 %v9546_v29, %v3721_v54  ;;  %v4141_v16 = vpop.permute.xlu0 %4140  ;;  %v4139_v62 = vpop.permute.xlu1 %4138  ;;  %v3672_v23 = vadd.f32 %v9547_v63, %v3622_v60  ;;  %v3245_v0 = vadd.f32 %v9548_v42, %v3203_v18  ;;  %v3308_v35 = vadd.f32 %v9549_v40, %v3266_v25  ;;  %v9550_v19 = vld [vmem:[#allocation112_spill] sm:$0xff]  ;;  %v9555_v60 = vld [vmem:[#allocation111_spill] sm:$0xff] }
 0xb27   : > { %v3673_v49 = vadd.f32 %v9545_v2, %v3623_v7  ;;  %v3748_v8 = vadd.f32 %v8438_v39, %v3698_v20  ;;  %v5703_v26 = vmov 3   ;;  %v5704_v11 = vmov 2   ;;  %v9551_v39 = vld [vmem:[#allocation113_spill] sm:$0xff] }
 0xb28   : > { %5532 = vset.pattern.permute.xlu1 %v5704_v11  ;;  %v3722_v21 = vadd.f32 %v9551_v39, %v3672_v23  ;;  %v4121_v7 = vadd.f32 %v4114_v1, %v4077_v55  ;;  %v4120_v15 = vadd.f32 %v4112_v32, %v4076_v45  ;;  %v4090_v12 = vrot.slane %v8748_v3, 4  ;;  %v9553_v1 = vld [vmem:[#allocation66_spill] sm:$0xff] }
 0xb29   : > { %v3723_v28 = vadd.f32 %v9550_v19, %v3673_v49  ;;  %5534 = vset.pattern.permute.xlu0 %v5703_v26  ;;  %4770 = vperm.xlu1 %5532, %v8788_v46   ;;  %v4095_v56 = vadd.f32 %v4089_v47, %v3771_v41  ;;  %v9552_v61 = vrot.slane %v8640_v14, 4  ;;  %v3287_v32 = vadd.f32 %v9553_v1, %v3245_v0  ;;  %v9558_v47 = vld [vmem:[#allocation71_spill] sm:$0xff]  ;;  %v9559_v0 = vld [vmem:[#allocation76_spill] sm:$0xff]  ;;  %v9560_v26 = vld [vmem:[#allocation74_spill] sm:$0xff] }
 0xb2a   : > { %4781 = vperm.xlu0 %5534, %v8788_v46   ;;  %v4164_v51 = vpop.permute.xlu0 %4163  ;;  %v4162_v54 = vpop.permute.xlu1 %4161  ;;  %v3772_v20 = vadd.f32 %v8465_v36, %v3722_v21  ;;  %v3350_v3 = vadd.f32 %v9554_v31, %v3308_v35  ;;  %v3776_v13 = vmul.f32 %v9555_v60, %v7494_v57  ;;  %v3793_v25 = vmul.f32 %v8393_v38, %v7509_v5  ;;  %v9556_v36 = vld [vmem:[#allocation68_spill] sm:$0xff]  ;;  %v9563_v1 = vld [vmem:[#allocation118_spill] sm:$0xff] }
 0xb2b   : > { %v4078_v17 = vadd.f32 %v9552_v61, %v3748_v8  ;;  %v3773_v43 = vadd.f32 %v8463_v10, %v3723_v28  ;;  %v4171_v48 = vadd.f32 %v4164_v51, %v4121_v7  ;;  %v4170_v18 = vadd.f32 %v4162_v54, %v4120_v15  ;;  %v9557_v8 = vld [vmem:[#allocation72_spill] sm:$0xff] }
 0xb2c   : > { %v4145_v14 = vadd.f32 %v4137_v50, %v4095_v56  ;;  %v4091_v49 = vsel %vm688_vm11, %v4088_v52, %v4090_v12  ;;  %v5705_v29 = vmov 12   ;;  %v5706_v10 = vmov 10  }
 0xb2d   : > { %v4122_v2 = vadd.f32 %v4116_v58, %v4078_v17  ;;  %5533 = vset.pattern.permute.xlu1 %v5706_v10  ;;  %v3329_v41 = vadd.f32 %v9556_v36, %v3287_v32  ;;  %v3392_v63 = vadd.f32 %v9557_v8, %v3350_v3  ;;  %v4097_v45 = vadd.f32 %v4090_v12, %v3773_v43 }
 0xb2e   : > { %5537 = vset.pattern.permute.xlu0 %v5705_v29  ;;  %v4187_v23 = vpop.permute.xlu0 %4186  ;;  %4858 = vperm.xlu1 %5533, %v8788_v46   ;;  %v4166_v55 = vpop.permute.xlu1 %4165  ;;  %v4096_v38 = vadd.f32 %v4091_v49, %v3772_v20  ;;  %v3799_v42 = vrot.slane %v3793_v25, 4  ;;  %v3782_v35 = vrot.slane %v3776_v13, 4  ;;  %v5707_v39 = vmov 6   ;;  %v9565_v25 = vld [vmem:[#allocation120_spill] sm:$0xff] }
 0xb2f   : > { %4880 = vperm.xlu0 %5537, %v8788_v46   ;;  %v4195_v50 = vadd.f32 %v4187_v23, %v4145_v14  ;;  %v4172_v58 = vadd.f32 %v4166_v55, %v4122_v2  ;;  %v3371_v52 = vadd.f32 %v9558_v47, %v3329_v41  ;;  %v3434_v40 = vadd.f32 %v9559_v0, %v3392_v63 }
 0xb30   : > { %v4147_v19 = vadd.f32 %v4141_v16, %v4097_v45  ;;  %v4146_v28 = vadd.f32 %v4139_v62, %v4096_v38  ;;  %v5708_v7 = vmov 11   ;;  %v9561_v16 = vrot.slane %v8470_v44, 4  ;;  %v9567_v38 = vld [vmem:[#allocation121_spill] sm:$0xff] }
 0xb31   : > { %v3413_v11 = vadd.f32 %v9560_v26, %v3371_v52  ;;  %v9562_v61 = vrot.slane %v8427_v22, 4  ;;  %v5709_v60 = vmov 15   ;;  %v5710_v13 = vmov 4   ;;  %v9564_v22 = vld [vmem:[#allocation117_spill] sm:$0xff] }
 0xb32   : > { %v4191_v21 = vpop.permute.xlu0 %4190  ;;  %5535 = vset.pattern.permute.xlu1 %v5708_v7  ;;  %v4189_v15 = vpop.permute.xlu1 %4188  ;;  %v3801_v62 = vsel %vm688_vm11, %v3799_v42, %v9561_v16  ;;  %v4399_v29 = vstv %s8869_s5  ;;  %v8888_v10 = vstv %s5408_s26  ;;  %v5711_v63 = vmov 5   ;;  %s5021_s5 = sshll.u32 %s211_s8, 4  ;;  %s5022_s5 = int_to_ptr.vmem [resolvable:$true] %s5021_s5 }
 0xb33   : > { %5540 = vset.pattern.permute.xlu0 %v5707_v39  ;;  %v4197_v12 = vadd.f32 %v4191_v21, %v4147_v19  ;;  %v4196_v56 = vadd.f32 %v4189_v15, %v4146_v28  ;;  %4869 = vperm.xlu1 %5535, %v8788_v46   ;;  %v3784_v17 = vsel %vm688_vm11, %v3782_v35, %v9562_v61  ;;  %v9569_v28 = vld [vmem:[#allocation75_spill] sm:$0xff]  ;;  %v5712_v39 = vmov 13  }
 0xb34   : > { %4814 = vperm.xlu0 %5540, %v8788_v46   ;;  %v3806_v51 = vadd.f32 %v3801_v62, %v3434_v40  ;;  %v3789_v54 = vadd.f32 %v3784_v17, %v3413_v11  ;;  %v4401_v23 = vmul.f32 %v4399_v29, %v7491_v34  ;;  %v4417_v55 = vmul.f32 %v8888_v10, %v7509_v5  ;;  %v9568_v34 = vld [vmem:[#allocation70_spill] sm:$0xff] }
 0xb35   : > { %v8901_v45 = vmul.f32 %v8888_v10, %v7506_v37  ;;  %v4402_v42 = vmul.f32 %v4399_v29, %v7560_v6  ;;  %v5713_v17 = vmov 14   ;;  %vm9570_vm11 = vcmask 1046528  }
 0xb36   : > { %v4214_v43 = vpop.permute.xlu0 %4213  ;;  %v4212_v20 = vpop.permute.xlu1 %4211  ;;  %v3848_v32 = vadd.f32 %v9563_v1, %v3806_v51  ;;  %v3827_v44 = vadd.f32 %v9564_v22, %v3789_v54  ;;  %v4407_v35 = vrot.slane %v4401_v23, 6  ;;  %v4423_v19 = vrot.slane %v4417_v55, 6  ;;  %vm9571_vm1 = vmmov %vm9570_vm11 }
 0xb37   : > { %v8881_v31 = vadd.f32 %v4214_v43, %v4171_v48  ;;  %v4220_v3 = vadd.f32 %v4212_v20, %v4170_v18  ;;  %5536 = vset.pattern.permute.xlu1 %v5710_v13  ;;  %v9566_v48 = vld [vmem:[#allocation119_spill] sm:$0xff]  ;;  %v5715_v22 = vmov 0   ;;  %vm9572_vm8 = vmmov %vm9571_vm1 }
 0xb38   : > { %5543 = vset.pattern.permute.xlu0 %v5709_v60  ;;  %4792 = vperm.xlu1 %5536, %v8788_v46   ;;  %v3890_v14 = vadd.f32 %v9565_v25, %v3848_v32  ;;  %v3869_v36 = vadd.f32 %v9566_v48, %v3827_v44  ;;  %vm9573_vm10 = vmmov %vm9571_vm1 }
 0xb39   : > { %4913 = vperm.xlu0 %5543, %v8788_v46  }
 0xb3a   : > { %v4237_v2 = vpop.permute.xlu0 %4236  ;;  %v4216_v49 = vpop.permute.xlu1 %4215  ;;  %v3932_v18 = vadd.f32 %v8610_v24, %v3890_v14  ;;  %v3911_v47 = vadd.f32 %v9567_v38, %v3869_v36  ;;  %v5716_v14 = vmov 8  }
 0xb3b   : > { %v8892_v41 = vadd.f32 %v4237_v2, %v4195_v50  ;;  %v8894_v8 = vadd.f32 %v4216_v49, %v4172_v58  ;;  %v4400_v58 = vmul.f32 %v4399_v29, %v7494_v57 }
 0xb3c   : > { %5538 = vset.pattern.permute.xlu1 %v5711_v63  ;;  %v3974_v52 = vadd.f32 %v8665_v4, %v3932_v18  ;;  %v3953_v0 = vadd.f32 %v9568_v34, %v3911_v47  ;;  %v4424_v4 = vrot.slane %v8901_v45, 6 }
 0xb3d   : > { %4803 = vperm.xlu1 %5538, %v8788_v46   ;;  %v4406_v57 = vrot.slane %v4400_v58, 6 }
 0xb3e   : > { %v4241_v24 = vpop.permute.xlu0 %4240  ;;  %v4239_v50 = vpop.permute.xlu1 %4238  ;;  %v4016_v5 = vadd.f32 %v8726_v59, %v3974_v52  ;;  %v3995_v26 = vadd.f32 %v9569_v28, %v3953_v0  ;;  %v4409_v59 = vrot.slane %v4402_v42, 6 }
 0xb3f   : > { %v8910_v40 = vadd.f32 %v4241_v24, %v4197_v12  ;;  %v8912_v37 = vadd.f32 %v4239_v50, %v4196_v56  ;;  %v4425_v12 = vsel %vm684_vm9, %v4423_v19, %v4424_v4  ;;  %v4408_v62 = vsel %vm684_vm9, %v4406_v57, %v4407_v35 }
 0xb40   : > { %v4058_v11 = vadd.f32 %v8780_v53, %v4016_v5  ;;  %v4037_v7 = vadd.f32 %v8754_v9, %v3995_v26  ;;  %v4410_v56 = vsel %vm684_vm9, %v4407_v35, %v4409_v59 }
 0xb41   : > { %5539 = vset.pattern.permute.xlu1 %v5712_v39  ;;  %v4414_v53 = vadd.f32 %v4410_v56, %v8759_v27  ;;  %v5714_v27 = vmov 7  }
 0xb42   : > { %v4446_v6 = vpop.permute.xlu0 %4445  ;;  %4891 = vperm.xlu1 %5539, %v8788_v46   ;;  %v4262_v21 = vpop.permute.xlu1 %4261  ;;  %v4430_v16 = vadd.f32 %v4425_v12, %v4058_v11  ;;  %v4413_v54 = vadd.f32 %v4408_v62, %v4037_v7 }
 0xb43   : > { %v4270_v15 = vadd.f32 %v4262_v21, %v4220_v3 }
 0xb44   : > { %v4451_v20 = vadd.f32 %v4446_v6, %v4413_v54 }
 0xb46   : > { %v4467_v61 = vpop.permute.xlu0 %4466  ;;  %5541 = vset.pattern.permute.xlu1 %v5713_v17  ;;  %v4448_v51 = vpop.permute.xlu1 %4447 }
 0xb47   : > { %v8925_v43 = vadd.f32 %v4467_v61, %v4430_v16  ;;  %v8927_v9 = vadd.f32 %v4448_v51, %v4414_v53  ;;  %4902 = vperm.xlu1 %5541, %v8788_v46  }
 0xb4a   : > { %v4488_v1 = vpop.permute.xlu0 %4487  ;;  %v8930_v32 = vpop.permute.xlu1 %4468 }
 0xb4b   : > { %v8932_v3 = vadd.f32 %v4488_v1, %v4451_v20  ;;  %5542 = vset.pattern.permute.xlu1 %v5714_v27 }
 0xb4c   : > { %4825 = vperm.xlu1 %5542, %v8788_v46  }
 0xb4e   : > { %v8935_v60 = vpop.permute.xlu0 %4508  ;;  %v8937_v13 = vpop.permute.xlu1 %4489 }
 0xb50   : > { %5544 = vset.pattern.permute.xlu1 %v5715_v22 }
 0xb51   : > { %4748 = vperm.xlu1 %5544, %v8788_v46  }
 0xb52   : > { %v4264_v44 = vpop.permute.xlu0 %4263  ;;  %v8940_v25 = vpop.permute.xlu1 %4510 }
 0xb53   : > { %v4271_v0 = vadd.f32 %v4264_v44, %v8881_v31 }
 0xb55   : > { %5545 = vset.pattern.permute.xlu1 %v5716_v14 }
 0xb56   : > { %v4287_v2 = vpop.permute.xlu0 %4286  ;;  %4836 = vperm.xlu1 %5545, %v8788_v46   ;;  %v4266_v49 = vpop.permute.xlu1 %4265 }
 0xb57   : > { %v4272_v26 = vadd.f32 %v4266_v49, %v8894_v8  ;;  %v4295_v57 = vadd.f32 %v4287_v2, %v8892_v41  ;;  %v4419_v8 = vmul.f32 %v8888_v10, %v7569_v33  ;;  %v4494_v49 = vadd.f32 %v8937_v13, %v8927_v9  ;;  %v9574_v13 = vld [vmem:[#allocation16_spill] sm:$0xff] }
 0xb58   : > { %v4714_v9 = vstv %s8962_s27  ;;  %s5019_s27 = scalar_lea.hbm %s9085_s3, %s5432_s10 }
 0xb59   : > { %v4426_v1 = vrot.slane %v4419_v8, 6 }
 0xb5a   : > { %v4291_v29 = vpop.permute.xlu0 %4290  ;;  %v4289_v48 = vpop.permute.xlu1 %4288 }
 0xb5b   : > { %v4297_v7 = vadd.f32 %v4291_v29, %v8910_v40  ;;  %v4296_v16 = vadd.f32 %v4289_v48, %v8912_v37  ;;  %v4427_v33 = vsel %vm684_vm9, %v4424_v4, %v4426_v1  ;;  %vm4979_vm9 = vcmask 130048  }
 0xb5c   : > { %v4431_v2 = vadd.f32 %v4427_v33, %v8785_v30 }
 0xb5e   : > { %v4532_v36 = vpop.permute.xlu0 %4531  ;;  %v4530_v18 = vpop.permute.xlu1 %4529 }
 0xb5f   : > { %v4535_v45 = vadd.f32 %v4530_v18, %v8932_v3 }
 0xb62   : > { %v8943_v63 = vpop.permute.xlu0 %4552  ;;  %v8945_v23 = vpop.permute.xlu1 %4550 }
 0xb66   : > { %v4314_v55 = vpop.permute.xlu0 %4313  ;;  %v4312_v38 = vpop.permute.xlu1 %4311 }
 0xb67   : > { %v4321_v5 = vadd.f32 %v4314_v55, %v4271_v0  ;;  %v4320_v35 = vadd.f32 %v4312_v38, %v4270_v15  ;;  %v4711_v55 = vstv %s8959_s11  ;;  %v4473_v38 = vadd.f32 %v8930_v32, %v4431_v2 }
 0xb69   : > { %v4515_v30 = vadd.f32 %v8940_v25, %v4473_v38 }
 0xb6a   : > { %v4337_v47 = vpop.permute.xlu0 %4336  ;;  %v4316_v52 = vpop.permute.xlu1 %4315 }
 0xb6b   : > { %v4322_v6 = vadd.f32 %v4316_v52, %v4272_v26  ;;  %v4345_v31 = vadd.f32 %v4337_v47, %v4295_v57  ;;  %v4536_v47 = vadd.f32 %v4532_v36, %v4494_v49 }
 0xb6e   : > { %v4341_v24 = vpop.permute.xlu0 %4340  ;;  %v4339_v50 = vpop.permute.xlu1 %4338 }
 0xb6f   : > { %v4347_v62 = vadd.f32 %v4341_v24, %v4297_v7  ;;  %v4346_v41 = vadd.f32 %v4339_v50, %v4296_v16  ;;  %v4514_v24 = vadd.f32 %v8935_v60, %v8925_v43 }
 0xb72   : > { %v4574_v58 = vpop.permute.xlu0 %4573  ;;  %v4572_v42 = vpop.permute.xlu1 %4571 }
 0xb73   : > { %v4578_v50 = vadd.f32 %v4574_v58, %v4536_v47  ;;  %v4577_v0 = vadd.f32 %v4572_v42, %v4535_v45 }
 0xb76   : > { %v8947_v34 = vpop.permute.xlu0 %4594  ;;  %v8949_v46 = vpop.permute.xlu1 %4592 }
 0xb7a   : > { %v4364_v19 = vpop.permute.xlu0 %4363  ;;  %v4362_v28 = vpop.permute.xlu1 %4361 }
 0xb7b   : > { %v4371_v11 = vadd.f32 %v4364_v19, %v4321_v5  ;;  %v4370_v39 = vadd.f32 %v4362_v28, %v4320_v35  ;;  %v4712_v5 = vmul.f32 %v4711_v55, %v9574_v13  ;;  %v4557_v35 = vadd.f32 %v8943_v63, %v4515_v30 }
 0xb7c   : > { %v4556_v19 = vadd.f32 %v8945_v23, %v4514_v24 }
 0xb7d   : > { %v4688_v21 = vrot.slane %v4371_v11, 1  ;;  %v4687_v59 = vrot.slane %v4370_v39, 1  ;;  %v4599_v18 = vadd.f32 %v8947_v34, %v4557_v35  ;;  %v4715_v58 = vadd.f32 %v4714_v9, %v4712_v5 }
 0xb7e   : > { %v4387_v12 = vpop.permute.xlu0 %4386  ;;  %v4366_v56 = vpop.permute.xlu1 %4365  ;;  %v4598_v43 = vadd.f32 %v8949_v46, %v4556_v19  ;;  %v4735_v46 = vstv %s5425_s20  ;;  %s5610_s20 = scalar_lea.vmem %s5022_s5, 128 }
 0xb7f   : > { %v4372_v53 = vadd.f32 %v4366_v56, %v4322_v6  ;;  %v4689_v15 = vsel %vm9570_vm11, %v4687_v59, %v4688_v21  ;;  %v4395_v61 = vadd.f32 %v4387_v12, %v4345_v31  ;;  %v4731_v12 = vstv %s5424_s30  ;;  %s5007_s30 = scalar_lea.sflag [#allocation4], %s5856_s21  ;;  %p5611_p12 = scmp.ne.s32.totalorder %s5022_s5, %s5610_s20 }
 0xb81   : > { %v4690_v17 = vrot.slane %v4372_v53, 1  ;;  %v4699_v27 = vrot.slane %v4395_v61, 1  ;;  %p5612_p13 = pnand %p5611_p12, %p9583_p10 }
 0xb82   : > { %v4389_v54 = vpop.permute.xlu1 %4388 }
 0xb83   : > { %v4391_v51 = vpop.permute.xlu0 %4390  ;;  %v4396_v20 = vadd.f32 %v4389_v54, %v4346_v41  ;;  %v4691_v37 = vsel %vm9571_vm1, %v4688_v21, %v4690_v17  ;;  %v4716_v21 = vmul.f32 0.5, %v4715_v58  ;;  %v4752_v17 = vlaneseq  ;;  %p5613_p0 = pneg %p5612_p13 }
 0xb84   : > { %v4397_v40 = vadd.f32 %v4391_v51, %v4347_v62 }
 0xb85   : > { %v4700_v44 = vrot.slane %v4396_v20, 1  ;;  %5549 = vtanh.f32 %v4716_v21 }
 0xb86   : > { %v4702_v22 = vrot.slane %v4397_v40, 1  ;;  %v4614_v14 = vpop.permute.xlu1 %4613 }
 0xb87   : > { %v4616_v10 = vpop.permute.xlu0 %4615  ;;  %v4701_v48 = vsel %vm9573_vm10, %v4699_v27, %v4700_v44  ;;  %v4619_v36 = vadd.f32 %v4614_v14, %v4577_v0 }
 0xb88   : > { %v4703_v29 = vsel %vm9572_vm8, %v4700_v44, %v4702_v22  ;;  %v4620_v32 = vadd.f32 %v4616_v10, %v4578_v50 }
 0xb8a   : > { %v4635_v4 = vpop.permute.xlu1 %4634 }
 0xb8b   : > { %v4637_v52 = vpop.permute.xlu0 %4636  ;;  %v4640_v26 = vadd.f32 %v4635_v4, %v4598_v43 }
 0xb8c   : > { %v4641_v42 = vadd.f32 %v4637_v52, %v4599_v18 }
 0xb8e   : > { %v4656_v3 = vpop.permute.xlu1 %4655 }
 0xb8f   : > { %v4658_v28 = vpop.permute.xlu0 %4657  ;;  %v4661_v25 = vadd.f32 %v4656_v3, %v4619_v36 }
 0xb90   : > { %v4662_v60 = vadd.f32 %v4658_v28, %v4620_v32 }
 0xb91   : > { %v4694_v39 = vadd.f32 %v4689_v15, %v4661_v25 }
 0xb92   : > { %v4695_v11 = vadd.f32 %v4691_v37, %v4662_v60  ;;  %v4677_v57 = vpop.permute.xlu1 %4676  ;;  %v5550_v40 = vpop.eup %5549  ;;  %v8984_v37 = vshrl.u32 %v4752_v17, 7 }
 0xb93   : > { %v4679_v63 = vpop.permute.xlu0 %4678  ;;  %v4682_v6 = vadd.f32 %v4677_v57, %v4640_v26  ;;  %v4718_v20 = vadd.f32 1.0, %v5550_v40 }
 0xb94   : > { %v4683_v23 = vadd.f32 %v4679_v63, %v4641_v42  ;;  %v4765_v33 = vsub.s32 1, %v8984_v37  ;;  %v4787_v10 = vsub.s32 3, %v8984_v37  ;;  %v4776_v49 = vsub.s32 2, %v8984_v37 }
 0xb95   : > { %v4706_v7 = vadd.f32 %v4701_v48, %v4682_v6  ;;  %v8986_v44 = vmul.f32 0.5, %v4718_v20  ;;  %v4820_v48 = vsub.s32 6, %v8984_v37  ;;  %v4831_v4 = vsub.s32 7, %v8984_v37 }
 0xb96   : > { %v4707_v59 = vadd.f32 %v4703_v29, %v4683_v23  ;;  %v4798_v29 = vsub.s32 4, %v8984_v37 }
 0xb97   : > { %v4708_v34 = vadd.f32 %v4706_v7, %v4694_v39  ;;  %v4809_v7 = vsub.s32 5, %v8984_v37 }
 0xb98   : > { %v4709_v56 = vadd.f32 %v4707_v59, %v4695_v11 }
 0xb99   : > { %v4732_v31 = vmul.f32 %v4731_v12, %v4708_v34 }
 0xb9a   : > { %v4733_v16 = vmul.f32 %v4731_v12, %v4709_v56  ;;  %v4754_v12 = vsub.s32 0, %v8984_v37 }
 0xb9b   : > { %v4736_v8 = vadd.f32 %v4735_v46, %v4732_v31 }
 0xb9c   : > { %v4737_v53 = vadd.f32 %v4735_v46, %v4733_v16 }
 0xb9d   : > { %v4738_v41 = vmul.f32 0.5, %v4736_v8 }
 0xb9e   : > { %v4739_v62 = vmul.f32 0.5, %v4737_v53 }
 0xb9f   : > { %v4760_v61 = vpop.permute.xlu1 %4759 }
 0xba0   : > { %5551 = vtanh.f32 %v4739_v62  ;;  %v4848_v15 = vpop.permute.xlu0 %4847  ;;  %v4762_v47 = vadd.f32 %v4760_v61, %v8986_v44 }
 0xba1   : > { %5553 = vtanh.f32 %v4738_v41  ;;  %v4850_v38 = vadd.f32 %v4848_v15, %v8986_v44 }
 0xba4   : > { %v4771_v54 = vpop.permute.xlu1 %4770 }
 0xba5   : > { %v4782_v51 = vpop.permute.xlu0 %4781  ;;  %v4773_v50 = vadd.f32 %v4771_v54, %v8986_v44 }
 0xba6   : > { %v4784_v30 = vadd.f32 %v4782_v51, %v8986_v44 }
 0xba9   : > { %v4859_v27 = vpop.permute.xlu1 %4858 }
 0xbaa   : > { %v4881_v1 = vpop.permute.xlu0 %4880  ;;  %v4861_v13 = vadd.f32 %v4859_v27, %v8986_v44 }
 0xbab   : > { %v4883_v0 = vadd.f32 %v4881_v1, %v8986_v44 }
 0xbad   : > { %v5552_v22 = vpop.eup %5551 }
 0xbae   : > { %v5554_v14 = vpop.eup %5553  ;;  %v4743_v2 = vadd.f32 1.0, %v5552_v22  ;;  %v4870_v52 = vpop.permute.xlu1 %4869 }
 0xbaf   : > { %v4742_v55 = vadd.f32 1.0, %v5554_v14  ;;  %v4815_v45 = vpop.permute.xlu0 %4814  ;;  %v4872_v35 = vadd.f32 %v4870_v52, %v8986_v44 }
 0xbb0   : > { %v4745_v24 = vmul.f32 0.5, %v4743_v2  ;;  %v4817_v5 = vadd.f32 %v4815_v45, %v8986_v44 }
 0xbb1   : > { %v8999_v9 = vmul.f32 0.5, %v4742_v55 }
 0xbb2   : > { %v4854_v19 = vrot.slane %v4745_v24, %v4765_v33  ;;  %v4887_v32 = vrot.slane %v4745_v24, %v4798_v29  ;;  %v4865_v36 = vrot.slane %v4745_v24, %v4776_v49  ;;  %v4876_v28 = vrot.slane %v4745_v24, %v4787_v10 }
 0xbb3   : > { %v4766_v3 = vrot.slane %v8999_v9, %v4765_v33  ;;  %v4788_v18 = vrot.slane %v8999_v9, %v4787_v10  ;;  %v4777_v43 = vrot.slane %v8999_v9, %v4776_v49  ;;  %v4821_v60 = vrot.slane %v8999_v9, %v4820_v48  ;;  %v4793_v39 = vpop.permute.xlu1 %4792 }
 0xbb4   : > { %v4855_v25 = vadd.f32 %v4854_v19, %v4850_v38  ;;  %v4888_v58 = vadd.f32 %v4887_v32, %v4883_v0  ;;  %v4866_v42 = vadd.f32 %v4865_v36, %v4861_v13  ;;  %v4877_v26 = vadd.f32 %v4876_v28, %v4872_v35  ;;  %v4914_v11 = vpop.permute.xlu0 %4913 }
 0xbb5   : > { %v4767_v63 = vadd.f32 %v4766_v3, %v4762_v47  ;;  %v4789_v57 = vadd.f32 %v4788_v18, %v4784_v30  ;;  %v4778_v23 = vadd.f32 %v4777_v43, %v4773_v50  ;;  %v4822_v6 = vadd.f32 %v4821_v60, %v4817_v5 }
 0xbb6   : > { %v4856_v21 = vmul.f32 0.33333334, %v4855_v25  ;;  %v4916_v59 = vadd.f32 %v4914_v11, %v8986_v44  ;;  %v4920_v34 = vrot.slane %v4745_v24, %v4831_v4  ;;  %v4799_v46 = vrot.slane %v8999_v9, %v4798_v29 }
 0xbb7   : > { %v4768_v56 = vmul.f32 0.33333334, %v4767_v63  ;;  %v4795_v16 = vadd.f32 %v4793_v39, %v8986_v44  ;;  %v4867_v31 = vmul.f32 0.33333334, %v4866_v42  ;;  %v4810_v41 = vrot.slane %v8999_v9, %v4809_v7 }
 0xbb8   : > { %4952 = vrot.lane.b32.xlu1 %v4856_v21, %s9575_s18  ;;  %v4921_v53 = vadd.f32 %v4920_v34, %v4916_v59  ;;  %v4804_v8 = vpop.permute.xlu1 %4803  ;;  %v4755_v61 = vrot.slane %v8999_v9, %v4754_v12  ;;  %v4779_v17 = vmul.f32 0.33333334, %v4778_v23  ;;  %v4843_v51 = vrot.slane %v4745_v24, %v4754_v12 }
 0xbb9   : > { %4924 = vrot.lane.b32.xlu0 %v4768_v56, %s9575_s18  ;;  %v4800_v62 = vadd.f32 %v4799_v46, %v4795_v16  ;;  %v4806_v15 = vadd.f32 %v4804_v8, %v8986_v44  ;;  %v4878_v40 = vmul.f32 0.33333334, %v4877_v26  ;;  %v4790_v1 = vmul.f32 0.33333334, %v4789_v57  ;;  %s5717_s18 = smov [#allocation9]  }
 0xbba   : > { %v4898_v27 = vrot.slane %v4745_v24, %v4809_v7  ;;  %v4889_v10 = vmul.f32 0.33333334, %v4888_v58  ;;  %v4909_v49 = vrot.slane %v4745_v24, %v4820_v48  ;;  %v4832_v52 = vrot.slane %v8999_v9, %v4831_v4  ;;  %s5614_s16 = sshll.u32 %s5717_s18, 4  ;;  %s5615_s16 = int_to_ptr.vmem [resolvable:$false] %s5614_s16 }
 0xbbb   : > { %v4811_v54 = vadd.f32 %v4810_v41, %v4806_v15  ;;  %v4801_v14 = vmul.f32 0.33333334, %v4800_v62  ;;  %v4823_v30 = vmul.f32 0.33333334, %v4822_v6  ;;  %v4922_v5 = vmul.f32 0.33333334, %v4921_v53  ;;  %p5617_p9 = scmp.lt.s32.totalorder %s5022_s5, %s5615_s16 }
 0xbbc   : > { %4956 = vrot.lane.b32.xlu1 %v4867_v31, %s9576_s17  ;;  %v5555_v15 = vld [vmem:[%s5862_s29] sm:$0xff] }
 0xbbd   : > { %4928 = vrot.lane.b32.xlu0 %v4779_v17, %s9576_s17  ;;  %v4892_v20 = vpop.permute.xlu1 %4891  ;;  %v4812_v47 = vmul.f32 0.33333334, %v4811_v54  ;;  %s5616_s17 = scalar_lea.vmem %s5615_s16, 256 }
 0xbbe   : > { %v4894_v22 = vadd.f32 %v4892_v20, %v8986_v44  ;;  %p5618_p1 = scmp.lt.s32.totalorder %s5616_s17, %s5610_s20 }
 0xbc0   : > { %4960 = vrot.lane.b32.xlu1 %v4878_v40, %s9577_s6  ;;  %v4899_v33 = vadd.f32 %v4898_v27, %v4894_v22  ;;  %p5619_p2 = por %p5618_p1, %p5617_p9 }
 0xbc1   : > { %4932 = vrot.lane.b32.xlu0 %v4790_v1, %s9577_s6 }
 0xbc2   : > { %v4903_v2 = vpop.permute.xlu1 %4902  ;;  %v4900_v55 = vmul.f32 0.33333334, %v4899_v33  ;;  %p5620_p5 = pnand %p5619_p2, %p5613_p0 }
 0xbc3   : > { %v4905_v29 = vadd.f32 %v4903_v2, %v8986_v44 }
 0xbc4   : > { %4964 = vrot.lane.b32.xlu1 %v4889_v10, %s9578_s25 }
 0xbc5   : > { %4936 = vrot.lane.b32.xlu0 %v4801_v14, %s9578_s25  ;;  %v4910_v38 = vadd.f32 %v4909_v49, %v4905_v29 }
 0xbc7   : > { %v4826_v45 = vpop.permute.xlu1 %4825  ;;  %v4911_v24 = vmul.f32 0.33333334, %v4910_v38 }
 0xbc8   : > { %4968 = vrot.lane.b32.xlu1 %v4900_v55, %s9579_s23  ;;  %v4828_v48 = vadd.f32 %v4826_v45, %v8986_v44 }
 0xbc9   : > { %4940 = vrot.lane.b32.xlu0 %v4812_v47, %s9579_s23 }
 0xbca   : > { %v4833_v50 = vadd.f32 %v4832_v52, %v4828_v48 }
 0xbcc   : > { %4972 = vrot.lane.b32.xlu1 %v4911_v24, %s9580_s4  ;;  %v4834_v0 = vmul.f32 0.33333334, %v4833_v50  ;;  %v4749_v13 = vpop.permute.xlu1 %4748 }
 0xbcd   : > { %4944 = vrot.lane.b32.xlu0 %v4823_v30, %s9580_s4  ;;  %v4751_v35 = vadd.f32 %v4749_v13, %v8986_v44 }
 0xbcf   : > { %v4756_v19 = vadd.f32 %v4755_v61, %v4751_v35 }
 0xbd0   : > { %4976 = vrot.lane.b32.xlu1 %v4922_v5, %s9581_s28 }
 0xbd1   : > { %4948 = vrot.lane.b32.xlu0 %v4834_v0, %s9581_s28  ;;  %v4837_v37 = vpop.permute.xlu1 %4836  ;;  %v4757_v11 = vmul.f32 0.33333334, %v4756_v19 }
 0xbd2   : > { %v4839_v4 = vadd.f32 %v4837_v37, %v8986_v44 }
 0xbd4   : > { %v4844_v9 = vadd.f32 %v4843_v51, %v4839_v4 }
 0xbd6   : > { %v4845_v42 = vmul.f32 0.33333334, %v4844_v9 }
 0xc2a   : > { %v4953_v32 = vpop.permute.xlu1 %4952 }
 0xc2b   : > { %v4925_v36 = vpop.permute.xlu0 %4924  ;;  %v4993_v39 = vsel %vm4979_vm9, %v4845_v42, %v4953_v32 }
 0xc2c   : > { %v4980_v63 = vsel %vm4979_vm9, %v4757_v11, %v4925_v36 }
 0xc2e   : > { %v4957_v28 = vpop.permute.xlu1 %4956 }
 0xc2f   : > { %v4929_v3 = vpop.permute.xlu0 %4928  ;;  %v4994_v44 = vsel %vm4981_vm12, %v4993_v39, %v4957_v28 }
 0xc30   : > { %v4982_v23 = vsel %vm4981_vm12, %v4980_v63, %v4929_v3 }
 0xc32   : > { %v4961_v18 = vpop.permute.xlu1 %4960 }
 0xc33   : > { %v4933_v43 = vpop.permute.xlu0 %4932  ;;  %v4995_v6 = vsel %vm4983_vm13, %v4994_v44, %v4961_v18 }
 0xc34   : > { %v4984_v59 = vsel %vm4983_vm13, %v4982_v23, %v4933_v43 }
 0xc36   : > { %v4965_v60 = vpop.permute.xlu1 %4964 }
 0xc37   : > { %v4937_v25 = vpop.permute.xlu0 %4936  ;;  %v4996_v7 = vsel %vm4985_vm14, %v4995_v6, %v4965_v60 }
 0xc38   : > { %v4986_v12 = vsel %vm4985_vm14, %v4984_v59, %v4937_v25 }
 0xc3a   : > { %v4969_v58 = vpop.permute.xlu1 %4968 }
 0xc3b   : > { %v4941_v26 = vpop.permute.xlu0 %4940  ;;  %v4997_v56 = vsel %vm4987_vm15, %v4996_v7, %v4969_v58 }
 0xc3c   : > { %v4988_v34 = vsel %vm4987_vm15, %v4986_v12, %v4941_v26 }
 0xc3e   : > { %v4973_v57 = vpop.permute.xlu1 %4972 }
 0xc3f   : > { %v4945_v21 = vpop.permute.xlu0 %4944  ;;  %v4998_v46 = vsel %vm4989_vm2, %v4997_v56, %v4973_v57 }
 0xc40   : > { %v4990_v31 = vsel %vm4989_vm2, %v4988_v34, %v4945_v21 }
 0xc42   : > { %v4977_v16 = vpop.permute.xlu1 %4976 }
 0xc43   : > { %v4949_v53 = vpop.permute.xlu0 %4948  ;;  %v4999_v8 = vsel %vm4991_vm3, %v4998_v46, %v4977_v16 }
 0xc44   : > { %v4992_v62 = vsel %vm4991_vm3, %v4990_v31, %v4949_v53 }
 0xc45   : > { %v5002_v41 = vcombine.low %v4992_v62, %v4999_v8 }
 0xc47   : > { %v5004_v61 = vmul.f32 %v5555_v15, %v5002_v41 }
 0xc49   : > { %5005 = vst [vmem:[%s211_s8] sm:$0xff] %v5004_v61 }
 0xc4a   : > { %5623 = shalt.err (!%p5620_p5)
}
 0xc4b   : > { %s5624_s29 = scalar_lea.hbm %s5019_s27, 128  ;;  %s5628_s25 = scalar_lea.hbm %s9085_s3, 256 }
 0xc4c   : > { %p5625_p7 = scmp.ne.s32.totalorder %s5019_s27, %s5624_s29  ;;  %p5629_p8 = scmp.lt.s32.totalorder %s5019_s27, %s9085_s3 }
 0xc4d   : > { %p5630_p3 = scmp.lt.s32.totalorder %s5628_s25, %s5624_s29 }
 0xc4e   : > { %p5626_p4 = pnand %p5625_p7, %p9583_p10 }
 0xc4f   : > { %p5631_p11 = por %p5630_p3, %p5629_p8 }
 0xc50   : > { %p5627_p6 = pneg %p5626_p4 }
 0xc52   : > { %p5632_p12 = pnand %p5631_p11, %p5627_p6 }
 0xc54   : > { %5635 = shalt.err (!%p5632_p12)
}
 0xc55   : > { %5443 = dma.vmem_to_hbm [thread:$0]  (%p9583_p10), %s5022_s5, 128, %s5019_s27, %s5007_s30  }
 0xc56 PF: > { %s5033_s28 = sand.u32 1, %s5670_s12   ;;  %p9584_p13 = scmp.ne.s32.totalorder %s9132_s19, 0 }
 0xc57   : > { %p9585_p0 = scmp.ge.s32.totalorder %s5682_s15, 2  ;;  %s5034_s10 = scalar_lea.sflag [#allocation4], %s5033_s28 }
 0xc59   : > { %p5457_p9 = pnand %p9585_p0, %p9584_p13 }
 0xc5b   : > { %p5458_p1 = pneg %p5457_p9 }
 0xc5d   : > { %5665 = dma.done.wait (%p5458_p1), %s5034_s10, 128  }
 0xc5e   : > { %5667 = vsyncadd (%p5458_p1), %s5034_s10, 4294967168  ;;  %p18_p2 = scmp.ge.s32.totalorder %s5789_s24, 4   ;;  %s9586_s12 = smov %s5674_s13 }
 0xc5f   : > { %s9587_s13 = smov %s5678_s14  ;;  %s9588_s14 = smov %s5816_s7 }
 0xc60   : > { %s9589_s15 = smov %s5789_s24  ;;  %20 = sbr.rel (!%p18_p2) target bundleno = 7 (0x7), region = 87 }
 0xc65   :  { %5039 = vsyncpa [#allocation3], 1 }
 0xc66   :  { %5041 = vsyncpa [#allocation3 + $0x1], 1 }
 0xc67   :  { %5042 = vsyncpa [#allocation4], 1 }
 0xc68   :  { %5044 = vsyncpa [#allocation4 + $0x1], 1 }
 0xc69   :  { %5045 = vsyncpa [#allocation5], 1 }
 0xc6a   :  { %5047 = vsyncpa [#allocation5 + $0x1], 1 }
 0xc6b   :  { %5048 = vsyncpa [#allocation6], 1 }
 0xc6c   :  { %5050 = vsyncpa [#allocation6 + $0x1], 1 }

</bundles_post_ra>
